<compile_context>
chip_gen: v7x
topology: tpu7x:2x2x1
jax: 0.10.0
libtpu: 0.0.40
codegen_flags: <defaults>
</compile_context>

<pallas_src>
import jax
import jax.numpy as jnp
from jax.experimental import pallas as pl
from jax.experimental.pallas import tpu as pltpu

# ----------------------------- configuration --------------------------------
EMBED_DIM   = 32
NODE_DIM    = 4
NUM_NODES   = 8
GRAPH_SIZE  = NODE_DIM * NUM_NODES          # 32
OTHER_DIM   = 8
INPUT_DIM   = GRAPH_SIZE + OTHER_DIM        # 40
N_ACTIONS   = 5
N_AGENTS    = 2
NUM_LAYERS  = 2                             # number_graph_encoder_layers
N_HEADS     = 4
HEAD_DIM    = EMBED_DIM // N_HEADS          # 8
FF_DIM      = 64
Q_HIDDEN    = 32
Q_DIM       = EMBED_DIM + OTHER_DIM         # 40
NE          = NUM_NODES * EMBED_DIM         # 256  (node-folded, lane-dense width)
NF          = NUM_NODES * FF_DIM            # 512
OUT_PAD     = 128                           # lane-dense output width


# ------------------------------- kernel -------------------------------------
def global_critic_kernel(x_ref,
                         w_init_ref, b_init_ref,
                         wqkv_ref, wo_ref,
                         w1_ref, b1_ref, w2_ref, b2_ref,
                         seg_ref,
                         wq1g_ref, wq1a_ref, bqa_ref,
                         wqb_ref, bqb_ref,
                         out_ref):
    f32, bf16 = jnp.float32, jnp.bfloat16
    bb = x_ref.shape[0]
    n, e, ne = NUM_NODES, EMBED_DIM, NE

    x = x_ref[...]                               # (bb, 40) = [node feats | agent feats]
    x16 = x.astype(bf16)

    # Node embedding for all 8 nodes at once, lane-dense: (bb,40)@(40,256).
    # (agent-feature rows of the weight are zero, so no input slicing is needed.)
    h = jnp.dot(x16, w_init_ref[...], preferred_element_type=f32) + b_init_ref[...]

    seg = seg_ref[...]                           # (256, 256) bf16 block-diag head mask

    for layer in range(NUM_LAYERS):
        # Fused QKV projection (softmax scale folded into Q), lane-dense, bf16 MXU.
        qkv = jnp.dot(h.astype(bf16), wqkv_ref[layer], preferred_element_type=f32)
        q = qkv[:, :ne]                          # (bb, 256), 128-aligned slices
        k = qkv[:, ne:2 * ne]
        v = qkv[:, 2 * ne:]

        # Keys/values with the key index on sublanes, query index folded into lanes.
        k_t = jnp.tile(k.reshape(bb, n, e), (1, 1, n))        # (bb, n_k, n_q*E)
        v_t = jnp.tile(v.reshape(bb, n, e), (1, 1, n))
        q_b = jnp.broadcast_to(q[:, None, :], (bb, n, ne))    # broadcast over keys

        # Per-head scores: VPU multiply + one K=256 segment-sum matmul.
        prod = q_b * k_t                                      # (bb, n_k, n_q*E)
        s = jnp.dot(prod.reshape(bb * n, ne).astype(bf16), seg,
                    preferred_element_type=f32).reshape(bb, n, ne)

        # Flash-style softmax over the key axis (sublane reduction), late norm.
        m = jnp.max(s, axis=1, keepdims=True)
        p = jnp.exp(s - m)
        l_sum = jnp.sum(p, axis=1)                            # (bb, n_q*E)
        attn_un = jnp.sum(p * v_t, axis=1)                    # (bb, n_q*E) == h layout
        attn = attn_un * pl.reciprocal(l_sum, approx=True)

        # Output projection + residual (block-diagonal, lane-dense).
        h = h + jnp.dot(attn.astype(bf16), wo_ref[layer], preferred_element_type=f32)

        # FFN + residual (block-diagonal per node, lane-dense).
        ff = jnp.maximum(
            jnp.dot(h.astype(bf16), w1_ref[layer], preferred_element_type=f32)
            + b1_ref[layer], 0.0)
        h = h + (jnp.dot(ff.astype(bf16), w2_ref[layer], preferred_element_type=f32)
                 + b2_ref[layer])

    # q-net: graph-mean folded into wq1g (tiled wqa_graph / NUM_NODES); agent part
    # read straight from x (graph rows of wq1a are zero).
    hq = (jnp.dot(h.astype(bf16), wq1g_ref[...], preferred_element_type=f32)
          + jnp.dot(x16, wq1a_ref[...], preferred_element_type=f32)
          + bqa_ref[...])
    hq = jnp.maximum(hq, 0.0)

    # Lane-dense (128-wide, zero-padded) output store.
    out = jnp.dot(hq.astype(bf16), wqb_ref[...], preferred_element_type=f32) + bqb_ref[...]
    out_ref[...] = out.astype(out_ref.dtype)


# ------------------------------- wrapper -------------------------------------
def _round_up(x, m):
    return ((x + m - 1) // m) * m


def _kron_nodes(w):
    """(a, b) -> (NUM_NODES*a, NUM_NODES*b) block-diagonal with NUM_NODES copies."""
    return jnp.kron(jnp.eye(NUM_NODES, dtype=w.dtype), w)


def _prep_weights(params):
    """One-time weight preprocessing (block-diagonal folding, bf16 casts)."""
    f32, bf16 = jnp.float32, jnp.bfloat16
    scale = 1.0 / jnp.sqrt(jnp.float32(HEAD_DIM))

    # Node-embedding weight over the full 40-wide input (agent rows zero).
    w_init = jnp.zeros((INPUT_DIM, NE), f32).at[:GRAPH_SIZE].set(
        _kron_nodes(params['w_init']))
    b_init = jnp.tile(params['b_init'], (1, NUM_NODES))                   # (1, 256)

    wqkv, wo, w1, w2 = [], [], [], []
    for l in range(NUM_LAYERS):
        wqkv.append(jnp.concatenate(
            [_kron_nodes(params['wq'][l] * scale),
             _kron_nodes(params['wk'][l]),
             _kron_nodes(params['wv'][l])], axis=-1))                     # (256, 768)
        wo.append(_kron_nodes(params['wo'][l]))                           # (256, 256)
        w1.append(_kron_nodes(params['w1'][l]))                           # (256, 512)
        w2.append(_kron_nodes(params['w2'][l]))                           # (512, 256)
    wqkv = jnp.stack(wqkv)
    wo = jnp.stack(wo)
    w1 = jnp.stack(w1)
    w2 = jnp.stack(w2)
    b1 = jnp.tile(params['b1'], (1, 1, NUM_NODES))                        # (L, 1, 512)
    b2 = jnp.tile(params['b2'], (1, 1, NUM_NODES))                        # (L, 1, 256)

    # Block-diagonal head-segment matrix, replicated per node chunk.
    head = jnp.arange(EMBED_DIM) // HEAD_DIM
    mask = (head[:, None] == head[None, :]).astype(f32)                   # (32, 32)
    seg = _kron_nodes(mask)                                               # (256, 256)

    # q-net first layer: graph half with the node-mean folded in; agent half from x.
    wq1g = jnp.tile(params['wqa'][:EMBED_DIM] / NUM_NODES, (NUM_NODES, 1))  # (256, 32)
    wq1a = jnp.zeros((INPUT_DIM, Q_HIDDEN), f32).at[GRAPH_SIZE:].set(
        params['wqa'][EMBED_DIM:])                                        # (40, 32)
    bqa = params['bqa']                                                   # (1, 32)

    # Final layer zero-padded to a lane-dense 128-wide output.
    wqb = jnp.zeros((Q_HIDDEN, OUT_PAD), f32).at[:, :N_ACTIONS].set(params['wqb'])
    bqb = jnp.zeros((1, OUT_PAD), f32).at[:, :N_ACTIONS].set(params['bqb'])

    # Matmul operands in bf16 (accumulation stays f32 in-kernel); biases stay f32.
    return [w_init.astype(bf16), b_init,
            wqkv.astype(bf16), wo.astype(bf16),
            w1.astype(bf16), b1, w2.astype(bf16), b2,
            seg.astype(bf16),
            wq1g.astype(bf16), wq1a.astype(bf16), bqa,
            wqb.astype(bf16), bqb]


def global_critic_forward(x, params, *, block_rows=256):
    """x: (..., INPUT_DIM) float32 -> (..., N_ACTIONS) float32."""
    batch_shape = x.shape[:-1]
    bf = 1
    for d in batch_shape:
        bf *= d
    x_flat = x.reshape(bf, INPUT_DIM)

    # Block size: multiple of 8, capped so the grid has >= 2 steps whenever possible
    # (keeps both v7x TensorCores busy); VMEM bounded independently of bf.
    half = -(-bf // 2)
    bb = min(block_rows, _round_up(half, 8))
    bb = max(8, (bb // 8) * 8)
    bf_pad = _round_up(bf, bb)
    if bf_pad != bf:
        x_flat = jnp.pad(x_flat, ((0, bf_pad - bf), (0, 0)))
    grid = (bf_pad // bb,)

    weights = _prep_weights(params)

    def const_spec(arr):
        nd = arr.ndim
        return pl.BlockSpec(arr.shape, lambda i, _n=nd: (0,) * _n)   # resident weights

    in_specs = [pl.BlockSpec((bb, INPUT_DIM), lambda i: (i, 0))] + \
               [const_spec(w) for w in weights]

    out = pl.pallas_call(
        global_critic_kernel,
        out_shape=jax.ShapeDtypeStruct((bf_pad, OUT_PAD), jnp.float32),
        grid_spec=pltpu.PrefetchScalarGridSpec(
            num_scalar_prefetch=0,
            grid=grid,
            in_specs=in_specs,
            out_specs=pl.BlockSpec((bb, OUT_PAD), lambda i: (i, 0)),
        ),
        compiler_params=pltpu.CompilerParams(
            dimension_semantics=("parallel",),
            vmem_limit_bytes=48 * 1024 * 1024),
    )(x_flat, *weights)

    return out[:bf, :N_ACTIONS].reshape(*batch_shape, N_ACTIONS)


# --------------------------- pure-JAX reference -------------------------------
def global_critic_reference(x, params):
    batch_shape = x.shape[:-1]
    bf = 1
    for d in batch_shape:
        bf *= d
    agent_specific = x[..., GRAPH_SIZE:].reshape(bf, OTHER_DIM)
    nodes = x[..., :GRAPH_SIZE].reshape(bf, NUM_NODES, NODE_DIM)

    h = jnp.einsum('bnd,de->bne', nodes, params['w_init']) + params['b_init'][None]
    scale = 1.0 / jnp.sqrt(jnp.float32(HEAD_DIM))
    for l in range(NUM_LAYERS):
        q = jnp.einsum('bne,ef->bnf', h, params['wq'][l])
        k = jnp.einsum('bne,ef->bnf', h, params['wk'][l])
        v = jnp.einsum('bne,ef->bnf', h, params['wv'][l])
        heads = []
        for hd in range(N_HEADS):
            sl = slice(hd * HEAD_DIM, (hd + 1) * HEAD_DIM)
            s = jnp.einsum('bqd,bkd->bqk', q[:, :, sl], k[:, :, sl]) * scale
            s = s - jnp.max(s, axis=-1, keepdims=True)
            p = jnp.exp(s)
            p = p / jnp.sum(p, axis=-1, keepdims=True)
            heads.append(jnp.einsum('bqk,bkd->bqd', p, v[:, :, sl]))
        attn = jnp.concatenate(heads, axis=-1)
        h = h + jnp.einsum('bne,ef->bnf', attn, params['wo'][l])
        ff = jnp.maximum(
            jnp.einsum('bne,ef->bnf', h, params['w1'][l]) + params['b1'][l][None], 0.0)
        h = h + jnp.einsum('bnf,fe->bne', ff, params['w2'][l]) + params['b2'][l][None]

    graph_emb = jnp.mean(h, axis=1)
    feat = jnp.concatenate([graph_emb, agent_specific], axis=-1)
    hq = jnp.maximum(feat @ params['wqa'] + params['bqa'], 0.0)
    out = hq @ params['wqb'] + params['bqb']
    return out.reshape(*batch_shape, N_ACTIONS)


# ------------------------------- params --------------------------------------
def init_params(key):
    ks = jax.random.split(key, 16)
    s = 0.1
    f = jnp.float32
    return {
        'w_init': s * jax.random.normal(ks[0], (NODE_DIM, EMBED_DIM), f),
        'b_init': s * jax.random.normal(ks[1], (1, EMBED_DIM), f),
        'wq': s * jax.random.normal(ks[2], (NUM_LAYERS, EMBED_DIM, EMBED_DIM), f),
        'wk': s * jax.random.normal(ks[3], (NUM_LAYERS, EMBED_DIM, EMBED_DIM), f),
        'wv': s * jax.random.normal(ks[4], (NUM_LAYERS, EMBED_DIM, EMBED_DIM), f),
        'wo': s * jax.random.normal(ks[5], (NUM_LAYERS, EMBED_DIM, EMBED_DIM), f),
        'w1': s * jax.random.normal(ks[6], (NUM_LAYERS, EMBED_DIM, FF_DIM), f),
        'b1': s * jax.random.normal(ks[7], (NUM_LAYERS, 1, FF_DIM), f),
        'w2': s * jax.random.normal(ks[8], (NUM_LAYERS, FF_DIM, EMBED_DIM), f),
        'b2': s * jax.random.normal(ks[9], (NUM_LAYERS, 1, EMBED_DIM), f),
        'wqa': s * jax.random.normal(ks[10], (Q_DIM, Q_HIDDEN), f),
        'bqa': s * jax.random.normal(ks[11], (1, Q_HIDDEN), f),
        'wqb': s * jax.random.normal(ks[12], (Q_HIDDEN, N_ACTIONS), f),
        'bqb': s * jax.random.normal(ks[13], (1, N_ACTIONS), f),
    }


# -------------------------------- main ----------------------------------------
if __name__ == "__main__":
    key = jax.random.PRNGKey(0)
    k_x, k_p = jax.random.split(key)

    # x: (batch=2, seq=5, n_agents=2, input_dim=40) -> flat batch of 20 rows.
    batch, seq = 2, 5
    x = jax.random.normal(k_x, (batch, seq, N_AGENTS, INPUT_DIM), jnp.float32)
    params = init_params(k_p)

    # With bf=20 the two-step-grid cap picks bb=16 -> bf_pad=32, grid=(2,), so the
    # padded, multi-step pipeline path is exercised; large batches use block_rows=256.
    out = global_critic_forward(x, params)
    out = jax.block_until_ready(out)

    ref = global_critic_reference(x, params)
    assert out.shape == (batch, seq, N_AGENTS, N_ACTIONS), out.shape
    # bf16 matmul operands + approx reciprocal -> relaxed tolerance vs f32 reference.
    assert jnp.allclose(out, ref, atol=2e-2, rtol=2e-2), "mismatch vs reference"

    print("KERNEL_OK")
</pallas_src>

<mosaic_0001>
module attributes {stable_mosaic.version = 11 : i64} {
  func.func @global_critic_kernel(%arg0: i32, %arg1: memref<16x40xf32, #tpu.memory_space<vmem>>, %arg2: memref<40x256xbf16, #tpu.memory_space<vmem>>, %arg3: memref<1x256xf32, #tpu.memory_space<vmem>>, %arg4: memref<2x256x768xbf16, #tpu.memory_space<vmem>>, %arg5: memref<2x256x256xbf16, #tpu.memory_space<vmem>>, %arg6: memref<2x256x512xbf16, #tpu.memory_space<vmem>>, %arg7: memref<2x1x512xf32, #tpu.memory_space<vmem>>, %arg8: memref<2x512x256xbf16, #tpu.memory_space<vmem>>, %arg9: memref<2x1x256xf32, #tpu.memory_space<vmem>>, %arg10: memref<256x256xbf16, #tpu.memory_space<vmem>>, %arg11: memref<256x32xbf16, #tpu.memory_space<vmem>>, %arg12: memref<40x32xbf16, #tpu.memory_space<vmem>>, %arg13: memref<1x32xf32, #tpu.memory_space<vmem>>, %arg14: memref<32x128xbf16, #tpu.memory_space<vmem>>, %arg15: memref<1x128xf32, #tpu.memory_space<vmem>>, %arg16: memref<16x128xf32, #tpu.memory_space<vmem>>) attributes {dimension_semantics = [#tpu.dimension_semantics<parallel>], iteration_bounds = array<i64: 2>, scalar_prefetch = 0 : i64, scratch_operands = 0 : i64, tpu.core_type = #tpu.core_type<tc>, window_params = [{transform_indices = @transform_0, window_bounds = array<i64: 16, 40>}, {pipeline_mode = #tpu.pipeline_mode<synchronous>, transform_indices = @transform_1, window_bounds = array<i64: 40, 256>}, {pipeline_mode = #tpu.pipeline_mode<synchronous>, transform_indices = @transform_2, window_bounds = array<i64: 1, 256>}, {pipeline_mode = #tpu.pipeline_mode<synchronous>, transform_indices = @transform_3, window_bounds = array<i64: 2, 256, 768>}, {pipeline_mode = #tpu.pipeline_mode<synchronous>, transform_indices = @transform_4, window_bounds = array<i64: 2, 256, 256>}, {pipeline_mode = #tpu.pipeline_mode<synchronous>, transform_indices = @transform_5, window_bounds = array<i64: 2, 256, 512>}, {pipeline_mode = #tpu.pipeline_mode<synchronous>, transform_indices = @transform_6, window_bounds = array<i64: 2, 1, 512>}, {pipeline_mode = #tpu.pipeline_mode<synchronous>, transform_indices = @transform_7, window_bounds = array<i64: 2, 512, 256>}, {pipeline_mode = #tpu.pipeline_mode<synchronous>, transform_indices = @transform_8, window_bounds = array<i64: 2, 1, 256>}, {pipeline_mode = #tpu.pipeline_mode<synchronous>, transform_indices = @transform_9, window_bounds = array<i64: 256, 256>}, {pipeline_mode = #tpu.pipeline_mode<synchronous>, transform_indices = @transform_10, window_bounds = array<i64: 256, 32>}, {pipeline_mode = #tpu.pipeline_mode<synchronous>, transform_indices = @transform_11, window_bounds = array<i64: 40, 32>}, {pipeline_mode = #tpu.pipeline_mode<synchronous>, transform_indices = @transform_12, window_bounds = array<i64: 1, 32>}, {pipeline_mode = #tpu.pipeline_mode<synchronous>, transform_indices = @transform_13, window_bounds = array<i64: 32, 128>}, {pipeline_mode = #tpu.pipeline_mode<synchronous>, transform_indices = @transform_14, window_bounds = array<i64: 1, 128>}, {transform_indices = @transform_15, window_bounds = array<i64: 16, 128>}]} {
    %c0 = arith.constant 0 : index
    %c0_0 = arith.constant 0 : index
    %0 = vector.load %arg1[%c0, %c0_0] : memref<16x40xf32, #tpu.memory_space<vmem>>, vector<16x40xf32>
    %1 = arith.truncf %0 : vector<16x40xf32> to vector<16x40xbf16>
    %c0_1 = arith.constant 0 : index
    %c0_2 = arith.constant 0 : index
    %2 = vector.load %arg2[%c0_1, %c0_2] : memref<40x256xbf16, #tpu.memory_space<vmem>>, vector<40x256xbf16>
    %cst = arith.constant dense<0.000000e+00> : vector<16x256xf32>
    %3 = tpu.matmul %1, %2, %cst {dimension_numbers = #tpu.dot_dimension_numbers<[1], [0], [0], [1], [0, 0, 1, 1], [], []>} : vector<16x40xbf16>, vector<40x256xbf16>, vector<16x256xf32> -> vector<16x256xf32>
    %c0_3 = arith.constant 0 : index
    %c0_4 = arith.constant 0 : index
    %4 = vector.load %arg3[%c0_3, %c0_4] : memref<1x256xf32, #tpu.memory_space<vmem>>, vector<1x256xf32>
    %5 = vector.broadcast %4 : vector<1x256xf32> to vector<16x256xf32>
    %6 = arith.addf %3, %5 : vector<16x256xf32>
    %c0_5 = arith.constant 0 : index
    %c0_6 = arith.constant 0 : index
    %7 = vector.load %arg10[%c0_5, %c0_6] : memref<256x256xbf16, #tpu.memory_space<vmem>>, vector<256x256xbf16>
    %8 = arith.truncf %6 : vector<16x256xf32> to vector<16x256xbf16>
    %c0_7 = arith.constant 0 : index
    %c0_8 = arith.constant 0 : index
    %c0_9 = arith.constant 0 : index
    %9 = vector.load %arg4[%c0_7, %c0_8, %c0_9] : memref<2x256x768xbf16, #tpu.memory_space<vmem>>, vector<1x256x768xbf16>
    %10 = vector.shape_cast %9 : vector<1x256x768xbf16> to vector<256x768xbf16>
    %cst_10 = arith.constant dense<0.000000e+00> : vector<16x768xf32>
    %11 = tpu.matmul %8, %10, %cst_10 {dimension_numbers = #tpu.dot_dimension_numbers<[1], [0], [0], [1], [0, 0, 1, 1], [], []>} : vector<16x256xbf16>, vector<256x768xbf16>, vector<16x768xf32> -> vector<16x768xf32>
    %12 = vector.extract_strided_slice %11 {offsets = [0, 0], sizes = [16, 256], strides = [1, 1]} : vector<16x768xf32> to vector<16x256xf32>
    %13 = vector.extract_strided_slice %11 {offsets = [0, 256], sizes = [16, 256], strides = [1, 1]} : vector<16x768xf32> to vector<16x256xf32>
    %14 = vector.extract_strided_slice %11 {offsets = [0, 512], sizes = [16, 256], strides = [1, 1]} : vector<16x768xf32> to vector<16x256xf32>
    %15 = vector.shape_cast %13 : vector<16x256xf32> to vector<16x8x32xf32>
    %16 = tpu.concatenate %15, %15, %15, %15, %15, %15, %15, %15 in 2 : vector<16x8x32xf32>, vector<16x8x32xf32>, vector<16x8x32xf32>, vector<16x8x32xf32>, vector<16x8x32xf32>, vector<16x8x32xf32>, vector<16x8x32xf32>, vector<16x8x32xf32> -> vector<16x8x256xf32>
    %17 = vector.shape_cast %14 : vector<16x256xf32> to vector<16x8x32xf32>
    %18 = tpu.concatenate %17, %17, %17, %17, %17, %17, %17, %17 in 2 : vector<16x8x32xf32>, vector<16x8x32xf32>, vector<16x8x32xf32>, vector<16x8x32xf32>, vector<16x8x32xf32>, vector<16x8x32xf32>, vector<16x8x32xf32>, vector<16x8x32xf32> -> vector<16x8x256xf32>
    %19 = vector.shape_cast %12 : vector<16x256xf32> to vector<16x1x256xf32>
    %20 = vector.shape_cast %19 : vector<16x1x256xf32> to vector<16x1x256xf32>
    %21 = vector.broadcast %20 : vector<16x1x256xf32> to vector<16x8x256xf32>
    %22 = arith.mulf %21, %16 : vector<16x8x256xf32>
    %23 = vector.shape_cast %22 : vector<16x8x256xf32> to vector<128x256xf32>
    %24 = arith.truncf %23 : vector<128x256xf32> to vector<128x256xbf16>
    %cst_11 = arith.constant dense<0.000000e+00> : vector<128x256xf32>
    %25 = tpu.matmul %24, %7, %cst_11 {dimension_numbers = #tpu.dot_dimension_numbers<[1], [0], [0], [1], [0, 0, 1, 1], [], []>} : vector<128x256xbf16>, vector<256x256xbf16>, vector<128x256xf32> -> vector<128x256xf32>
    %26 = vector.shape_cast %25 : vector<128x256xf32> to vector<16x8x256xf32>
    %cst_12 = arith.constant dense<0xFF800000> : vector<16x256xf32>
    %27 = vector.multi_reduction <maximumf>, %26, %cst_12 [1] : vector<16x8x256xf32> to vector<16x256xf32>
    %28 = vector.shape_cast %27 : vector<16x256xf32> to vector<16x1x256xf32>
    %29 = vector.broadcast %28 : vector<16x1x256xf32> to vector<16x8x256xf32>
    %30 = arith.subf %26, %29 : vector<16x8x256xf32>
    %31 = math.exp %30 : vector<16x8x256xf32>
    %cst_13 = arith.constant dense<0.000000e+00> : vector<16x256xf32>
    %32 = vector.multi_reduction <add>, %31, %cst_13 [1] : vector<16x8x256xf32> to vector<16x256xf32>
    %33 = arith.mulf %31, %18 : vector<16x8x256xf32>
    %cst_14 = arith.constant dense<0.000000e+00> : vector<16x256xf32>
    %34 = vector.multi_reduction <add>, %33, %cst_14 [1] : vector<16x8x256xf32> to vector<16x256xf32>
    %35 = tpu.reciprocal %32 {approx = true} : vector<16x256xf32> -> vector<16x256xf32>
    %36 = arith.mulf %34, %35 : vector<16x256xf32>
    %37 = arith.truncf %36 : vector<16x256xf32> to vector<16x256xbf16>
    %c0_15 = arith.constant 0 : index
    %c0_16 = arith.constant 0 : index
    %c0_17 = arith.constant 0 : index
    %38 = vector.load %arg5[%c0_15, %c0_16, %c0_17] : memref<2x256x256xbf16, #tpu.memory_space<vmem>>, vector<1x256x256xbf16>
    %39 = vector.shape_cast %38 : vector<1x256x256xbf16> to vector<256x256xbf16>
    %cst_18 = arith.constant dense<0.000000e+00> : vector<16x256xf32>
    %40 = tpu.matmul %37, %39, %cst_18 {dimension_numbers = #tpu.dot_dimension_numbers<[1], [0], [0], [1], [0, 0, 1, 1], [], []>} : vector<16x256xbf16>, vector<256x256xbf16>, vector<16x256xf32> -> vector<16x256xf32>
    %41 = arith.addf %6, %40 : vector<16x256xf32>
    %42 = arith.truncf %41 : vector<16x256xf32> to vector<16x256xbf16>
    %c0_19 = arith.constant 0 : index
    %c0_20 = arith.constant 0 : index
    %c0_21 = arith.constant 0 : index
    %43 = vector.load %arg6[%c0_19, %c0_20, %c0_21] : memref<2x256x512xbf16, #tpu.memory_space<vmem>>, vector<1x256x512xbf16>
    %44 = vector.shape_cast %43 : vector<1x256x512xbf16> to vector<256x512xbf16>
    %cst_22 = arith.constant dense<0.000000e+00> : vector<16x512xf32>
    %45 = tpu.matmul %42, %44, %cst_22 {dimension_numbers = #tpu.dot_dimension_numbers<[1], [0], [0], [1], [0, 0, 1, 1], [], []>} : vector<16x256xbf16>, vector<256x512xbf16>, vector<16x512xf32> -> vector<16x512xf32>
    %c0_23 = arith.constant 0 : index
    %c0_24 = arith.constant 0 : index
    %c0_25 = arith.constant 0 : index
    %46 = vector.load %arg7[%c0_23, %c0_24, %c0_25] : memref<2x1x512xf32, #tpu.memory_space<vmem>>, vector<1x1x512xf32>
    %47 = vector.shape_cast %46 : vector<1x1x512xf32> to vector<1x512xf32>
    %48 = vector.broadcast %47 : vector<1x512xf32> to vector<16x512xf32>
    %49 = arith.addf %45, %48 : vector<16x512xf32>
    %cst_26 = arith.constant 0.000000e+00 : f32
    %50 = vector.broadcast %cst_26 : f32 to vector<16x512xf32>
    %51 = arith.maximumf %49, %50 : vector<16x512xf32>
    %52 = arith.truncf %51 : vector<16x512xf32> to vector<16x512xbf16>
    %c0_27 = arith.constant 0 : index
    %c0_28 = arith.constant 0 : index
    %c0_29 = arith.constant 0 : index
    %53 = vector.load %arg8[%c0_27, %c0_28, %c0_29] : memref<2x512x256xbf16, #tpu.memory_space<vmem>>, vector<1x512x256xbf16>
    %54 = vector.shape_cast %53 : vector<1x512x256xbf16> to vector<512x256xbf16>
    %cst_30 = arith.constant dense<0.000000e+00> : vector<16x256xf32>
    %55 = tpu.matmul %52, %54, %cst_30 {dimension_numbers = #tpu.dot_dimension_numbers<[1], [0], [0], [1], [0, 0, 1, 1], [], []>} : vector<16x512xbf16>, vector<512x256xbf16>, vector<16x256xf32> -> vector<16x256xf32>
    %c0_31 = arith.constant 0 : index
    %c0_32 = arith.constant 0 : index
    %c0_33 = arith.constant 0 : index
    %56 = vector.load %arg9[%c0_31, %c0_32, %c0_33] : memref<2x1x256xf32, #tpu.memory_space<vmem>>, vector<1x1x256xf32>
    %57 = vector.shape_cast %56 : vector<1x1x256xf32> to vector<1x256xf32>
    %58 = vector.broadcast %57 : vector<1x256xf32> to vector<16x256xf32>
    %59 = arith.addf %55, %58 : vector<16x256xf32>
    %60 = arith.addf %41, %59 : vector<16x256xf32>
    %61 = arith.truncf %60 : vector<16x256xf32> to vector<16x256xbf16>
    %c1 = arith.constant 1 : index
    %c0_34 = arith.constant 0 : index
    %c0_35 = arith.constant 0 : index
    %62 = vector.load %arg4[%c1, %c0_34, %c0_35] : memref<2x256x768xbf16, #tpu.memory_space<vmem>>, vector<1x256x768xbf16>
    %63 = vector.shape_cast %62 : vector<1x256x768xbf16> to vector<256x768xbf16>
    %cst_36 = arith.constant dense<0.000000e+00> : vector<16x768xf32>
    %64 = tpu.matmul %61, %63, %cst_36 {dimension_numbers = #tpu.dot_dimension_numbers<[1], [0], [0], [1], [0, 0, 1, 1], [], []>} : vector<16x256xbf16>, vector<256x768xbf16>, vector<16x768xf32> -> vector<16x768xf32>
    %65 = vector.extract_strided_slice %64 {offsets = [0, 0], sizes = [16, 256], strides = [1, 1]} : vector<16x768xf32> to vector<16x256xf32>
    %66 = vector.extract_strided_slice %64 {offsets = [0, 256], sizes = [16, 256], strides = [1, 1]} : vector<16x768xf32> to vector<16x256xf32>
    %67 = vector.extract_strided_slice %64 {offsets = [0, 512], sizes = [16, 256], strides = [1, 1]} : vector<16x768xf32> to vector<16x256xf32>
    %68 = vector.shape_cast %66 : vector<16x256xf32> to vector<16x8x32xf32>
    %69 = tpu.concatenate %68, %68, %68, %68, %68, %68, %68, %68 in 2 : vector<16x8x32xf32>, vector<16x8x32xf32>, vector<16x8x32xf32>, vector<16x8x32xf32>, vector<16x8x32xf32>, vector<16x8x32xf32>, vector<16x8x32xf32>, vector<16x8x32xf32> -> vector<16x8x256xf32>
    %70 = vector.shape_cast %67 : vector<16x256xf32> to vector<16x8x32xf32>
    %71 = tpu.concatenate %70, %70, %70, %70, %70, %70, %70, %70 in 2 : vector<16x8x32xf32>, vector<16x8x32xf32>, vector<16x8x32xf32>, vector<16x8x32xf32>, vector<16x8x32xf32>, vector<16x8x32xf32>, vector<16x8x32xf32>, vector<16x8x32xf32> -> vector<16x8x256xf32>
    %72 = vector.shape_cast %65 : vector<16x256xf32> to vector<16x1x256xf32>
    %73 = vector.shape_cast %72 : vector<16x1x256xf32> to vector<16x1x256xf32>
    %74 = vector.broadcast %73 : vector<16x1x256xf32> to vector<16x8x256xf32>
    %75 = arith.mulf %74, %69 : vector<16x8x256xf32>
    %76 = vector.shape_cast %75 : vector<16x8x256xf32> to vector<128x256xf32>
    %77 = arith.truncf %76 : vector<128x256xf32> to vector<128x256xbf16>
    %cst_37 = arith.constant dense<0.000000e+00> : vector<128x256xf32>
    %78 = tpu.matmul %77, %7, %cst_37 {dimension_numbers = #tpu.dot_dimension_numbers<[1], [0], [0], [1], [0, 0, 1, 1], [], []>} : vector<128x256xbf16>, vector<256x256xbf16>, vector<128x256xf32> -> vector<128x256xf32>
    %79 = vector.shape_cast %78 : vector<128x256xf32> to vector<16x8x256xf32>
    %cst_38 = arith.constant dense<0xFF800000> : vector<16x256xf32>
    %80 = vector.multi_reduction <maximumf>, %79, %cst_38 [1] : vector<16x8x256xf32> to vector<16x256xf32>
    %81 = vector.shape_cast %80 : vector<16x256xf32> to vector<16x1x256xf32>
    %82 = vector.broadcast %81 : vector<16x1x256xf32> to vector<16x8x256xf32>
    %83 = arith.subf %79, %82 : vector<16x8x256xf32>
    %84 = math.exp %83 : vector<16x8x256xf32>
    %cst_39 = arith.constant dense<0.000000e+00> : vector<16x256xf32>
    %85 = vector.multi_reduction <add>, %84, %cst_39 [1] : vector<16x8x256xf32> to vector<16x256xf32>
    %86 = arith.mulf %84, %71 : vector<16x8x256xf32>
    %cst_40 = arith.constant dense<0.000000e+00> : vector<16x256xf32>
    %87 = vector.multi_reduction <add>, %86, %cst_40 [1] : vector<16x8x256xf32> to vector<16x256xf32>
    %88 = tpu.reciprocal %85 {approx = true} : vector<16x256xf32> -> vector<16x256xf32>
    %89 = arith.mulf %87, %88 : vector<16x256xf32>
    %90 = arith.truncf %89 : vector<16x256xf32> to vector<16x256xbf16>
    %c1_41 = arith.constant 1 : index
    %c0_42 = arith.constant 0 : index
    %c0_43 = arith.constant 0 : index
    %91 = vector.load %arg5[%c1_41, %c0_42, %c0_43] : memref<2x256x256xbf16, #tpu.memory_space<vmem>>, vector<1x256x256xbf16>
    %92 = vector.shape_cast %91 : vector<1x256x256xbf16> to vector<256x256xbf16>
    %cst_44 = arith.constant dense<0.000000e+00> : vector<16x256xf32>
    %93 = tpu.matmul %90, %92, %cst_44 {dimension_numbers = #tpu.dot_dimension_numbers<[1], [0], [0], [1], [0, 0, 1, 1], [], []>} : vector<16x256xbf16>, vector<256x256xbf16>, vector<16x256xf32> -> vector<16x256xf32>
    %94 = arith.addf %60, %93 : vector<16x256xf32>
    %95 = arith.truncf %94 : vector<16x256xf32> to vector<16x256xbf16>
    %c1_45 = arith.constant 1 : index
    %c0_46 = arith.constant 0 : index
    %c0_47 = arith.constant 0 : index
    %96 = vector.load %arg6[%c1_45, %c0_46, %c0_47] : memref<2x256x512xbf16, #tpu.memory_space<vmem>>, vector<1x256x512xbf16>
    %97 = vector.shape_cast %96 : vector<1x256x512xbf16> to vector<256x512xbf16>
    %cst_48 = arith.constant dense<0.000000e+00> : vector<16x512xf32>
    %98 = tpu.matmul %95, %97, %cst_48 {dimension_numbers = #tpu.dot_dimension_numbers<[1], [0], [0], [1], [0, 0, 1, 1], [], []>} : vector<16x256xbf16>, vector<256x512xbf16>, vector<16x512xf32> -> vector<16x512xf32>
    %c1_49 = arith.constant 1 : index
    %c0_50 = arith.constant 0 : index
    %c0_51 = arith.constant 0 : index
    %99 = vector.load %arg7[%c1_49, %c0_50, %c0_51] : memref<2x1x512xf32, #tpu.memory_space<vmem>>, vector<1x1x512xf32>
    %100 = vector.shape_cast %99 : vector<1x1x512xf32> to vector<1x512xf32>
    %101 = vector.broadcast %100 : vector<1x512xf32> to vector<16x512xf32>
    %102 = arith.addf %98, %101 : vector<16x512xf32>
    %cst_52 = arith.constant 0.000000e+00 : f32
    %103 = vector.broadcast %cst_52 : f32 to vector<16x512xf32>
    %104 = arith.maximumf %102, %103 : vector<16x512xf32>
    %105 = arith.truncf %104 : vector<16x512xf32> to vector<16x512xbf16>
    %c1_53 = arith.constant 1 : index
    %c0_54 = arith.constant 0 : index
    %c0_55 = arith.constant 0 : index
    %106 = vector.load %arg8[%c1_53, %c0_54, %c0_55] : memref<2x512x256xbf16, #tpu.memory_space<vmem>>, vector<1x512x256xbf16>
    %107 = vector.shape_cast %106 : vector<1x512x256xbf16> to vector<512x256xbf16>
    %cst_56 = arith.constant dense<0.000000e+00> : vector<16x256xf32>
    %108 = tpu.matmul %105, %107, %cst_56 {dimension_numbers = #tpu.dot_dimension_numbers<[1], [0], [0], [1], [0, 0, 1, 1], [], []>} : vector<16x512xbf16>, vector<512x256xbf16>, vector<16x256xf32> -> vector<16x256xf32>
    %c1_57 = arith.constant 1 : index
    %c0_58 = arith.constant 0 : index
    %c0_59 = arith.constant 0 : index
    %109 = vector.load %arg9[%c1_57, %c0_58, %c0_59] : memref<2x1x256xf32, #tpu.memory_space<vmem>>, vector<1x1x256xf32>
    %110 = vector.shape_cast %109 : vector<1x1x256xf32> to vector<1x256xf32>
    %111 = vector.broadcast %110 : vector<1x256xf32> to vector<16x256xf32>
    %112 = arith.addf %108, %111 : vector<16x256xf32>
    %113 = arith.addf %94, %112 : vector<16x256xf32>
    %114 = arith.truncf %113 : vector<16x256xf32> to vector<16x256xbf16>
    %c0_60 = arith.constant 0 : index
    %c0_61 = arith.constant 0 : index
    %115 = vector.load %arg11[%c0_60, %c0_61] : memref<256x32xbf16, #tpu.memory_space<vmem>>, vector<256x32xbf16>
    %cst_62 = arith.constant dense<0.000000e+00> : vector<16x32xf32>
    %116 = tpu.matmul %114, %115, %cst_62 {dimension_numbers = #tpu.dot_dimension_numbers<[1], [0], [0], [1], [0, 0, 1, 1], [], []>} : vector<16x256xbf16>, vector<256x32xbf16>, vector<16x32xf32> -> vector<16x32xf32>
    %c0_63 = arith.constant 0 : index
    %c0_64 = arith.constant 0 : index
    %117 = vector.load %arg12[%c0_63, %c0_64] : memref<40x32xbf16, #tpu.memory_space<vmem>>, vector<40x32xbf16>
    %cst_65 = arith.constant dense<0.000000e+00> : vector<16x32xf32>
    %118 = tpu.matmul %1, %117, %cst_65 {dimension_numbers = #tpu.dot_dimension_numbers<[1], [0], [0], [1], [0, 0, 1, 1], [], []>} : vector<16x40xbf16>, vector<40x32xbf16>, vector<16x32xf32> -> vector<16x32xf32>
    %119 = arith.addf %116, %118 : vector<16x32xf32>
    %c0_66 = arith.constant 0 : index
    %c0_67 = arith.constant 0 : index
    %120 = vector.load %arg13[%c0_66, %c0_67] : memref<1x32xf32, #tpu.memory_space<vmem>>, vector<1x32xf32>
    %121 = vector.broadcast %120 : vector<1x32xf32> to vector<16x32xf32>
    %122 = arith.addf %119, %121 : vector<16x32xf32>
    %cst_68 = arith.constant 0.000000e+00 : f32
    %123 = vector.broadcast %cst_68 : f32 to vector<16x32xf32>
    %124 = arith.maximumf %122, %123 : vector<16x32xf32>
    %125 = arith.truncf %124 : vector<16x32xf32> to vector<16x32xbf16>
    %c0_69 = arith.constant 0 : index
    %c0_70 = arith.constant 0 : index
    %126 = vector.load %arg14[%c0_69, %c0_70] : memref<32x128xbf16, #tpu.memory_space<vmem>>, vector<32x128xbf16>
    %cst_71 = arith.constant dense<0.000000e+00> : vector<16x128xf32>
    %127 = tpu.matmul %125, %126, %cst_71 {dimension_numbers = #tpu.dot_dimension_numbers<[1], [0], [0], [1], [0, 0, 1, 1], [], []>} : vector<16x32xbf16>, vector<32x128xbf16>, vector<16x128xf32> -> vector<16x128xf32>
    %c0_72 = arith.constant 0 : index
    %c0_73 = arith.constant 0 : index
    %128 = vector.load %arg15[%c0_72, %c0_73] : memref<1x128xf32, #tpu.memory_space<vmem>>, vector<1x128xf32>
    %129 = vector.broadcast %128 : vector<1x128xf32> to vector<16x128xf32>
    %130 = arith.addf %127, %129 : vector<16x128xf32>
    %c0_74 = arith.constant 0 : index
    %c0_75 = arith.constant 0 : index
    %131 = vector.load %arg16[%c0_74, %c0_75] : memref<16x128xf32, #tpu.memory_space<vmem>>, vector<16x128xf32>
    tpu.vector_store %arg16[%c0_74, %c0_75], %130 {strides = array<i32>} : memref<16x128xf32, #tpu.memory_space<vmem>>, vector<16x128xf32>,
    return
  }
  func.func @transform_0(%arg0: i32) -> (i32, i32) {
    %c0_i32 = arith.constant 0 : i32
    %c0_i32_0 = arith.constant 0 : i32
    return %arg0, %c0_i32 : i32, i32
  }
  func.func @transform_1(%arg0: i32) -> (i32, i32) {
    %c0_i32 = arith.constant 0 : i32
    %c0_i32_0 = arith.constant 0 : i32
    %c0_i32_1 = arith.constant 0 : i32
    return %c0_i32, %c0_i32_0 : i32, i32
  }
  func.func @transform_2(%arg0: i32) -> (i32, i32) {
    %c0_i32 = arith.constant 0 : i32
    %c0_i32_0 = arith.constant 0 : i32
    %c0_i32_1 = arith.constant 0 : i32
    return %c0_i32, %c0_i32_0 : i32, i32
  }
  func.func @transform_3(%arg0: i32) -> (i32, i32, i32) {
    %c0_i32 = arith.constant 0 : i32
    %c0_i32_0 = arith.constant 0 : i32
    %c0_i32_1 = arith.constant 0 : i32
    %c0_i32_2 = arith.constant 0 : i32
    return %c0_i32, %c0_i32_0, %c0_i32_1 : i32, i32, i32
  }
  func.func @transform_4(%arg0: i32) -> (i32, i32, i32) {
    %c0_i32 = arith.constant 0 : i32
    %c0_i32_0 = arith.constant 0 : i32
    %c0_i32_1 = arith.constant 0 : i32
    %c0_i32_2 = arith.constant 0 : i32
    return %c0_i32, %c0_i32_0, %c0_i32_1 : i32, i32, i32
  }
  func.func @transform_5(%arg0: i32) -> (i32, i32, i32) {
    %c0_i32 = arith.constant 0 : i32
    %c0_i32_0 = arith.constant 0 : i32
    %c0_i32_1 = arith.constant 0 : i32
    %c0_i32_2 = arith.constant 0 : i32
    return %c0_i32, %c0_i32_0, %c0_i32_1 : i32, i32, i32
  }
  func.func @transform_6(%arg0: i32) -> (i32, i32, i32) {
    %c0_i32 = arith.constant 0 : i32
    %c0_i32_0 = arith.constant 0 : i32
    %c0_i32_1 = arith.constant 0 : i32
    %c0_i32_2 = arith.constant 0 : i32
    return %c0_i32, %c0_i32_0, %c0_i32_1 : i32, i32, i32
  }
  func.func @transform_7(%arg0: i32) -> (i32, i32, i32) {
    %c0_i32 = arith.constant 0 : i32
    %c0_i32_0 = arith.constant 0 : i32
    %c0_i32_1 = arith.constant 0 : i32
    %c0_i32_2 = arith.constant 0 : i32
    return %c0_i32, %c0_i32_0, %c0_i32_1 : i32, i32, i32
  }
  func.func @transform_8(%arg0: i32) -> (i32, i32, i32) {
    %c0_i32 = arith.constant 0 : i32
    %c0_i32_0 = arith.constant 0 : i32
    %c0_i32_1 = arith.constant 0 : i32
    %c0_i32_2 = arith.constant 0 : i32
    return %c0_i32, %c0_i32_0, %c0_i32_1 : i32, i32, i32
  }
  func.func @transform_9(%arg0: i32) -> (i32, i32) {
    %c0_i32 = arith.constant 0 : i32
    %c0_i32_0 = arith.constant 0 : i32
    %c0_i32_1 = arith.constant 0 : i32
    return %c0_i32, %c0_i32_0 : i32, i32
  }
  func.func @transform_10(%arg0: i32) -> (i32, i32) {
    %c0_i32 = arith.constant 0 : i32
    %c0_i32_0 = arith.constant 0 : i32
    %c0_i32_1 = arith.constant 0 : i32
    return %c0_i32, %c0_i32_0 : i32, i32
  }
  func.func @transform_11(%arg0: i32) -> (i32, i32) {
    %c0_i32 = arith.constant 0 : i32
    %c0_i32_0 = arith.constant 0 : i32
    %c0_i32_1 = arith.constant 0 : i32
    return %c0_i32, %c0_i32_0 : i32, i32
  }
  func.func @transform_12(%arg0: i32) -> (i32, i32) {
    %c0_i32 = arith.constant 0 : i32
    %c0_i32_0 = arith.constant 0 : i32
    %c0_i32_1 = arith.constant 0 : i32
    return %c0_i32, %c0_i32_0 : i32, i32
  }
  func.func @transform_13(%arg0: i32) -> (i32, i32) {
    %c0_i32 = arith.constant 0 : i32
    %c0_i32_0 = arith.constant 0 : i32
    %c0_i32_1 = arith.constant 0 : i32
    return %c0_i32, %c0_i32_0 : i32, i32
  }
  func.func @transform_14(%arg0: i32) -> (i32, i32) {
    %c0_i32 = arith.constant 0 : i32
    %c0_i32_0 = arith.constant 0 : i32
    %c0_i32_1 = arith.constant 0 : i32
    return %c0_i32, %c0_i32_0 : i32, i32
  }
  func.func @transform_15(%arg0: i32) -> (i32, i32) {
    %c0_i32 = arith.constant 0 : i32
    %c0_i32_0 = arith.constant 0 : i32
    return %arg0, %c0_i32 : i32, i32
  }
}

</mosaic_0001>

<bundles_post_ra>
// kernel: tpu_custom_call.1
= control target key start
LH: loop header
LB: loop body
LE: loop exit
PB: predicated region body
PF: predicated region fallthrough
CT: control target
= control target key end

     0   :  { %s14950_s0 = inlined_call_operand.vmem [shape: f32[32,40], index: 0, kind: input, shape index: {}]   ;;  %s14951_s1 = inlined_call_operand.vmem [shape: bf16[40,256], index: 1, kind: input, shape index: {}]   ;;  %s14952_s2 = inlined_call_operand.vmem [shape: f32[1,256], index: 2, kind: input, shape index: {}]   ;;  %s14953_s3 = inlined_call_operand.hbm [shape: bf16[2,256,768], index: 3, kind: input, shape index: {}]   ;;  %s14954_s4 = inlined_call_operand.hbm [shape: bf16[2,256,256], index: 4, kind: input, shape index: {}]   ;;  %s14955_s5 = inlined_call_operand.hbm [shape: bf16[2,256,512], index: 5, kind: input, shape index: {}]   ;;  %s14956_s6 = inlined_call_operand.vmem [shape: f32[2,1,512], index: 6, kind: input, shape index: {}]   ;;  %s14957_s7 = inlined_call_operand.hbm [shape: bf16[2,512,256], index: 7, kind: input, shape index: {}]   ;;  %s14958_s8 = inlined_call_operand.vmem [shape: f32[2,1,256], index: 8, kind: input, shape index: {}]   ;;  %s14959_s9 = inlined_call_operand.hbm [shape: bf16[256,256], index: 9, kind: input, shape index: {}]   ;;  %s14960_s10 = inlined_call_operand.vmem [shape: bf16[256,32], index: 10, kind: input, shape index: {}]   ;;  %s14961_s11 = inlined_call_operand.vmem [shape: bf16[40,32], index: 11, kind: input, shape index: {}]   ;;  %s14962_s12 = inlined_call_operand.vmem [shape: f32[1,32], index: 12, kind: input, shape index: {}]   ;;  %s14963_s13 = inlined_call_operand.vmem [shape: bf16[32,128], index: 13, kind: input, shape index: {}]   ;;  %s14964_s14 = inlined_call_operand.vmem [shape: f32[1,128], index: 14, kind: input, shape index: {}]   ;;  %s14965_s15 = inlined_call_operand.hbm [shape: f32[32,128], index: 15, kind: output, shape index: {}]  }
   0x1   :  { %15019 = sst [smem:[#allocation44_spill]] %s14962_s12 }
   0x2   :  { %15020 = sst [smem:[#allocation45_spill]] %s14964_s14 }
   0x3   :  { %15021 = sst [smem:[#allocation46_spill]] %s14965_s15 }
   0x4   :  { %20 = vsyncpa [#allocation3], 0 }
   0x5   :  { %21 = vsyncpa [#allocation6], 0 }
   0x6   :  { %22 = vsyncpa [#allocation9], 0 }
   0x7   :  { %23 = vsyncpa [#allocation4], 0 }
   0x8   :  { %25 = vsyncpa [#allocation4 + $0x1], 0  ;;  %s12141_s18 = smov 0   ;;  %s12143_s19 = smov 0  }
   0x9   :  { %s12145_s20 = smov 0   ;;  %s12147_s21 = smov 0  }
   0xa LB: > { %15022 = sst [smem:[#allocation16_spill]] %s12024_s18  ;;  %s12162_s22 = sadd.s32 4294967295, %s12036_s21   ;;  %s12036_s21 = sphi %s12147_s21, %s15134_s21   ;;  %s12032_s20 = sphi %s12145_s20, %s15137_s20   ;;  %s12028_s19 = sphi %s12143_s19, %s15136_s19   ;;  %s12024_s18 = sphi %s12141_s18, %s15135_s18  }
   0xb   : > { %15023 = sst [smem:[#allocation17_spill]] %s12028_s19  ;;  %s9917_s23 = sadd.s32 4294967294, %s12036_s21  }
   0xc   : > { %15024 = sst [smem:[#allocation18_spill]] %s12032_s20  ;;  %s12166_s24 = sadd.s32 1, %s12036_s21  }
   0xd   : > { %15025 = sst [smem:[#allocation19_spill]] %s12036_s21  ;;  %s358_s25 = sadd.s32 1, %s12032_s20 }
   0xe   : > { %15026 = sst [smem:[#allocation20_spill]] %s12166_s24  ;;  %s355_s26 = ssub.s32 %s12036_s21, %s12166_s24 }
   0xf   : > { %p368_p0 = scmp.ne.s32.totalorder %s12032_s20, %s12028_s19  ;;  %p356_p1 = scmp.eq.s32.totalorder %s355_s26, 0 }
  0x10   : > { %p369_p2 = scmp.eq.s32.totalorder %s12162_s22, 1  ;;  %p374_p3 = scmp.ne.s32.totalorder %s12028_s19, %s12024_s18 }
  0x11   : > { %p375_p4 = scmp.eq.s32.totalorder %s9917_s23, 1  ;;  %p9918_p7 = scmp.ge.s32.totalorder %s12036_s21, 1 }
  0x12   : > { %s12177_s27 = scalar_select %p356_p1, %s12032_s20, %s358_s25  }
  0x13   : > { %p12179_p5 = por %p369_p2, %p368_p0  ;;  %p12183_p6 = por %p375_p4, %p374_p3 }
  0x14   : > { %15027 = sst [smem:[#allocation21_spill]] %s12177_s27  ;;  %p382_p8 = scmp.lt.s32.totalorder %s12036_s21, 3 }
  0x15   : > { %s15028_s28 = scalar_select %p12179_p5, 1, 0 }
  0x16   : > { %s15030_s29 = scalar_select %p12183_p6, 1, 0 }
  0x17   : > { %15029 = sst [smem:[#allocation22_spill]] %s15028_s28  ;;  %p14973_p9 = scmp.eq.s32.totalorder %s12162_s22, 0 }
  0x18   : > { %15031 = sst [smem:[#allocation23_spill]] %s15030_s29  ;;  %p12190_p10 = pnand %p9918_p7, %p382_p8 }
  0x19   : > { %s12038_s16 = smov [#allocation5]   ;;  %s12039_s25 = smov [#allocation8]  }
  0x1a   : > { %s15032_s30 = scalar_select %p12190_p10, 1, 0 }
  0x1b   : > { %s413_s17 = sshll.u32 %s12038_s16, 4  ;;  %p10604_p11 = pneg %p12190_p10  ;;  %s12196_s17 = int_to_ptr.vmem [resolvable:$true] %s413_s17 }
  0x1c   : > { %s442_s26 = sshll.u32 %s12039_s25, 4  ;;  %s12040_s27 = smov [#allocation2]   ;;  %s12204_s26 = int_to_ptr.vmem [resolvable:$true] %s442_s26 }
  0x1d   : > { %p12200_p12 = pnand %p14973_p9, %p10604_p11  ;;  %s12206_s20 = sshll.u32 %s12040_s27, 4  ;;  %s401_s20 = int_to_ptr.vmem [resolvable:$true] %s12206_s20 }
  0x1e   : > { %s11822_s16 = scalar_lea.hbm %s14954_s4, 8192 }
  0x1f   : > { %p11823_p13 = scmp.ne.s32.totalorder %s14954_s4, %s11822_s16  ;;  %p12216_p0 = pneg %p12200_p12 }
  0x20   : > { %p11829_p3 = scmp.lt.u32.totalorder %s11822_s16, %s14954_s4 }
  0x21   : > { %p11825_p1 = pnand %p12216_p0, %p11823_p13 }
  0x23   : > { %p11826_p2 = pneg %p11825_p1 }
  0x25   : > { %p11831_p4 = pnand %p11829_p3, %p11826_p2 }
  0x27   : > { %11834 = shalt.err (!%p11831_p4)
}
  0x28   : > { %s11835_s18 = scalar_lea.vmem %s12196_s17, 8192  ;;  %p11843_p9 = scmp.lt.s32.totalorder %s12196_s17, %s12196_s17 }
  0x29   : > { %p11836_p7 = scmp.ne.s32.totalorder %s12196_s17, %s11835_s18  ;;  %p11844_p6 = scmp.lt.s32.totalorder %s11835_s18, %s11835_s18 }
  0x2b   : > { %p11838_p8 = pnand %p11836_p7, %p12216_p0  ;;  %p11845_p13 = por %p11844_p6, %p11843_p9 }
  0x2d   : > { %p11839_p11 = pneg %p11838_p8 }
  0x2f   : > { %p11846_p1 = pnand %p11845_p13, %p11839_p11 }
  0x31   : > { %11849 = shalt.err (!%p11846_p1)
}
  0x32   : > { %s14979_s21 = smov 128   ;;  %s14980_s24 = smov 8  }
  0x33   : > { %10610 = dma.hbm_to_vmem [thread:$0]  (!%p12200_p12), %s14954_s4, 8192, %s12196_s17, [#allocation6], %s14979_s21, %s14979_s21, %s14980_s24  }
  0x34   : > { %s11850_s18 = scalar_lea.hbm %s14957_s7, 16384 }
  0x35   : > { %p11851_p6 = scmp.ne.s32.totalorder %s14957_s7, %s11850_s18  ;;  %p11857_p3 = scmp.lt.u32.totalorder %s11850_s18, %s14957_s7 }
  0x37   : > { %p11853_p9 = pnand %p11851_p6, %p12216_p0 }
  0x39   : > { %p11854_p2 = pneg %p11853_p9 }
  0x3b   : > { %p11859_p4 = pnand %p11857_p3, %p11854_p2 }
  0x3d   : > { %11862 = shalt.err (!%p11859_p4)
}
  0x3e   : > { %s11863_s17 = scalar_lea.vmem %s12204_s26, 16384  ;;  %p11871_p13 = scmp.lt.s32.totalorder %s12204_s26, %s12204_s26 }
  0x3f   : > { %p11864_p7 = scmp.ne.s32.totalorder %s12204_s26, %s11863_s17  ;;  %p11872_p1 = scmp.lt.s32.totalorder %s11863_s17, %s11863_s17 }
  0x41   : > { %p11866_p8 = pnand %p11864_p7, %p12216_p0  ;;  %p11873_p6 = por %p11872_p1, %p11871_p13 }
  0x43   : > { %p11867_p11 = pneg %p11866_p8 }
  0x45   : > { %p11874_p9 = pnand %p11873_p6, %p11867_p11 }
  0x47   : > { %11877 = shalt.err (!%p11874_p9)
}
  0x48   : > { %10616 = dma.hbm_to_vmem [thread:$0]  (!%p12200_p12), %s14957_s7, 16384, %s12204_s26, [#allocation9], %s14979_s21, %s14979_s21, %s14980_s24  }
  0x49   : > { %s11878_s29 = scalar_lea.hbm %s14953_s3, 24576 }
  0x4a   : > { %p11879_p2 = scmp.ne.s32.totalorder %s14953_s3, %s11878_s29  ;;  %p11885_p7 = scmp.lt.u32.totalorder %s11878_s29, %s14953_s3 }
  0x4c   : > { %p11881_p3 = pnand %p11879_p2, %p12216_p0 }
  0x4e   : > { %p11882_p4 = pneg %p11881_p3 }
  0x50   : > { %p11887_p8 = pnand %p11885_p7, %p11882_p4 }
  0x52   : > { %11890 = shalt.err (!%p11887_p8)
}
  0x53   : > { %s11891_s17 = scalar_lea.vmem %s401_s20, 24576  ;;  %p11899_p6 = scmp.lt.s32.totalorder %s401_s20, %s401_s20 }
  0x54   : > { %p11892_p11 = scmp.ne.s32.totalorder %s401_s20, %s11891_s17  ;;  %p11900_p9 = scmp.lt.s32.totalorder %s11891_s17, %s11891_s17 }
  0x56   : > { %p11894_p13 = pnand %p11892_p11, %p12216_p0  ;;  %p11901_p5 = por %p11900_p9, %p11899_p6 }
  0x58   : > { %p11895_p1 = pneg %p11894_p13 }
  0x5a   : > { %p11902_p10 = pnand %p11901_p5, %p11895_p1 }
  0x5c   : > { %11905 = shalt.err (!%p11902_p10)
}
  0x5d   : > { %s12043_s26 = smov 384   ;;  %s12044_s12 = smov 24  }
  0x5e   : > { %10607 = dma.hbm_to_vmem [thread:$0]  (!%p12200_p12), %s14953_s3, 24576, %s401_s20, [#allocation3], %s12043_s26, %s12043_s26, %s12044_s12  }
  0x5f   : > { %s12045_s28 = smov [#allocation7]   ;;  %s11906_s27 = scalar_lea.hbm %s14955_s5, 16384 }
  0x60   : > { %s426_s29 = sshll.u32 %s12045_s28, 4  ;;  %p11907_p5 = scmp.ne.s32.totalorder %s14955_s5, %s11906_s27  ;;  %s427_s29 = int_to_ptr.vmem [resolvable:$true] %s426_s29 }
  0x61   : > { %p11913_p3 = scmp.lt.u32.totalorder %s11906_s27, %s14955_s5 }
  0x62   : > { %p11909_p10 = pnand %p11907_p5, %p12216_p0 }
  0x64   : > { %p11910_p2 = pneg %p11909_p10 }
  0x66   : > { %p11915_p4 = pnand %p11913_p3, %p11910_p2 }
  0x68   : > { %11918 = shalt.err (!%p11915_p4)
}
  0x69   : > { %s11919_s20 = scalar_lea.vmem %s427_s29, 16384  ;;  %p11927_p13 = scmp.lt.s32.totalorder %s427_s29, %s427_s29 }
  0x6a   : > { %p11920_p7 = scmp.ne.s32.totalorder %s427_s29, %s11919_s20  ;;  %p11928_p1 = scmp.lt.s32.totalorder %s11919_s20, %s11919_s20 }
  0x6c   : > { %p11922_p8 = pnand %p11920_p7, %p12216_p0  ;;  %p11929_p6 = por %p11928_p1, %p11927_p13 }
  0x6e   : > { %p11923_p11 = pneg %p11922_p8 }
  0x70   : > { %p11930_p9 = pnand %p11929_p6, %p11923_p11 }
  0x72   : > { %11933 = shalt.err (!%p11930_p9)
}
  0x73   : > { %s12046_s26 = smov 256   ;;  %s12047_s12 = smov 16  }
  0x74   : > { %10613 = dma.hbm_to_vmem [thread:$0]  (!%p12200_p12), %s14955_s5, 16384, %s427_s29, [#allocation6], %s12046_s26, %s12046_s26, %s12047_s12  }
  0x75   : > { %s12048_s14 = smov [#allocation10]   ;;  %s11934_s25 = scalar_lea.hbm %s14959_s9, 4096 }
  0x76   : > { %s458_s19 = sshll.u32 %s12048_s14, 4  ;;  %p11935_p5 = scmp.ne.s32.totalorder %s14959_s9, %s11934_s25  ;;  %s459_s19 = int_to_ptr.vmem [resolvable:$true] %s458_s19 }
  0x77   : > { %p11941_p3 = scmp.lt.u32.totalorder %s11934_s25, %s14959_s9 }
  0x78   : > { %p11937_p10 = pnand %p11935_p5, %p12216_p0 }
  0x7a   : > { %p11938_p2 = pneg %p11937_p10 }
  0x7c   : > { %p11943_p4 = pnand %p11941_p3, %p11938_p2 }
  0x7e   : > { %11946 = shalt.err (!%p11943_p4)
}
  0x7f   : > { %s11947_s29 = scalar_lea.vmem %s459_s19, 4096  ;;  %p11955_p13 = scmp.lt.s32.totalorder %s459_s19, %s459_s19 }
  0x80   : > { %p11948_p7 = scmp.ne.s32.totalorder %s459_s19, %s11947_s29  ;;  %p11956_p1 = scmp.lt.s32.totalorder %s11947_s29, %s11947_s29 }
  0x82   : > { %p11950_p8 = pnand %p11948_p7, %p12216_p0  ;;  %p11957_p6 = por %p11956_p1, %p11955_p13 }
  0x84   : > { %p11951_p11 = pneg %p11950_p8 }
  0x86   : > { %p11958_p9 = pnand %p11957_p6, %p11951_p11 }
  0x88   : > { %11961 = shalt.err (!%p11958_p9)
}
  0x89   : > { %s15035_s26 = smov 8   ;;  %s15036_s12 = smov 128  }
  0x8a   : > { %10619 = dma.hbm_to_vmem [thread:$0]  (!%p12200_p12), %s14959_s9, 4096, %s459_s19, [#allocation9], %s15036_s12, %s15036_s12, %s15035_s26  }
  0x8b   : > { %p15037_p5 = scmp.ne.s32.totalorder %s15032_s30, 0 }
  0x8d   : > { %498 = sbr.rel (%p15037_p5) target bundleno = 4231 (0x1087), region = 80 }
  0x94   : > { %p15038_p0 = scmp.eq.s32.totalorder %s12162_s22, 0 }
  0x96   : > { %12007 = dma.done.wait (%p15038_p0), [#allocation3], 24576   ;;  %p15039_p10 = pmov %p15038_p0 }
  0x97   : > { %p15040_p2 = pmov %p15038_p0 }
  0x98   : > { %12009 = vsyncadd (%p15039_p10), [#allocation3], 4294942720 }
  0x99   : > { %12011 = dma.done.wait (%p15040_p2), [#allocation6], 24576   ;;  %p15041_p3 = pmov %p15038_p0 }
  0x9a   : > { %p15042_p4 = pmov %p15038_p0 }
  0x9b   : > { %12013 = vsyncadd (%p15041_p3), [#allocation6], 4294942720 }
  0x9c   : > { %12015 = dma.done.wait (%p15042_p4), [#allocation9], 20480   ;;  %p15043_p12 = pmov %p15038_p0 }
  0x9d   : > { %s9932_s15 = sshll.u32 %s12162_s22, 1  ;;  %v12049_v0 = vmov 0   ;;  %v10689_v1 = vld [vmem:[%s14951_s1 + $0x4] ss:$8 sps:$4 sm:$0xff]   ;;  %v10691_v2 = vld [vmem:[%s14951_s1] ss:$8 sps:$4 sm:$0xff]  }
  0x9e   : > { %12017 = vsyncadd (%p15043_p12), [#allocation9], 4294946816  ;;  %658 = vmatprep.mubr.bf16.mxu0 %v12049_v0  ;;  %p563_p7 = scmp.lt.s32.totalorder %s9932_s15, 3  ;;  %626 = vmatprep.subr.bf16.mxu0 %v10689_v1  ;;  %v10692_v3 = vld [vmem:[%s14951_s1 + $0x14] ss:$8 sps:$4 sm:$0xff]   ;;  %v577_v4 = vld [vmem:[%s14951_s1 + $0x20] sm:$0xff] }
  0x9f   : > { %627 = vmatpush1.bf16.msra.mxu0 %v10691_v2  ;;  %v10694_v5 = vld [vmem:[%s14951_s1 + $0x10] ss:$8 sps:$4 sm:$0xff]   ;;  %v9939_v6 = vcombine.high %v577_v4, %v577_v4  ;;  %v9938_v7 = vcombine.low %v577_v4, %v577_v4  ;;  %v10697_v8 = vld [vmem:[#allocation2 + $0x4] ss:$24 sps:$4 sm:$0xff]   ;;  %vm619_vm0 = vcmask 1043456   ;;  %vm615_vm1 = vcmask 326656  }
  0xa0   : > { %s15139_s15 = smov (!%p563_p7, %s9932_s15), 3  ;;  %628 = vmatprep.subr.bf16.mxu0 %v10692_v3  ;;  %v10699_v9 = vld [vmem:[#allocation2] ss:$24 sps:$4 sm:$0xff]   ;;  %1279 = vmatprep.subr.bf16.mxu1 %v10697_v8  ;;  %v10703_v12 = vld [vmem:[#allocation2 + $0x34] ss:$24 sps:$4 sm:$0xff]   ;;  %s12052_s23 = smov 64  }
  0xa1   : > { %s9933_s30 = sshll.u32 %s15139_s15, 3  ;;  %1280 = vmatpush1.bf16.msra.mxu1 %v10699_v9  ;;  %v10705_v13 = vld [vmem:[#allocation2 + $0x30] ss:$24 sps:$4 sm:$0xff]   ;;  %v621_v14 = vsel %vm619_vm0, %v9938_v7, 0  ;;  %v10702_v15 = vld [vmem:[#allocation2 + $0xc] ss:$24 sps:$4 sm:$0xff]  }
  0xa2   : > { %s566_s29 = scalar_lea.vmem %s14950_s0, %s9933_s30  ;;  %1281 = vmatprep.subr.bf16.mxu1 %v10703_v12  ;;  %v10709_v16 = vld [vmem:[#allocation2 + $0x64] ss:$24 sps:$4 sm:$0xff]   ;;  %v10700_v18 = vld [vmem:[#allocation2 + $0x8] ss:$24 sps:$4 sm:$0xff]   ;;  %v10715_v21 = vld [vmem:[#allocation2 + $0x94] ss:$24 sps:$4 sm:$0xff]  }
  0xa3   : > { %v570_v10 = vld [vmem:[%s566_s29] sm:$0xff]  ;;  %v571_v11 = vld [vmem:[%s566_s29 + $0x8] sm:$0xff]  ;;  %629 = vmatpush1.bf16.msra.mxu0 %v10694_v5  ;;  %v10708_v20 = vld [vmem:[#allocation2 + $0x3c] ss:$24 sps:$4 sm:$0xff]   ;;  %s12050_s15 = smov 32   ;;  %s12051_s30 = smov 96  }
  0xa4   : > { %9940 = vmatprep.subr.msk.bf16.mxu0 %vm619_vm0, %v9939_v6  ;;  %v12359_v17 = vpack.c.bf16 %v571_v11, %v570_v10  ;;  %v10711_v19 = vld [vmem:[#allocation2 + $0x60] ss:$24 sps:$4 sm:$0xff]   ;;  %v10717_v23 = vld [vmem:[#allocation2 + $0x90] ss:$24 sps:$4 sm:$0xff]   ;;  %v10714_v24 = vld [vmem:[#allocation2 + $0x6c] ss:$24 sps:$4 sm:$0xff]  }
  0xa5   : > { %1282 = vmatpush1.bf16.msra.mxu1 %v10705_v13  ;;  %v10706_v22 = vld [vmem:[#allocation2 + $0x38] ss:$24 sps:$4 sm:$0xff]   ;;  %v10721_v25 = vld [vmem:[#allocation2 + $0xc4] ss:$24 sps:$4 sm:$0xff]   ;;  %v10712_v26 = vld [vmem:[#allocation2 + $0x68] ss:$24 sps:$4 sm:$0xff]   ;;  %v580_v13 = vlaneseq }
  0xa6   : > { %15044 = vst [vmem:[#allocation24_spill] sm:$0xff] %v12359_v17  ;;  %1283 = vmatprep.subr.bf16.mxu1 %v10709_v16  ;;  %v10723_v27 = vld [vmem:[#allocation2 + $0xc0] ss:$24 sps:$4 sm:$0xff]   ;;  %v10720_v28 = vld [vmem:[#allocation2 + $0x9c] ss:$24 sps:$4 sm:$0xff]   ;;  %vm1880_vm2 = vcmask 261120  }
  0xa7   : > { %631 = vmatpush1.bf16.msra.mxu0 %v621_v14  ;;  %v10727_v29 = vld [vmem:[#allocation2 + $0xf4] ss:$24 sps:$4 sm:$0xff]   ;;  %v10718_v30 = vld [vmem:[#allocation2 + $0x98] ss:$24 sps:$4 sm:$0xff]   ;;  %v10733_v33 = vld [vmem:[#allocation2 + $0x124] ss:$24 sps:$4 sm:$0xff]  }
  0xa8   : > { %1322 = vmatprep.subr.bf16.mxu0 %v10702_v15  ;;  %v10729_v31 = vld [vmem:[#allocation2 + $0xf0] ss:$24 sps:$4 sm:$0xff]   ;;  %v10726_v32 = vld [vmem:[#allocation2 + $0xcc] ss:$24 sps:$4 sm:$0xff]   ;;  %v10735_v35 = vld [vmem:[#allocation2 + $0x120] ss:$24 sps:$4 sm:$0xff]  }
  0xa9   : > { %1284 = vmatpush1.bf16.msra.mxu1 %v10711_v19  ;;  %v10724_v34 = vld [vmem:[#allocation2 + $0xc8] ss:$24 sps:$4 sm:$0xff]   ;;  %v10732_v36 = vld [vmem:[#allocation2 + $0xfc] ss:$24 sps:$4 sm:$0xff]   ;;  %v10730_v38 = vld [vmem:[#allocation2 + $0xf8] ss:$24 sps:$4 sm:$0xff]  }
  0xaa   : > { %9941 = vmatmul.mubr.msk.bf16.vlgmr.msra.gmra.mrb[0].mxu0 %vm615_vm1, %v12359_v17  ;;  %1285 = vmatprep.subr.bf16.mxu1 %v10715_v21  ;;  %v10739_v37 = vld [vmem:[#allocation2 + $0x154] ss:$24 sps:$4 sm:$0xff]   ;;  %v10741_v39 = vld [vmem:[#allocation2 + $0x150] ss:$24 sps:$4 sm:$0xff]   ;;  %v10745_v41 = vld [vmem:[#allocation2 + $0x184] ss:$24 sps:$4 sm:$0xff]  }
  0xab   : > { %1323 = vmatpush1.bf16.msra.mxu0 %v10700_v18  ;;  %v10738_v40 = vld [vmem:[#allocation2 + $0x12c] ss:$24 sps:$4 sm:$0xff]   ;;  %v10736_v42 = vld [vmem:[#allocation2 + $0x128] ss:$24 sps:$4 sm:$0xff]   ;;  %v10744_v44 = vld [vmem:[#allocation2 + $0x15c] ss:$24 sps:$4 sm:$0xff]  }
  0xac   : > { %1324 = vmatprep.subr.bf16.mxu0 %v10708_v20  ;;  %v10747_v43 = vld [vmem:[#allocation2 + $0x180] ss:$24 sps:$4 sm:$0xff]   ;;  %v10751_v45 = vld [vmem:[#allocation2 + $0x1b4] ss:$24 sps:$4 sm:$0xff]   ;;  %v10753_v47 = vld [vmem:[#allocation2 + $0x1b0] ss:$24 sps:$4 sm:$0xff]  }
  0xad   : > { %1286 = vmatpush1.bf16.msra.mxu1 %v10717_v23  ;;  %v10742_v46 = vld [vmem:[#allocation2 + $0x158] ss:$24 sps:$4 sm:$0xff]   ;;  %v10750_v48 = vld [vmem:[#allocation2 + $0x18c] ss:$24 sps:$4 sm:$0xff]   ;;  %v10748_v50 = vld [vmem:[#allocation2 + $0x188] ss:$24 sps:$4 sm:$0xff]  }
  0xae   : > { %1287 = vmatprep.subr.bf16.mxu1 %v10721_v25  ;;  %v10757_v49 = vld [vmem:[#allocation2 + $0x1e4] ss:$24 sps:$4 sm:$0xff]   ;;  %v10759_v51 = vld [vmem:[#allocation2 + $0x1e0] ss:$24 sps:$4 sm:$0xff]   ;;  %v10763_v53 = vld [vmem:[#allocation2 + $0x214] ss:$24 sps:$4 sm:$0xff]  }
  0xaf   : > { %1325 = vmatpush1.bf16.msra.mxu0 %v10706_v22  ;;  %v10756_v52 = vld [vmem:[#allocation2 + $0x1bc] ss:$24 sps:$4 sm:$0xff]   ;;  %v10754_v54 = vld [vmem:[#allocation2 + $0x1b8] ss:$24 sps:$4 sm:$0xff]   ;;  %v10762_v56 = vld [vmem:[#allocation2 + $0x1ec] ss:$24 sps:$4 sm:$0xff]  }
  0xb0   : > { %1326 = vmatprep.subr.bf16.mxu0 %v10714_v24  ;;  %v10765_v55 = vld [vmem:[#allocation2 + $0x210] ss:$24 sps:$4 sm:$0xff]   ;;  %v10769_v57 = vld [vmem:[#allocation2 + $0x244] ss:$24 sps:$4 sm:$0xff]   ;;  %v10771_v59 = vld [vmem:[#allocation2 + $0x240] ss:$24 sps:$4 sm:$0xff]  }
  0xb1   : > { %1288 = vmatpush1.bf16.msra.mxu1 %v10723_v27  ;;  %v10760_v58 = vld [vmem:[#allocation2 + $0x1e8] ss:$24 sps:$4 sm:$0xff]   ;;  %v10768_v60 = vld [vmem:[#allocation2 + $0x21c] ss:$24 sps:$4 sm:$0xff]   ;;  %v10766_v62 = vld [vmem:[#allocation2 + $0x218] ss:$24 sps:$4 sm:$0xff]  }
  0xb2   : > { %1289 = vmatprep.subr.bf16.mxu1 %v10727_v29  ;;  %v10775_v61 = vld [vmem:[#allocation2 + $0x274] ss:$24 sps:$4 sm:$0xff]   ;;  %v10777_v63 = vld [vmem:[#allocation2 + $0x270] ss:$24 sps:$4 sm:$0xff]   ;;  %v10781_v4 = vld [vmem:[#allocation2 + $0x2a4] ss:$24 sps:$4 sm:$0xff]  }
  0xb3   : > { %1327 = vmatpush1.bf16.msra.mxu0 %v10712_v26  ;;  %v10774_v0 = vld [vmem:[#allocation2 + $0x24c] ss:$24 sps:$4 sm:$0xff]   ;;  %v10772_v1 = vld [vmem:[#allocation2 + $0x248] ss:$24 sps:$4 sm:$0xff]   ;;  %v10780_v2 = vld [vmem:[#allocation2 + $0x27c] ss:$24 sps:$4 sm:$0xff]  }
  0xb4   : > { %1328 = vmatprep.subr.bf16.mxu0 %v10720_v28  ;;  %v10778_v3 = vld [vmem:[#allocation2 + $0x278] ss:$24 sps:$4 sm:$0xff]   ;;  %v10786_v6 = vld [vmem:[#allocation2 + $0x2ac] ss:$24 sps:$4 sm:$0xff]   ;;  %v10784_v7 = vld [vmem:[#allocation2 + $0x2a8] ss:$24 sps:$4 sm:$0xff]  }
  0xb5   : > { %1290 = vmatpush1.bf16.msra.mxu1 %v10729_v31  ;;  %v10783_v5 = vld [vmem:[#allocation2 + $0x2a0] ss:$24 sps:$4 sm:$0xff]   ;;  %v10787_v8 = vld [vmem:[#allocation2 + $0x2d4] ss:$24 sps:$4 sm:$0xff]   ;;  %v10789_v9 = vld [vmem:[#allocation2 + $0x2d0] ss:$24 sps:$4 sm:$0xff]  }
  0xb6   : > { %1291 = vmatprep.subr.bf16.mxu1 %v10733_v33  ;;  %v10792_v10 = vld [vmem:[#allocation2 + $0x2dc] ss:$24 sps:$4 sm:$0xff]   ;;  %v10790_v11 = vld [vmem:[#allocation2 + $0x2d8] ss:$24 sps:$4 sm:$0xff]   ;;  %v12363_v14 = vshrl.u32 %v580_v13, 7  ;;  %vm1897_vm3 = vcmask 523264  }
  0xb7   : > { %1329 = vmatpush1.bf16.msra.mxu0 %v10718_v30  ;;  %v10795_v12 = vld [vmem:[#allocation2 + $0x14] ss:$24 sps:$4 sm:$0xff]   ;;  %v578_v18 = vld [vmem:[%s14952_s2] sm:$0x3]  ;;  %v10793_v28 = vld [vmem:[#allocation2 + $0x10] ss:$24 sps:$4 sm:$0xff]  }
  0xb8   : > { %1330 = vmatprep.subr.bf16.mxu0 %v10726_v32  ;;  %15045 = vst [vmem:[#allocation25_spill] sm:$0xff] %v12363_v14  ;;  %v12366_v15 = vsub.s32 0, %v12363_v14  ;;  %v12369_v16 = vsub.s32 1, %v12363_v14  ;;  %v10798_v32 = vld [vmem:[#allocation2 + $0x44] ss:$24 sps:$4 sm:$0xff]   ;;  %vm1914_vm4 = vcmask 785408  }
  0xb9   : > { %1292 = vmatpush1.bf16.msra.mxu1 %v10735_v35  ;;  %v10796_v33 = vld [vmem:[#allocation2 + $0x40] ss:$24 sps:$4 sm:$0xff]   ;;  %v10799_v35 = vld [vmem:[#allocation2 + $0x70] ss:$24 sps:$4 sm:$0xff]   ;;  %vm3932_vm5 = vcmask 1041409   ;;  %vm3934_vm6 = vcmask 1042434  }
  0xba   : > { %1293 = vmatprep.subr.bf16.mxu1 %v10739_v37  ;;  %15046 = vst [vmem:[#allocation26_spill] sm:$0xff] %v12366_v15  ;;  %15047 = vst [vmem:[#allocation27_spill] sm:$0xff] %v12369_v16  ;;  %v587_v20 = vrot.slane %v578_v18, %v12369_v16  ;;  %v583_v21 = vrot.slane %v578_v18, %v12366_v15  ;;  %v10802_v37 = vld [vmem:[#allocation2 + $0xa0] ss:$24 sps:$4 sm:$0xff]   ;;  %vm3936_vm7 = vcmask 1043459   ;;  %vm3938_vm8 = vcmask 1044484  }
  0xbb   : > { %1331 = vmatpush1.bf16.msra.mxu0 %v10724_v34  ;;  %v10801_v34 = vld [vmem:[#allocation2 + $0x74] ss:$24 sps:$4 sm:$0xff]   ;;  %v10841_v18 = vld [vmem:[#allocation10] ss:$8 sps:$4 sm:$0xff]   ;;  %vm3940_vm9 = vcmask 1045509   ;;  %vm3942_vm10 = vcmask 1046534  }
  0xbc   : > { %1332 = vmatprep.subr.bf16.mxu0 %v10732_v36  ;;  %v10804_v36 = vld [vmem:[#allocation2 + $0xa4] ss:$24 sps:$4 sm:$0xff]   ;;  %vm3944_vm11 = vcmask 1047559   ;;  %vm12057_vm12 = vmmov 0   ;;  %s15125_s28 = sld [smem:[#allocation44_spill]]  ;;  %s15126_s17 = sld [smem:[#allocation45_spill]] }
  0xbd   : > { %1294 = vmatpush1.bf16.msra.mxu1 %v10741_v39  ;;  %v10805_v39 = vld [vmem:[#allocation2 + $0xd0] ss:$24 sps:$4 sm:$0xff]   ;;  %s15127_s29 = sld [smem:[#allocation22_spill]]  ;;  %s10518_s12 = sshll.u32 %s12162_s22, 8 }
  0xbe   : > { %1295 = vmatprep.subr.bf16.mxu1 %v10745_v41  ;;  %v10808_v41 = vld [vmem:[#allocation2 + $0x100] ss:$24 sps:$4 sm:$0xff]   ;;  %s12058_s14 = smov [#allocation11]  }
  0xbf   : > { %1333 = vmatpush1.bf16.msra.mxu0 %v10730_v38  ;;  %v10807_v38 = vld [vmem:[#allocation2 + $0xd4] ss:$24 sps:$4 sm:$0xff]   ;;  %s11966_s19 = sshll.u32 %s12058_s14, 4  ;;  %s11967_s19 = int_to_ptr.vmem [resolvable:$false] %s11966_s19 }
  0xc0   : > { %1334 = vmatprep.subr.bf16.mxu0 %v10738_v40  ;;  %v10810_v40 = vld [vmem:[#allocation2 + $0x104] ss:$24 sps:$4 sm:$0xff]  }
  0xc1   : > { %1296 = vmatpush1.bf16.msra.mxu1 %v10747_v43  ;;  %v10811_v43 = vld [vmem:[#allocation2 + $0x130] ss:$24 sps:$4 sm:$0xff]  }
  0xc2   : > { %1297 = vmatprep.subr.bf16.mxu1 %v10751_v45  ;;  %v10814_v45 = vld [vmem:[#allocation2 + $0x160] ss:$24 sps:$4 sm:$0xff]  }
  0xc3   : > { %1335 = vmatpush1.bf16.msra.mxu0 %v10736_v42  ;;  %v10813_v42 = vld [vmem:[#allocation2 + $0x134] ss:$24 sps:$4 sm:$0xff]   ;;  %p15129_p11 = scmp.ne.s32.totalorder %s15127_s29, 0 }
  0xc4   : > { %1336 = vmatprep.subr.bf16.mxu0 %v10744_v44  ;;  %v10816_v44 = vld [vmem:[#allocation2 + $0x164] ss:$24 sps:$4 sm:$0xff]  }
  0xc5   : > { %1298 = vmatpush1.bf16.msra.mxu1 %v10753_v47  ;;  %v10817_v47 = vld [vmem:[#allocation2 + $0x190] ss:$24 sps:$4 sm:$0xff]  }
  0xc6   : > { %1299 = vmatprep.subr.bf16.mxu1 %v10757_v49  ;;  %v10820_v49 = vld [vmem:[#allocation2 + $0x1c0] ss:$24 sps:$4 sm:$0xff]  }
  0xc7   : > { %1337 = vmatpush1.bf16.msra.mxu0 %v10742_v46  ;;  %v10819_v46 = vld [vmem:[#allocation2 + $0x194] ss:$24 sps:$4 sm:$0xff]  }
  0xc8   : > { %1338 = vmatprep.subr.bf16.mxu0 %v10750_v48  ;;  %v10822_v48 = vld [vmem:[#allocation2 + $0x1c4] ss:$24 sps:$4 sm:$0xff]  }
  0xc9   : > { %1300 = vmatpush1.bf16.msra.mxu1 %v10759_v51  ;;  %v10823_v51 = vld [vmem:[#allocation2 + $0x1f0] ss:$24 sps:$4 sm:$0xff]  }
  0xca   : > { %1301 = vmatprep.subr.bf16.mxu1 %v10763_v53  ;;  %v10826_v53 = vld [vmem:[#allocation2 + $0x220] ss:$24 sps:$4 sm:$0xff]  }
  0xcb   : > { %1339 = vmatpush1.bf16.msra.mxu0 %v10748_v50  ;;  %v10825_v50 = vld [vmem:[#allocation2 + $0x1f4] ss:$24 sps:$4 sm:$0xff]  }
  0xcc   : > { %1340 = vmatprep.subr.bf16.mxu0 %v10756_v52  ;;  %v10828_v52 = vld [vmem:[#allocation2 + $0x224] ss:$24 sps:$4 sm:$0xff]  }
  0xcd   : > { %1302 = vmatpush1.bf16.msra.mxu1 %v10765_v55  ;;  %v10829_v55 = vld [vmem:[#allocation2 + $0x250] ss:$24 sps:$4 sm:$0xff]  }
  0xce   : > { %1303 = vmatprep.subr.bf16.mxu1 %v10769_v57  ;;  %v10832_v57 = vld [vmem:[#allocation2 + $0x280] ss:$24 sps:$4 sm:$0xff]  }
  0xcf   : > { %1341 = vmatpush1.bf16.msra.mxu0 %v10754_v54  ;;  %v10831_v54 = vld [vmem:[#allocation2 + $0x254] ss:$24 sps:$4 sm:$0xff]  }
  0xd0   : > { %1342 = vmatprep.subr.bf16.mxu0 %v10762_v56  ;;  %v10834_v56 = vld [vmem:[#allocation2 + $0x284] ss:$24 sps:$4 sm:$0xff]  }
  0xd1   : > { %1304 = vmatpush1.bf16.msra.mxu1 %v10771_v59  ;;  %v10835_v59 = vld [vmem:[#allocation2 + $0x2b0] ss:$24 sps:$4 sm:$0xff]  }
  0xd2   : > { %1305 = vmatprep.subr.bf16.mxu1 %v10775_v61  ;;  %v10838_v61 = vld [vmem:[#allocation2 + $0x2e0] ss:$24 sps:$4 sm:$0xff]  }
  0xd3   : > { %1343 = vmatpush1.bf16.msra.mxu0 %v10760_v58  ;;  %v10837_v58 = vld [vmem:[#allocation2 + $0x2b4] ss:$24 sps:$4 sm:$0xff]  }
  0xd4   : > { %1344 = vmatprep.subr.bf16.mxu0 %v10768_v60  ;;  %v10840_v60 = vld [vmem:[#allocation2 + $0x2e4] ss:$24 sps:$4 sm:$0xff]  }
  0xd5   : > { %1306 = vmatpush1.bf16.msra.mxu1 %v10777_v63 }
  0xd6   : > { %1307 = vmatprep.subr.bf16.mxu1 %v10781_v4 }
  0xd7   : > { %1345 = vmatpush1.bf16.msra.mxu0 %v10766_v62 }
  0xd8   : > { %1346 = vmatprep.subr.bf16.mxu0 %v10774_v0 }
  0xd9   : > { %1308 = vmatpush1.bf16.msra.mxu1 %v10783_v5 }
  0xda   : > { %1309 = vmatprep.subr.bf16.mxu1 %v10787_v8 }
  0xdb   : > { %1347 = vmatpush1.bf16.msra.mxu0 %v10772_v1 }
  0xdc   : > { %1348 = vmatprep.subr.bf16.mxu0 %v10780_v2 }
  0xdd   : > { %1310 = vmatpush1.bf16.msra.mxu1 %v10789_v9 }
  0xde   : > { %1365 = vmatprep.subr.bf16.mxu1 %v10795_v12 }
  0xdf   : > { %1349 = vmatpush1.bf16.msra.mxu0 %v10778_v3 }
  0xe0   : > { %1350 = vmatprep.subr.bf16.mxu0 %v10786_v6 }
  0xe3   : > { %1351 = vmatpush1.bf16.msra.mxu0 %v10784_v7 }
  0xe4   : > { %1352 = vmatprep.subr.bf16.mxu0 %v10792_v10 }
  0xe7   : > { %1353 = vmatpush1.bf16.msra.mxu0 %v10790_v11 }
 0x17d   : > { %v660_v19 = vpop.f32.mrb[0].mxu0 }
 0x17e   : > { %v662_v22 = vpop.f32.mrb[1].mxu0  ;;  %v12382_v29 = vadd.f32 %v660_v19, %v583_v21  ;;  %v10843_v19 = vld [vmem:[#allocation10 + $0x4] ss:$8 sps:$4 sm:$0xff]  }
 0x17f   : > { %v664_v23 = vpop.f32.mrb[2].mxu0  ;;  %v12378_v26 = vadd.f32 %v662_v22, %v587_v20  ;;  %2923 = vmatprep.subr.bf16.mxu0 %v10843_v19  ;;  %v10847_v22 = vld [vmem:[#allocation10 + $0x20] ss:$8 sps:$4 sm:$0xff]  }
 0x180   : > { %v12376_v24 = vadd.f32 %v664_v23, %v583_v21  ;;  %v666_v25 = vpop.f32.mrb[3].mxu0  ;;  %15051 = vst [vmem:[#allocation31_spill] sm:$0xff] %v12382_v29  ;;  %v10846_v21 = vld [vmem:[#allocation10 + $0x14] ss:$8 sps:$4 sm:$0xff]   ;;  %v10849_v23 = vld [vmem:[#allocation10 + $0x24] ss:$8 sps:$4 sm:$0xff]  }
 0x181   : > { %15049 = vst [vmem:[#allocation29_spill] sm:$0xff] %v12378_v26  ;;  %v12380_v27 = vadd.f32 %v666_v25, %v587_v20  ;;  %v10844_v20 = vld [vmem:[#allocation10 + $0x10] ss:$8 sps:$4 sm:$0xff]  }
 0x182   : > { %15048 = vst [vmem:[#allocation28_spill] sm:$0xff] %v12376_v24  ;;  %v12388_v31 = vpack.c.bf16 %v12376_v24, %v12382_v29  ;;  %v10850_v25 = vld [vmem:[#allocation10 + $0x30] ss:$8 sps:$4 sm:$0xff]  }
 0x183   : > { %15050 = vst [vmem:[#allocation30_spill] sm:$0xff] %v12380_v27  ;;  %v702_v30 = vpack.c.bf16 %v12380_v27, %v12378_v26 }
 0x185   : > { %1311 = vmatprep.mubr.bf16.mxu1 %v702_v30  ;;  %1354 = vmatprep.mubr.bf16.mxu0 %v702_v30 }
 0x186   : > { %1312 = vmatmul.mubr.bf16.vlgmr.msra.gmra.mrb[0].mxu1 %v12388_v31  ;;  %1355 = vmatmul.mubr.bf16.vlgmr.msra.gmra.mrb[4].mxu0 %v12388_v31 }
 0x187   : > { %1366 = vmatpush1.bf16.msra.mxu1 %v10793_v28  ;;  %1397 = vmatprep.mubr.bf16.mxu1 %v702_v30  ;;  %v10852_v28 = vld [vmem:[#allocation10 + $0x34] ss:$8 sps:$4 sm:$0xff]   ;;  %v10853_v30 = vld [vmem:[#allocation10 + $0x40] ss:$8 sps:$4 sm:$0xff]  }
 0x188   : > { %1367 = vmatprep.subr.bf16.mxu1 %v10798_v32  ;;  %2924 = vmatpush1.bf16.msra.mxu0 %v10841_v18  ;;  %v10856_v32 = vld [vmem:[#allocation10 + $0x50] ss:$8 sps:$4 sm:$0xff]  }
 0x189   : > { %2925 = vmatprep.subr.bf16.mxu0 %v10846_v21 }
 0x18b   : > { %1368 = vmatpush1.bf16.msra.mxu1 %v10796_v33  ;;  %v10858_v33 = vld [vmem:[#allocation10 + $0x54] ss:$8 sps:$4 sm:$0xff]  }
 0x18c   : > { %1369 = vmatprep.subr.bf16.mxu1 %v10801_v34  ;;  %2926 = vmatpush1.bf16.msra.mxu0 %v10844_v20  ;;  %v10859_v34 = vld [vmem:[#allocation10 + $0x60] ss:$8 sps:$4 sm:$0xff]  }
 0x18d   : > { %2927 = vmatprep.subr.bf16.mxu0 %v10849_v23 }
 0x18f   : > { %1370 = vmatpush1.bf16.msra.mxu1 %v10799_v35  ;;  %v10861_v35 = vld [vmem:[#allocation10 + $0x64] ss:$8 sps:$4 sm:$0xff]  }
 0x190   : > { %1371 = vmatprep.subr.bf16.mxu1 %v10804_v36  ;;  %2928 = vmatpush1.bf16.msra.mxu0 %v10847_v22  ;;  %v10862_v36 = vld [vmem:[#allocation10 + $0x70] ss:$8 sps:$4 sm:$0xff]  }
 0x191   : > { %2929 = vmatprep.subr.bf16.mxu0 %v10852_v28  ;;  %v10880_v28 = vld [vmem:[#allocation10 + $0xd0] ss:$8 sps:$4 sm:$0xff]  }
 0x193   : > { %1372 = vmatpush1.bf16.msra.mxu1 %v10802_v37  ;;  %v10864_v37 = vld [vmem:[#allocation10 + $0x74] ss:$8 sps:$4 sm:$0xff]  }
 0x194   : > { %1373 = vmatprep.subr.bf16.mxu1 %v10807_v38  ;;  %2930 = vmatpush1.bf16.msra.mxu0 %v10850_v25  ;;  %v10865_v38 = vld [vmem:[#allocation10 + $0x80] ss:$8 sps:$4 sm:$0xff]  }
 0x197   : > { %1374 = vmatpush1.bf16.msra.mxu1 %v10805_v39  ;;  %v10867_v39 = vld [vmem:[#allocation10 + $0x84] ss:$8 sps:$4 sm:$0xff]  }
 0x198   : > { %1375 = vmatprep.subr.bf16.mxu1 %v10810_v40  ;;  %v10868_v40 = vld [vmem:[#allocation10 + $0x90] ss:$8 sps:$4 sm:$0xff]  }
 0x19b   : > { %1376 = vmatpush1.bf16.msra.mxu1 %v10808_v41  ;;  %v10870_v41 = vld [vmem:[#allocation10 + $0x94] ss:$8 sps:$4 sm:$0xff]  }
 0x19c   : > { %1377 = vmatprep.subr.bf16.mxu1 %v10813_v42  ;;  %v12053_v42 = vmov 1983009808  }
 0x19f   : > { %1378 = vmatpush1.bf16.msra.mxu1 %v10811_v43  ;;  %v1451_v43 = vunpack.c.l.s4 %v12053_v42 }
 0x1a0   : > { %1379 = vmatprep.subr.bf16.mxu1 %v10816_v44  ;;  %v10871_v44 = vld [vmem:[#allocation10 + $0xa0] ss:$8 sps:$4 sm:$0xff]  }
 0x1a3   : > { %1380 = vmatpush1.bf16.msra.mxu1 %v10814_v45  ;;  %v10873_v45 = vld [vmem:[#allocation10 + $0xa4] ss:$8 sps:$4 sm:$0xff]  }
 0x1a4   : > { %1381 = vmatprep.subr.bf16.mxu1 %v10819_v46  ;;  %v1452_v46 = vunpack.c.0.s8 %v1451_v43  ;;  %v10885_v43 = vld [vmem:[#allocation10 + $0xe4] ss:$8 sps:$4 sm:$0xff]  }
 0x1a7   : > { %1382 = vmatpush1.bf16.msra.mxu1 %v10817_v47 }
 0x1a8   : > { %1383 = vmatprep.subr.bf16.mxu1 %v10822_v48 }
 0x1ab   : > { %1384 = vmatpush1.bf16.msra.mxu1 %v10820_v49  ;;  %v10874_v49 = vld [vmem:[#allocation10 + $0xb0] ss:$8 sps:$4 sm:$0xff]  }
 0x1ac   : > { %1385 = vmatprep.subr.bf16.mxu1 %v10825_v50  ;;  %v10876_v50 = vld [vmem:[#allocation10 + $0xb4] ss:$8 sps:$4 sm:$0xff]  }
 0x1af   : > { %1386 = vmatpush1.bf16.msra.mxu1 %v10823_v51  ;;  %v12054_v51 = vmov 1934713408  }
 0x1b0   : > { %1387 = vmatprep.subr.bf16.mxu1 %v10828_v52  ;;  %v1515_v52 = vunpack.c.l.s4 %v12054_v51 }
 0x1b2   : > { %v1516_v18 = vunpack.c.0.s8 %v1515_v52 }
 0x1b3   : > { %1388 = vmatpush1.bf16.msra.mxu1 %v10826_v53  ;;  %v12450_v53 = vsub.s32 %v1452_v46, %v12363_v14 }
 0x1b4   : > { %1389 = vmatprep.subr.bf16.mxu1 %v10831_v54 }
 0x1b5   : > { %15052 = vst [vmem:[#allocation32_spill] sm:$0xff] %v12450_v53 }
 0x1b7   : > { %1390 = vmatpush1.bf16.msra.mxu1 %v10829_v55 }
 0x1b8   : > { %1391 = vmatprep.subr.bf16.mxu1 %v10834_v56 }
 0x1bb   : > { %1392 = vmatpush1.bf16.msra.mxu1 %v10832_v57 }
 0x1bc   : > { %1393 = vmatprep.subr.bf16.mxu1 %v10837_v58 }
 0x1bf   : > { %1394 = vmatpush1.bf16.msra.mxu1 %v10835_v59 }
 0x1c0   : > { %1395 = vmatprep.subr.bf16.mxu1 %v10840_v60  ;;  %v10877_v60 = vld [vmem:[#allocation10 + $0xc0] ss:$8 sps:$4 sm:$0xff]  }
 0x1c3   : > { %1396 = vmatpush1.bf16.msra.mxu1 %v10838_v61  ;;  %v10879_v61 = vld [vmem:[#allocation10 + $0xc4] ss:$8 sps:$4 sm:$0xff]  }
 0x1c6   : > { %1398 = vmatmul.mubr.bf16.vlgmr.msra.gmra.mrb[4].mxu1 %v12388_v31  ;;  %v10855_v31 = vld [vmem:[#allocation10 + $0x44] ss:$8 sps:$4 sm:$0xff]  }
 0x1c7   : > { %2931 = vmatprep.subr.bf16.mxu0 %v10855_v31 }
 0x1c8   : > { %2932 = vmatpush1.bf16.msra.mxu0 %v10853_v30  ;;  %v10882_v30 = vld [vmem:[#allocation10 + $0xd4] ss:$8 sps:$4 sm:$0xff]  }
 0x1c9   : > { %2933 = vmatprep.subr.bf16.mxu0 %v10858_v33 }
 0x1cc   : > { %2934 = vmatpush1.bf16.msra.mxu0 %v10856_v32 }
 0x1cd   : > { %2935 = vmatprep.subr.bf16.mxu0 %v10861_v35 }
 0x1d0   : > { %2936 = vmatpush1.bf16.msra.mxu0 %v10859_v34  ;;  %v12461_v34 = vsub.s32 %v1516_v18, %v12363_v14 }
 0x1d1   : > { %2937 = vmatprep.subr.bf16.mxu0 %v10864_v37 }
 0x1d2   : > { %15053 = vst [vmem:[#allocation33_spill] sm:$0xff] %v12461_v34 }
 0x1d4   : > { %2938 = vmatpush1.bf16.msra.mxu0 %v10862_v36 }
 0x1d5   : > { %2939 = vmatprep.subr.bf16.mxu0 %v10867_v39 }
 0x1d8   : > { %2940 = vmatpush1.bf16.msra.mxu0 %v10865_v38 }
 0x1d9   : > { %2941 = vmatprep.subr.bf16.mxu0 %v10870_v41 }
 0x1dc   : > { %2942 = vmatpush1.bf16.msra.mxu0 %v10868_v40 }
 0x1dd   : > { %2943 = vmatprep.subr.bf16.mxu0 %v10873_v45 }
 0x1e0   : > { %2944 = vmatpush1.bf16.msra.mxu0 %v10871_v44 }
 0x1e1   : > { %2945 = vmatprep.subr.bf16.mxu0 %v10876_v50 }
 0x1e4   : > { %2946 = vmatpush1.bf16.msra.mxu0 %v10874_v49 }
 0x1e5   : > { %2947 = vmatprep.subr.bf16.mxu0 %v10879_v61 }
 0x1e8   : > { %2948 = vmatpush1.bf16.msra.mxu0 %v10877_v60 }
 0x1e9   : > { %2949 = vmatprep.subr.bf16.mxu0 %v10882_v30 }
 0x1ec   : > { %2950 = vmatpush1.bf16.msra.mxu0 %v10880_v28  ;;  %v10886_v28 = vld [vmem:[#allocation10 + $0xf0] ss:$8 sps:$4 sm:$0xff]  }
 0x1ed   : > { %2951 = vmatprep.subr.bf16.mxu0 %v10885_v43 }
 0x259   : > { %v12393_v62 = vpop.f32.mrb[0].mxu1  ;;  %v12395_v63 = vpop.f32.mrb[4].mxu0 }
 0x25a   : > { %1422 = vrot.lane.b32.xlu1 %v12395_v63, %s12050_s15  ;;  %1410 = vrot.lane.b32.xlu0 %v12395_v63, %s12051_s30  ;;  %v12401_v0 = vpop.f32.mrb[1].mxu1  ;;  %v12403_v1 = vpop.f32.mrb[5].mxu0 }
 0x25b   : > { %v2455_v2 = vcombine.low %v12393_v62, %v12401_v0  ;;  %v2456_v3 = vcombine.high %v12393_v62, %v12401_v0  ;;  %v12409_v4 = vpop.f32.mrb[2].mxu1  ;;  %v12411_v5 = vpop.f32.mrb[6].mxu0 }
 0x25c   : > { %v12413_v6 = vpop.f32.mrb[3].mxu1  ;;  %v12415_v7 = vpop.f32.mrb[7].mxu0 }
 0x25d   : > { %v2505_v8 = vcombine.low %v12409_v4, %v12413_v6  ;;  %v2506_v9 = vcombine.high %v12409_v4, %v12413_v6 }
 0x25e   : > { %1416 = vrot.lane.b32.xlu0 %v12395_v63, %s12052_s23  ;;  %1430 = vrot.lane.b32.xlu1 %v12403_v1, %s12051_s30 }
 0x262   : > { %1436 = vrot.lane.b32.xlu0 %v12403_v1, %s12052_s23  ;;  %1442 = vrot.lane.b32.xlu1 %v12403_v1, %s12050_s15 }
 0x266   : > { %1412 = vrot.lane.b32.xlu0 %v12411_v5, %s12051_s30  ;;  %1418 = vrot.lane.b32.xlu1 %v12411_v5, %s12052_s23 }
 0x26a   : > { %1424 = vrot.lane.b32.xlu0 %v12411_v5, %s12050_s15  ;;  %1432 = vrot.lane.b32.xlu1 %v12415_v7, %s12051_s30 }
 0x26e   : > { %1438 = vrot.lane.b32.xlu0 %v12415_v7, %s12052_s23  ;;  %1444 = vrot.lane.b32.xlu1 %v12415_v7, %s12050_s15 }
 0x299   : > { %v12441_v10 = vpop.f32.mrb[4].mxu1 }
 0x29a   : > { %v12443_v11 = vpop.f32.mrb[5].mxu1 }
 0x29b   : > { %v12445_v12 = vpop.f32.mrb[6].mxu1 }
 0x29c   : > { %v12447_v13 = vpop.f32.mrb[7].mxu1 }
 0x2cc   : > { %v1423_v47 = vpop.permute.xlu1 %1422  ;;  %v1411_v48 = vpop.permute.xlu0 %1410 }
 0x2cd   : > { %v1464_v56 = vcombine.low %v1411_v48, %v1423_v47  ;;  %v1465_v57 = vcombine.high %v1411_v48, %v1423_v47 }
 0x2cf   : > { %v1472_v22 = vrot.slane %v1464_v56, %v12450_v53  ;;  %v1479_v23 = vrot.slane %v1465_v57, %v12450_v53 }
 0x2d0   : > { %v1417_v54 = vpop.permute.xlu0 %1416  ;;  %v1431_v55 = vpop.permute.xlu1 %1430 }
 0x2d1   : > { %v1448_v58 = vcombine.low %v12395_v63, %v1417_v54  ;;  %v1449_v59 = vcombine.high %v12395_v63, %v1417_v54 }
 0x2d3   : > { %v1456_v19 = vrot.slane %v1448_v58, %v12450_v53  ;;  %v1463_v20 = vrot.slane %v1449_v59, %v12450_v53 }
 0x2d4   : > { %v1437_v21 = vpop.permute.xlu0 %1436  ;;  %v1443_v25 = vpop.permute.xlu1 %1442 }
 0x2d5   : > { %v1480_v31 = vcombine.low %v12403_v1, %v1437_v21  ;;  %v1481_v63 = vcombine.high %v12403_v1, %v1437_v21  ;;  %v1496_v32 = vcombine.low %v1431_v55, %v1443_v25  ;;  %v1497_v33 = vcombine.high %v1431_v55, %v1443_v25  ;;  %v10883_v1 = vld [vmem:[#allocation10 + $0xe0] ss:$8 sps:$4 sm:$0xff]  }
 0x2d6   : > { %v1512_v35 = vcombine.low %v1456_v19, %v1472_v22  ;;  %v1513_v36 = vcombine.high %v1456_v19, %v1472_v22  ;;  %v1528_v37 = vcombine.low %v1463_v20, %v1479_v23  ;;  %v1529_v44 = vcombine.high %v1463_v20, %v1479_v23  ;;  %2952 = vmatpush1.bf16.msra.mxu0 %v10883_v1  ;;  %v10888_v20 = vld [vmem:[#allocation10 + $0xf4] ss:$8 sps:$4 sm:$0xff]  }
 0x2d7   : > { %v1488_v38 = vrot.slane %v1480_v31, %v12450_v53  ;;  %v1495_v39 = vrot.slane %v1481_v63, %v12450_v53  ;;  %v1504_v40 = vrot.slane %v1496_v32, %v12450_v53  ;;  %v1511_v41 = vrot.slane %v1497_v33, %v12450_v53  ;;  %2953 = vmatprep.subr.bf16.mxu0 %v10888_v20 }
 0x2d8   : > { %v1413_v42 = vpop.permute.xlu0 %1412  ;;  %v1419_v45 = vpop.permute.xlu1 %1418  ;;  %v1520_v50 = vrot.slane %v1512_v35, %v12461_v34  ;;  %v1527_v51 = vrot.slane %v1513_v36, %v12461_v34  ;;  %v1536_v52 = vrot.slane %v1528_v37, %v12461_v34  ;;  %v1543_v19 = vrot.slane %v1529_v44, %v12461_v34 }
 0x2d9   : > { %v1544_v46 = vcombine.low %v1488_v38, %v1504_v40  ;;  %v1545_v47 = vcombine.high %v1488_v38, %v1504_v40  ;;  %v1560_v48 = vcombine.low %v1495_v39, %v1511_v41  ;;  %v1561_v49 = vcombine.high %v1495_v39, %v1511_v41 }
 0x2da   : > { %v1584_v59 = vcombine.low %v12411_v5, %v1419_v45  ;;  %v1585_v30 = vcombine.high %v12411_v5, %v1419_v45  ;;  %2954 = vmatpush1.bf16.msra.mxu0 %v10886_v28 }
 0x2db   : > { %v1552_v55 = vrot.slane %v1544_v46, %v12461_v34  ;;  %v1559_v56 = vrot.slane %v1545_v47, %v12461_v34  ;;  %v1568_v57 = vrot.slane %v1560_v48, %v12461_v34  ;;  %v1575_v58 = vrot.slane %v1561_v49, %v12461_v34 }
 0x2dc   : > { %v1425_v54 = vpop.permute.xlu0 %1424  ;;  %v1433_v18 = vpop.permute.xlu1 %1432  ;;  %v1592_v5 = vrot.slane %v1584_v59, %v12450_v53  ;;  %v1599_v1 = vrot.slane %v1585_v30, %v12450_v53 }
 0x2dd   : > { %v1600_v60 = vcombine.low %v1413_v42, %v1425_v54  ;;  %v1601_v61 = vcombine.high %v1413_v42, %v1425_v54  ;;  %v12476_v21 = vcombine.low %v1520_v50, %v1552_v55  ;;  %v12478_v22 = vcombine.high %v1520_v50, %v1552_v55 }
 0x2de   : > { %v12480_v23 = vcombine.low %v1527_v51, %v1559_v56  ;;  %v12482_v25 = vcombine.high %v1527_v51, %v1559_v56  ;;  %v12486_v63 = vcombine.low %v1536_v52, %v1568_v57  ;;  %v12488_v32 = vcombine.high %v1536_v52, %v1568_v57 }
 0x2df   : > { %v1608_v31 = vrot.slane %v1600_v60, %v12450_v53  ;;  %1736 = vrot.lane.b32.xlu0 %v12476_v21, %s12050_s15  ;;  %1738 = vrot.lane.b32.xlu1 %v12478_v22, %s12050_s15  ;;  %v12494_v35 = vcombine.low %v1543_v19, %v1575_v58  ;;  %v12496_v36 = vcombine.high %v1543_v19, %v1575_v58 }
 0x2e0   : > { %v1439_v33 = vpop.permute.xlu0 %1438  ;;  %v1615_v37 = vrot.slane %v1601_v61, %v12450_v53  ;;  %v1445_v38 = vpop.permute.xlu1 %1444 }
 0x2e1   : > { %v1616_v39 = vcombine.low %v12415_v7, %v1439_v33  ;;  %v1617_v40 = vcombine.high %v12415_v7, %v1439_v33  ;;  %v1632_v41 = vcombine.low %v1433_v18, %v1445_v38  ;;  %v1633_v42 = vcombine.high %v1433_v18, %v1445_v38 }
 0x2e2   : > { %v1648_v43 = vcombine.low %v1592_v5, %v1608_v31  ;;  %v1649_v44 = vcombine.high %v1592_v5, %v1608_v31  ;;  %v1664_v49 = vcombine.low %v1599_v1, %v1615_v37  ;;  %v1665_v50 = vcombine.high %v1599_v1, %v1615_v37 }
 0x2e3   : > { %v1624_v45 = vrot.slane %v1616_v39, %v12450_v53  ;;  %v1631_v46 = vrot.slane %v1617_v40, %v12450_v53  ;;  %v1640_v47 = vrot.slane %v1632_v41, %v12450_v53  ;;  %v1647_v48 = vrot.slane %v1633_v42, %v12450_v53  ;;  %1784 = vrot.lane.b32.xlu0 %v12476_v21, %s12052_s23 }
 0x2e4   : > { %1786 = vrot.lane.b32.xlu1 %v12478_v22, %s12052_s23  ;;  %v1656_v55 = vrot.slane %v1648_v43, %v12461_v34  ;;  %v1663_v56 = vrot.slane %v1649_v44, %v12461_v34  ;;  %v1672_v61 = vrot.slane %v1664_v49, %v12461_v34  ;;  %v1679_v18 = vrot.slane %v1665_v50, %v12461_v34 }
 0x2e5   : > { %v1680_v7 = vcombine.low %v1624_v45, %v1640_v47  ;;  %v1681_v51 = vcombine.high %v1624_v45, %v1640_v47  ;;  %v1696_v52 = vcombine.low %v1631_v46, %v1647_v48  ;;  %v1697_v54 = vcombine.high %v1631_v46, %v1647_v48 }
 0x2e6   : > { %v12055_v38 = vmov 1966171168  }
 0x2e7   : > { %1832 = vrot.lane.b32.xlu0 %v12476_v21, %s12051_s30  ;;  %v1688_v57 = vrot.slane %v1680_v7, %v12461_v34  ;;  %v1695_v58 = vrot.slane %v1681_v51, %v12461_v34  ;;  %v1704_v59 = vrot.slane %v1696_v52, %v12461_v34  ;;  %v1711_v60 = vrot.slane %v1697_v54, %v12461_v34 }
 0x2e8   : > { %1834 = vrot.lane.b32.xlu1 %v12478_v22, %s12051_s30  ;;  %v2458_v39 = vunpack.c.l.s4 %v12055_v38 }
 0x2e9   : > { %v12523_v19 = vcombine.high %v1656_v55, %v1688_v57  ;;  %v12525_v20 = vcombine.low %v1656_v55, %v1688_v57  ;;  %v12527_v28 = vcombine.high %v1663_v56, %v1695_v58  ;;  %v12529_v30 = vcombine.low %v1663_v56, %v1695_v58 }
 0x2ea   : > { %v12531_v31 = vcombine.high %v1672_v61, %v1704_v59  ;;  %v12533_v33 = vcombine.low %v1672_v61, %v1704_v59  ;;  %v12535_v5 = vcombine.high %v1679_v18, %v1711_v60  ;;  %v12537_v37 = vcombine.low %v1679_v18, %v1711_v60 }
 0x2eb   : > { %1740 = vrot.lane.b32.xlu0 %v12480_v23, %s12050_s15  ;;  %v2459_v40 = vunpack.c.0.s8 %v2458_v39 }
 0x2ec   : > { %1742 = vrot.lane.b32.xlu1 %v12482_v25, %s12050_s15 }
 0x2ed   : > { %v12636_v41 = vsub.s32 %v2459_v40, %v12363_v14 }
 0x2ef   : > { %1788 = vrot.lane.b32.xlu0 %v12480_v23, %s12052_s23  ;;  %15054 = vst [vmem:[#allocation34_spill] sm:$0xff] %v12636_v41  ;;  %v2463_v42 = vrot.slane %v2455_v2, %v12636_v41 }
 0x2f0   : > { %1790 = vrot.lane.b32.xlu1 %v12482_v25, %s12052_s23 }
 0x2f1   : > { %v2471_v44 = vcombine.high %v2463_v42, %v2463_v42  ;;  %v2479_v45 = vrot.slane %v2463_v42, %v12636_v41 }
 0x2f3   : > { %1836 = vrot.lane.b32.xlu0 %v12480_v23, %s12051_s30  ;;  %v2493_v2 = vrot.slane %v2471_v44, %v12636_v41  ;;  %v2558_v51 = vrot.slane %v2479_v45, %v12366_v15  ;;  %v2562_v52 = vrot.slane %v2479_v45, %v12369_v16 }
 0x2f4   : > { %1838 = vrot.lane.b32.xlu1 %v12482_v25, %s12051_s30 }
 0x2f5   : > { %v2566_v57 = vrot.slane %v2493_v2, %v12366_v15  ;;  %v2570_v58 = vrot.slane %v2493_v2, %v12369_v16  ;;  %v2503_v44 = vcombine.high %v2493_v2, %v2493_v2 }
 0x2f7   : > { %1744 = vrot.lane.b32.xlu0 %v12486_v63, %s12050_s15  ;;  %v2582_v62 = vrot.slane %v2503_v44, %v12366_v15  ;;  %v2586_v0 = vrot.slane %v2503_v44, %v12369_v16 }
 0x2f8   : > { %1746 = vrot.lane.b32.xlu1 %v12488_v32, %s12050_s15 }
 0x2fb   : > { %1792 = vrot.lane.b32.xlu0 %v12486_v63, %s12052_s23 }
 0x2fc   : > { %1794 = vrot.lane.b32.xlu1 %v12488_v32, %s12052_s23 }
 0x2ff   : > { %1840 = vrot.lane.b32.xlu0 %v12486_v63, %s12051_s30 }
 0x300   : > { %1842 = vrot.lane.b32.xlu1 %v12488_v32, %s12051_s30 }
 0x303   : > { %1748 = vrot.lane.b32.xlu0 %v12494_v35, %s12050_s15 }
 0x304   : > { %1750 = vrot.lane.b32.xlu1 %v12496_v36, %s12050_s15 }
 0x307   : > { %1796 = vrot.lane.b32.xlu0 %v12494_v35, %s12052_s23 }
 0x308   : > { %1798 = vrot.lane.b32.xlu1 %v12496_v36, %s12052_s23 }
 0x30b   : > { %1844 = vrot.lane.b32.xlu0 %v12494_v35, %s12051_s30 }
 0x30c   : > { %1846 = vrot.lane.b32.xlu1 %v12496_v36, %s12051_s30 }
 0x30f   : > { %1752 = vrot.lane.b32.xlu0 %v12525_v20, %s12050_s15 }
 0x310   : > { %1754 = vrot.lane.b32.xlu1 %v12523_v19, %s12050_s15 }
 0x313   : > { %1800 = vrot.lane.b32.xlu0 %v12525_v20, %s12052_s23 }
 0x314   : > { %1802 = vrot.lane.b32.xlu1 %v12523_v19, %s12052_s23 }
 0x317   : > { %1848 = vrot.lane.b32.xlu0 %v12525_v20, %s12051_s30 }
 0x318   : > { %1850 = vrot.lane.b32.xlu1 %v12523_v19, %s12051_s30 }
 0x31b   : > { %1756 = vrot.lane.b32.xlu0 %v12529_v30, %s12050_s15 }
 0x31c   : > { %1758 = vrot.lane.b32.xlu1 %v12527_v28, %s12050_s15 }
 0x31f   : > { %1804 = vrot.lane.b32.xlu0 %v12529_v30, %s12052_s23 }
 0x320   : > { %1806 = vrot.lane.b32.xlu1 %v12527_v28, %s12052_s23 }
 0x323   : > { %1852 = vrot.lane.b32.xlu0 %v12529_v30, %s12051_s30 }
 0x324   : > { %1854 = vrot.lane.b32.xlu1 %v12527_v28, %s12051_s30 }
 0x327   : > { %1760 = vrot.lane.b32.xlu0 %v12533_v33, %s12050_s15 }
 0x328   : > { %1762 = vrot.lane.b32.xlu1 %v12531_v31, %s12050_s15 }
 0x32b   : > { %1808 = vrot.lane.b32.xlu0 %v12533_v33, %s12052_s23 }
 0x32c   : > { %1810 = vrot.lane.b32.xlu1 %v12531_v31, %s12052_s23 }
 0x32f   : > { %1856 = vrot.lane.b32.xlu0 %v12533_v33, %s12051_s30 }
 0x330   : > { %1858 = vrot.lane.b32.xlu1 %v12531_v31, %s12051_s30 }
 0x333   : > { %1764 = vrot.lane.b32.xlu0 %v12537_v37, %s12050_s15 }
 0x334   : > { %1766 = vrot.lane.b32.xlu1 %v12535_v5, %s12050_s15 }
 0x337   : > { %1812 = vrot.lane.b32.xlu0 %v12537_v37, %s12052_s23 }
 0x338   : > { %1814 = vrot.lane.b32.xlu1 %v12535_v5, %s12052_s23 }
 0x33b   : > { %1860 = vrot.lane.b32.xlu0 %v12537_v37, %s12051_s30 }
 0x33c   : > { %1862 = vrot.lane.b32.xlu1 %v12535_v5, %s12051_s30 }
 0x33f   : > { %1933 = vrot.lane.b32.xlu0 %v12441_v10, %s12051_s30 }
 0x340   : > { %1935 = vrot.lane.b32.xlu1 %v12445_v12, %s12051_s30 }
 0x343   : > { %1939 = vrot.lane.b32.xlu0 %v12441_v10, %s12052_s23 }
 0x344   : > { %1941 = vrot.lane.b32.xlu1 %v12445_v12, %s12052_s23 }
 0x347   : > { %1945 = vrot.lane.b32.xlu0 %v12441_v10, %s12050_s15 }
 0x348   : > { %1947 = vrot.lane.b32.xlu1 %v12445_v12, %s12050_s15 }
 0x34b   : > { %1953 = vrot.lane.b32.xlu0 %v12443_v11, %s12051_s30 }
 0x34c   : > { %1955 = vrot.lane.b32.xlu1 %v12447_v13, %s12051_s30 }
 0x34f   : > { %1959 = vrot.lane.b32.xlu0 %v12443_v11, %s12052_s23 }
 0x350   : > { %1961 = vrot.lane.b32.xlu1 %v12447_v13, %s12052_s23 }
 0x351   : > { %v1737_v1 = vpop.permute.xlu0 %1736  ;;  %v1739_v43 = vpop.permute.xlu1 %1738 }
 0x352   : > { %v1881_v48 = vsel %vm1880_vm2, %v12476_v21, %v1737_v1  ;;  %v1882_v49 = vsel %vm1880_vm2, %v12478_v22, %v1739_v43  ;;  %v2501_v1 = vcombine.high %v2479_v45, %v2479_v45 }
 0x353   : > { %1965 = vrot.lane.b32.xlu0 %v12443_v11, %s12050_s15 }
 0x354   : > { %1967 = vrot.lane.b32.xlu1 %v12447_v13, %s12050_s15  ;;  %v2578_v45 = vrot.slane %v2501_v1, %v12369_v16 }
 0x355   : > { %v1785_v46 = vpop.permute.xlu0 %1784 }
 0x356   : > { %v1787_v47 = vpop.permute.xlu1 %1786  ;;  %v1898_v50 = vsel %vm1897_vm3, %v1881_v48, %v1785_v46  ;;  %v2470_v46 = vrot.slane %v2456_v3, %v12636_v41 }
 0x357   : > { %v1899_v54 = vsel %vm1897_vm3, %v1882_v49, %v1787_v47 }
 0x359   : > { %v1833_v7 = vpop.permute.xlu0 %1832 }
 0x35a   : > { %v1915_v55 = vsel %vm1914_vm4, %v1898_v50, %v1833_v7  ;;  %v1835_v56 = vpop.permute.xlu1 %1834  ;;  %v2574_v7 = vrot.slane %v2501_v1, %v12366_v15 }
 0x35b   : > { %v2715_v21 = vmul.f32 %v2558_v51, %v1915_v55  ;;  %v2716_v59 = vmul.f32 %v2562_v52, %v1915_v55  ;;  %v1916_v22 = vsel %vm1914_vm4, %v1899_v54, %v1835_v56 }
 0x35c   : > { %v2717_v60 = vmul.f32 %v2566_v57, %v1916_v22  ;;  %v2718_v61 = vmul.f32 %v2570_v58, %v1916_v22  ;;  %v2472_v57 = vcombine.high %v2470_v46, %v2470_v46  ;;  %v2486_v22 = vrot.slane %v2470_v46, %v12636_v41 }
 0x35d   : > { %v1741_v18 = vpop.permute.xlu0 %1740 }
 0x35e   : > { %v2747_v38 = vpack.c.bf16 %v2717_v60, %v2715_v21  ;;  %v1743_v39 = vpop.permute.xlu1 %1742  ;;  %v2748_v40 = vpack.c.bf16 %v2718_v61, %v2716_v59  ;;  %v1883_v47 = vsel %vm1880_vm2, %v12480_v23, %v1741_v18  ;;  %v2500_v61 = vrot.slane %v2472_v57, %v12636_v41 }
 0x35f   : > { %v1884_v48 = vsel %vm1880_vm2, %v12482_v25, %v1743_v39  ;;  %v2590_v1 = vrot.slane %v2486_v22, %v12366_v15 }
 0x360   : > { %2955 = vmatprep.mubr.bf16.mxu0 %v2748_v40 }
 0x361   : > { %2956 = vmatmul.mubr.bf16.vlgmr.msra.gmra.mrb[8].mxu0 %v2747_v38  ;;  %v1789_v42 = vpop.permute.xlu0 %1788 }
 0x362   : > { %v1791_v43 = vpop.permute.xlu1 %1790  ;;  %v1900_v49 = vsel %vm1897_vm3, %v1883_v47, %v1789_v42 }
 0x363   : > { %v1901_v2 = vsel %vm1897_vm3, %v1884_v48, %v1791_v43  ;;  %v2594_v43 = vrot.slane %v2486_v22, %v12369_v16  ;;  %v2598_v48 = vrot.slane %v2500_v61, %v12366_v15 }
 0x365   : > { %v1837_v50 = vpop.permute.xlu0 %1836 }
 0x366   : > { %v1917_v51 = vsel %vm1914_vm4, %v1900_v49, %v1837_v50  ;;  %v1839_v52 = vpop.permute.xlu1 %1838  ;;  %v2602_v49 = vrot.slane %v2500_v61, %v12369_v16 }
 0x367   : > { %v2719_v3 = vmul.f32 %v2574_v7, %v1917_v51  ;;  %v2720_v23 = vmul.f32 %v2578_v45, %v1917_v51  ;;  %v1918_v25 = vsel %vm1914_vm4, %v1901_v2, %v1839_v52 }
 0x368   : > { %v2721_v54 = vmul.f32 %v2582_v62, %v1918_v25  ;;  %v2722_v55 = vmul.f32 %v2586_v0, %v1918_v25  ;;  %v2504_v25 = vcombine.high %v2500_v61, %v2500_v61 }
 0x369   : > { %v1745_v56 = vpop.permute.xlu0 %1744 }
 0x36a   : > { %v1747_v58 = vpop.permute.xlu1 %1746  ;;  %v2750_v21 = vpack.c.bf16 %v2722_v55, %v2720_v23  ;;  %v2749_v59 = vpack.c.bf16 %v2721_v54, %v2719_v3  ;;  %v1885_v38 = vsel %vm1880_vm2, %v12486_v63, %v1745_v56  ;;  %v2502_v3 = vcombine.high %v2486_v22, %v2486_v22 }
 0x36b   : > { %v1886_v39 = vsel %vm1880_vm2, %v12488_v32, %v1747_v58  ;;  %v2513_v54 = vrot.slane %v2505_v8, %v12636_v41  ;;  %v2614_v8 = vrot.slane %v2504_v25, %v12366_v15 }
 0x36c   : > { %2965 = vmatprep.mubr.bf16.mxu0 %v2750_v21  ;;  %v2606_v21 = vrot.slane %v2502_v3, %v12366_v15 }
 0x36d   : > { %2966 = vmatmul.mubr.bf16.gmra.mrb[12].mxu0 %v2749_v59  ;;  %v1793_v60 = vpop.permute.xlu0 %1792  ;;  %v2610_v59 = vrot.slane %v2502_v3, %v12369_v16 }
 0x36e   : > { %v1795_v18 = vpop.permute.xlu1 %1794  ;;  %v1902_v40 = vsel %vm1897_vm3, %v1885_v38, %v1793_v60 }
 0x36f   : > { %v1903_v44 = vsel %vm1897_vm3, %v1886_v39, %v1795_v18  ;;  %v2618_v18 = vrot.slane %v2504_v25, %v12369_v16 }
 0x371   : > { %v1841_v42 = vpop.permute.xlu0 %1840 }
 0x372   : > { %v1919_v46 = vsel %vm1914_vm4, %v1902_v40, %v1841_v42  ;;  %v1843_v47 = vpop.permute.xlu1 %1842 }
 0x373   : > { %v2723_v63 = vmul.f32 %v2590_v1, %v1919_v46  ;;  %v2724_v50 = vmul.f32 %v2594_v43, %v1919_v46  ;;  %v1920_v32 = vsel %vm1914_vm4, %v1903_v44, %v1843_v47  ;;  %v2521_v1 = vcombine.high %v2513_v54, %v2513_v54 }
 0x374   : > { %v2725_v7 = vmul.f32 %v2598_v48, %v1920_v32  ;;  %v2726_v45 = vmul.f32 %v2602_v49, %v1920_v32  ;;  %v2529_v47 = vrot.slane %v2513_v54, %v12636_v41 }
 0x375   : > { %v1749_v2 = vpop.permute.xlu0 %1748  ;;  %v2543_v49 = vrot.slane %v2521_v1, %v12636_v41 }
 0x376   : > { %v1751_v51 = vpop.permute.xlu1 %1750  ;;  %v2752_v52 = vpack.c.bf16 %v2726_v45, %v2724_v50  ;;  %v2751_v62 = vpack.c.bf16 %v2725_v7, %v2723_v63  ;;  %v1887_v55 = vsel %vm1880_vm2, %v12494_v35, %v1749_v2  ;;  %v2622_v2 = vrot.slane %v2529_v47, %v12366_v15 }
 0x377   : > { %v1888_v56 = vsel %vm1880_vm2, %v12496_v36, %v1751_v51  ;;  %v2626_v51 = vrot.slane %v2529_v47, %v12369_v16  ;;  %v2630_v3 = vrot.slane %v2543_v49, %v12366_v15 }
 0x378   : > { %2975 = vmatprep.mubr.bf16.mxu0 %v2752_v52 }
 0x379   : > { %2976 = vmatmul.mubr.bf16.gmra.mrb[16].mxu0 %v2751_v62  ;;  %v1797_v0 = vpop.permute.xlu0 %1796 }
 0x37a   : > { %v1799_v23 = vpop.permute.xlu1 %1798  ;;  %v1904_v57 = vsel %vm1897_vm3, %v1887_v55, %v1797_v0 }
 0x37b   : > { %v1905_v22 = vsel %vm1897_vm3, %v1888_v56, %v1799_v23  ;;  %v2634_v23 = vrot.slane %v2543_v49, %v12369_v16 }
 0x37d   : > { %v1845_v58 = vpop.permute.xlu0 %1844 }
 0x37e   : > { %v1921_v60 = vsel %vm1914_vm4, %v1904_v57, %v1845_v58  ;;  %v1847_v61 = vpop.permute.xlu1 %1846 }
 0x37f   : > { %v2727_v35 = vmul.f32 %v2606_v21, %v1921_v60  ;;  %v2728_v38 = vmul.f32 %v2610_v59, %v1921_v60  ;;  %v1922_v36 = vsel %vm1914_vm4, %v1905_v22, %v1847_v61  ;;  %v2551_v22 = vcombine.high %v2529_v47, %v2529_v47 }
 0x380   : > { %v2729_v39 = vmul.f32 %v2614_v8, %v1922_v36  ;;  %v2730_v40 = vmul.f32 %v2618_v18, %v1922_v36  ;;  %v2553_v61 = vcombine.high %v2543_v49, %v2543_v49  ;;  %v2520_v8 = vrot.slane %v2506_v9, %v12636_v41 }
 0x381   : > { %v1753_v42 = vpop.permute.xlu0 %1752 }
 0x382   : > { %v1755_v43 = vpop.permute.xlu1 %1754  ;;  %v2754_v44 = vpack.c.bf16 %v2730_v40, %v2728_v38  ;;  %v2753_v46 = vpack.c.bf16 %v2729_v39, %v2727_v35  ;;  %v1889_v50 = vsel %vm1880_vm2, %v12525_v20, %v1753_v42  ;;  %v2638_v39 = vrot.slane %v2551_v22, %v12366_v15 }
 0x383   : > { %v1890_v32 = vsel %vm1880_vm2, %v12523_v19, %v1755_v43  ;;  %v2642_v40 = vrot.slane %v2551_v22, %v12369_v16  ;;  %v2646_v4 = vrot.slane %v2553_v61, %v12366_v15  ;;  %v2650_v6 = vrot.slane %v2553_v61, %v12369_v16 }
 0x384   : > { %2985 = vmatprep.mubr.bf16.mxu0 %v2754_v44 }
 0x385   : > { %2986 = vmatmul.mubr.bf16.gmra.mrb[20].mxu0 %v2753_v46  ;;  %v1801_v48 = vpop.permute.xlu0 %1800 }
 0x386   : > { %v1803_v63 = vpop.permute.xlu1 %1802  ;;  %v1906_v7 = vsel %vm1897_vm3, %v1889_v50, %v1801_v48  ;;  %v2522_v48 = vcombine.high %v2520_v8, %v2520_v8 }
 0x387   : > { %v1907_v52 = vsel %vm1897_vm3, %v1890_v32, %v1803_v63  ;;  %v2536_v32 = vrot.slane %v2520_v8, %v12636_v41 }
 0x389   : > { %v1849_v45 = vpop.permute.xlu0 %1848  ;;  %v2552_v8 = vcombine.high %v2536_v32, %v2536_v32 }
 0x38a   : > { %v1923_v62 = vsel %vm1914_vm4, %v1906_v7, %v1849_v45  ;;  %v1851_v0 = vpop.permute.xlu1 %1850  ;;  %v2550_v45 = vrot.slane %v2522_v48, %v12636_v41 }
 0x38b   : > { %v2731_v20 = vmul.f32 %v2622_v2, %v1923_v62  ;;  %v2732_v25 = vmul.f32 %v2626_v51, %v1923_v62  ;;  %v1924_v19 = vsel %vm1914_vm4, %v1907_v52, %v1851_v0 }
 0x38c   : > { %v2733_v54 = vmul.f32 %v2630_v3, %v1924_v19  ;;  %v2734_v55 = vmul.f32 %v2634_v23, %v1924_v19  ;;  %v2654_v3 = vrot.slane %v2536_v32, %v12366_v15  ;;  %v2658_v23 = vrot.slane %v2536_v32, %v12369_v16 }
 0x38d   : > { %v1757_v56 = vpop.permute.xlu0 %1756 }
 0x38e   : > { %v1759_v57 = vpop.permute.xlu1 %1758  ;;  %v2756_v58 = vpack.c.bf16 %v2734_v55, %v2732_v25  ;;  %v2755_v21 = vpack.c.bf16 %v2733_v54, %v2731_v20  ;;  %v1891_v18 = vsel %vm1880_vm2, %v12529_v30, %v1757_v56  ;;  %v2662_v54 = vrot.slane %v2550_v45, %v12366_v15 }
 0x38f   : > { %v1892_v35 = vsel %vm1880_vm2, %v12527_v28, %v1759_v57  ;;  %v2666_v55 = vrot.slane %v2550_v45, %v12369_v16 }
 0x390   : > { %2995 = vmatprep.mubr.bf16.mxu0 %v2756_v58 }
 0x391   : > { %2996 = vmatmul.mubr.bf16.gmra.mrb[24].mxu0 %v2755_v21  ;;  %v1805_v59 = vpop.permute.xlu0 %1804 }
 0x392   : > { %v1807_v60 = vpop.permute.xlu1 %1806  ;;  %v1908_v38 = vsel %vm1897_vm3, %v1891_v18, %v1805_v59 }
 0x393   : > { %v1909_v42 = vsel %vm1897_vm3, %v1892_v35, %v1807_v60  ;;  %v2554_v35 = vcombine.high %v2550_v45, %v2550_v45 }
 0x395   : > { %v1853_v36 = vpop.permute.xlu0 %1852 }
 0x396   : > { %v1925_v1 = vsel %vm1914_vm4, %v1908_v38, %v1853_v36  ;;  %v1855_v43 = vpop.permute.xlu1 %1854 }
 0x397   : > { %v2735_v9 = vmul.f32 %v2638_v39, %v1925_v1  ;;  %v2736_v30 = vmul.f32 %v2642_v40, %v1925_v1  ;;  %v1926_v28 = vsel %vm1914_vm4, %v1909_v42, %v1855_v43  ;;  %v2670_v42 = vrot.slane %v2552_v8, %v12366_v15 }
 0x398   : > { %v2737_v44 = vmul.f32 %v2646_v4, %v1926_v28  ;;  %v2738_v46 = vmul.f32 %v2650_v6, %v1926_v28  ;;  %v2674_v1 = vrot.slane %v2552_v8, %v12369_v16 }
 0x399   : > { %v1761_v47 = vpop.permute.xlu0 %1760 }
 0x39a   : > { %v1763_v49 = vpop.permute.xlu1 %1762  ;;  %v2758_v63 = vpack.c.bf16 %v2738_v46, %v2736_v30  ;;  %v2757_v50 = vpack.c.bf16 %v2737_v44, %v2735_v9  ;;  %v1893_v51 = vsel %vm1880_vm2, %v12533_v33, %v1761_v47  ;;  %v2678_v9 = vrot.slane %v2554_v35, %v12366_v15 }
 0x39b   : > { %v1894_v52 = vsel %vm1880_vm2, %v12531_v31, %v1763_v49  ;;  %v2682_v30 = vrot.slane %v2554_v35, %v12369_v16 }
 0x39c   : > { %3005 = vmatprep.mubr.bf16.mxu0 %v2758_v63 }
 0x39d   : > { %3006 = vmatmul.mubr.bf16.gmra.mrb[28].mxu0 %v2757_v50  ;;  %v1809_v7 = vpop.permute.xlu0 %1808 }
 0x39e   : > { %v1811_v2 = vpop.permute.xlu1 %1810  ;;  %v1910_v62 = vsel %vm1897_vm3, %v1893_v51, %v1809_v7 }
 0x39f   : > { %v1911_v20 = vsel %vm1897_vm3, %v1894_v52, %v1811_v2 }
 0x3a1   : > { %v1857_v0 = vpop.permute.xlu0 %1856 }
 0x3a2   : > { %v1927_v25 = vsel %vm1914_vm4, %v1910_v62, %v1857_v0  ;;  %v1859_v19 = vpop.permute.xlu1 %1858 }
 0x3a3   : > { %v2739_v33 = vmul.f32 %v2654_v3, %v1927_v25  ;;  %v2740_v56 = vmul.f32 %v2658_v23, %v1927_v25  ;;  %v1928_v31 = vsel %vm1914_vm4, %v1911_v20, %v1859_v19 }
 0x3a4   : > { %v2741_v57 = vmul.f32 %v2662_v54, %v1928_v31  ;;  %v2742_v58 = vmul.f32 %v2666_v55, %v1928_v31 }
 0x3a5   : > { %v1765_v21 = vpop.permute.xlu0 %1764 }
 0x3a6   : > { %v1767_v59 = vpop.permute.xlu1 %1766  ;;  %v2760_v22 = vpack.c.bf16 %v2742_v58, %v2740_v56  ;;  %v2759_v60 = vpack.c.bf16 %v2741_v57, %v2739_v33  ;;  %v1895_v38 = vsel %vm1880_vm2, %v12537_v37, %v1765_v21 }
 0x3a7   : > { %v1896_v36 = vsel %vm1880_vm2, %v12535_v5, %v1767_v59 }
 0x3a8   : > { %3015 = vmatprep.mubr.bf16.mxu0 %v2760_v22 }
 0x3a9   : > { %3016 = vmatmul.mubr.bf16.gmra.mrb[32].mxu0 %v2759_v60  ;;  %v1813_v61 = vpop.permute.xlu0 %1812 }
 0x3aa   : > { %v1815_v18 = vpop.permute.xlu1 %1814  ;;  %v1912_v39 = vsel %vm1897_vm3, %v1895_v38, %v1813_v61 }
 0x3ab   : > { %v1913_v43 = vsel %vm1897_vm3, %v1896_v36, %v1815_v18 }
 0x3ad   : > { %v1861_v40 = vpop.permute.xlu0 %1860 }
 0x3ae   : > { %v1929_v4 = vsel %vm1914_vm4, %v1912_v39, %v1861_v40  ;;  %v1863_v6 = vpop.permute.xlu1 %1862 }
 0x3af   : > { %v2743_v37 = vmul.f32 %v2670_v42, %v1929_v4  ;;  %v2744_v28 = vmul.f32 %v2674_v1, %v1929_v4  ;;  %v1930_v5 = vsel %vm1914_vm4, %v1913_v43, %v1863_v6 }
 0x3b0   : > { %v2745_v44 = vmul.f32 %v2678_v9, %v1930_v5  ;;  %v2746_v46 = vmul.f32 %v2682_v30, %v1930_v5 }
 0x3b1   : > { %v1934_v47 = vpop.permute.xlu0 %1933 }
 0x3b2   : > { %v1936_v48 = vpop.permute.xlu1 %1935  ;;  %v2762_v49 = vpack.c.bf16 %v2746_v46, %v2744_v28  ;;  %v2761_v63 = vpack.c.bf16 %v2745_v44, %v2743_v37 }
 0x3b4   : > { %3025 = vmatprep.mubr.bf16.mxu0 %v2762_v49 }
 0x3b5   : > { %3026 = vmatmul.mubr.bf16.gmra.mrb[36].mxu0 %v2761_v63  ;;  %v1940_v50 = vpop.permute.xlu0 %1939 }
 0x3b6   : > { %v1942_v32 = vpop.permute.xlu1 %1941  ;;  %v1971_v45 = vcombine.low %v12441_v10, %v1940_v50  ;;  %v1972_v62 = vcombine.high %v12441_v10, %v1940_v50 }
 0x3b7   : > { %v2107_v23 = vcombine.low %v12445_v12, %v1942_v32  ;;  %v2108_v25 = vcombine.high %v12445_v12, %v1942_v32 }
 0x3b8   : > { %v1979_v55 = vrot.slane %v1971_v45, %v12450_v53  ;;  %v1986_v31 = vrot.slane %v1972_v62, %v12450_v53 }
 0x3b9   : > { %v1946_v7 = vpop.permute.xlu0 %1945  ;;  %v2115_v57 = vrot.slane %v2107_v23, %v12450_v53  ;;  %v2122_v59 = vrot.slane %v2108_v25, %v12450_v53 }
 0x3ba   : > { %v1987_v2 = vcombine.low %v1934_v47, %v1946_v7  ;;  %v1988_v51 = vcombine.high %v1934_v47, %v1946_v7  ;;  %v1948_v52 = vpop.permute.xlu1 %1947 }
 0x3bb   : > { %v2123_v0 = vcombine.low %v1936_v48, %v1948_v52  ;;  %v2124_v3 = vcombine.high %v1936_v48, %v1948_v52 }
 0x3bc   : > { %v1995_v20 = vrot.slane %v1987_v2, %v12450_v53  ;;  %v2002_v19 = vrot.slane %v1988_v51, %v12450_v53 }
 0x3bd   : > { %v1954_v54 = vpop.permute.xlu0 %1953  ;;  %v2131_v33 = vrot.slane %v2123_v0, %v12450_v53  ;;  %v2138_v10 = vrot.slane %v2124_v3, %v12450_v53 }
 0x3be   : > { %v1956_v56 = vpop.permute.xlu1 %1955  ;;  %v2035_v58 = vcombine.low %v1979_v55, %v1995_v20  ;;  %v2036_v21 = vcombine.high %v1979_v55, %v1995_v20  ;;  %v2051_v22 = vcombine.low %v1986_v31, %v2002_v19  ;;  %v2052_v12 = vcombine.high %v1986_v31, %v2002_v19 }
 0x3bf   : > { %v2171_v61 = vcombine.low %v2115_v57, %v2131_v33  ;;  %v2172_v8 = vcombine.high %v2115_v57, %v2131_v33  ;;  %v2187_v35 = vcombine.low %v2122_v59, %v2138_v10  ;;  %v2188_v38 = vcombine.high %v2122_v59, %v2138_v10 }
 0x3c0   : > { %v2043_v40 = vrot.slane %v2035_v58, %v12461_v34  ;;  %v2050_v42 = vrot.slane %v2036_v21, %v12461_v34  ;;  %v2059_v6 = vrot.slane %v2051_v22, %v12461_v34  ;;  %v2066_v9 = vrot.slane %v2052_v12, %v12461_v34 }
 0x3c1   : > { %v1960_v60 = vpop.permute.xlu0 %1959  ;;  %v2179_v5 = vrot.slane %v2171_v61, %v12461_v34  ;;  %v2195_v47 = vrot.slane %v2187_v35, %v12461_v34  ;;  %v2202_v48 = vrot.slane %v2188_v38, %v12461_v34 }
 0x3c2   : > { %v1962_v18 = vpop.permute.xlu1 %1961  ;;  %v2003_v36 = vcombine.low %v12443_v11, %v1960_v60  ;;  %v2004_v39 = vcombine.high %v12443_v11, %v1960_v60  ;;  %v2186_v11 = vrot.slane %v2172_v8, %v12461_v34 }
 0x3c3   : > { %v2139_v1 = vcombine.low %v12447_v13, %v1962_v18  ;;  %v2140_v43 = vcombine.high %v12447_v13, %v1962_v18 }
 0x3c4   : > { %v2011_v13 = vrot.slane %v2003_v36, %v12450_v53  ;;  %v2018_v49 = vrot.slane %v2004_v39, %v12450_v53 }
 0x3c5   : > { %v1966_v4 = vpop.permute.xlu0 %1965  ;;  %v2147_v32 = vrot.slane %v2139_v1, %v12450_v53  ;;  %v2154_v7 = vrot.slane %v2140_v43, %v12450_v53 }
 0x3c6   : > { %v2019_v30 = vcombine.low %v1954_v54, %v1966_v4  ;;  %v2020_v37 = vcombine.high %v1954_v54, %v1966_v4  ;;  %v1968_v28 = vpop.permute.xlu1 %1967 }
 0x3c7   : > { %v2155_v44 = vcombine.low %v1956_v56, %v1968_v28  ;;  %v2156_v46 = vcombine.high %v1956_v56, %v1968_v28 }
 0x3c8   : > { %v2027_v63 = vrot.slane %v2019_v30, %v12450_v53  ;;  %v2034_v50 = vrot.slane %v2020_v37, %v12450_v53 }
 0x3c9   : > { %v2163_v45 = vrot.slane %v2155_v44, %v12450_v53  ;;  %v2170_v2 = vrot.slane %v2156_v46, %v12450_v53 }
 0x3ca   : > { %v2067_v51 = vcombine.low %v2011_v13, %v2027_v63  ;;  %v2068_v52 = vcombine.high %v2011_v13, %v2027_v63  ;;  %v2083_v62 = vcombine.low %v2018_v49, %v2034_v50  ;;  %v2084_v0 = vcombine.high %v2018_v49, %v2034_v50 }
 0x3cb   : > { %v2203_v3 = vcombine.low %v2147_v32, %v2163_v45  ;;  %v2204_v23 = vcombine.high %v2147_v32, %v2163_v45  ;;  %v2219_v20 = vcombine.low %v2154_v7, %v2170_v2  ;;  %v2220_v25 = vcombine.high %v2154_v7, %v2170_v2 }
 0x3cc   : > { %v2075_v19 = vrot.slane %v2067_v51, %v12461_v34  ;;  %v2082_v54 = vrot.slane %v2068_v52, %v12461_v34  ;;  %v2091_v55 = vrot.slane %v2083_v62, %v12461_v34  ;;  %v2098_v33 = vrot.slane %v2084_v0, %v12461_v34 }
 0x3cd   : > { %v2211_v56 = vrot.slane %v2203_v3, %v12461_v34  ;;  %v2218_v31 = vrot.slane %v2204_v23, %v12461_v34  ;;  %v2227_v10 = vrot.slane %v2219_v20, %v12461_v34  ;;  %v2234_v57 = vrot.slane %v2220_v25, %v12461_v34 }
 0x3ce   : > { %v12810_v58 = vcombine.low %v2043_v40, %v2075_v19  ;;  %v12812_v21 = vcombine.high %v2043_v40, %v2075_v19  ;;  %v12814_v59 = vcombine.low %v2050_v42, %v2082_v54  ;;  %v12816_v22 = vcombine.high %v2050_v42, %v2082_v54 }
 0x3cf   : > { %v12818_v12 = vcombine.high %v2179_v5, %v2211_v56  ;;  %v12820_v60 = vcombine.low %v2186_v11, %v2218_v31  ;;  %v12822_v61 = vcombine.low %v2059_v6, %v2091_v55  ;;  %v12824_v8 = vcombine.high %v2186_v11, %v2218_v31 }
 0x3d0   : > { %2259 = vrot.lane.b32.xlu0 %v12810_v58, %s12050_s15  ;;  %2261 = vrot.lane.b32.xlu1 %v12812_v21, %s12050_s15  ;;  %v12830_v18 = vcombine.high %v2059_v6, %v2091_v55  ;;  %v12832_v35 = vcombine.low %v2195_v47, %v2227_v10  ;;  %v12834_v38 = vcombine.low %v2066_v9, %v2098_v33 }
 0x3d1   : > { %v12836_v36 = vcombine.high %v2195_v47, %v2227_v10  ;;  %v12838_v39 = vcombine.high %v2066_v9, %v2098_v33  ;;  %v12840_v40 = vcombine.low %v2202_v48, %v2234_v57  ;;  %v12842_v42 = vcombine.high %v2202_v48, %v2234_v57 }
 0x3d2   : > { %v12844_v1 = vcombine.low %v2179_v5, %v2211_v56 }
 0x3d3   : > { %15055 = vst [vmem:[#allocation35_spill] sm:$0xff] %v12838_v39  ;;  %15056 = vst [vmem:[#allocation36_spill] sm:$0xff] %v12840_v40 }
 0x3d4   : > { %15057 = vst [vmem:[#allocation37_spill] sm:$0xff] %v12842_v42  ;;  %15058 = vst [vmem:[#allocation38_spill] sm:$0xff] %v12844_v1  ;;  %2263 = vrot.lane.b32.xlu0 %v12814_v59, %s12050_s15  ;;  %2309 = vrot.lane.b32.xlu1 %v12812_v21, %s12052_s23 }
 0x3d8   : > { %2307 = vrot.lane.b32.xlu0 %v12810_v58, %s12052_s23  ;;  %2357 = vrot.lane.b32.xlu1 %v12812_v21, %s12051_s30 }
 0x3dc   : > { %2265 = vrot.lane.b32.xlu0 %v12816_v22, %s12050_s15  ;;  %2277 = vrot.lane.b32.xlu1 %v12818_v12, %s12050_s15 }
 0x3e0   : > { %2311 = vrot.lane.b32.xlu0 %v12814_v59, %s12052_s23  ;;  %2279 = vrot.lane.b32.xlu1 %v12820_v60, %s12050_s15 }
 0x3e4   : > { %2355 = vrot.lane.b32.xlu0 %v12810_v58, %s12051_s30  ;;  %2325 = vrot.lane.b32.xlu1 %v12818_v12, %s12052_s23 }
 0x3e8   : > { %2267 = vrot.lane.b32.xlu0 %v12822_v61, %s12050_s15  ;;  %2281 = vrot.lane.b32.xlu1 %v12824_v8, %s12050_s15 }
 0x3ec   : > { %2313 = vrot.lane.b32.xlu0 %v12816_v22, %s12052_s23  ;;  %2327 = vrot.lane.b32.xlu1 %v12820_v60, %s12052_s23 }
 0x3f0   : > { %2359 = vrot.lane.b32.xlu0 %v12814_v59, %s12051_s30  ;;  %2373 = vrot.lane.b32.xlu1 %v12818_v12, %s12051_s30 }
 0x3f4   : > { %2269 = vrot.lane.b32.xlu0 %v12830_v18, %s12050_s15  ;;  %2283 = vrot.lane.b32.xlu1 %v12832_v35, %s12050_s15 }
 0x3f8   : > { %2315 = vrot.lane.b32.xlu0 %v12822_v61, %s12052_s23  ;;  %2329 = vrot.lane.b32.xlu1 %v12824_v8, %s12052_s23 }
 0x3fc   : > { %2361 = vrot.lane.b32.xlu0 %v12816_v22, %s12051_s30  ;;  %2375 = vrot.lane.b32.xlu1 %v12820_v60, %s12051_s30 }
 0x400   : > { %2271 = vrot.lane.b32.xlu0 %v12834_v38, %s12050_s15  ;;  %2285 = vrot.lane.b32.xlu1 %v12836_v36, %s12050_s15 }
 0x404   : > { %2317 = vrot.lane.b32.xlu0 %v12830_v18, %s12052_s23  ;;  %2331 = vrot.lane.b32.xlu1 %v12832_v35, %s12052_s23 }
 0x408   : > { %2363 = vrot.lane.b32.xlu0 %v12822_v61, %s12051_s30  ;;  %2377 = vrot.lane.b32.xlu1 %v12824_v8, %s12051_s30 }
 0x40c   : > { %2273 = vrot.lane.b32.xlu0 %v12838_v39, %s12050_s15  ;;  %2287 = vrot.lane.b32.xlu1 %v12840_v40, %s12050_s15 }
 0x410   : > { %2319 = vrot.lane.b32.xlu0 %v12834_v38, %s12052_s23  ;;  %2333 = vrot.lane.b32.xlu1 %v12836_v36, %s12052_s23 }
 0x414   : > { %2365 = vrot.lane.b32.xlu0 %v12830_v18, %s12051_s30  ;;  %2379 = vrot.lane.b32.xlu1 %v12832_v35, %s12051_s30 }
 0x418   : > { %2321 = vrot.lane.b32.xlu0 %v12838_v39, %s12052_s23  ;;  %2289 = vrot.lane.b32.xlu1 %v12842_v42, %s12050_s15 }
 0x41c   : > { %2335 = vrot.lane.b32.xlu1 %v12840_v40, %s12052_s23  ;;  %2275 = vrot.lane.b32.xlu0 %v12844_v1, %s12050_s15 }
 0x420   : > { %2381 = vrot.lane.b32.xlu1 %v12836_v36, %s12051_s30  ;;  %2323 = vrot.lane.b32.xlu0 %v12844_v1, %s12052_s23 }
 0x424   : > { %2337 = vrot.lane.b32.xlu1 %v12842_v42, %s12052_s23  ;;  %2371 = vrot.lane.b32.xlu0 %v12844_v1, %s12051_s30 }
 0x428   : > { %2383 = vrot.lane.b32.xlu1 %v12840_v40, %s12051_s30  ;;  %2367 = vrot.lane.b32.xlu0 %v12834_v38, %s12051_s30 }
 0x42c   : > { %2385 = vrot.lane.b32.xlu1 %v12842_v42, %s12051_s30  ;;  %2369 = vrot.lane.b32.xlu0 %v12838_v39, %s12051_s30 }
 0x434   : > { %v2957_v43 = vpop.f32.mrb[8].mxu0 }
 0x435   : > { %v3036_v4 = vrot.slane %v2957_v43, 4  ;;  %v12938_v6 = vpop.f32.mrb[9].mxu0 }
 0x436   : > { %v3042_v9 = vrot.slane %v12938_v6, 4  ;;  %v2961_v30 = vpop.f32.mrb[10].mxu0 }
 0x437   : > { %v3037_v37 = vmax.f32 %v2957_v43, %v3036_v4  ;;  %v3048_v28 = vrot.slane %v2961_v30, 4  ;;  %v2963_v5 = vpop.f32.mrb[11].mxu0 }
 0x438   : > { %v3043_v11 = vmax.f32 %v12938_v6, %v3042_v9  ;;  %v3054_v44 = vrot.slane %v2963_v5, 4 }
 0x439   : > { %v3038_v46 = vrot.slane %v3037_v37, 2  ;;  %v3049_v47 = vmax.f32 %v2961_v30, %v3048_v28 }
 0x43a   : > { %v3044_v48 = vrot.slane %v3043_v11, 2  ;;  %v3055_v13 = vmax.f32 %v2963_v5, %v3054_v44 }
 0x43b   : > { %v3039_v49 = vmax.f32 %v3037_v37, %v3038_v46  ;;  %v3050_v63 = vrot.slane %v3049_v47, 2 }
 0x43c   : > { %v3045_v50 = vmax.f32 %v3043_v11, %v3044_v48  ;;  %v3056_v32 = vrot.slane %v3055_v13, 2 }
 0x43d   : > { %v3040_v7 = vrot.slane %v3039_v49, 1  ;;  %v3051_v45 = vmax.f32 %v3049_v47, %v3050_v63 }
 0x43e   : > { %v3057_v2 = vmax.f32 %v3055_v13, %v3056_v32  ;;  %v3046_v52 = vrot.slane %v3045_v50, 1 }
 0x43f   : > { %v3052_v51 = vrot.slane %v3051_v45, 1  ;;  %v3041_v3 = vmax.f32 %v3039_v49, %v3040_v7 }
 0x440   : > { %v3058_v62 = vrot.slane %v3057_v2, 1  ;;  %v2967_v0 = vpop.f32.mrb[12].mxu0  ;;  %v3047_v9 = vmax.f32 %v3045_v50, %v3046_v52 }
 0x441   : > { %v3053_v23 = vmax.f32 %v3051_v45, %v3052_v51  ;;  %v3060_v20 = vrot.slane %v2967_v0, 4  ;;  %v12942_v25 = vpop.f32.mrb[13].mxu0  ;;  %v3228_v44 = vsub.f32 %v2957_v43, %v3041_v3 }
 0x442   : > { %v3059_v19 = vmax.f32 %v3057_v2, %v3058_v62  ;;  %v3066_v54 = vrot.slane %v12942_v25, 4  ;;  %v12945_v55 = vpop.f32.mrb[14].mxu0  ;;  %v12947_v33 = vpop.permute.xlu0 %2259 }
 0x443   : > { %v3230_v56 = vsub.f32 %v2961_v30, %v3053_v23  ;;  %v3061_v31 = vmax.f32 %v2967_v0, %v3060_v20  ;;  %v3072_v10 = vrot.slane %v12945_v55, 4  ;;  %v12950_v57 = vpop.f32.mrb[15].mxu0  ;;  %v2262_v4 = vpop.permute.xlu1 %2261  ;;  %v3260_v43 = vmul.f32 1.442695, %v3228_v44 }
 0x444   : > { %v3231_v37 = vsub.f32 %v2963_v5, %v3059_v19  ;;  %v3067_v28 = vmax.f32 %v12942_v25, %v3066_v54  ;;  %v3078_v11 = vrot.slane %v12950_v57, 4  ;;  %v3229_v5 = vsub.f32 %v12938_v6, %v3047_v9 }
 0x445   : > { %v3264_v46 = vmul.f32 1.442695, %v3230_v56  ;;  %v3062_v47 = vrot.slane %v3061_v31, 2  ;;  %v3073_v48 = vmax.f32 %v12945_v55, %v3072_v10 }
 0x446   : > { %v3266_v13 = vmul.f32 1.442695, %v3231_v37  ;;  %v3068_v49 = vrot.slane %v3067_v28, 2  ;;  %v3079_v30 = vmax.f32 %v12950_v57, %v3078_v11  ;;  %v12956_v63 = vpop.permute.xlu0 %2263  ;;  %v3262_v54 = vmul.f32 1.442695, %v3229_v5 }
 0x447   : > { %11534 = vpow2.f32 %v3264_v46  ;;  %v3063_v32 = vmax.f32 %v3061_v31, %v3062_v47  ;;  %v3074_v7 = vrot.slane %v3073_v48, 2  ;;  %v2310_v2 = vpop.permute.xlu1 %2309  ;;  %v2404_v46 = vsel %vm1880_vm2, %v12812_v21, %v2262_v4 }
 0x448   : > { %11536 = vpow2.f32 %v3266_v13  ;;  %v3069_v50 = vmax.f32 %v3067_v28, %v3068_v49  ;;  %v3080_v45 = vrot.slane %v3079_v30, 2  ;;  %v2420_v5 = vsel %vm1897_vm3, %v2404_v46, %v2310_v2 }
 0x449   : > { %v3064_v51 = vrot.slane %v3063_v32, 1  ;;  %v3075_v52 = vmax.f32 %v3073_v48, %v3074_v7  ;;  %11538 = vpow2.f32 %v3260_v43 }
 0x44a   : > { %v3070_v62 = vrot.slane %v3069_v50, 1  ;;  %v3081_v3 = vmax.f32 %v3079_v30, %v3080_v45  ;;  %v12959_v19 = vpop.permute.xlu0 %2307  ;;  %11540 = vpow2.f32 %v3262_v54 }
 0x44b   : > { %v3065_v23 = vmax.f32 %v3063_v32, %v3064_v51  ;;  %v3076_v20 = vrot.slane %v3075_v52, 1  ;;  %v2358_v47 = vpop.permute.xlu1 %2357 }
 0x44c   : > { %v3071_v56 = vmax.f32 %v3069_v50, %v3070_v62  ;;  %v3082_v10 = vrot.slane %v3081_v3, 1  ;;  %v12961_v31 = vpop.f32.mrb[16].mxu0  ;;  %v2436_v45 = vsel %vm1914_vm4, %v2420_v5, %v2358_v47 }
 0x44d   : > { %v3232_v6 = vsub.f32 %v2967_v0, %v3065_v23  ;;  %v3077_v9 = vmax.f32 %v3075_v52, %v3076_v20  ;;  %v3084_v37 = vrot.slane %v12961_v31, 4  ;;  %v12964_v28 = vpop.f32.mrb[17].mxu0 }
 0x44e   : > { %v3233_v11 = vsub.f32 %v12942_v25, %v3071_v56  ;;  %v3083_v44 = vmax.f32 %v3081_v3, %v3082_v10  ;;  %v3090_v48 = vrot.slane %v12964_v28, 4  ;;  %v12970_v13 = vpop.f32.mrb[18].mxu0  ;;  %v12982_v51 = vpop.permute.xlu0 %2265 }
 0x44f   : > { %v3268_v49 = vmul.f32 1.442695, %v3232_v6  ;;  %v3234_v30 = vsub.f32 %v12945_v55, %v3077_v9  ;;  %v3085_v0 = vmax.f32 %v12961_v31, %v3084_v37  ;;  %v3096_v32 = vrot.slane %v12970_v13, 4  ;;  %v12975_v7 = vpop.f32.mrb[19].mxu0 }
 0x450   : > { %v3235_v25 = vsub.f32 %v12950_v57, %v3083_v44  ;;  %v3091_v21 = vmax.f32 %v12964_v28, %v3090_v48  ;;  %v3270_v50 = vmul.f32 1.442695, %v3233_v11  ;;  %v3102_v23 = vrot.slane %v12975_v7, 4 }
 0x451   : > { %v11535_v4 = vpop.eup %11534  ;;  %v3086_v43 = vrot.slane %v3085_v0, 2  ;;  %v3097_v55 = vmax.f32 %v12970_v13, %v3096_v32  ;;  %11542 = vpow2.f32 %v3268_v49  ;;  %v3272_v57 = vmul.f32 1.442695, %v3234_v30 }
 0x452   : > { %v11537_v52 = vpop.eup %11536  ;;  %v3336_v62 = vrot.slane %v11535_v4, 4  ;;  %v3518_v3 = vmul.f32 %v11535_v4, %v2436_v45  ;;  %v3274_v56 = vmul.f32 1.442695, %v3235_v25  ;;  %v3092_v9 = vrot.slane %v3091_v21, 2 }
 0x453   : > { %v3342_v20 = vrot.slane %v11537_v52, 4  ;;  %v3519_v2 = vmul.f32 %v11537_v52, %v2436_v45  ;;  %v3087_v54 = vmax.f32 %v3085_v0, %v3086_v43  ;;  %v3098_v46 = vrot.slane %v3097_v55, 2  ;;  %v12986_v5 = vpop.eup %11538  ;;  %v12988_v0 = vpop.permute.xlu0 %2311 }
 0x454   : > { %v3337_v10 = vadd.f32 %v11535_v4, %v3336_v62  ;;  %v3560_v6 = vrot.slane %v3518_v3, 4  ;;  %v3093_v32 = vmax.f32 %v3091_v21, %v3092_v9  ;;  %v3103_v49 = vmax.f32 %v12975_v7, %v3102_v23  ;;  %v10889_v9 = vld [vmem:[#allocation5] ss:$8 sps:$4 sm:$0xff]  }
 0x455   : > { %v3343_v37 = vadd.f32 %v11537_v52, %v3342_v20  ;;  %v3566_v11 = vrot.slane %v3519_v2, 4  ;;  %v3088_v44 = vrot.slane %v3087_v54, 1  ;;  %v3099_v45 = vmax.f32 %v3097_v55, %v3098_v46  ;;  %v10891_v20 = vld [vmem:[#allocation5 + $0x4] ss:$8 sps:$4 sm:$0xff]  }
 0x456   : > { %v3338_v47 = vrot.slane %v3337_v10, 2  ;;  %v3561_v48 = vadd.f32 %v3560_v6, %v3518_v3  ;;  %v3094_v43 = vrot.slane %v3093_v32, 1  ;;  %v3104_v52 = vrot.slane %v3103_v49, 2  ;;  %4131 = vmatprep.subr.bf16.mxu1 %v10891_v20  ;;  %v10895_v20 = vld [vmem:[#allocation5 + $0x20] ss:$8 sps:$4 sm:$0xff]  }
 0x457   : > { %v3344_v17 = vrot.slane %v3343_v37, 2  ;;  %v3567_v30 = vadd.f32 %v3566_v11, %v3519_v2  ;;  %v3089_v41 = vmax.f32 %v3087_v54, %v3088_v44  ;;  %v3100_v23 = vrot.slane %v3099_v45, 1  ;;  %v11541_v2 = vpop.eup %11540  ;;  %4132 = vmatpush1.bf16.msra.mxu1 %v10889_v9 }
 0x458   : > { %v3339_v25 = vadd.f32 %v3338_v47, %v3337_v10  ;;  %v3562_v4 = vrot.slane %v3561_v48, 2  ;;  %v12990_v62 = vpop.f32.mrb[20].mxu0  ;;  %v3095_v11 = vmax.f32 %v3093_v32, %v3094_v43  ;;  %v3105_v44 = vmax.f32 %v3103_v49, %v3104_v52  ;;  %v2356_v43 = vpop.permute.xlu0 %2355 }
 0x459   : > { %v3345_v34 = vadd.f32 %v3344_v17, %v3343_v37  ;;  %v3568_v3 = vrot.slane %v3567_v30, 2  ;;  %v3236_v21 = vsub.f32 %v12961_v31, %v3089_v41  ;;  %v12993_v6 = vpop.f32.mrb[21].mxu0  ;;  %11544 = vpow2.f32 %v3270_v50  ;;  %v10892_v50 = vld [vmem:[#allocation5 + $0x10] ss:$8 sps:$4 sm:$0xff]  }
 0x45a   : > { %v3340_v54 = vrot.slane %v3339_v25, 1  ;;  %v3563_v55 = vadd.f32 %v3562_v4, %v3561_v48  ;;  %v12995_v10 = vpop.f32.mrb[22].mxu0  ;;  %v3101_v53 = vmax.f32 %v3099_v45, %v3100_v23  ;;  %11546 = vpow2.f32 %v3272_v57  ;;  %v10894_v48 = vld [vmem:[#allocation5 + $0x14] ss:$8 sps:$4 sm:$0xff]  }
 0x45b   : > { %v3346_v46 = vrot.slane %v3345_v34, 1  ;;  %v3569_v47 = vadd.f32 %v3568_v3, %v3567_v30  ;;  %v12997_v17 = vpop.f32.mrb[23].mxu0  ;;  %v12999_v41 = vpop.eup %11542  ;;  %v3276_v37 = vmul.f32 1.442695, %v3236_v21  ;;  %v3237_v16 = vsub.f32 %v12964_v28, %v3095_v11  ;;  %4133 = vmatprep.subr.bf16.mxu1 %v10894_v48 }
 0x45c   : > { %v3341_v31 = vadd.f32 %v3340_v54, %v3339_v25  ;;  %11548 = vpow2.f32 %v3274_v56  ;;  %v3564_v49 = vrot.slane %v3563_v55, 1  ;;  %v3106_v4 = vrot.slane %v3105_v44, 1  ;;  %4134 = vmatpush1.bf16.msra.mxu1 %v10892_v50  ;;  %v13013_v25 = vpop.permute.xlu1 %2277  ;;  %v13024_v54 = vpop.permute.xlu0 %2267 }
 0x45d   : > { %v3347_v32 = vadd.f32 %v3346_v46, %v3345_v34  ;;  %v3570_v30 = vrot.slane %v3569_v47, 1  ;;  %v3238_v45 = vsub.f32 %v12970_v13, %v3101_v53  ;;  %v2403_v57 = vsel %vm1880_vm2, %v12810_v58, %v12947_v33  ;;  %v10897_v53 = vld [vmem:[#allocation5 + $0x24] ss:$8 sps:$4 sm:$0xff]  }
 0x45e   : > { %11550 = vrcp.f32 %v3341_v31  ;;  %v13009_v28 = vsel %vm1880_vm2, %v12814_v59, %v12956_v63  ;;  %v2419_v34 = vsel %vm1897_vm3, %v2403_v57, %v12959_v19  ;;  %v3278_v56 = vmul.f32 1.442695, %v3237_v16  ;;  %4135 = vmatprep.subr.bf16.mxu1 %v10897_v53 }
 0x45f   : > { %11552 = vrcp.f32 %v3347_v32  ;;  %v3565_v13 = vadd.f32 %v3564_v49, %v3563_v55  ;;  %v13015_v52 = vmax.f32 %v3105_v44, %v3106_v4  ;;  %v3324_v58 = vrot.slane %v12986_v5, 4 }
 0x460   : > { %11554 = vpow2.f32 %v3276_v37  ;;  %v3330_v33 = vrot.slane %v11541_v2, 4  ;;  %v3571_v3 = vadd.f32 %v3570_v30, %v3569_v47  ;;  %v13018_v21 = vmul.f32 1.442695, %v3238_v45  ;;  %4136 = vmatpush1.bf16.msra.mxu1 %v10895_v20  ;;  %v10900_v47 = vld [vmem:[#allocation5 + $0x34] ss:$8 sps:$4 sm:$0xff]   ;;  %v2280_v4 = vpop.permute.xlu1 %2279  ;;  %v2314_v1 = vpop.permute.xlu0 %2313 }
 0x461   : > { %v2435_v59 = vsel %vm1914_vm4, %v2419_v34, %v2356_v43  ;;  %v3108_v63 = vrot.slane %v12990_v62, 4  ;;  %v3325_v16 = vadd.f32 %v12986_v5, %v3324_v58  ;;  %11556 = vpow2.f32 %v3278_v56  ;;  %v10898_v34 = vld [vmem:[#allocation5 + $0x30] ss:$8 sps:$4 sm:$0xff]   ;;  %4137 = vmatprep.subr.bf16.mxu1 %v10900_v47 }
 0x462   : > { %v3331_v19 = vadd.f32 %v11541_v2, %v3330_v33  ;;  %v3516_v23 = vmul.f32 %v12986_v5, %v2435_v59  ;;  %v3517_v9 = vmul.f32 %v11541_v2, %v2435_v59  ;;  %v3114_v11 = vrot.slane %v12993_v6, 4 }
 0x463   : > { %v3109_v55 = vmax.f32 %v12990_v62, %v3108_v63  ;;  %v3120_v44 = vrot.slane %v12995_v10, 4  ;;  %v13031_v31 = vpop.eup %11544  ;;  %v3326_v37 = vrot.slane %v3325_v16, 2  ;;  %v3126_v45 = vrot.slane %v12997_v17, 4 }
 0x464   : > { %v13029_v46 = vpop.f32.mrb[24].mxu0  ;;  %v3332_v48 = vrot.slane %v3331_v19, 2  ;;  %v3548_v32 = vrot.slane %v3516_v23, 4  ;;  %v3554_v5 = vrot.slane %v3517_v9, 4  ;;  %v13035_v49 = vpop.eup %11546  ;;  %v3115_v50 = vmax.f32 %v12993_v6, %v3114_v11  ;;  %4138 = vmatpush1.bf16.msra.mxu1 %v10898_v34 }
 0x465   : > { %v13033_v2 = vpop.f32.mrb[25].mxu0  ;;  %v3110_v43 = vrot.slane %v3109_v55, 2  ;;  %v3121_v30 = vmax.f32 %v12995_v10, %v3120_v44  ;;  %v3327_v53 = vadd.f32 %v3326_v37, %v3325_v16  ;;  %v3239_v11 = vsub.f32 %v12975_v7, %v13015_v52  ;;  %v2326_v34 = vpop.permute.xlu1 %2325 }
 0x466   : > { %v13040_v57 = vpop.f32.mrb[26].mxu0  ;;  %v13042_v56 = vpop.eup %11548  ;;  %v3333_v58 = vadd.f32 %v3332_v48, %v3331_v19  ;;  %v3549_v33 = vadd.f32 %v3548_v32, %v3516_v23  ;;  %v3555_v20 = vadd.f32 %v3554_v5, %v3517_v9  ;;  %v3116_v44 = vrot.slane %v3115_v50, 2 }
 0x467   : > { %v13044_v59 = vpop.f32.mrb[27].mxu0  ;;  %v3111_v15 = vmax.f32 %v3109_v55, %v3110_v43  ;;  %v3122_v14 = vrot.slane %v3121_v30, 2  ;;  %v3328_v26 = vrot.slane %v3327_v53, 1  ;;  %v3127_v7 = vmax.f32 %v12997_v17, %v3126_v45  ;;  %v2360_v45 = vpop.permute.xlu0 %2359 }
 0x468   : > { %v11551_v63 = vpop.eup %11550  ;;  %v3334_v47 = vrot.slane %v3333_v58, 1  ;;  %v3550_v24 = vrot.slane %v3549_v33, 2  ;;  %v3556_v23 = vrot.slane %v3555_v20, 2  ;;  %v3117_v37 = vmax.f32 %v3115_v50, %v3116_v44 }
 0x469   : > { %v11553_v29 = vpop.eup %11552  ;;  %v3774_v27 = vmul.f32 %v11551_v63, %v3565_v13  ;;  %v3112_v9 = vrot.slane %v3111_v15, 1  ;;  %v3329_v48 = vadd.f32 %v3328_v26, %v3327_v53  ;;  %v3282_v55 = vmul.f32 1.442695, %v3239_v11 }
 0x46a   : > { %v13048_v16 = vpop.eup %11554  ;;  %v3775_v19 = vmul.f32 %v11553_v29, %v3571_v3  ;;  %v3335_v32 = vadd.f32 %v3334_v47, %v3333_v58  ;;  %v3551_v5 = vadd.f32 %v3550_v24, %v3549_v33  ;;  %v3557_v43 = vadd.f32 %v3556_v23, %v3555_v20 }
 0x46b   : > { %v3806_v52 = vpack.c.bf16 %v3774_v27, %v3774_v27  ;;  %v3113_v13 = vmax.f32 %v3111_v15, %v3112_v9  ;;  %11558 = vrcp.f32 %v3329_v48  ;;  %v3118_v42 = vrot.slane %v3117_v37, 1  ;;  %v13051_v39 = vpop.eup %11556 }
 0x46c   : > { %v3807_v63 = vpack.c.bf16 %v3775_v19, %v3775_v19  ;;  %v3123_v40 = vmax.f32 %v3121_v30, %v3122_v14  ;;  %v2406_v29 = vsel %vm1880_vm2, %v12816_v22, %v12982_v51  ;;  %11560 = vrcp.f32 %v3335_v32 }
 0x46d   : > { %v3552_v26 = vrot.slane %v3551_v5, 1  ;;  %v3558_v24 = vrot.slane %v3557_v43, 1  ;;  %v2412_v27 = vsel %vm1880_vm2, %v12818_v12, %v13013_v25  ;;  %v3240_v3 = vsub.f32 %v12990_v62, %v3113_v13 }
 0x46e   : > { %v3124_v15 = vrot.slane %v3123_v40, 1  ;;  %v3128_v50 = vrot.slane %v3127_v7, 2  ;;  %11562 = vpow2.f32 %v13018_v21  ;;  %v2421_v14 = vsel %vm1897_vm3, %v13009_v28, %v12988_v0  ;;  %v2282_v0 = vpop.permute.xlu1 %2281 }
 0x46f   : > { %v13066_v22 = vsel %vm1880_vm2, %v12820_v60, %v2280_v4  ;;  %v13069_v51 = vsel %vm1897_vm3, %v2412_v27, %v2326_v34  ;;  %v13073_v12 = vunpack.c.l.b16 %v3806_v52  ;;  %v13075_v62 = vunpack.c.l.b16 %v3807_v63 }
 0x470   : > { %v13071_v30 = vpop.f32.mrb[28].mxu0  ;;  %11564 = vpow2.f32 %v3282_v55  ;;  %v3119_v25 = vmax.f32 %v3117_v37, %v3118_v42  ;;  %v3553_v53 = vadd.f32 %v3552_v26, %v3551_v5  ;;  %v3559_v58 = vadd.f32 %v3558_v24, %v3557_v43  ;;  %v13103_v5 = vpop.permute.xlu0 %2269 }
 0x471   : > { %v13077_v21 = vpop.f32.mrb[29].mxu0  ;;  %v3348_v28 = vrot.slane %v12999_v41, 4  ;;  %v3354_v60 = vrot.slane %v13031_v31, 4  ;;  %v3284_v33 = vmul.f32 1.442695, %v3240_v3  ;;  %v3125_v20 = vmax.f32 %v3123_v40, %v3124_v15 }
 0x472   : > { %v13081_v4 = vpop.f32.mrb[30].mxu0  ;;  %v3129_v11 = vmax.f32 %v3127_v7, %v3128_v50  ;;  %v2437_v44 = vsel %vm1914_vm4, %v2421_v14, %v2360_v45  ;;  %v3241_v37 = vsub.f32 %v12993_v6, %v3119_v25  ;;  %v13094_v48 = vsel %vm1880_vm2, %v12822_v61, %v13024_v54  ;;  %v10903_v3 = vld [vmem:[#allocation5 + $0x44] ss:$8 sps:$4 sm:$0xff]   ;;  %v10901_v25 = vld [vmem:[#allocation5 + $0x40] ss:$8 sps:$4 sm:$0xff]  }
 0x473   : > { %v13084_v47 = vpop.f32.mrb[31].mxu0  ;;  %v3349_v42 = vadd.f32 %v12999_v41, %v3348_v28  ;;  %v3355_v19 = vadd.f32 %v13031_v31, %v3354_v60  ;;  %v3520_v23 = vmul.f32 %v12999_v41, %v2437_v44  ;;  %v3521_v9 = vmul.f32 %v13031_v31, %v2437_v44  ;;  %4139 = vmatprep.subr.bf16.mxu1 %v10903_v3 }
 0x474   : > { %v13098_v40 = vsel %vm1880_vm2, %v12824_v8, %v2282_v0  ;;  %v13101_v32 = vsel %vm1897_vm3, %v2406_v29, %v2314_v1  ;;  %11566 = vpow2.f32 %v3284_v33  ;;  %v3242_v6 = vsub.f32 %v12995_v10, %v3125_v20  ;;  %v2328_v8 = vpop.permute.xlu1 %2327  ;;  %4140 = vmatpush1.bf16.msra.mxu1 %v10901_v25 }
 0x475   : > { %v3350_v7 = vrot.slane %v3349_v42, 2  ;;  %v3356_v41 = vrot.slane %v3355_v19, 2  ;;  %v3572_v52 = vrot.slane %v3520_v23, 4  ;;  %v3578_v31 = vrot.slane %v3521_v9, 4  ;;  %v11559_v55 = vpop.eup %11558 }
 0x476   : > { %v3130_v43 = vrot.slane %v3129_v11, 1  ;;  %v3132_v61 = vrot.slane %v13029_v46, 4  ;;  %v11561_v54 = vpop.eup %11560  ;;  %v3772_v34 = vmul.f32 %v11559_v55, %v3553_v53  ;;  %v3138_v27 = vrot.slane %v13033_v2, 4 }
 0x477   : > { %v3351_v13 = vadd.f32 %v3350_v7, %v3349_v42  ;;  %v3357_v63 = vadd.f32 %v3356_v41, %v3355_v19  ;;  %v3573_v1 = vadd.f32 %v3572_v52, %v3520_v23  ;;  %v3773_v29 = vmul.f32 %v11561_v54, %v3559_v58  ;;  %v13113_v58 = vpop.permute.xlu0 %2315 }
 0x478   : > { %v3579_v26 = vadd.f32 %v3578_v31, %v3521_v9  ;;  %v3133_v24 = vmax.f32 %v13029_v46, %v3132_v61  ;;  %v13109_v15 = vpop.eup %11562  ;;  %v3804_v50 = vpack.c.bf16 %v3772_v34, %v3772_v34  ;;  %v3286_v28 = vmul.f32 1.442695, %v3241_v37  ;;  %v2374_v55 = vpop.permute.xlu1 %2373 }
 0x479   : > { %v3352_v10 = vrot.slane %v3351_v13, 1  ;;  %v3358_v45 = vrot.slane %v3357_v63, 1  ;;  %v3574_v14 = vrot.slane %v3573_v1, 2  ;;  %v3805_v53 = vpack.c.bf16 %v3773_v29, %v3773_v29 }
 0x47a   : > { %v13111_v0 = vpop.eup %11564  ;;  %v3131_v60 = vmax.f32 %v3129_v11, %v3130_v43  ;;  %v3134_v33 = vrot.slane %v3133_v24, 2  ;;  %v3900_v20 = vunpack.c.l.b16 %v3804_v50  ;;  %v3288_v44 = vmul.f32 1.442695, %v3242_v6 }
 0x47b   : > { %v3353_v42 = vadd.f32 %v3352_v10, %v3351_v13  ;;  %v3580_v19 = vrot.slane %v3579_v26, 2  ;;  %v3901_v9 = vunpack.c.l.b16 %v3805_v53  ;;  %v3575_v7 = vadd.f32 %v3574_v14, %v3573_v1 }
 0x47c   : > { %v13115_v23 = vpop.f32.mrb[32].mxu0  ;;  %v3135_v41 = vmax.f32 %v3133_v24, %v3134_v33  ;;  %v3139_v52 = vmax.f32 %v13033_v2, %v3138_v27  ;;  %v13122_v11 = vsel %vm3932_vm5, %v13073_v12, %v3900_v20  ;;  %v3359_v37 = vadd.f32 %v3358_v45, %v3357_v63 }
 0x47d   : > { %v13118_v31 = vpop.f32.mrb[33].mxu0  ;;  %11568 = vrcp.f32 %v3353_v42  ;;  %v3144_v6 = vrot.slane %v13040_v57, 4  ;;  %v13129_v61 = vsel %vm3932_vm5, %v13075_v62, %v3901_v9  ;;  %v3243_v54 = vsub.f32 %v12997_v17, %v3131_v60 }
 0x47e   : > { %v13125_v43 = vpop.f32.mrb[34].mxu0  ;;  %15059 = vst [vmem:[#allocation39_spill] sm:$0xff] %v13129_v61  ;;  %v13134_v34 = vsel %vm1897_vm3, %v13066_v22, %v2328_v8  ;;  %v3136_v13 = vrot.slane %v3135_v41, 1  ;;  %11570 = vpow2.f32 %v3286_v28  ;;  %v3140_v63 = vrot.slane %v3139_v52, 2  ;;  %v13140_v24 = vpop.eup %11566  ;;  %v10945_v61 = vld [vmem:[#allocation7 + $0x24] ss:$16 sps:$4 sm:$0xff]  }
 0x47f   : > { %v13136_v12 = vpop.f32.mrb[35].mxu0  ;;  %v3145_v1 = vmax.f32 %v13040_v57, %v3144_v6  ;;  %v3150_v29 = vrot.slane %v13044_v59, 4  ;;  %11572 = vpow2.f32 %v3288_v44  ;;  %v3576_v62 = vrot.slane %v3575_v7, 1  ;;  %v2362_v22 = vpop.permute.xlu0 %2361 }
 0x480   : > { %v3581_v27 = vadd.f32 %v3580_v19, %v3579_v26  ;;  %v13144_v17 = vsel %vm1914_vm4, %v13069_v51, %v2374_v55  ;;  %11574 = vrcp.f32 %v3359_v37  ;;  %v3141_v8 = vmax.f32 %v3139_v52, %v3140_v63  ;;  %v2284_v63 = vpop.permute.xlu1 %2283 }
 0x481   : > { %v3146_v3 = vrot.slane %v3145_v1, 2  ;;  %v3151_v50 = vmax.f32 %v13044_v59, %v3150_v29  ;;  %v3290_v10 = vmul.f32 1.442695, %v3243_v54  ;;  %v3137_v45 = vmax.f32 %v3135_v41, %v3136_v13 }
 0x482   : > { %v3360_v14 = vrot.slane %v13035_v49, 4  ;;  %v3366_v25 = vrot.slane %v13042_v56, 4  ;;  %v3142_v53 = vrot.slane %v3141_v8, 1  ;;  %v2438_v51 = vsel %vm1914_vm4, %v13101_v32, %v2362_v22 }
 0x483   : > { %v3147_v28 = vmax.f32 %v3145_v1, %v3146_v3  ;;  %v3152_v26 = vrot.slane %v3151_v50, 2  ;;  %v3577_v60 = vadd.f32 %v3576_v62, %v3575_v7  ;;  %v3522_v44 = vmul.f32 %v13035_v49, %v2438_v51 }
 0x484   : > { %v3361_v33 = vadd.f32 %v13035_v49, %v3360_v14  ;;  %v3367_v20 = vadd.f32 %v13042_v56, %v3366_v25  ;;  %v3582_v42 = vrot.slane %v3581_v27, 1  ;;  %v3523_v41 = vmul.f32 %v13042_v56, %v2438_v51 }
 0x485   : > { %v3148_v19 = vrot.slane %v3147_v28, 1  ;;  %v3153_v9 = vmax.f32 %v3151_v50, %v3152_v26  ;;  %v3143_v52 = vmax.f32 %v3141_v8, %v3142_v53  ;;  %v3584_v6 = vrot.slane %v3522_v44, 4 }
 0x486   : > { %v3362_v37 = vrot.slane %v3361_v33, 2  ;;  %v3368_v55 = vrot.slane %v3367_v20, 2  ;;  %11576 = vpow2.f32 %v3290_v10  ;;  %v3244_v32 = vsub.f32 %v13029_v46, %v3137_v45 }
 0x487   : > { %v11569_v54 = vpop.eup %11568  ;;  %v3149_v7 = vmax.f32 %v3147_v28, %v3148_v19  ;;  %v3154_v13 = vrot.slane %v3153_v9, 1  ;;  %v3585_v22 = vadd.f32 %v3584_v6, %v3522_v44  ;;  %v3583_v8 = vadd.f32 %v3582_v42, %v3581_v27  ;;  %v13180_v44 = vpop.permute.xlu0 %2271 }
 0x488   : > { %v13156_v1 = vpop.f32.mrb[36].mxu0  ;;  %v3776_v29 = vmul.f32 %v11569_v54, %v3577_v60  ;;  %v3363_v49 = vadd.f32 %v3362_v37, %v3361_v33  ;;  %v3369_v62 = vadd.f32 %v3368_v55, %v3367_v20  ;;  %v13160_v56 = vpop.eup %11570  ;;  %v3590_v10 = vrot.slane %v3523_v41, 4 }
 0x489   : > { %v13158_v3 = vpop.f32.mrb[37].mxu0  ;;  %v3246_v50 = vsub.f32 %v13040_v57, %v3149_v7  ;;  %v3155_v14 = vmax.f32 %v3153_v9, %v3154_v13  ;;  %v13165_v46 = vpop.eup %11572  ;;  %v3245_v53 = vsub.f32 %v13033_v2, %v3143_v52  ;;  %v3586_v26 = vrot.slane %v3585_v22, 2 }
 0x48a   : > { %v13163_v25 = vpop.f32.mrb[38].mxu0  ;;  %v3808_v45 = vpack.c.bf16 %v3776_v29, %v3776_v29  ;;  %v3364_v28 = vrot.slane %v3363_v49, 1  ;;  %v11575_v60 = vpop.eup %11574  ;;  %v13174_v57 = vsel %vm1880_vm2, %v12830_v18, %v13103_v5  ;;  %v13178_v27 = vsel %vm1880_vm2, %v12832_v35, %v2284_v63 }
 0x48b   : > { %v13168_v51 = vpop.f32.mrb[39].mxu0  ;;  %v3296_v33 = vmul.f32 1.442695, %v3246_v50  ;;  %v3247_v20 = vsub.f32 %v13044_v59, %v3155_v14  ;;  %v3292_v42 = vmul.f32 1.442695, %v3244_v32  ;;  %v3370_v9 = vrot.slane %v3369_v62, 1  ;;  %v2330_v37 = vpop.permute.xlu1 %2329 }
 0x48c   : > { %v3904_v2 = vunpack.c.l.b16 %v3808_v45  ;;  %v3365_v19 = vadd.f32 %v3364_v28, %v3363_v49  ;;  %v3587_v55 = vadd.f32 %v3586_v26, %v3585_v22  ;;  %v3591_v59 = vadd.f32 %v3590_v10, %v3523_v41  ;;  %v13197_v50 = vpop.permute.xlu0 %2317  ;;  %v10904_v28 = vld [vmem:[#allocation5 + $0x50] ss:$8 sps:$4 sm:$0xff]  }
 0x48d   : > { %11578 = vpow2.f32 %v3296_v33  ;;  %v3298_v52 = vmul.f32 1.442695, %v3247_v20  ;;  %v3777_v6 = vmul.f32 %v11575_v60, %v3583_v8  ;;  %v3294_v5 = vmul.f32 1.442695, %v3245_v53  ;;  %v10906_v20 = vld [vmem:[#allocation5 + $0x54] ss:$8 sps:$4 sm:$0xff]  }
 0x48e   : > { %v13184_v18 = vsel %vm3934_vm6, %v3904_v2, %v13122_v11  ;;  %11580 = vrcp.f32 %v3365_v19  ;;  %v3592_v35 = vrot.slane %v3591_v59, 2  ;;  %v3156_v54 = vrot.slane %v13071_v30, 4  ;;  %4141 = vmatprep.subr.bf16.mxu1 %v10906_v20 }
 0x48f   : > { %11582 = vpow2.f32 %v3298_v52  ;;  %v3162_v32 = vrot.slane %v13077_v21, 4  ;;  %v2423_v7 = vsel %vm1897_vm3, %v13094_v48, %v13113_v58  ;;  %v3371_v13 = vadd.f32 %v3370_v9, %v3369_v62  ;;  %v2376_v62 = vpop.permute.xlu1 %2375  ;;  %4142 = vmatpush1.bf16.msra.mxu1 %v10904_v28 }
 0x490   : > { %v3168_v41 = vrot.slane %v13081_v4, 4  ;;  %v3174_v63 = vrot.slane %v13084_v47, 4  ;;  %v13193_v29 = vpop.eup %11576  ;;  %v3588_v11 = vrot.slane %v3587_v55, 1  ;;  %v3593_v49 = vadd.f32 %v3592_v35, %v3591_v59 }
 0x491   : > { %15060 = vst [vmem:[#allocation40_spill] sm:$0xff] %v13193_v29  ;;  %v3157_v22 = vmax.f32 %v13071_v30, %v3156_v54  ;;  %v3163_v8 = vmax.f32 %v13077_v21, %v3162_v32  ;;  %v3809_v14 = vpack.c.bf16 %v3777_v6, %v3777_v6  ;;  %11584 = vpow2.f32 %v3292_v42  ;;  %v2364_v32 = vpop.permute.xlu0 %2363 }
 0x492   : > { %v3169_v10 = vmax.f32 %v13081_v4, %v3168_v41  ;;  %v3175_v48 = vmax.f32 %v13084_v47, %v3174_v63  ;;  %11586 = vpow2.f32 %v3294_v5  ;;  %v13203_v58 = vsel %vm1897_vm3, %v13098_v40, %v2330_v37 }
 0x493   : > { %v3158_v45 = vrot.slane %v3157_v22, 2  ;;  %v3164_v53 = vrot.slane %v3163_v8, 2  ;;  %11588 = vrcp.f32 %v3371_v13  ;;  %v3372_v33 = vrot.slane %v13048_v16, 4 }
 0x494   : > { %v3170_v26 = vrot.slane %v3169_v10, 2  ;;  %v3176_v60 = vrot.slane %v3175_v48, 2  ;;  %v3589_v2 = vadd.f32 %v3588_v11, %v3587_v55  ;;  %v3594_v42 = vrot.slane %v3593_v49, 1 }
 0x495   : > { %v3159_v19 = vmax.f32 %v3157_v22, %v3158_v45  ;;  %v3165_v9 = vmax.f32 %v3163_v8, %v3164_v53  ;;  %v13206_v52 = vunpack.c.l.b16 %v3809_v14  ;;  %v3378_v37 = vrot.slane %v13051_v39, 4 }
 0x496   : > { %v3171_v59 = vmax.f32 %v3169_v10, %v3170_v26  ;;  %v3177_v40 = vmax.f32 %v3175_v48, %v3176_v60  ;;  %v13213_v5 = vsel %vm1914_vm4, %v13134_v34, %v2376_v62  ;;  %v3373_v55 = vadd.f32 %v13048_v16, %v3372_v33  ;;  %v2286_v62 = vpop.permute.xlu1 %2285 }
 0x497   : > { %15061 = vst [vmem:[#allocation41_spill] sm:$0xff] %v13206_v52  ;;  %v13209_v6 = vpop.eup %11578  ;;  %v3160_v35 = vrot.slane %v3159_v19, 1  ;;  %v3166_v54 = vrot.slane %v3165_v9, 1  ;;  %v13220_v22 = vsel %vm1880_vm2, %v12834_v38, %v13180_v44  ;;  %v3595_v34 = vadd.f32 %v3594_v42, %v3593_v49 }
 0x498   : > { %v11581_v13 = vpop.eup %11580  ;;  %v3432_v41 = vrot.slane %v13209_v6, 4  ;;  %v3172_v63 = vrot.slane %v3171_v59, 1  ;;  %v3178_v11 = vrot.slane %v3177_v40, 1  ;;  %v3379_v28 = vadd.f32 %v13051_v39, %v3378_v37 }
 0x499   : > { %v13222_v8 = vpop.eup %11582  ;;  %v3778_v14 = vmul.f32 %v11581_v13, %v3589_v2  ;;  %v3161_v10 = vmax.f32 %v3159_v19, %v3160_v35  ;;  %v3167_v48 = vmax.f32 %v3165_v9, %v3166_v54  ;;  %v2439_v26 = vsel %vm1914_vm4, %v2423_v7, %v2364_v32 }
 0x49a   : > { %v3438_v45 = vrot.slane %v13222_v8, 4  ;;  %v3173_v53 = vmax.f32 %v3171_v59, %v3172_v63  ;;  %v3374_v44 = vrot.slane %v3373_v55, 2  ;;  %v3433_v49 = vadd.f32 %v13209_v6, %v3432_v41 }
 0x49b   : > { %v3810_v60 = vpack.c.bf16 %v3778_v14, %v3778_v14  ;;  %v3248_v33 = vsub.f32 %v13071_v30, %v3161_v10  ;;  %v3249_v38 = vsub.f32 %v13077_v21, %v3167_v48  ;;  %v13229_v20 = vpop.eup %11584  ;;  %v3179_v19 = vmax.f32 %v3177_v40, %v3178_v11  ;;  %v2332_v40 = vpop.permute.xlu1 %2331 }
 0x49c   : > { %v3439_v2 = vadd.f32 %v13222_v8, %v3438_v45  ;;  %v3250_v42 = vsub.f32 %v13081_v4, %v3173_v53  ;;  %v13234_v9 = vpop.eup %11586  ;;  %v3524_v35 = vmul.f32 %v13048_v16, %v2439_v26  ;;  %v13240_v32 = vsel %vm1880_vm2, %v12836_v36, %v2286_v62 }
 0x49d   : > { %v3906_v59 = vunpack.c.l.b16 %v3810_v60  ;;  %v3300_v37 = vmul.f32 1.442695, %v3248_v33  ;;  %v3302_v7 = vmul.f32 1.442695, %v3249_v38  ;;  %v11589_v30 = vpop.eup %11588  ;;  %v3251_v21 = vsub.f32 %v13084_v47, %v3179_v19  ;;  %v10912_v60 = vld [vmem:[#allocation5 + $0x74] ss:$8 sps:$4 sm:$0xff]  }
 0x49e   : > { %v3304_v54 = vmul.f32 1.442695, %v3250_v42  ;;  %v3525_v13 = vmul.f32 %v13051_v39, %v2439_v26  ;;  %v3779_v41 = vmul.f32 %v11589_v30, %v3595_v34  ;;  %v3375_v63 = vadd.f32 %v3374_v44, %v3373_v55  ;;  %v10907_v55 = vld [vmem:[#allocation5 + $0x60] ss:$8 sps:$4 sm:$0xff]   ;;  %v10909_v34 = vld [vmem:[#allocation5 + $0x64] ss:$8 sps:$4 sm:$0xff]  }
 0x49f   : > { %v13245_v4 = vsel %vm3936_vm7, %v3906_v59, %v13184_v18  ;;  %11590 = vpow2.f32 %v3300_v37  ;;  %v3434_v11 = vrot.slane %v3433_v49, 2  ;;  %v3440_v16 = vrot.slane %v3439_v2, 2  ;;  %4143 = vmatprep.subr.bf16.mxu1 %v10909_v34  ;;  %v10910_v59 = vld [vmem:[#allocation5 + $0x70] ss:$8 sps:$4 sm:$0xff]  }
 0x4a0   : > { %15062 = vst [vmem:[#allocation42_spill] sm:$0xff] %v13245_v4  ;;  %11592 = vpow2.f32 %v3302_v7  ;;  %v3306_v14 = vmul.f32 1.442695, %v3251_v21  ;;  %v3376_v47 = vrot.slane %v3375_v63, 1  ;;  %v3380_v10 = vrot.slane %v3379_v28, 2  ;;  %4144 = vmatpush1.bf16.msra.mxu1 %v10907_v55 }
 0x4a1   : > { %11594 = vpow2.f32 %v3304_v54  ;;  %v3596_v48 = vrot.slane %v3524_v35, 4  ;;  %v13250_v36 = vsel %vm1897_vm3, %v13174_v57, %v13197_v50  ;;  %v13254_v39 = vsel %vm1897_vm3, %v13178_v27, %v2332_v40  ;;  %4145 = vmatprep.subr.bf16.mxu1 %v10912_v60  ;;  %v15064_v60 = vld [vmem:[#allocation35_spill] sm:$0xff] }
 0x4a2   : > { %11596 = vpow2.f32 %v3306_v14  ;;  %v3602_v18 = vrot.slane %v3525_v13, 4  ;;  %v3377_v62 = vadd.f32 %v3376_v47, %v3375_v63  ;;  %v3381_v45 = vadd.f32 %v3380_v10, %v3379_v28  ;;  %v2378_v28 = vpop.permute.xlu1 %2377 }
 0x4a3   : > { %v3597_v53 = vadd.f32 %v3596_v48, %v3524_v35  ;;  %v3180_v26 = vrot.slane %v13115_v23, 4  ;;  %v13257_v33 = vadd.f32 %v3434_v11, %v3433_v49  ;;  %v3811_v38 = vpack.c.bf16 %v3779_v41, %v3779_v41  ;;  %v10915_v35 = vld [vmem:[#allocation5 + $0x84] ss:$8 sps:$4 sm:$0xff]   ;;  %v2274_v11 = vpop.permute.xlu0 %2273  ;;  %v10913_v48 = vld [vmem:[#allocation5 + $0x80] ss:$8 sps:$4 sm:$0xff]  }
 0x4a4   : > { %v3603_v44 = vadd.f32 %v3602_v18, %v3525_v13  ;;  %v3186_v57 = vrot.slane %v13118_v31, 4  ;;  %v13260_v50 = vadd.f32 %v3440_v16, %v3439_v2  ;;  %v3382_v27 = vrot.slane %v3381_v45, 1  ;;  %4146 = vmatpush1.bf16.msra.mxu1 %v10910_v59  ;;  %v10916_v59 = vld [vmem:[#allocation5 + $0x90] ss:$8 sps:$4 sm:$0xff]  }
 0x4a5   : > { %v3598_v42 = vrot.slane %v3597_v53, 2  ;;  %v3181_v19 = vmax.f32 %v13115_v23, %v3180_v26  ;;  %11598 = vrcp.f32 %v3377_v62  ;;  %v3192_v49 = vrot.slane %v13125_v43, 4  ;;  %4147 = vmatprep.subr.bf16.mxu1 %v10915_v35  ;;  %v10918_v62 = vld [vmem:[#allocation5 + $0x94] ss:$8 sps:$4 sm:$0xff]  }
 0x4a6   : > { %v3187_v37 = vmax.f32 %v13118_v31, %v3186_v57  ;;  %v3198_v7 = vrot.slane %v13136_v12, 4  ;;  %v13268_v2 = vmul.f32 %v13209_v6, %v13144_v17  ;;  %v3604_v54 = vrot.slane %v3603_v44, 2 }
 0x4a7   : > { %v3599_v30 = vadd.f32 %v3598_v42, %v3597_v53  ;;  %v3182_v21 = vrot.slane %v3181_v19, 2  ;;  %v13273_v41 = vmul.f32 %v13222_v8, %v13144_v17  ;;  %v13275_v40 = vunpack.c.l.b16 %v3811_v38 }
 0x4a8   : > { %v3383_v63 = vadd.f32 %v3382_v27, %v3381_v45  ;;  %v2446_v6 = vsel %vm1914_vm4, %v13203_v58, %v2378_v28  ;;  %v3188_v8 = vrot.slane %v3187_v37, 2  ;;  %v13286_v55 = vmax.f32 %v13125_v43, %v3192_v49  ;;  %4148 = vmatpush1.bf16.msra.mxu1 %v10913_v48  ;;  %v10943_v48 = vld [vmem:[#allocation7 + $0x20] ss:$16 sps:$4 sm:$0xff]  }
 0x4a9   : > { %15063 = vst [vmem:[#allocation43_spill] sm:$0xff] %v13275_v40  ;;  %v13277_v16 = vpop.eup %11590  ;;  %v3600_v47 = vrot.slane %v3599_v30, 1  ;;  %v3183_v10 = vmax.f32 %v3181_v19, %v3182_v21  ;;  %v13289_v34 = vmax.f32 %v13136_v12, %v3198_v7  ;;  %v3605_v58 = vadd.f32 %v3604_v54, %v3603_v44  ;;  %v10937_v21 = vld [vmem:[#allocation7] ss:$16 sps:$4 sm:$0xff]   ;;  %v10939_v44 = vld [vmem:[#allocation7 + $0x4] ss:$16 sps:$4 sm:$0xff]   ;;  %4149 = vmatprep.subr.bf16.mxu1 %v10918_v62 }
 0x4aa   : > { %v13282_v18 = vpop.eup %11592  ;;  %v3444_v17 = vrot.slane %v13277_v16, 4  ;;  %v13294_v38 = vsel %vm1880_vm2, %v15064_v60, %v2274_v11  ;;  %11600 = vrcp.f32 %v3383_v63  ;;  %v3189_v11 = vmax.f32 %v3187_v37, %v3188_v8  ;;  %v10921_v60 = vld [vmem:[#allocation5 + $0xa4] ss:$8 sps:$4 sm:$0xff]   ;;  %4586 = vmatprep.subr.bf16.mxu0 %v10939_v44  ;;  %v2288_v8 = vpop.permute.xlu1 %2287  ;;  %v10919_v62 = vld [vmem:[#allocation5 + $0xa0] ss:$8 sps:$4 sm:$0xff]  }
 0x4ab   : > { %v11595_v45 = vpop.eup %11594  ;;  %v3450_v53 = vrot.slane %v13282_v18, 4  ;;  %v3184_v26 = vrot.slane %v3183_v10, 1  ;;  %v3601_v42 = vadd.f32 %v3600_v47, %v3599_v30  ;;  %4587 = vmatpush1.bf16.msra.mxu0 %v10937_v21  ;;  %v3194_v37 = vrot.slane %v13286_v55, 2  ;;  %v13300_v44 = vpop.permute.xlu0 %2319 }
 0x4ac   : > { %v11597_v57 = vpop.eup %11596  ;;  %v3445_v27 = vadd.f32 %v13277_v16, %v3444_v17  ;;  %v3456_v19 = vrot.slane %v11595_v45, 4  ;;  %v3538_v7 = vmul.f32 %v11595_v45, %v2446_v6  ;;  %4150 = vmatpush1.bf16.msra.mxu1 %v10916_v59  ;;  %4588 = vmatprep.subr.bf16.mxu0 %v10945_v61  ;;  %v3200_v59 = vrot.slane %v13289_v34, 2 }
 0x4ad   : > { %v3451_v28 = vadd.f32 %v13282_v18, %v3450_v53  ;;  %v3462_v49 = vrot.slane %v11597_v57, 4  ;;  %v3539_v35 = vmul.f32 %v11597_v57, %v2446_v6  ;;  %v3185_v13 = vmax.f32 %v3183_v10, %v3184_v26  ;;  %v10924_v26 = vld [vmem:[#allocation5 + $0xb4] ss:$8 sps:$4 sm:$0xff]   ;;  %4151 = vmatprep.subr.bf16.mxu1 %v10921_v60  ;;  %v10949_v60 = vld [vmem:[#allocation7 + $0x40] ss:$16 sps:$4 sm:$0xff]  }
 0x4ae   : > { %v3446_v54 = vrot.slane %v3445_v27, 2  ;;  %v3457_v14 = vadd.f32 %v11595_v45, %v3456_v19  ;;  %v3680_v63 = vrot.slane %v3538_v7, 4  ;;  %v3606_v53 = vrot.slane %v3605_v58, 1 }
 0x4af   : > { %v3452_v40 = vrot.slane %v3451_v28, 2  ;;  %v3463_v17 = vadd.f32 %v11597_v57, %v3462_v49  ;;  %v3686_v30 = vrot.slane %v3539_v35, 4  ;;  %v11599_v47 = vpop.eup %11598  ;;  %v3252_v6 = vsub.f32 %v13115_v23, %v3185_v13  ;;  %v10951_v23 = vld [vmem:[#allocation7 + $0x44] ss:$16 sps:$4 sm:$0xff]   ;;  %4589 = vmatpush1.bf16.msra.mxu0 %v10943_v48 }
 0x4b0   : > { %v3447_v4 = vadd.f32 %v3446_v54, %v3445_v27  ;;  %v3458_v52 = vrot.slane %v3457_v14, 2  ;;  %v3780_v29 = vmul.f32 %v11599_v47, %v3601_v42  ;;  %v3681_v10 = vadd.f32 %v3680_v63, %v3538_v7  ;;  %4152 = vmatpush1.bf16.msra.mxu1 %v10919_v62  ;;  %4590 = vmatprep.subr.bf16.mxu0 %v10951_v23  ;;  %v13320_v62 = vpop.permute.xlu1 %2333 }
 0x4b1   : > { %v3464_v45 = vrot.slane %v3463_v17, 2  ;;  %v3687_v19 = vadd.f32 %v3686_v30, %v3539_v35  ;;  %v3308_v49 = vmul.f32 1.442695, %v3252_v6  ;;  %v3190_v27 = vrot.slane %v3189_v11, 1  ;;  %4153 = vmatprep.subr.bf16.mxu1 %v10924_v26  ;;  %v10927_v6 = vld [vmem:[#allocation5 + $0xc4] ss:$8 sps:$4 sm:$0xff]  }
 0x4b2   : > { %v3459_v57 = vadd.f32 %v3458_v52, %v3457_v14  ;;  %v13304_v13 = vmul.f32 %v13277_v16, %v13213_v5  ;;  %v13306_v42 = vadd.f32 %v3452_v40, %v3451_v28  ;;  %v3448_v21 = vrot.slane %v3447_v4, 1  ;;  %v15065_v14 = vld [vmem:[#allocation36_spill] sm:$0xff]  ;;  %v10922_v16 = vld [vmem:[#allocation5 + $0xb0] ss:$8 sps:$4 sm:$0xff]  }
 0x4b3   : > { %v3465_v7 = vadd.f32 %v3464_v45, %v3463_v17  ;;  %v3607_v54 = vadd.f32 %v3606_v53, %v3605_v58  ;;  %v13311_v35 = vsel %vm1880_vm2, %v15065_v14, %v2288_v8  ;;  %v3812_v61 = vpack.c.bf16 %v3780_v29, %v3780_v29  ;;  %v10957_v40 = vld [vmem:[#allocation7 + $0x64] ss:$16 sps:$4 sm:$0xff]   ;;  %4591 = vmatpush1.bf16.msra.mxu0 %v10949_v60 }
 0x4b4   : > { %v3460_v52 = vrot.slane %v3459_v57, 1  ;;  %v3682_v30 = vrot.slane %v3681_v10, 2  ;;  %11602 = vpow2.f32 %v3308_v49  ;;  %v11601_v28 = vpop.eup %11600  ;;  %v13315_v17 = vmul.f32 %v13282_v18, %v13213_v5  ;;  %v2366_v18 = vpop.permute.xlu0 %2365  ;;  %4154 = vmatpush1.bf16.msra.mxu1 %v10922_v16  ;;  %4592 = vmatprep.subr.bf16.mxu0 %v10957_v40 }
 0x4b5   : > { %v3466_v63 = vrot.slane %v3465_v7, 1  ;;  %v3688_v47 = vrot.slane %v3687_v19, 2  ;;  %v3191_v53 = vmax.f32 %v3189_v11, %v3190_v27  ;;  %v3195_v8 = vmax.f32 %v13286_v55, %v3194_v37  ;;  %v10955_v11 = vld [vmem:[#allocation7 + $0x60] ss:$16 sps:$4 sm:$0xff]   ;;  %v10930_v55 = vld [vmem:[#allocation5 + $0xd4] ss:$8 sps:$4 sm:$0xff]   ;;  %4155 = vmatprep.subr.bf16.mxu1 %v10927_v6  ;;  %v2380_v40 = vpop.permute.xlu1 %2379 }
 0x4b6   : > { %v3461_v58 = vadd.f32 %v3460_v52, %v3459_v57  ;;  %v3449_v49 = vadd.f32 %v3448_v21, %v3447_v4  ;;  %v3201_v5 = vmax.f32 %v13289_v34, %v3200_v59  ;;  %v13324_v26 = vmul.f32 %v11601_v28, %v3607_v54  ;;  %v10928_v28 = vld [vmem:[#allocation5 + $0xd0] ss:$8 sps:$4 sm:$0xff]  }
 0x4b7   : > { %v3467_v45 = vadd.f32 %v3466_v63, %v3465_v7  ;;  %v3253_v23 = vsub.f32 %v13118_v31, %v3191_v53  ;;  %v13326_v57 = vunpack.c.l.b16 %v3812_v61  ;;  %v3683_v27 = vadd.f32 %v3682_v30, %v3681_v10  ;;  %v10925_v7 = vld [vmem:[#allocation5 + $0xc0] ss:$8 sps:$4 sm:$0xff]   ;;  %v10963_v31 = vld [vmem:[#allocation7 + $0x84] ss:$16 sps:$4 sm:$0xff]   ;;  %4593 = vmatpush1.bf16.msra.mxu0 %v10955_v11 }
 0x4b8   : > { %11604 = vrcp.f32 %v3461_v58  ;;  %v3196_v52 = vrot.slane %v3195_v8, 1  ;;  %v3689_v4 = vadd.f32 %v3688_v47, %v3687_v19  ;;  %v3202_v21 = vrot.slane %v3201_v5, 1  ;;  %v10961_v19 = vld [vmem:[#allocation7 + $0x80] ss:$16 sps:$4 sm:$0xff]   ;;  %4156 = vmatpush1.bf16.msra.mxu1 %v10925_v7  ;;  %v10969_v58 = vld [vmem:[#allocation7 + $0xa4] ss:$16 sps:$4 sm:$0xff]   ;;  %4594 = vmatprep.subr.bf16.mxu0 %v10963_v31 }
 0x4b9   : > { %11606 = vrcp.f32 %v3467_v45  ;;  %v3310_v37 = vmul.f32 1.442695, %v3253_v23  ;;  %v3384_v59 = vrot.slane %v13109_v15, 4  ;;  %v3390_v54 = vrot.slane %v13111_v0, 4  ;;  %4157 = vmatprep.subr.bf16.mxu1 %v10930_v55  ;;  %v10933_v45 = vld [vmem:[#allocation5 + $0xe4] ss:$8 sps:$4 sm:$0xff]  }
 0x4ba   : > { %v3197_v34 = vmax.f32 %v3195_v8, %v3196_v52  ;;  %v2440_v14 = vsel %vm1914_vm4, %v13250_v36, %v2366_v18  ;;  %v3203_v10 = vmax.f32 %v3201_v5, %v3202_v21  ;;  %v3684_v36 = vrot.slane %v3683_v27, 1  ;;  %v10931_v21 = vld [vmem:[#allocation5 + $0xe0] ss:$8 sps:$4 sm:$0xff]   ;;  %v10936_v31 = vld [vmem:[#allocation5 + $0xf4] ss:$8 sps:$4 sm:$0xff]  }
 0x4bb   : > { %11608 = vpow2.f32 %v3310_v37  ;;  %v3526_v60 = vmul.f32 %v13109_v15, %v2440_v14  ;;  %v3527_v61 = vmul.f32 %v13111_v0, %v2440_v14  ;;  %v3385_v30 = vadd.f32 %v13109_v15, %v3384_v59  ;;  %4595 = vmatpush1.bf16.msra.mxu0 %v10961_v19 }
 0x4bc   : > { %11610 = vrcp.f32 %v3449_v49  ;;  %v3254_v63 = vsub.f32 %v13125_v43, %v3197_v34  ;;  %v3391_v16 = vadd.f32 %v13111_v0, %v3390_v54  ;;  %v3255_v47 = vsub.f32 %v13136_v12, %v3203_v10  ;;  %v10967_v12 = vld [vmem:[#allocation7 + $0xa0] ss:$16 sps:$4 sm:$0xff]   ;;  %4158 = vmatpush1.bf16.msra.mxu1 %v10928_v28  ;;  %4596 = vmatprep.subr.bf16.mxu0 %v10969_v58 }
 0x4bd   : > { %v3608_v53 = vrot.slane %v3526_v60, 4  ;;  %v3614_v6 = vrot.slane %v3527_v61, 4  ;;  %v3813_v43 = vpack.c.bf16 %v13324_v26, %v13324_v26  ;;  %v3690_v49 = vrot.slane %v3689_v4, 1  ;;  %4159 = vmatprep.subr.bf16.mxu1 %v10933_v45  ;;  %v10973_v58 = vld [vmem:[#allocation7 + $0xc0] ss:$16 sps:$4 sm:$0xff]  }
 0x4be   : > { %v11603_v8 = vpop.eup %11602  ;;  %v3386_v15 = vrot.slane %v3385_v30, 2  ;;  %v3392_v23 = vrot.slane %v3391_v16, 2  ;;  %v2447_v11 = vsel %vm1914_vm4, %v13254_v39, %v2380_v40  ;;  %v3312_v52 = vmul.f32 1.442695, %v3254_v63  ;;  %v10981_v45 = vld [vmem:[#allocation7 + $0xe4] ss:$16 sps:$4 sm:$0xff]  }
 0x4bf   : > { %v3609_v0 = vadd.f32 %v3608_v53, %v3526_v60  ;;  %v3615_v5 = vadd.f32 %v3614_v6, %v3527_v61  ;;  %v3468_v18 = vrot.slane %v11603_v8, 4  ;;  %v3540_v37 = vmul.f32 %v11603_v8, %v2447_v11  ;;  %v10975_v60 = vld [vmem:[#allocation7 + $0xc4] ss:$16 sps:$4 sm:$0xff]   ;;  %4597 = vmatpush1.bf16.msra.mxu0 %v10967_v12  ;;  %v10934_v6 = vld [vmem:[#allocation5 + $0xf0] ss:$8 sps:$4 sm:$0xff]  }
 0x4c0   : > { %v3387_v7 = vadd.f32 %v3386_v15, %v3385_v30  ;;  %v3393_v55 = vadd.f32 %v3392_v23, %v3391_v16  ;;  %v3685_v59 = vadd.f32 %v3684_v36, %v3683_v27  ;;  %v3314_v54 = vmul.f32 1.442695, %v3255_v47  ;;  %4160 = vmatpush1.bf16.msra.mxu1 %v10931_v21  ;;  %4598 = vmatprep.subr.bf16.mxu0 %v10975_v60  ;;  %v10979_v21 = vld [vmem:[#allocation7 + $0xe0] ss:$16 sps:$4 sm:$0xff]  }
 0x4c1   : > { %v3610_v14 = vrot.slane %v3609_v0, 2  ;;  %v3469_v10 = vadd.f32 %v11603_v8, %v3468_v18  ;;  %v3616_v39 = vrot.slane %v3615_v5, 2  ;;  %v3692_v19 = vrot.slane %v3540_v37, 4  ;;  %4161 = vmatprep.subr.bf16.mxu1 %v10936_v31 }
 0x4c2   : > { %v11605_v34 = vpop.eup %11604  ;;  %v3388_v61 = vrot.slane %v3387_v7, 1  ;;  %v3394_v53 = vrot.slane %v3393_v55, 1  ;;  %v3691_v63 = vadd.f32 %v3690_v49, %v3689_v4  ;;  %11612 = vpow2.f32 %v3312_v52  ;;  %v10942_v49 = vld [vmem:[#allocation7 + $0xc] ss:$16 sps:$4 sm:$0xff]  }
 0x4c3   : > { %v11607_v40 = vpop.eup %11606  ;;  %v13342_v30 = vmul.f32 %v11605_v34, %v3685_v59  ;;  %v13344_v16 = vadd.f32 %v3610_v14, %v3609_v0  ;;  %v3470_v28 = vrot.slane %v3469_v10, 2  ;;  %v3693_v47 = vadd.f32 %v3692_v19, %v3540_v37  ;;  %4599 = vmatpush1.bf16.msra.mxu0 %v10973_v58  ;;  %v13355_v14 = vpop.permute.xlu0 %2321 }
 0x4c4   : > { %v3389_v27 = vadd.f32 %v3388_v61, %v3387_v7  ;;  %v3395_v36 = vadd.f32 %v3394_v53, %v3393_v55  ;;  %11614 = vpow2.f32 %v3314_v54  ;;  %v3204_v23 = vrot.slane %v13156_v1, 4  ;;  %4162 = vmatpush1.bf16.msra.mxu1 %v10934_v6  ;;  %4600 = vmatprep.subr.bf16.mxu0 %v10981_v45  ;;  %v13361_v61 = vpop.permute.xlu1 %2289  ;;  %v10987_v53 = vld [vmem:[#allocation7 + $0x104] ss:$16 sps:$4 sm:$0xff]   ;;  %v10985_v6 = vld [vmem:[#allocation7 + $0x100] ss:$16 sps:$4 sm:$0xff]  }
 0x4c5   : > { %v11609_v8 = vpop.eup %11608  ;;  %v3471_v15 = vadd.f32 %v3470_v28, %v3469_v10  ;;  %v3210_v4 = vrot.slane %v13158_v3, 4  ;;  %v3617_v18 = vadd.f32 %v3616_v39, %v3615_v5  ;;  %v13350_v7 = vmul.f32 %v11607_v40, %v3691_v63  ;;  %4629 = vmatprep.subr.bf16.mxu1 %v10942_v49 }
 0x4c6   : > { %v13348_v0 = vpop.eup %11610  ;;  %11616 = vrcp.f32 %v3389_v27  ;;  %v3474_v12 = vrot.slane %v11609_v8, 4  ;;  %v3541_v52 = vmul.f32 %v11609_v8, %v2447_v11  ;;  %v3612_v37 = vrot.slane %v13344_v16, 1 }
 0x4c7   : > { %11618 = vrcp.f32 %v3395_v36  ;;  %v3472_v34 = vrot.slane %v3471_v15, 1  ;;  %v3694_v59 = vrot.slane %v3693_v47, 2  ;;  %v3205_v5 = vmax.f32 %v13156_v1, %v3204_v23  ;;  %4601 = vmatpush1.bf16.msra.mxu0 %v10979_v21 }
 0x4c8   : > { %v3475_v31 = vadd.f32 %v11609_v8, %v3474_v12  ;;  %v3698_v54 = vrot.slane %v3541_v52, 4  ;;  %v3211_v11 = vmax.f32 %v13158_v3, %v3210_v4  ;;  %v3216_v10 = vrot.slane %v13163_v25, 4  ;;  %4602 = vmatprep.subr.bf16.mxu0 %v10987_v53  ;;  %v10993_v4 = vld [vmem:[#allocation7 + $0x124] ss:$16 sps:$4 sm:$0xff]   ;;  %v10991_v53 = vld [vmem:[#allocation7 + $0x120] ss:$16 sps:$4 sm:$0xff]  }
 0x4c9   : > { %v3222_v60 = vrot.slane %v13168_v51, 4  ;;  %v3618_v39 = vrot.slane %v3617_v18, 1  ;;  %v3473_v19 = vadd.f32 %v3472_v34, %v3471_v15  ;;  %v3206_v28 = vrot.slane %v3205_v5, 2 }
 0x4ca   : > { %v3476_v40 = vrot.slane %v3475_v31, 2  ;;  %v3699_v63 = vadd.f32 %v3698_v54, %v3541_v52  ;;  %v3212_v58 = vrot.slane %v3211_v11, 2  ;;  %v3217_v27 = vmax.f32 %v13163_v25, %v3216_v10 }
 0x4cb   : > { %v3223_v36 = vmax.f32 %v13168_v51, %v3222_v60  ;;  %11620 = vrcp.f32 %v3473_v19  ;;  %v3695_v8 = vadd.f32 %v3694_v59, %v3693_v47  ;;  %v3207_v49 = vmax.f32 %v3205_v5, %v3206_v28  ;;  %v2276_v60 = vpop.permute.xlu0 %2275  ;;  %v2336_v59 = vpop.permute.xlu1 %2335  ;;  %4603 = vmatpush1.bf16.msra.mxu0 %v10985_v6 }
 0x4cc   : > { %v3477_v45 = vadd.f32 %v3476_v40, %v3475_v31  ;;  %v3700_v23 = vrot.slane %v3699_v63, 2  ;;  %v3213_v12 = vmax.f32 %v3211_v11, %v3212_v58  ;;  %v3218_v29 = vrot.slane %v3217_v27, 2  ;;  %v13365_v34 = vpop.eup %11612  ;;  %4604 = vmatprep.subr.bf16.mxu0 %v10993_v4 }
 0x4cd   : > { %v3224_v15 = vrot.slane %v3223_v36, 2  ;;  %v3613_v52 = vadd.f32 %v3612_v37, %v13344_v16  ;;  %v3619_v54 = vadd.f32 %v3618_v39, %v3617_v18  ;;  %v3208_v55 = vrot.slane %v3207_v49, 1  ;;  %v10999_v39 = vld [vmem:[#allocation7 + $0x144] ss:$16 sps:$4 sm:$0xff]  }
 0x4ce   : > { %v3478_v10 = vrot.slane %v3477_v45, 1  ;;  %v3701_v48 = vadd.f32 %v3700_v23, %v3699_v63  ;;  %v11615_v21 = vpop.eup %11614  ;;  %v3214_v31 = vrot.slane %v3213_v12, 1  ;;  %v3219_v19 = vmax.f32 %v3217_v27, %v3218_v29  ;;  %v10997_v23 = vld [vmem:[#allocation7 + $0x140] ss:$16 sps:$4 sm:$0xff]  }
 0x4cf   : > { %v3225_v47 = vmax.f32 %v3223_v36, %v3224_v15  ;;  %v13371_v11 = vunpack.c.l.b16 %v3813_v43  ;;  %v13376_v16 = vsel %vm1897_vm3, %v13220_v22, %v13300_v44  ;;  %v3696_v37 = vrot.slane %v3695_v8, 1  ;;  %4605 = vmatpush1.bf16.msra.mxu0 %v10991_v53  ;;  %v11005_v15 = vld [vmem:[#allocation7 + $0x164] ss:$16 sps:$4 sm:$0xff]  }
 0x4d0   : > { %v11617_v5 = vpop.eup %11616  ;;  %v3479_v18 = vadd.f32 %v3478_v10, %v3477_v45  ;;  %v3702_v40 = vrot.slane %v3701_v48, 1  ;;  %v3209_v63 = vmax.f32 %v3207_v49, %v3208_v55  ;;  %v3215_v28 = vmax.f32 %v3213_v12, %v3214_v31  ;;  %v2324_v12 = vpop.permute.xlu0 %2323  ;;  %4606 = vmatprep.subr.bf16.mxu0 %v10999_v39  ;;  %v11011_v39 = vld [vmem:[#allocation7 + $0x184] ss:$16 sps:$4 sm:$0xff]  }
 0x4d1   : > { %v11619_v29 = vpop.eup %11618  ;;  %v3220_v58 = vrot.slane %v3219_v19, 1  ;;  %v3827_v27 = vpack.c.bf16 %v13350_v7, %v13350_v7  ;;  %v2432_v26 = vsel %vm1897_vm3, %v13240_v32, %v13320_v62  ;;  %v3782_v43 = vmul.f32 %v11617_v5, %v3613_v52  ;;  %v15067_v62 = vld [vmem:[#allocation37_spill] sm:$0xff]  ;;  %v2382_v10 = vpop.permute.xlu1 %2381 }
 0x4d2   : > { %v3226_v36 = vrot.slane %v3225_v47, 1  ;;  %v15066_v22 = vpack.c.bf16 %v13342_v30, %v13342_v30  ;;  %v13388_v6 = vmul.f32 %v11619_v29, %v3619_v54  ;;  %v3256_v55 = vsub.f32 %v13156_v1, %v3209_v63 }
 0x4d3   : > { %v3221_v45 = vmax.f32 %v3219_v19, %v3220_v58  ;;  %v3697_v4 = vadd.f32 %v3696_v37, %v3695_v8  ;;  %v13394_v32 = vsel %vm1897_vm3, %v13294_v38, %v13355_v14  ;;  %v13399_v30 = vsel %vm1880_vm2, %v15067_v62, %v13361_v61  ;;  %v15068_v8 = vld [vmem:[#allocation38_spill] sm:$0xff]  ;;  %4607 = vmatpush1.bf16.msra.mxu0 %v10997_v23 }
 0x4d4   : > { %v13386_v44 = vunpack.c.l.b16 %v15066_v22  ;;  %v3227_v49 = vmax.f32 %v3225_v47, %v3226_v36  ;;  %11622 = vrcp.f32 %v3479_v18  ;;  %v13401_v1 = vadd.f32 %v3702_v40, %v3701_v48  ;;  %4608 = vmatprep.subr.bf16.mxu0 %v11005_v15 }
 0x4d5   : > { %v3257_v52 = vsub.f32 %v13158_v3, %v3215_v28  ;;  %v2411_v54 = vsel %vm1880_vm2, %v15068_v8, %v2276_v60  ;;  %v11621_v31 = vpop.eup %11620  ;;  %v3814_v38 = vpack.c.bf16 %v3782_v43, %v3782_v43  ;;  %v3258_v14 = vsub.f32 %v13163_v25, %v3221_v45  ;;  %v11003_v60 = vld [vmem:[#allocation7 + $0x160] ss:$16 sps:$4 sm:$0xff]  }
 0x4d6   : > { %v3480_v19 = vrot.slane %v13365_v34, 4  ;;  %v3486_v61 = vrot.slane %v11615_v21, 4  ;;  %v3815_v47 = vpack.c.bf16 %v13388_v6, %v13388_v6  ;;  %v3316_v53 = vmul.f32 1.442695, %v3256_v55 }
 0x4d7   : > { %v13412_v48 = vsel %vm1897_vm3, %v13311_v35, %v2336_v59  ;;  %v2427_v3 = vsel %vm1897_vm3, %v2411_v54, %v2324_v12  ;;  %v3259_v5 = vsub.f32 %v13168_v51, %v3227_v49  ;;  %v2448_v37 = vsel %vm1914_vm4, %v2432_v26, %v2382_v10  ;;  %4609 = vmatpush1.bf16.msra.mxu0 %v11003_v60  ;;  %v11009_v26 = vld [vmem:[#allocation7 + $0x180] ss:$16 sps:$4 sm:$0xff]  }
 0x4d8   : > { %v3481_v18 = vadd.f32 %v13365_v34, %v3480_v19  ;;  %v3487_v25 = vadd.f32 %v11615_v21, %v3486_v61  ;;  %v3796_v29 = vmul.f32 %v11621_v31, %v3697_v4  ;;  %v3318_v40 = vmul.f32 1.442695, %v3257_v52  ;;  %4610 = vmatprep.subr.bf16.mxu0 %v11011_v39  ;;  %v11015_v19 = vld [vmem:[#allocation7 + $0x1a0] ss:$16 sps:$4 sm:$0xff]  }
 0x4d9   : > { %v3542_v63 = vmul.f32 %v13365_v34, %v2448_v37  ;;  %v3543_v28 = vmul.f32 %v11615_v21, %v2448_v37  ;;  %v3320_v35 = vmul.f32 1.442695, %v3258_v14  ;;  %v3420_v43 = vrot.slane %v13229_v20, 4  ;;  %v11017_v34 = vld [vmem:[#allocation7 + $0x1a4] ss:$16 sps:$4 sm:$0xff]   ;;  %v2372_v14 = vpop.permute.xlu0 %2371 }
 0x4da   : > { %v3482_v59 = vrot.slane %v3481_v18, 2  ;;  %v3488_v58 = vrot.slane %v3487_v25, 2  ;;  %v13420_v36 = vunpack.c.l.b16 %v3814_v38  ;;  %v3426_v6 = vrot.slane %v13234_v9, 4 }
 0x4db   : > { %v3704_v51 = vrot.slane %v3542_v63, 4  ;;  %v3710_v22 = vrot.slane %v3543_v28, 4  ;;  %v3322_v55 = vmul.f32 1.442695, %v3259_v5  ;;  %v3421_v4 = vadd.f32 %v13229_v20, %v3420_v43  ;;  %4611 = vmatpush1.bf16.msra.mxu0 %v11009_v26 }
 0x4dc   : > { %v3483_v45 = vadd.f32 %v3482_v59, %v3481_v18  ;;  %v3489_v23 = vadd.f32 %v3488_v58, %v3487_v25  ;;  %v3828_v21 = vpack.c.bf16 %v3796_v29, %v3796_v29  ;;  %11624 = vpow2.f32 %v3316_v53  ;;  %4612 = vmatprep.subr.bf16.mxu0 %v11017_v34 }
 0x4dd   : > { %v3705_v49 = vadd.f32 %v3704_v51, %v3542_v63  ;;  %v3427_v62 = vadd.f32 %v13234_v9, %v3426_v6  ;;  %11626 = vpow2.f32 %v3318_v40  ;;  %v3422_v15 = vrot.slane %v3421_v4, 2 }
 0x4de   : > { %v3484_v12 = vrot.slane %v3483_v45, 1  ;;  %v15069_v52 = vrot.slane %v13257_v33, 1  ;;  %v11623_v54 = vpop.eup %11622  ;;  %11628 = vpow2.f32 %v3320_v35  ;;  %v3490_v10 = vrot.slane %v3489_v23, 1 }
 0x4df   : > { %v3711_v31 = vadd.f32 %v3710_v22, %v3543_v28  ;;  %v3428_v38 = vrot.slane %v3427_v62, 2  ;;  %v13428_v61 = vunpack.c.l.b16 %v3815_v47  ;;  %11630 = vpow2.f32 %v3322_v55  ;;  %4613 = vmatpush1.bf16.msra.mxu0 %v11015_v19 }
 0x4e0   : > { %v3437_v8 = vadd.f32 %v15069_v52, %v13257_v33  ;;  %v3485_v53 = vadd.f32 %v3484_v12, %v3483_v45  ;;  %v3423_v60 = vadd.f32 %v3422_v15, %v3421_v4  ;;  %v13430_v5 = vunpack.c.l.b16 %v3828_v21 }
 0x4e1   : > { %v3706_v18 = vrot.slane %v3705_v49, 2  ;;  %v3429_v25 = vadd.f32 %v3428_v38, %v3427_v62  ;;  %v15070_v33 = vrot.slane %v13260_v50, 1  ;;  %v2443_v29 = vsel %vm1914_vm4, %v2427_v3, %v2372_v14 }
 0x4e2   : > { %v3424_v39 = vrot.slane %v3423_v60, 1  ;;  %11632 = vrcp.f32 %v3437_v8  ;;  %v3656_v40 = vrot.slane %v13268_v2, 4  ;;  %v13438_v47 = vmul.f32 %v11623_v54, %v13401_v1 }
 0x4e3   : > { %v3443_v37 = vadd.f32 %v15070_v33, %v13260_v50  ;;  %v3491_v63 = vadd.f32 %v3490_v10, %v3489_v23  ;;  %v3712_v28 = vrot.slane %v3711_v31, 2  ;;  %v3430_v35 = vrot.slane %v3429_v25, 1 }
 0x4e4   : > { %11634 = vrcp.f32 %v3485_v53  ;;  %v3425_v59 = vadd.f32 %v3424_v39, %v3423_v60  ;;  %v3532_v58 = vmul.f32 %v13229_v20, %v2443_v29  ;;  %v3533_v43 = vmul.f32 %v13234_v9, %v2443_v29  ;;  %v2368_v53 = vpop.permute.xlu0 %2367 }
 0x4e5   : > { %v3707_v50 = vadd.f32 %v3706_v18, %v3705_v49  ;;  %v3431_v51 = vadd.f32 %v3430_v35, %v3429_v25  ;;  %11636 = vrcp.f32 %v3443_v37  ;;  %v3657_v3 = vadd.f32 %v3656_v40, %v13268_v2 }
 0x4e6   : > { %11638 = vrcp.f32 %v3425_v59  ;;  %v3644_v22 = vrot.slane %v3532_v58, 4  ;;  %v3650_v6 = vrot.slane %v3533_v43, 4  ;;  %v3662_v1 = vrot.slane %v13273_v41, 4  ;;  %v13444_v26 = vpop.eup %11624 }
 0x4e7   : > { %v3713_v55 = vadd.f32 %v3712_v28, %v3711_v31  ;;  %11640 = vrcp.f32 %v3431_v51  ;;  %v3658_v45 = vrot.slane %v3657_v3, 2  ;;  %v15071_v20 = vrot.slane %v13304_v13, 4  ;;  %v13449_v9 = vpop.eup %11626 }
 0x4e8   : > { %v3645_v4 = vadd.f32 %v3644_v22, %v3532_v58  ;;  %v3651_v34 = vadd.f32 %v3650_v6, %v3533_v43  ;;  %v3663_v2 = vadd.f32 %v3662_v1, %v13273_v41  ;;  %v3396_v21 = vrot.slane %v13140_v24, 4  ;;  %v13453_v49 = vpop.eup %11628  ;;  %v13462_v6 = vpop.permute.xlu1 %2337 }
 0x4e9   : > { %v3669_v23 = vadd.f32 %v15071_v20, %v13304_v13  ;;  %v3708_v62 = vrot.slane %v3707_v50, 1  ;;  %v3659_v12 = vadd.f32 %v3658_v45, %v3657_v3  ;;  %v3402_v52 = vrot.slane %v13160_v56, 4  ;;  %v13456_v8 = vpop.eup %11630 }
 0x4ea   : > { %v3646_v54 = vrot.slane %v3645_v4, 2  ;;  %v3652_v10 = vrot.slane %v3651_v34, 2  ;;  %v3664_v13 = vrot.slane %v3663_v2, 2  ;;  %v3397_v31 = vadd.f32 %v13140_v24, %v3396_v21 }
 0x4eb   : > { %v3670_v15 = vrot.slane %v3669_v23, 2  ;;  %v3714_v38 = vrot.slane %v3713_v55, 1  ;;  %v3660_v14 = vrot.slane %v3659_v12, 1  ;;  %v3403_v41 = vadd.f32 %v13160_v56, %v3402_v52 }
 0x4ec   : > { %v11633_v60 = vpop.eup %11632  ;;  %v3647_v18 = vadd.f32 %v3646_v54, %v3645_v4  ;;  %v3653_v25 = vadd.f32 %v3652_v10, %v3651_v34  ;;  %v3665_v33 = vadd.f32 %v3664_v13, %v3663_v2  ;;  %v3398_v37 = vrot.slane %v3397_v31, 2 }
 0x4ed   : > { %v3671_v19 = vadd.f32 %v3670_v15, %v3669_v23  ;;  %11642 = vrcp.f32 %v3491_v63  ;;  %v3709_v39 = vadd.f32 %v3708_v62, %v3707_v50  ;;  %v3661_v29 = vadd.f32 %v3660_v14, %v3659_v12 }
 0x4ee   : > { %v11635_v28 = vpop.eup %11634  ;;  %v3648_v35 = vrot.slane %v3647_v18, 1  ;;  %v3654_v59 = vrot.slane %v3653_v25, 1  ;;  %v3666_v58 = vrot.slane %v3665_v33, 1  ;;  %v2441_v43 = vsel %vm1914_vm4, %v13376_v16, %v2368_v53 }
 0x4ef   : > { %v3672_v40 = vrot.slane %v3671_v19, 1  ;;  %v11637_v51 = vpop.eup %11636  ;;  %v3790_v22 = vmul.f32 %v11633_v60, %v3661_v29  ;;  %v3399_v1 = vadd.f32 %v3398_v37, %v3397_v31  ;;  %v3404_v45 = vrot.slane %v3403_v41, 2 }
 0x4f0   : > { %v11639_v20 = vpop.eup %11638  ;;  %v13464_v23 = vadd.f32 %v3714_v38, %v3713_v55  ;;  %v3649_v63 = vadd.f32 %v3648_v35, %v3647_v18  ;;  %v3655_v50 = vadd.f32 %v3654_v59, %v3653_v25  ;;  %v3667_v4 = vadd.f32 %v3666_v58, %v3665_v33  ;;  %v2384_v25 = vpop.permute.xlu1 %2383 }
 0x4f1   : > { %v3673_v3 = vadd.f32 %v3672_v40, %v3671_v19  ;;  %v11641_v34 = vpop.eup %11640  ;;  %v3822_v21 = vpack.c.bf16 %v3790_v22, %v3790_v22  ;;  %v3400_v62 = vrot.slane %v3399_v1, 1  ;;  %v3528_v16 = vmul.f32 %v13140_v24, %v2441_v43 }
 0x4f2   : > { %v13468_v12 = vmul.f32 %v11635_v28, %v3709_v39  ;;  %v3788_v15 = vmul.f32 %v11639_v20, %v3649_v63  ;;  %v3789_v52 = vmul.f32 %v11641_v34, %v3655_v50  ;;  %v3791_v54 = vmul.f32 %v11637_v51, %v3667_v4  ;;  %v2370_v51 = vpop.permute.xlu0 %2369 }
 0x4f3   : > { %v3792_v2 = vmul.f32 %v13348_v0, %v3673_v3  ;;  %v3918_v13 = vunpack.c.l.b16 %v3822_v21  ;;  %v3401_v31 = vadd.f32 %v3400_v62, %v3399_v1  ;;  %v3405_v55 = vadd.f32 %v3404_v45, %v3403_v41 }
 0x4f4   : > { %v3820_v38 = vpack.c.bf16 %v3788_v15, %v3788_v15  ;;  %v3821_v14 = vpack.c.bf16 %v3789_v52, %v3789_v52  ;;  %v3823_v19 = vpack.c.bf16 %v3791_v54, %v3791_v54  ;;  %v3529_v53 = vmul.f32 %v13160_v56, %v2441_v43 }
 0x4f5   : > { %v3824_v10 = vpack.c.bf16 %v3792_v2, %v3792_v2  ;;  %v3406_v0 = vrot.slane %v3405_v55, 1  ;;  %11644 = vrcp.f32 %v3401_v31  ;;  %v3620_v18 = vrot.slane %v3528_v16, 4 }
 0x4f6   : > { %v3916_v24 = vunpack.c.l.b16 %v3820_v38  ;;  %v3917_v33 = vunpack.c.l.b16 %v3821_v14  ;;  %v3919_v37 = vunpack.c.l.b16 %v3823_v19  ;;  %v3626_v39 = vrot.slane %v3529_v53, 4 }
 0x4f7   : > { %v3920_v60 = vunpack.c.l.b16 %v3824_v10  ;;  %v11643_v29 = vpop.eup %11642  ;;  %v3407_v40 = vadd.f32 %v3406_v0, %v3405_v55  ;;  %v3621_v28 = vadd.f32 %v3620_v18, %v3528_v16  ;;  %v3492_v35 = vrot.slane %v13444_v26, 4 }
 0x4f8   : > { %v3498_v41 = vrot.slane %v13449_v9, 4  ;;  %v3953_v59 = vsel %vm3932_vm5, %v3918_v13, %v3916_v24  ;;  %v13475_v56 = vsel %vm3932_vm5, %v3919_v37, %v3917_v33  ;;  %v3627_v58 = vadd.f32 %v3626_v39, %v3529_v53 }
 0x4f9   : > { %v2449_v43 = vsel %vm1914_vm4, %v13412_v48, %v2384_v25  ;;  %v13480_v3 = vsel %vm3934_vm6, %v3920_v60, %v3953_v59  ;;  %11646 = vrcp.f32 %v3407_v40  ;;  %v3622_v22 = vrot.slane %v3621_v28, 2  ;;  %v15072_v60 = vld [vmem:[#allocation40_spill] sm:$0xff] }
 0x4fa   : > { %v3493_v1 = vadd.f32 %v13444_v26, %v3492_v35  ;;  %v3628_v45 = vrot.slane %v3627_v58, 2  ;;  %v3499_v20 = vadd.f32 %v13449_v9, %v3498_v41  ;;  %v3544_v63 = vmul.f32 %v13444_v26, %v2449_v43 }
 0x4fb   : > { %v3545_v50 = vmul.f32 %v13449_v9, %v2449_v43  ;;  %v3623_v4 = vadd.f32 %v3622_v22, %v3621_v28  ;;  %v3408_v2 = vrot.slane %v13165_v46, 4  ;;  %v2442_v48 = vsel %vm1914_vm4, %v13394_v32, %v2370_v51 }
 0x4fc   : > { %v3494_v34 = vrot.slane %v3493_v1, 2  ;;  %v3629_v21 = vadd.f32 %v3628_v45, %v3627_v58  ;;  %v3500_v62 = vrot.slane %v3499_v20, 2  ;;  %v3716_v16 = vrot.slane %v3544_v63, 4 }
 0x4fd   : > { %v3722_v15 = vrot.slane %v3545_v50, 4  ;;  %v3624_v52 = vrot.slane %v3623_v4, 1  ;;  %v3409_v10 = vadd.f32 %v13165_v46, %v3408_v2  ;;  %v3530_v13 = vmul.f32 %v13165_v46, %v2442_v48 }
 0x4fe   : > { %v3495_v54 = vadd.f32 %v3494_v34, %v3493_v1  ;;  %v3630_v26 = vrot.slane %v3629_v21, 1  ;;  %v3501_v31 = vadd.f32 %v3500_v62, %v3499_v20  ;;  %v3717_v9 = vadd.f32 %v3716_v16, %v3544_v63  ;;  %v2386_v1 = vpop.permute.xlu1 %2385 }
 0x4ff   : > { %v3723_v55 = vadd.f32 %v3722_v15, %v3545_v50  ;;  %v11645_v38 = vpop.eup %11644  ;;  %v3625_v14 = vadd.f32 %v3624_v52, %v3623_v4  ;;  %v3410_v53 = vrot.slane %v3409_v10, 2  ;;  %v3531_v32 = vmul.f32 %v15072_v60, %v2442_v48 }
 0x500   : > { %v3496_v19 = vrot.slane %v3495_v54, 1  ;;  %v13493_v0 = vmul.f32 %v11643_v29, %v13464_v23  ;;  %v3830_v18 = vpack.c.bf16 %v13468_v12, %v13468_v12  ;;  %v3502_v25 = vrot.slane %v3501_v31, 1 }
 0x501   : > { %v3718_v24 = vrot.slane %v3717_v9, 2  ;;  %v3724_v46 = vrot.slane %v3723_v55, 2  ;;  %v3411_v37 = vadd.f32 %v3410_v53, %v3409_v10  ;;  %v3632_v39 = vrot.slane %v3530_v13, 4 }
 0x502   : > { %v3497_v33 = vadd.f32 %v3496_v19, %v3495_v54  ;;  %v3631_v40 = vadd.f32 %v3630_v26, %v3629_v21  ;;  %v13497_v28 = vmul.f32 %v11645_v38, %v3625_v14  ;;  %v3503_v35 = vadd.f32 %v3502_v25, %v3501_v31 }
 0x503   : > { %v3638_v41 = vrot.slane %v3531_v32, 4  ;;  %v11647_v59 = vpop.eup %11646  ;;  %v3719_v58 = vadd.f32 %v3718_v24, %v3717_v9  ;;  %v3412_v43 = vrot.slane %v3411_v37, 1  ;;  %v3633_v23 = vadd.f32 %v3632_v39, %v3530_v13 }
 0x504   : > { %11648 = vrcp.f32 %v3497_v33  ;;  %v3829_v29 = vpack.c.bf16 %v13438_v47, %v13438_v47  ;;  %v3831_v12 = vpack.c.bf16 %v13493_v0, %v13493_v0  ;;  %v13503_v51 = vunpack.c.l.b16 %v3830_v18 }
 0x505   : > { %v2434_v22 = vsel %vm1897_vm3, %v13399_v30, %v13462_v6  ;;  %v3725_v45 = vadd.f32 %v3724_v46, %v3723_v55  ;;  %v3413_v20 = vadd.f32 %v3412_v43, %v3411_v37  ;;  %v3634_v63 = vrot.slane %v3633_v23, 2 }
 0x506   : > { %v3639_v50 = vadd.f32 %v3638_v41, %v3531_v32  ;;  %v13508_v4 = vmul.f32 %v11647_v59, %v3631_v40  ;;  %v3816_v34 = vpack.c.bf16 %v13497_v28, %v13497_v28  ;;  %11650 = vrcp.f32 %v3503_v35 }
 0x507   : > { %v3504_v2 = vrot.slane %v13453_v49, 4  ;;  %v3720_v48 = vrot.slane %v3719_v58, 1  ;;  %11652 = vrcp.f32 %v3413_v20  ;;  %v3635_v21 = vadd.f32 %v3634_v63, %v3633_v23 }
 0x508   : > { %v2450_v62 = vsel %vm1914_vm4, %v2434_v22, %v2386_v1  ;;  %v3414_v15 = vrot.slane %v15072_v60, 4  ;;  %v3640_v54 = vrot.slane %v3639_v50, 2  ;;  %v15073_v10 = vrot.slane %v13306_v42, 1 }
 0x509   : > { %v3505_v30 = vadd.f32 %v13453_v49, %v3504_v2  ;;  %v3546_v6 = vmul.f32 %v13453_v49, %v2450_v62  ;;  %v3547_v16 = vmul.f32 %v13456_v8, %v2450_v62  ;;  %v3636_v52 = vrot.slane %v3635_v21, 1 }
 0x50a   : > { %v3455_v13 = vadd.f32 %v15073_v10, %v13306_v42  ;;  %v3510_v26 = vrot.slane %v13456_v8, 4  ;;  %v3415_v38 = vadd.f32 %v15072_v60, %v3414_v15  ;;  %v3721_v14 = vadd.f32 %v3720_v48, %v3719_v58 }
 0x50b   : > { %v3506_v31 = vrot.slane %v3505_v30, 2  ;;  %v3728_v9 = vrot.slane %v3546_v6, 4  ;;  %v3734_v55 = vrot.slane %v3547_v16, 4  ;;  %v3726_v19 = vrot.slane %v3725_v45, 1 }
 0x50c   : > { %v3511_v49 = vadd.f32 %v13456_v8, %v3510_v26  ;;  %v3674_v53 = vrot.slane %v13315_v17, 4  ;;  %v3416_v24 = vrot.slane %v3415_v38, 2  ;;  %v13525_v46 = vadd.f32 %v3640_v54, %v3639_v50 }
 0x50d   : > { %v3507_v32 = vadd.f32 %v3506_v31, %v3505_v30  ;;  %v3729_v18 = vadd.f32 %v3728_v9, %v3546_v6  ;;  %v3735_v25 = vadd.f32 %v3734_v55, %v3547_v16  ;;  %11654 = vrcp.f32 %v3455_v13  ;;  %v15074_v31 = vld [vmem:[#allocation39_spill] sm:$0xff]  ;;  %v15075_v9 = vld [vmem:[#allocation41_spill] sm:$0xff] }
 0x50e   : > { %v11649_v33 = vpop.eup %11648  ;;  %v3512_v42 = vrot.slane %v3511_v49, 2  ;;  %v3675_v37 = vadd.f32 %v3674_v53, %v13315_v17  ;;  %v3637_v40 = vadd.f32 %v3636_v52, %v3635_v21  ;;  %v3817_v8 = vpack.c.bf16 %v13508_v4, %v13508_v4  ;;  %v15077_v53 = vld [vmem:[#allocation43_spill] sm:$0xff] }
 0x50f   : > { %v3800_v39 = vmul.f32 %v11649_v33, %v3721_v14  ;;  %v3508_v60 = vrot.slane %v3507_v32, 1  ;;  %v3730_v28 = vrot.slane %v3729_v18, 2  ;;  %v3417_v35 = vadd.f32 %v3416_v24, %v3415_v38  ;;  %v15076_v38 = vld [vmem:[#allocation42_spill] sm:$0xff] }
 0x510   : > { %v3513_v41 = vadd.f32 %v3512_v42, %v3511_v49  ;;  %v3676_v59 = vrot.slane %v3675_v37, 2  ;;  %v11651_v58 = vpop.eup %11650  ;;  %v3736_v1 = vrot.slane %v3735_v25, 2  ;;  %v3727_v63 = vadd.f32 %v3726_v19, %v3725_v45 }
 0x511   : > { %v3832_v43 = vpack.c.bf16 %v3800_v39, %v3800_v39  ;;  %v3509_v23 = vadd.f32 %v3508_v60, %v3507_v32  ;;  %v3731_v22 = vadd.f32 %v3730_v28, %v3729_v18  ;;  %v11653_v20 = vpop.eup %11652  ;;  %v3418_v50 = vrot.slane %v3417_v35, 1 }
 0x512   : > { %v3514_v17 = vrot.slane %v3513_v41, 1  ;;  %v3677_v2 = vadd.f32 %v3676_v59, %v3675_v37  ;;  %v3912_v48 = vunpack.c.l.b16 %v3816_v34  ;;  %v3642_v21 = vrot.slane %v13525_v46, 1 }
 0x513   : > { %v3786_v62 = vmul.f32 %v11653_v20, %v3637_v40  ;;  %11656 = vrcp.f32 %v3509_v23  ;;  %v3801_v30 = vmul.f32 %v11651_v58, %v3727_v63  ;;  %v3419_v4 = vadd.f32 %v3418_v50, %v3417_v35 }
 0x514   : > { %v3515_v6 = vadd.f32 %v3514_v17, %v3513_v41  ;;  %v3678_v16 = vrot.slane %v3677_v2, 1  ;;  %v3928_v15 = vunpack.c.l.b16 %v3832_v43  ;;  %v3732_v54 = vrot.slane %v3731_v22, 1 }
 0x515   : > { %v3818_v52 = vpack.c.bf16 %v3786_v62, %v3786_v62  ;;  %v3737_v10 = vadd.f32 %v3736_v1, %v3735_v25  ;;  %11658 = vrcp.f32 %v3419_v4  ;;  %v3913_v26 = vunpack.c.l.b16 %v3817_v8  ;;  %v10940_v62 = vld [vmem:[#allocation7 + $0x8] ss:$16 sps:$4 sm:$0xff]  }
 0x516   : > { %v3679_v13 = vadd.f32 %v3678_v16, %v3677_v2  ;;  %11660 = vrcp.f32 %v3515_v6  ;;  %v3947_v55 = vsel %vm3934_vm6, %v15075_v9, %v15074_v31  ;;  %v3939_v14 = vsel %vm3938_vm8, %v13326_v57, %v15076_v38  ;;  %v10946_v4 = vld [vmem:[#allocation7 + $0x28] ss:$16 sps:$4 sm:$0xff]   ;;  %v10954_v6 = vld [vmem:[#allocation7 + $0x4c] ss:$16 sps:$4 sm:$0xff]  }
 0x517   : > { %v3914_v45 = vunpack.c.l.b16 %v3818_v52  ;;  %v11655_v34 = vpop.eup %11654  ;;  %v3955_v19 = vsel %vm3936_vm7, %v13386_v44, %v13480_v3  ;;  %v3948_v32 = vsel %vm3936_vm7, %v15077_v53, %v3947_v55  ;;  %v3941_v18 = vsel %vm3940_vm9, %v13420_v36, %v3939_v14  ;;  %v10952_v16 = vld [vmem:[#allocation7 + $0x48] ss:$16 sps:$4 sm:$0xff]   ;;  %v10984_v31 = vld [vmem:[#allocation7 + $0xec] ss:$16 sps:$4 sm:$0xff]  }
 0x518   : > { %v3793_v49 = vmul.f32 %v11655_v34, %v3679_v13  ;;  %v3956_v25 = vsel %vm3938_vm8, %v13430_v5, %v3955_v19  ;;  %v3833_v24 = vpack.c.bf16 %v3801_v30, %v3801_v30  ;;  %v3949_v33 = vsel %vm3938_vm8, %v13371_v11, %v3948_v32  ;;  %v10948_v30 = vld [vmem:[#allocation7 + $0x2c] ss:$16 sps:$4 sm:$0xff]   ;;  %v10958_v52 = vld [vmem:[#allocation7 + $0x68] ss:$16 sps:$4 sm:$0xff]  }
 0x519   : > { %v3943_v57 = vsel %vm3942_vm10, %v3912_v48, %v3941_v18  ;;  %v3957_v42 = vsel %vm3940_vm9, %v13503_v51, %v3956_v25  ;;  %v3950_v3 = vsel %vm3940_vm9, %v13428_v61, %v3949_v33  ;;  %v3733_v39 = vadd.f32 %v3732_v54, %v3731_v22  ;;  %v10966_v54 = vld [vmem:[#allocation7 + $0x8c] ss:$16 sps:$4 sm:$0xff]   ;;  %v10976_v34 = vld [vmem:[#allocation7 + $0xc8] ss:$16 sps:$4 sm:$0xff]  }
 0x51a   : > { %v3825_v44 = vpack.c.bf16 %v3793_v49, %v3793_v49  ;;  %v3945_v37 = vsel %vm3944_vm11, %v3914_v45, %v3943_v57  ;;  %v3958_v36 = vsel %vm3942_vm10, %v3928_v15, %v3957_v42  ;;  %v3738_v40 = vrot.slane %v3737_v10, 1  ;;  %v10960_v15 = vld [vmem:[#allocation7 + $0x6c] ss:$16 sps:$4 sm:$0xff]   ;;  %v10982_v9 = vld [vmem:[#allocation7 + $0xe8] ss:$16 sps:$4 sm:$0xff]  }
 0x51b   : > { %v3951_v5 = vsel %vm3942_vm10, %v3913_v26, %v3950_v3  ;;  %v3925_v11 = vunpack.c.l.b16 %v3829_v29  ;;  %v3643_v28 = vadd.f32 %v3642_v21, %v13525_v46  ;;  %v3923_v61 = vunpack.c.l.b16 %v3827_v27  ;;  %v10972_v13 = vld [vmem:[#allocation7 + $0xac] ss:$16 sps:$4 sm:$0xff]   ;;  %v10970_v26 = vld [vmem:[#allocation7 + $0xa8] ss:$16 sps:$4 sm:$0xff]   ;;  %v11021_v42 = vld [vmem:[#allocation7 + $0x1c0] ss:$16 sps:$4 sm:$0xff]  }
 0x51c   : > { %v3921_v51 = vunpack.c.l.b16 %v3825_v44  ;;  %v3927_v8 = vunpack.c.l.b16 %v3831_v12  ;;  %v3929_v41 = vunpack.c.l.b16 %v3833_v24  ;;  %v3739_v43 = vadd.f32 %v3738_v40, %v3737_v10  ;;  %v10964_v10 = vld [vmem:[#allocation7 + $0x88] ss:$16 sps:$4 sm:$0xff]   ;;  %v10978_v45 = vld [vmem:[#allocation7 + $0xcc] ss:$16 sps:$4 sm:$0xff]   ;;  %v11023_v44 = vld [vmem:[#allocation7 + $0x1c4] ss:$16 sps:$4 sm:$0xff]  }
 0x51d   : > { %v11657_v60 = vpop.eup %11656  ;;  %v10990_v55 = vld [vmem:[#allocation7 + $0x10c] ss:$16 sps:$4 sm:$0xff]   ;;  %v10988_v38 = vld [vmem:[#allocation7 + $0x108] ss:$16 sps:$4 sm:$0xff]   ;;  %4614 = vmatprep.subr.bf16.mxu0 %v11023_v44 }
 0x51e   : > { %v3802_v35 = vmul.f32 %v11657_v60, %v3733_v39  ;;  %v3961_v59 = vsel %vm3934_vm6, %v3921_v51, %v13475_v56  ;;  %v10996_v14 = vld [vmem:[#allocation7 + $0x12c] ss:$16 sps:$4 sm:$0xff]   ;;  %v10994_v19 = vld [vmem:[#allocation7 + $0x128] ss:$16 sps:$4 sm:$0xff]   ;;  %4615 = vmatpush1.bf16.msra.mxu0 %v11021_v42  ;;  %v11029_v39 = vld [vmem:[#allocation7 + $0x1e4] ss:$16 sps:$4 sm:$0xff]  }
 0x51f   : > { %v11659_v58 = vpop.eup %11658  ;;  %v3962_v29 = vsel %vm3936_vm7, %v3923_v61, %v3961_v59  ;;  %v11002_v49 = vld [vmem:[#allocation7 + $0x14c] ss:$16 sps:$4 sm:$0xff]   ;;  %v11000_v53 = vld [vmem:[#allocation7 + $0x148] ss:$16 sps:$4 sm:$0xff]   ;;  %4616 = vmatprep.subr.bf16.mxu0 %v11029_v39  ;;  %v15078_v61 = vld [vmem:[#allocation28_spill] sm:$0xff] }
 0x520   : > { %v3834_v47 = vpack.c.bf16 %v3802_v35, %v3802_v35  ;;  %v11661_v46 = vpop.eup %11660  ;;  %v3787_v23 = vmul.f32 %v11659_v58, %v3643_v28  ;;  %v3963_v22 = vsel %vm3938_vm8, %v3925_v11, %v3962_v29  ;;  %v11008_v32 = vld [vmem:[#allocation7 + $0x16c] ss:$16 sps:$4 sm:$0xff]   ;;  %v11006_v18 = vld [vmem:[#allocation7 + $0x168] ss:$16 sps:$4 sm:$0xff]   ;;  %v15080_v58 = vld [vmem:[#allocation30_spill] sm:$0xff] }
 0x521   : > { %v3803_v27 = vmul.f32 %v11661_v46, %v3739_v43  ;;  %v3964_v1 = vsel %vm3940_vm9, %v3927_v8, %v3963_v22  ;;  %v11014_v25 = vld [vmem:[#allocation7 + $0x18c] ss:$16 sps:$4 sm:$0xff]   ;;  %v11012_v24 = vld [vmem:[#allocation7 + $0x188] ss:$16 sps:$4 sm:$0xff]  }
 0x522   : > { %v3930_v7 = vunpack.c.l.b16 %v3834_v47  ;;  %v3819_v0 = vpack.c.bf16 %v3787_v23, %v3787_v23  ;;  %v3965_v12 = vsel %vm3942_vm10, %v3929_v41, %v3964_v1  ;;  %v11020_v33 = vld [vmem:[#allocation7 + $0x1ac] ss:$16 sps:$4 sm:$0xff]   ;;  %v11018_v57 = vld [vmem:[#allocation7 + $0x1a8] ss:$16 sps:$4 sm:$0xff]  }
 0x523   : > { %v3835_v20 = vpack.c.bf16 %v3803_v27, %v3803_v27  ;;  %v11024_v3 = vld [vmem:[#allocation7 + $0x1c8] ss:$16 sps:$4 sm:$0xff]   ;;  %v11035_v60 = vld [vmem:[#allocation8 + $0x4] ss:$8 sps:$4 sm:$0xff]  }
 0x524   : > { %v3959_v63 = vsel %vm3944_vm11, %v3930_v7, %v3958_v36  ;;  %v3915_v56 = vunpack.c.l.b16 %v3819_v0  ;;  %v11027_v36 = vld [vmem:[#allocation7 + $0x1e0] ss:$16 sps:$4 sm:$0xff]   ;;  %v11030_v40 = vld [vmem:[#allocation7 + $0x1e8] ss:$16 sps:$4 sm:$0xff]   ;;  %v11038_v7 = vld [vmem:[#allocation8 + $0x14] ss:$8 sps:$4 sm:$0xff]  }
 0x525   : > { %v3967_v50 = vpack.c.b16 %v3959_v63, %v3945_v37  ;;  %v3931_v17 = vunpack.c.l.b16 %v3835_v20  ;;  %v11026_v37 = vld [vmem:[#allocation7 + $0x1cc] ss:$16 sps:$4 sm:$0xff]   ;;  %4617 = vmatpush1.bf16.msra.mxu0 %v11027_v36  ;;  %v11033_v23 = vld [vmem:[#allocation8] ss:$8 sps:$4 sm:$0xff]   ;;  %v11036_v27 = vld [vmem:[#allocation8 + $0x10] ss:$8 sps:$4 sm:$0xff]  }
 0x526   : > { %v3952_v2 = vsel %vm3944_vm11, %v3915_v56, %v3951_v5  ;;  %v11032_v5 = vld [vmem:[#allocation7 + $0x1ec] ss:$16 sps:$4 sm:$0xff]   ;;  %5080 = vmatprep.subr.bf16.mxu0 %v11035_v60  ;;  %v11039_v0 = vld [vmem:[#allocation8 + $0x20] ss:$8 sps:$4 sm:$0xff]   ;;  %v11042_v20 = vld [vmem:[#allocation8 + $0x30] ss:$8 sps:$4 sm:$0xff]  }
 0x527   : > { %v3966_v48 = vsel %vm3944_vm11, %v3931_v17, %v3965_v12  ;;  %v15079_v41 = vld [vmem:[#allocation29_spill] sm:$0xff]  ;;  %v15081_v47 = vld [vmem:[#allocation31_spill] sm:$0xff] }
 0x528   : > { %v3968_v21 = vpack.c.b16 %v3966_v48, %v3952_v2  ;;  %v11041_v1 = vld [vmem:[#allocation8 + $0x24] ss:$8 sps:$4 sm:$0xff]   ;;  %v11044_v12 = vld [vmem:[#allocation8 + $0x34] ss:$8 sps:$4 sm:$0xff]   ;;  %v11045_v56 = vld [vmem:[#allocation8 + $0x40] ss:$8 sps:$4 sm:$0xff]  }
 0x529   : > { %v11047_v63 = vld [vmem:[#allocation8 + $0x44] ss:$8 sps:$4 sm:$0xff]   ;;  %v11048_v17 = vld [vmem:[#allocation8 + $0x50] ss:$8 sps:$4 sm:$0xff]   ;;  %v11051_v48 = vld [vmem:[#allocation8 + $0x60] ss:$8 sps:$4 sm:$0xff]  }
 0x52a   : > { %4163 = vmatprep.mubr.bf16.mxu1 %v3968_v21  ;;  %v11053_v2 = vld [vmem:[#allocation8 + $0x64] ss:$8 sps:$4 sm:$0xff]   ;;  %v11056_v21 = vld [vmem:[#allocation8 + $0x74] ss:$8 sps:$4 sm:$0xff]   ;;  %v11153_v42 = vld [vmem:[#allocation2 + $0x3c0] ss:$24 sps:$4 sm:$0xff]  }
 0x52b   : > { %4164 = vmatmul.mubr.bf16.vlgmr.msra.gmra.mrb[8].mxu1 %v3967_v50  ;;  %v11050_v50 = vld [vmem:[#allocation8 + $0x54] ss:$8 sps:$4 sm:$0xff]   ;;  %v11165_v36 = vld [vmem:[#allocation2 + $0x420] ss:$24 sps:$4 sm:$0xff]  }
 0x52c   : > { %4630 = vmatpush1.bf16.msra.mxu1 %v10940_v62  ;;  %v11054_v62 = vld [vmem:[#allocation8 + $0x70] ss:$8 sps:$4 sm:$0xff]   ;;  %v11161_v44 = vld [vmem:[#allocation2 + $0x3f4] ss:$24 sps:$4 sm:$0xff]  }
 0x52d   : > { %4631 = vmatprep.subr.bf16.mxu1 %v10948_v30  ;;  %v11059_v30 = vld [vmem:[#allocation8 + $0x84] ss:$8 sps:$4 sm:$0xff]   ;;  %v11177_v60 = vld [vmem:[#allocation2 + $0x480] ss:$24 sps:$4 sm:$0xff]  }
 0x52e   : > { %v11173_v39 = vld [vmem:[#allocation2 + $0x454] ss:$24 sps:$4 sm:$0xff]  }
 0x530   : > { %4632 = vmatpush1.bf16.msra.mxu1 %v10946_v4  ;;  %v11057_v4 = vld [vmem:[#allocation8 + $0x80] ss:$8 sps:$4 sm:$0xff]  }
 0x531   : > { %4633 = vmatprep.subr.bf16.mxu1 %v10954_v6  ;;  %v11062_v6 = vld [vmem:[#allocation8 + $0x94] ss:$8 sps:$4 sm:$0xff]  }
 0x534   : > { %4634 = vmatpush1.bf16.msra.mxu1 %v10952_v16  ;;  %v11060_v16 = vld [vmem:[#allocation8 + $0x90] ss:$8 sps:$4 sm:$0xff]  }
 0x535   : > { %4635 = vmatprep.subr.bf16.mxu1 %v10960_v15  ;;  %v11065_v15 = vld [vmem:[#allocation8 + $0xa4] ss:$8 sps:$4 sm:$0xff]  }
 0x538   : > { %4636 = vmatpush1.bf16.msra.mxu1 %v10958_v52  ;;  %v11063_v52 = vld [vmem:[#allocation8 + $0xa0] ss:$8 sps:$4 sm:$0xff]  }
 0x539   : > { %4637 = vmatprep.subr.bf16.mxu1 %v10966_v54  ;;  %v11068_v54 = vld [vmem:[#allocation8 + $0xb4] ss:$8 sps:$4 sm:$0xff]  }
 0x53c   : > { %4638 = vmatpush1.bf16.msra.mxu1 %v10964_v10  ;;  %v11066_v10 = vld [vmem:[#allocation8 + $0xb0] ss:$8 sps:$4 sm:$0xff]  }
 0x53d   : > { %4639 = vmatprep.subr.bf16.mxu1 %v10972_v13  ;;  %v11071_v13 = vld [vmem:[#allocation8 + $0xc4] ss:$8 sps:$4 sm:$0xff]  }
 0x540   : > { %4640 = vmatpush1.bf16.msra.mxu1 %v10970_v26  ;;  %v11069_v26 = vld [vmem:[#allocation8 + $0xc0] ss:$8 sps:$4 sm:$0xff]  }
 0x541   : > { %4641 = vmatprep.subr.bf16.mxu1 %v10978_v45  ;;  %v11074_v45 = vld [vmem:[#allocation8 + $0xd4] ss:$8 sps:$4 sm:$0xff]  }
 0x544   : > { %4642 = vmatpush1.bf16.msra.mxu1 %v10976_v34  ;;  %v11072_v34 = vld [vmem:[#allocation8 + $0xd0] ss:$8 sps:$4 sm:$0xff]  }
 0x545   : > { %4643 = vmatprep.subr.bf16.mxu1 %v10984_v31  ;;  %v11075_v31 = vld [vmem:[#allocation8 + $0xe0] ss:$8 sps:$4 sm:$0xff]  }
 0x548   : > { %4644 = vmatpush1.bf16.msra.mxu1 %v10982_v9  ;;  %v11077_v9 = vld [vmem:[#allocation8 + $0xe4] ss:$8 sps:$4 sm:$0xff]  }
 0x549   : > { %4645 = vmatprep.subr.bf16.mxu1 %v10990_v55  ;;  %v11080_v55 = vld [vmem:[#allocation8 + $0xf4] ss:$8 sps:$4 sm:$0xff]  }
 0x54c   : > { %4646 = vmatpush1.bf16.msra.mxu1 %v10988_v38  ;;  %v11078_v38 = vld [vmem:[#allocation8 + $0xf0] ss:$8 sps:$4 sm:$0xff]  }
 0x54d   : > { %4647 = vmatprep.subr.bf16.mxu1 %v10996_v14  ;;  %v11083_v14 = vld [vmem:[#allocation8 + $0x104] ss:$8 sps:$4 sm:$0xff]  }
 0x550   : > { %4648 = vmatpush1.bf16.msra.mxu1 %v10994_v19  ;;  %v11129_v19 = vld [vmem:[#allocation2 + $0x300] ss:$24 sps:$4 sm:$0xff]  }
 0x551   : > { %4649 = vmatprep.subr.bf16.mxu1 %v11002_v49  ;;  %v11131_v49 = vld [vmem:[#allocation2 + $0x304] ss:$24 sps:$4 sm:$0xff]  }
 0x554   : > { %4650 = vmatpush1.bf16.msra.mxu1 %v11000_v53  ;;  %v11137_v53 = vld [vmem:[#allocation2 + $0x334] ss:$24 sps:$4 sm:$0xff]  }
 0x555   : > { %4651 = vmatprep.subr.bf16.mxu1 %v11008_v32  ;;  %v11135_v32 = vld [vmem:[#allocation2 + $0x330] ss:$24 sps:$4 sm:$0xff]  }
 0x558   : > { %4652 = vmatpush1.bf16.msra.mxu1 %v11006_v18  ;;  %v11143_v18 = vld [vmem:[#allocation2 + $0x364] ss:$24 sps:$4 sm:$0xff]  }
 0x559   : > { %4653 = vmatprep.subr.bf16.mxu1 %v11014_v25  ;;  %v11141_v25 = vld [vmem:[#allocation2 + $0x360] ss:$24 sps:$4 sm:$0xff]  }
 0x55c   : > { %4654 = vmatpush1.bf16.msra.mxu1 %v11012_v24  ;;  %v11149_v24 = vld [vmem:[#allocation2 + $0x394] ss:$24 sps:$4 sm:$0xff]  }
 0x55d   : > { %4655 = vmatprep.subr.bf16.mxu1 %v11020_v33  ;;  %v11147_v33 = vld [vmem:[#allocation2 + $0x390] ss:$24 sps:$4 sm:$0xff]  }
 0x560   : > { %4656 = vmatpush1.bf16.msra.mxu1 %v11018_v57  ;;  %v11155_v57 = vld [vmem:[#allocation2 + $0x3c4] ss:$24 sps:$4 sm:$0xff]  }
 0x561   : > { %4657 = vmatprep.subr.bf16.mxu1 %v11026_v37  ;;  %v11167_v37 = vld [vmem:[#allocation2 + $0x424] ss:$24 sps:$4 sm:$0xff]  }
 0x564   : > { %4658 = vmatpush1.bf16.msra.mxu1 %v11024_v3  ;;  %v11159_v3 = vld [vmem:[#allocation2 + $0x3f0] ss:$24 sps:$4 sm:$0xff]  }
 0x565   : > { %4659 = vmatprep.subr.bf16.mxu1 %v11032_v5  ;;  %v11179_v5 = vld [vmem:[#allocation2 + $0x484] ss:$24 sps:$4 sm:$0xff]  }
 0x568   : > { %4660 = vmatpush1.bf16.msra.mxu1 %v11030_v40  ;;  %v11171_v40 = vld [vmem:[#allocation2 + $0x450] ss:$24 sps:$4 sm:$0xff]  }
 0x569   : > { %5749 = vmatprep.subr.bf16.mxu1 %v11131_v49 }
 0x5fe   : > { %v4165_v11 = vpop.f32.mrb[8].mxu1 }
 0x5ff   : > { %v4167_v28 = vpop.f32.mrb[9].mxu1  ;;  %v13585_v29 = vadd.f32 %v4165_v11, %v15081_v47  ;;  %v11185_v11 = vld [vmem:[#allocation2 + $0x4b4] ss:$24 sps:$4 sm:$0xff]  }
 0x600   : > { %v4169_v51 = vpop.f32.mrb[10].mxu1  ;;  %v13579_v59 = vadd.f32 %v4167_v28, %v15079_v41  ;;  %v11183_v28 = vld [vmem:[#allocation2 + $0x4b0] ss:$24 sps:$4 sm:$0xff]  }
 0x601   : > { %v13576_v8 = vadd.f32 %v4169_v51, %v15078_v61  ;;  %v4171_v35 = vpop.f32.mrb[11].mxu1  ;;  %v11191_v51 = vld [vmem:[#allocation2 + $0x4e4] ss:$24 sps:$4 sm:$0xff]   ;;  %v11189_v61 = vld [vmem:[#allocation2 + $0x4e0] ss:$24 sps:$4 sm:$0xff]   ;;  %v15082_v47 = vld [vmem:[#allocation25_spill] sm:$0xff] }
 0x602   : > { %v13582_v43 = vadd.f32 %v4171_v35, %v15080_v58  ;;  %v11197_v35 = vld [vmem:[#allocation2 + $0x514] ss:$24 sps:$4 sm:$0xff]   ;;  %v11195_v41 = vld [vmem:[#allocation2 + $0x510] ss:$24 sps:$4 sm:$0xff]   ;;  %v11203_v58 = vld [vmem:[#allocation2 + $0x544] ss:$24 sps:$4 sm:$0xff]  }
 0x603   : > { %v4178_v22 = vpack.c.bf16 %v13576_v8, %v13585_v29 }
 0x604   : > { %v4179_v46 = vpack.c.bf16 %v13582_v43, %v13579_v59 }
 0x606   : > { %4618 = vmatprep.mubr.bf16.mxu0 %v4179_v46  ;;  %4661 = vmatprep.mubr.bf16.mxu1 %v4179_v46  ;;  %v15004_v46 = vsub.s32 2, %v15082_v47 }
 0x607   : > { %4619 = vmatmul.mubr.bf16.vlgmr.msra.gmra.mrb[40].mxu0 %v4178_v22  ;;  %4662 = vmatmul.mubr.bf16.vlgmr.msra.gmra.mrb[12].mxu1 %v4178_v22  ;;  %v15003_v22 = vsub.s32 3, %v15082_v47 }
 0x608   : > { %5081 = vmatpush1.bf16.msra.mxu0 %v11033_v23  ;;  %5750 = vmatpush1.bf16.msra.mxu1 %v11129_v19  ;;  %v4244_v23 = vld [vmem:[%s14956_s6] sm:$0xf] }
 0x609   : > { %5082 = vmatprep.subr.bf16.mxu0 %v11038_v7  ;;  %5751 = vmatprep.subr.bf16.mxu1 %v11137_v53  ;;  %v11201_v7 = vld [vmem:[#allocation2 + $0x540] ss:$24 sps:$4 sm:$0xff]  }
 0x60c   : > { %5083 = vmatpush1.bf16.msra.mxu0 %v11036_v27  ;;  %5752 = vmatpush1.bf16.msra.mxu1 %v11135_v32  ;;  %v11209_v27 = vld [vmem:[#allocation2 + $0x574] ss:$24 sps:$4 sm:$0xff]  }
 0x60d   : > { %5084 = vmatprep.subr.bf16.mxu0 %v11041_v1  ;;  %5753 = vmatprep.subr.bf16.mxu1 %v11143_v18  ;;  %v15083_v1 = vld [vmem:[#allocation26_spill] sm:$0xff] }
 0x610   : > { %5085 = vmatpush1.bf16.msra.mxu0 %v11039_v0  ;;  %5754 = vmatpush1.bf16.msra.mxu1 %v11141_v25  ;;  %v4249_v0 = vrot.slane %v4244_v23, %v15083_v1 }
 0x611   : > { %5086 = vmatprep.subr.bf16.mxu0 %v11044_v12  ;;  %5755 = vmatprep.subr.bf16.mxu1 %v11149_v24  ;;  %v4257_v12 = vrot.slane %v4244_v23, %v15004_v46  ;;  %v11081_v24 = vld [vmem:[#allocation8 + $0x100] ss:$8 sps:$4 sm:$0xff]  }
 0x614   : > { %5087 = vmatpush1.bf16.msra.mxu0 %v11042_v20  ;;  %5756 = vmatpush1.bf16.msra.mxu1 %v11147_v33  ;;  %v15084_v20 = vld [vmem:[#allocation27_spill] sm:$0xff] }
 0x615   : > { %5088 = vmatprep.subr.bf16.mxu0 %v11047_v63  ;;  %5757 = vmatprep.subr.bf16.mxu1 %v11155_v57  ;;  %v4253_v63 = vrot.slane %v4244_v23, %v15084_v20  ;;  %v11086_v33 = vld [vmem:[#allocation8 + $0x114] ss:$8 sps:$4 sm:$0xff]   ;;  %v11084_v57 = vld [vmem:[#allocation8 + $0x110] ss:$8 sps:$4 sm:$0xff]  }
 0x618   : > { %5089 = vmatpush1.bf16.msra.mxu0 %v11045_v56  ;;  %5758 = vmatpush1.bf16.msra.mxu1 %v11153_v42  ;;  %v4261_v56 = vrot.slane %v4244_v23, %v15003_v22  ;;  %v11089_v42 = vld [vmem:[#allocation8 + $0x124] ss:$8 sps:$4 sm:$0xff]  }
 0x619   : > { %5090 = vmatprep.subr.bf16.mxu0 %v11050_v50  ;;  %5759 = vmatprep.subr.bf16.mxu1 %v11161_v44  ;;  %v11207_v50 = vld [vmem:[#allocation2 + $0x570] ss:$24 sps:$4 sm:$0xff]   ;;  %v11113_v23 = vld [vmem:[#allocation8 + $0x1a4] ss:$8 sps:$4 sm:$0xff]  }
 0x61a   : > { %v11087_v44 = vld [vmem:[#allocation8 + $0x120] ss:$8 sps:$4 sm:$0xff]  }
 0x61c   : > { %5091 = vmatpush1.bf16.msra.mxu0 %v11048_v17  ;;  %5760 = vmatpush1.bf16.msra.mxu1 %v11159_v3  ;;  %v11092_v3 = vld [vmem:[#allocation8 + $0x134] ss:$8 sps:$4 sm:$0xff]  }
 0x61d   : > { %5092 = vmatprep.subr.bf16.mxu0 %v11053_v2  ;;  %5761 = vmatprep.subr.bf16.mxu1 %v11167_v37  ;;  %v11090_v37 = vld [vmem:[#allocation8 + $0x130] ss:$8 sps:$4 sm:$0xff]  }
 0x620   : > { %5093 = vmatpush1.bf16.msra.mxu0 %v11051_v48  ;;  %5762 = vmatpush1.bf16.msra.mxu1 %v11165_v36  ;;  %v11095_v36 = vld [vmem:[#allocation8 + $0x144] ss:$8 sps:$4 sm:$0xff]  }
 0x621   : > { %5094 = vmatprep.subr.bf16.mxu0 %v11056_v21  ;;  %5763 = vmatprep.subr.bf16.mxu1 %v11173_v39  ;;  %v11093_v39 = vld [vmem:[#allocation8 + $0x140] ss:$8 sps:$4 sm:$0xff]  }
 0x624   : > { %5095 = vmatpush1.bf16.msra.mxu0 %v11054_v62  ;;  %5764 = vmatpush1.bf16.msra.mxu1 %v11171_v40  ;;  %v11098_v40 = vld [vmem:[#allocation8 + $0x154] ss:$8 sps:$4 sm:$0xff]  }
 0x625   : > { %5096 = vmatprep.subr.bf16.mxu0 %v11059_v30  ;;  %5765 = vmatprep.subr.bf16.mxu1 %v11179_v5  ;;  %v11096_v5 = vld [vmem:[#allocation8 + $0x150] ss:$8 sps:$4 sm:$0xff]  }
 0x628   : > { %5097 = vmatpush1.bf16.msra.mxu0 %v11057_v4  ;;  %5766 = vmatpush1.bf16.msra.mxu1 %v11177_v60  ;;  %v11101_v60 = vld [vmem:[#allocation8 + $0x164] ss:$8 sps:$4 sm:$0xff]  }
 0x629   : > { %5098 = vmatprep.subr.bf16.mxu0 %v11062_v6  ;;  %5767 = vmatprep.subr.bf16.mxu1 %v11185_v11  ;;  %v11099_v11 = vld [vmem:[#allocation8 + $0x160] ss:$8 sps:$4 sm:$0xff]  }
 0x62c   : > { %5099 = vmatpush1.bf16.msra.mxu0 %v11060_v16  ;;  %5768 = vmatpush1.bf16.msra.mxu1 %v11183_v28  ;;  %v11104_v28 = vld [vmem:[#allocation8 + $0x174] ss:$8 sps:$4 sm:$0xff]  }
 0x62d   : > { %5100 = vmatprep.subr.bf16.mxu0 %v11065_v15  ;;  %5769 = vmatprep.subr.bf16.mxu1 %v11191_v51  ;;  %v11102_v51 = vld [vmem:[#allocation8 + $0x170] ss:$8 sps:$4 sm:$0xff]  }
 0x630   : > { %5101 = vmatpush1.bf16.msra.mxu0 %v11063_v52  ;;  %5770 = vmatpush1.bf16.msra.mxu1 %v11189_v61  ;;  %v11107_v61 = vld [vmem:[#allocation8 + $0x184] ss:$8 sps:$4 sm:$0xff]  }
 0x631   : > { %5102 = vmatprep.subr.bf16.mxu0 %v11068_v54  ;;  %5771 = vmatprep.subr.bf16.mxu1 %v11197_v35  ;;  %v11105_v35 = vld [vmem:[#allocation8 + $0x180] ss:$8 sps:$4 sm:$0xff]  }
 0x634   : > { %5103 = vmatpush1.bf16.msra.mxu0 %v11066_v10  ;;  %5772 = vmatpush1.bf16.msra.mxu1 %v11195_v41  ;;  %v11110_v41 = vld [vmem:[#allocation8 + $0x194] ss:$8 sps:$4 sm:$0xff]  }
 0x635   : > { %5104 = vmatprep.subr.bf16.mxu0 %v11071_v13  ;;  %5773 = vmatprep.subr.bf16.mxu1 %v11203_v58  ;;  %v11108_v58 = vld [vmem:[#allocation8 + $0x190] ss:$8 sps:$4 sm:$0xff]  }
 0x638   : > { %5105 = vmatpush1.bf16.msra.mxu0 %v11069_v26  ;;  %5774 = vmatpush1.bf16.msra.mxu1 %v11201_v7  ;;  %v11111_v7 = vld [vmem:[#allocation8 + $0x1a0] ss:$8 sps:$4 sm:$0xff]  }
 0x639   : > { %5106 = vmatprep.subr.bf16.mxu0 %v11074_v45  ;;  %5775 = vmatprep.subr.bf16.mxu1 %v11209_v27  ;;  %v11116_v27 = vld [vmem:[#allocation8 + $0x1b4] ss:$8 sps:$4 sm:$0xff]  }
 0x63c   : > { %5107 = vmatpush1.bf16.msra.mxu0 %v11072_v34  ;;  %5776 = vmatpush1.bf16.msra.mxu1 %v11207_v50  ;;  %v11120_v50 = vld [vmem:[#allocation8 + $0x1d0] ss:$8 sps:$4 sm:$0xff]  }
 0x63d   : > { %5108 = vmatprep.subr.bf16.mxu0 %v11077_v9 }
 0x640   : > { %5109 = vmatpush1.bf16.msra.mxu0 %v11075_v31 }
 0x641   : > { %5110 = vmatprep.subr.bf16.mxu0 %v11080_v55 }
 0x644   : > { %5111 = vmatpush1.bf16.msra.mxu0 %v11078_v38 }
 0x645   : > { %5123 = vmatprep.subr.bf16.mxu0 %v11083_v14 }
 0x6da   : > { %v4620_v17 = vpop.f32.mrb[40].mxu0  ;;  %v4663_v2 = vpop.f32.mrb[12].mxu1 }
 0x6db   : > { %v4621_v48 = vadd.f32 %v4620_v17, %v4249_v0  ;;  %v4664_v21 = vadd.f32 %v4663_v2, %v4257_v12  ;;  %v4622_v62 = vpop.f32.mrb[41].mxu0  ;;  %v4665_v30 = vpop.f32.mrb[13].mxu1  ;;  %v11125_v17 = vld [vmem:[#allocation8 + $0x1e4] ss:$8 sps:$4 sm:$0xff]   ;;  %v11123_v2 = vld [vmem:[#allocation8 + $0x1e0] ss:$8 sps:$4 sm:$0xff]  }
 0x6dc   : > { %v4623_v4 = vadd.f32 %v4622_v62, %v4253_v63  ;;  %v4666_v6 = vadd.f32 %v4665_v30, %v4261_v56  ;;  %v4624_v16 = vpop.f32.mrb[42].mxu0  ;;  %v4667_v15 = vpop.f32.mrb[14].mxu1  ;;  %v11134_v62 = vld [vmem:[#allocation2 + $0x314] ss:$24 sps:$4 sm:$0xff]   ;;  %v11132_v30 = vld [vmem:[#allocation2 + $0x310] ss:$24 sps:$4 sm:$0xff]  }
 0x6dd   : > { %v4625_v52 = vadd.f32 %v4624_v16, %v4249_v0  ;;  %v4668_v54 = vadd.f32 %v4667_v15, %v4257_v12  ;;  %v4626_v10 = vpop.f32.mrb[43].mxu0  ;;  %v4669_v13 = vpop.f32.mrb[15].mxu1  ;;  %v4672_v34 = vmax.f32 %v4621_v48, 0.0  ;;  %v4674_v31 = vmax.f32 %v4664_v21, 0.0  ;;  %v11114_v0 = vld [vmem:[#allocation8 + $0x1b0] ss:$8 sps:$4 sm:$0xff]  }
 0x6de   : > { %v4627_v26 = vadd.f32 %v4626_v10, %v4253_v63  ;;  %v4670_v45 = vadd.f32 %v4669_v13, %v4261_v56  ;;  %v4673_v38 = vmax.f32 %v4623_v4, 0.0  ;;  %v4675_v14 = vmax.f32 %v4666_v6, 0.0  ;;  %v11119_v12 = vld [vmem:[#allocation8 + $0x1c4] ss:$8 sps:$4 sm:$0xff]   ;;  %v11117_v63 = vld [vmem:[#allocation8 + $0x1c0] ss:$8 sps:$4 sm:$0xff]  }
 0x6df   : > { %v4676_v9 = vmax.f32 %v4625_v52, 0.0  ;;  %v4678_v55 = vmax.f32 %v4668_v54, 0.0  ;;  %v11122_v56 = vld [vmem:[#allocation8 + $0x1d4] ss:$8 sps:$4 sm:$0xff]   ;;  %v11126_v21 = vld [vmem:[#allocation8 + $0x1f0] ss:$8 sps:$4 sm:$0xff]  }
 0x6e0   : > { %v4677_v19 = vmax.f32 %v4627_v26, 0.0  ;;  %v4679_v49 = vmax.f32 %v4670_v45, 0.0  ;;  %v11128_v48 = vld [vmem:[#allocation8 + $0x1f4] ss:$8 sps:$4 sm:$0xff]   ;;  %v11138_v6 = vld [vmem:[#allocation2 + $0x340] ss:$24 sps:$4 sm:$0xff]  }
 0x6e1   : > { %v4680_v53 = vpack.c.bf16 %v4676_v9, %v4672_v34  ;;  %v13602_v32 = vpack.c.bf16 %v4678_v55, %v4674_v31  ;;  %v11140_v4 = vld [vmem:[#allocation2 + $0x344] ss:$24 sps:$4 sm:$0xff]   ;;  %v11146_v16 = vld [vmem:[#allocation2 + $0x374] ss:$24 sps:$4 sm:$0xff]   ;;  %v11144_v15 = vld [vmem:[#allocation2 + $0x370] ss:$24 sps:$4 sm:$0xff]  }
 0x6e2   : > { %v4681_v18 = vpack.c.bf16 %v4677_v19, %v4673_v38  ;;  %v4683_v25 = vpack.c.bf16 %v4679_v49, %v4675_v14  ;;  %v11152_v52 = vld [vmem:[#allocation2 + $0x3a4] ss:$24 sps:$4 sm:$0xff]   ;;  %v11150_v54 = vld [vmem:[#allocation2 + $0x3a0] ss:$24 sps:$4 sm:$0xff]   ;;  %v11158_v10 = vld [vmem:[#allocation2 + $0x3d4] ss:$24 sps:$4 sm:$0xff]  }
 0x6e3   : > { %v11156_v13 = vld [vmem:[#allocation2 + $0x3d0] ss:$24 sps:$4 sm:$0xff]   ;;  %v11164_v26 = vld [vmem:[#allocation2 + $0x404] ss:$24 sps:$4 sm:$0xff]   ;;  %v11162_v45 = vld [vmem:[#allocation2 + $0x400] ss:$24 sps:$4 sm:$0xff]  }
 0x6e4   : > { %5112 = vmatprep.mubr.bf16.mxu0 %v4681_v18  ;;  %v11170_v34 = vld [vmem:[#allocation2 + $0x434] ss:$24 sps:$4 sm:$0xff]   ;;  %v11168_v31 = vld [vmem:[#allocation2 + $0x430] ss:$24 sps:$4 sm:$0xff]   ;;  %v11176_v9 = vld [vmem:[#allocation2 + $0x464] ss:$24 sps:$4 sm:$0xff]  }
 0x6e5   : > { %5113 = vmatmul.mubr.bf16.vlgmr.msra.gmra.mrb[44].mxu0 %v4680_v53  ;;  %v11174_v55 = vld [vmem:[#allocation2 + $0x460] ss:$24 sps:$4 sm:$0xff]   ;;  %v11182_v38 = vld [vmem:[#allocation2 + $0x494] ss:$24 sps:$4 sm:$0xff]   ;;  %v11180_v14 = vld [vmem:[#allocation2 + $0x490] ss:$24 sps:$4 sm:$0xff]  }
 0x6e6   : > { %5124 = vmatpush1.bf16.msra.mxu0 %v11081_v24  ;;  %5155 = vmatprep.mubr.bf16.mxu0 %v4683_v25  ;;  %v11188_v19 = vld [vmem:[#allocation2 + $0x4c4] ss:$24 sps:$4 sm:$0xff]   ;;  %v11186_v49 = vld [vmem:[#allocation2 + $0x4c0] ss:$24 sps:$4 sm:$0xff]   ;;  %v11194_v53 = vld [vmem:[#allocation2 + $0x4f4] ss:$24 sps:$4 sm:$0xff]  }
 0x6e7   : > { %5125 = vmatprep.subr.bf16.mxu0 %v11086_v33  ;;  %v11200_v18 = vld [vmem:[#allocation2 + $0x524] ss:$24 sps:$4 sm:$0xff]   ;;  %v11198_v25 = vld [vmem:[#allocation2 + $0x520] ss:$24 sps:$4 sm:$0xff]   ;;  %v11206_v24 = vld [vmem:[#allocation2 + $0x554] ss:$24 sps:$4 sm:$0xff]  }
 0x6e8   : > { %v11204_v33 = vld [vmem:[#allocation2 + $0x550] ss:$24 sps:$4 sm:$0xff]  }
 0x6ea   : > { %5126 = vmatpush1.bf16.msra.mxu0 %v11084_v57  ;;  %v11212_v57 = vld [vmem:[#allocation2 + $0x584] ss:$24 sps:$4 sm:$0xff]  }
 0x6eb   : > { %5127 = vmatprep.subr.bf16.mxu0 %v11089_v42  ;;  %v11210_v42 = vld [vmem:[#allocation2 + $0x580] ss:$24 sps:$4 sm:$0xff]  }
 0x6ee   : > { %5128 = vmatpush1.bf16.msra.mxu0 %v11087_v44  ;;  %v11213_v44 = vld [vmem:[#allocation2 + $0x5a0] ss:$24 sps:$4 sm:$0xff]  }
 0x6ef   : > { %5129 = vmatprep.subr.bf16.mxu0 %v11092_v3  ;;  %v11215_v3 = vld [vmem:[#allocation2 + $0x5a4] ss:$24 sps:$4 sm:$0xff]  }
 0x6f0   : > { %5777 = vmatprep.subr.bf16.mxu1 %v11215_v3  ;;  %v11793_v3 = vld [vmem:[#allocation10 + $0x10] ss:$8 sps:$4 sm:$0xff]  }
 0x6f1   : > { %5778 = vmatpush1.bf16.msra.mxu1 %v11213_v44  ;;  %v11792_v44 = vld [vmem:[#allocation10 + $0x14] ss:$8 sps:$4 sm:$0xff]  }
 0x6f2   : > { %5130 = vmatpush1.bf16.msra.mxu0 %v11090_v37  ;;  %v11216_v37 = vld [vmem:[#allocation2 + $0x5b0] ss:$24 sps:$4 sm:$0xff]  }
 0x6f3   : > { %5131 = vmatprep.subr.bf16.mxu0 %v11095_v36  ;;  %v11218_v36 = vld [vmem:[#allocation2 + $0x5b4] ss:$24 sps:$4 sm:$0xff]  }
 0x6f6   : > { %5132 = vmatpush1.bf16.msra.mxu0 %v11093_v39  ;;  %v11221_v39 = vld [vmem:[#allocation2 + $0x5d4] ss:$24 sps:$4 sm:$0xff]  }
 0x6f7   : > { %5133 = vmatprep.subr.bf16.mxu0 %v11098_v40  ;;  %v11224_v40 = vld [vmem:[#allocation2 + $0x5e4] ss:$24 sps:$4 sm:$0xff]   ;;  %5779 = vmatprep.subr.bf16.mxu1 %v11221_v39 }
 0x6f8   : > { %v11796_v39 = vld [vmem:[#allocation10 + $0x34] ss:$8 sps:$4 sm:$0xff]  }
 0x6fa   : > { %5134 = vmatpush1.bf16.msra.mxu0 %v11096_v5  ;;  %v11219_v5 = vld [vmem:[#allocation2 + $0x5d0] ss:$24 sps:$4 sm:$0xff]  }
 0x6fb   : > { %5135 = vmatprep.subr.bf16.mxu0 %v11101_v60  ;;  %v11222_v60 = vld [vmem:[#allocation2 + $0x5e0] ss:$24 sps:$4 sm:$0xff]   ;;  %5780 = vmatpush1.bf16.msra.mxu1 %v11219_v5  ;;  %v11798_v5 = vld [vmem:[#allocation10 + $0x44] ss:$8 sps:$4 sm:$0xff]  }
 0x6fe   : > { %5136 = vmatpush1.bf16.msra.mxu0 %v11099_v11  ;;  %v11227_v11 = vld [vmem:[#allocation2 + $0x30c] ss:$24 sps:$4 sm:$0xff]  }
 0x6ff   : > { %5137 = vmatprep.subr.bf16.mxu0 %v11104_v28  ;;  %5792 = vmatprep.subr.bf16.mxu1 %v11227_v11  ;;  %v4748_v28 = vld [vmem:[%s14958_s8] sm:$0x3]  ;;  %v11800_v11 = vld [vmem:[#allocation10 + $0x54] ss:$8 sps:$4 sm:$0xff]  }
 0x702   : > { %5138 = vmatpush1.bf16.msra.mxu0 %v11102_v51  ;;  %v4757_v51 = vrot.slane %v4748_v28, %v15084_v20 }
 0x703   : > { %5139 = vmatprep.subr.bf16.mxu0 %v11107_v61  ;;  %v4753_v61 = vrot.slane %v4748_v28, %v15083_v1  ;;  %v11801_v28 = vld [vmem:[#allocation10 + $0x50] ss:$8 sps:$4 sm:$0xff]  }
 0x706   : > { %5140 = vmatpush1.bf16.msra.mxu0 %v11105_v35 }
 0x707   : > { %5141 = vmatprep.subr.bf16.mxu0 %v11110_v41 }
 0x70a   : > { %5142 = vmatpush1.bf16.msra.mxu0 %v11108_v58 }
 0x70b   : > { %5143 = vmatprep.subr.bf16.mxu0 %v11113_v23 }
 0x70e   : > { %5144 = vmatpush1.bf16.msra.mxu0 %v11111_v7 }
 0x70f   : > { %5145 = vmatprep.subr.bf16.mxu0 %v11116_v27 }
 0x712   : > { %5146 = vmatpush1.bf16.msra.mxu0 %v11114_v0 }
 0x713   : > { %5147 = vmatprep.subr.bf16.mxu0 %v11119_v12 }
 0x716   : > { %5148 = vmatpush1.bf16.msra.mxu0 %v11117_v63 }
 0x717   : > { %5149 = vmatprep.subr.bf16.mxu0 %v11122_v56 }
 0x71a   : > { %5150 = vmatpush1.bf16.msra.mxu0 %v11120_v50 }
 0x71b   : > { %5151 = vmatprep.subr.bf16.mxu0 %v11125_v17 }
 0x71e   : > { %5152 = vmatpush1.bf16.msra.mxu0 %v11123_v2 }
 0x71f   : > { %5153 = vmatprep.subr.bf16.mxu0 %v11128_v48  ;;  %v11225_v48 = vld [vmem:[#allocation2 + $0x308] ss:$24 sps:$4 sm:$0xff]  }
 0x722   : > { %5154 = vmatpush1.bf16.msra.mxu0 %v11126_v21 }
 0x723   : > { %5835 = vmatprep.subr.bf16.mxu0 %v11134_v62  ;;  %v11230_v62 = vld [vmem:[#allocation2 + $0x33c] ss:$24 sps:$4 sm:$0xff]  }
 0x725   : > { %5156 = vmatmul.mubr.bf16.vlgmr.msra.gmra.mrb[44].mxu0 %v13602_v32  ;;  %v11192_v32 = vld [vmem:[#allocation2 + $0x4f0] ss:$24 sps:$4 sm:$0xff]  }
 0x726   : > { %5836 = vmatpush1.bf16.msra.mxu0 %v11132_v30  ;;  %v11234_v30 = vld [vmem:[#allocation2 + $0x398] ss:$24 sps:$4 sm:$0xff]  }
 0x727   : > { %5837 = vmatprep.subr.bf16.mxu0 %v11140_v4  ;;  %v11239_v4 = vld [vmem:[#allocation2 + $0x3cc] ss:$24 sps:$4 sm:$0xff]  }
 0x72a   : > { %5838 = vmatpush1.bf16.msra.mxu0 %v11138_v6  ;;  %v11237_v6 = vld [vmem:[#allocation2 + $0x3c8] ss:$24 sps:$4 sm:$0xff]  }
 0x72b   : > { %5839 = vmatprep.subr.bf16.mxu0 %v11146_v16  ;;  %v11242_v16 = vld [vmem:[#allocation2 + $0x3fc] ss:$24 sps:$4 sm:$0xff]  }
 0x72e   : > { %5840 = vmatpush1.bf16.msra.mxu0 %v11144_v15  ;;  %v11240_v15 = vld [vmem:[#allocation2 + $0x3f8] ss:$24 sps:$4 sm:$0xff]  }
 0x72f   : > { %5841 = vmatprep.subr.bf16.mxu0 %v11152_v52  ;;  %v11245_v52 = vld [vmem:[#allocation2 + $0x42c] ss:$24 sps:$4 sm:$0xff]  }
 0x732   : > { %5842 = vmatpush1.bf16.msra.mxu0 %v11150_v54  ;;  %v11243_v54 = vld [vmem:[#allocation2 + $0x428] ss:$24 sps:$4 sm:$0xff]  }
 0x733   : > { %5843 = vmatprep.subr.bf16.mxu0 %v11158_v10  ;;  %v11248_v10 = vld [vmem:[#allocation2 + $0x45c] ss:$24 sps:$4 sm:$0xff]  }
 0x736   : > { %5844 = vmatpush1.bf16.msra.mxu0 %v11156_v13  ;;  %v11246_v13 = vld [vmem:[#allocation2 + $0x458] ss:$24 sps:$4 sm:$0xff]  }
 0x737   : > { %5845 = vmatprep.subr.bf16.mxu0 %v11164_v26  ;;  %v11251_v26 = vld [vmem:[#allocation2 + $0x48c] ss:$24 sps:$4 sm:$0xff]  }
 0x73a   : > { %5846 = vmatpush1.bf16.msra.mxu0 %v11162_v45  ;;  %v11249_v45 = vld [vmem:[#allocation2 + $0x488] ss:$24 sps:$4 sm:$0xff]  }
 0x73b   : > { %5847 = vmatprep.subr.bf16.mxu0 %v11170_v34  ;;  %v11254_v34 = vld [vmem:[#allocation2 + $0x4bc] ss:$24 sps:$4 sm:$0xff]  }
 0x73e   : > { %5848 = vmatpush1.bf16.msra.mxu0 %v11168_v31  ;;  %v11252_v31 = vld [vmem:[#allocation2 + $0x4b8] ss:$24 sps:$4 sm:$0xff]  }
 0x73f   : > { %5849 = vmatprep.subr.bf16.mxu0 %v11176_v9  ;;  %v11257_v9 = vld [vmem:[#allocation2 + $0x4ec] ss:$24 sps:$4 sm:$0xff]  }
 0x742   : > { %5850 = vmatpush1.bf16.msra.mxu0 %v11174_v55  ;;  %v11255_v55 = vld [vmem:[#allocation2 + $0x4e8] ss:$24 sps:$4 sm:$0xff]  }
 0x743   : > { %5851 = vmatprep.subr.bf16.mxu0 %v11182_v38  ;;  %v11260_v38 = vld [vmem:[#allocation2 + $0x51c] ss:$24 sps:$4 sm:$0xff]  }
 0x746   : > { %5852 = vmatpush1.bf16.msra.mxu0 %v11180_v14  ;;  %v11258_v14 = vld [vmem:[#allocation2 + $0x518] ss:$24 sps:$4 sm:$0xff]  }
 0x747   : > { %5853 = vmatprep.subr.bf16.mxu0 %v11188_v19  ;;  %v11263_v19 = vld [vmem:[#allocation2 + $0x54c] ss:$24 sps:$4 sm:$0xff]  }
 0x74a   : > { %5854 = vmatpush1.bf16.msra.mxu0 %v11186_v49  ;;  %v11261_v49 = vld [vmem:[#allocation2 + $0x548] ss:$24 sps:$4 sm:$0xff]  }
 0x74b   : > { %5855 = vmatprep.subr.bf16.mxu0 %v11194_v53  ;;  %v11266_v53 = vld [vmem:[#allocation2 + $0x57c] ss:$24 sps:$4 sm:$0xff]  }
 0x74e   : > { %5856 = vmatpush1.bf16.msra.mxu0 %v11192_v32  ;;  %v11264_v32 = vld [vmem:[#allocation2 + $0x578] ss:$24 sps:$4 sm:$0xff]  }
 0x74f   : > { %5857 = vmatprep.subr.bf16.mxu0 %v11200_v18  ;;  %v11269_v18 = vld [vmem:[#allocation2 + $0x5ac] ss:$24 sps:$4 sm:$0xff]  }
 0x752   : > { %5858 = vmatpush1.bf16.msra.mxu0 %v11198_v25  ;;  %v11267_v25 = vld [vmem:[#allocation2 + $0x5a8] ss:$24 sps:$4 sm:$0xff]  }
 0x753   : > { %5859 = vmatprep.subr.bf16.mxu0 %v11206_v24  ;;  %v11272_v24 = vld [vmem:[#allocation2 + $0x5dc] ss:$24 sps:$4 sm:$0xff]  }
 0x756   : > { %5860 = vmatpush1.bf16.msra.mxu0 %v11204_v33  ;;  %v11270_v33 = vld [vmem:[#allocation2 + $0x5d8] ss:$24 sps:$4 sm:$0xff]  }
 0x757   : > { %5861 = vmatprep.subr.bf16.mxu0 %v11212_v57  ;;  %v11790_v57 = vld [vmem:[#allocation10 + $0x4] ss:$8 sps:$4 sm:$0xff]  }
 0x75a   : > { %5862 = vmatpush1.bf16.msra.mxu0 %v11210_v42  ;;  %v11791_v42 = vld [vmem:[#allocation10] ss:$8 sps:$4 sm:$0xff]  }
 0x75b   : > { %5863 = vmatprep.subr.bf16.mxu0 %v11218_v36  ;;  %v11795_v36 = vld [vmem:[#allocation10 + $0x20] ss:$8 sps:$4 sm:$0xff]  }
 0x75e   : > { %5864 = vmatpush1.bf16.msra.mxu0 %v11216_v37  ;;  %v11794_v37 = vld [vmem:[#allocation10 + $0x24] ss:$8 sps:$4 sm:$0xff]  }
 0x75f   : > { %5865 = vmatprep.subr.bf16.mxu0 %v11224_v40  ;;  %v11797_v40 = vld [vmem:[#allocation10 + $0x30] ss:$8 sps:$4 sm:$0xff]  }
 0x762   : > { %5866 = vmatpush1.bf16.msra.mxu0 %v11222_v60  ;;  %v11799_v60 = vld [vmem:[#allocation10 + $0x40] ss:$8 sps:$4 sm:$0xff]  }
 0x7f8   : > { %v5157_v35 = vpop.f32.mrb[44].mxu0 }
 0x7f9   : > { %v5159_v41 = vpop.f32.mrb[45].mxu0  ;;  %v10566_v7 = vadd.f32 %v5157_v35, %v4753_v61  ;;  %v11804_v35 = vld [vmem:[#allocation10 + $0x74] ss:$8 sps:$4 sm:$0xff]  }
 0x7fa   : > { %v10567_v58 = vadd.f32 %v5159_v41, %v4757_v51  ;;  %v5161_v23 = vpop.f32.mrb[46].mxu0  ;;  %v11805_v41 = vld [vmem:[#allocation10 + $0x70] ss:$8 sps:$4 sm:$0xff]  }
 0x7fb   : > { %v10568_v27 = vadd.f32 %v5161_v23, %v4753_v61  ;;  %v5163_v0 = vpop.f32.mrb[47].mxu0  ;;  %v13620_v17 = vadd.f32 %v10566_v7, %v13585_v29  ;;  %v11236_v29 = vld [vmem:[#allocation2 + $0x39c] ss:$24 sps:$4 sm:$0xff]   ;;  %v11803_v61 = vld [vmem:[#allocation10 + $0x60] ss:$8 sps:$4 sm:$0xff]  }
 0x7fc   : > { %v10569_v12 = vadd.f32 %v5163_v0, %v4757_v51  ;;  %v13614_v56 = vadd.f32 %v10567_v58, %v13579_v59  ;;  %v11233_v59 = vld [vmem:[#allocation2 + $0x36c] ss:$24 sps:$4 sm:$0xff]   ;;  %v11807_v23 = vld [vmem:[#allocation10 + $0x80] ss:$8 sps:$4 sm:$0xff]   ;;  %v11808_v7 = vld [vmem:[#allocation10 + $0x94] ss:$8 sps:$4 sm:$0xff]  }
 0x7fd   : > { %v13611_v63 = vadd.f32 %v10568_v27, %v13576_v8  ;;  %15088 = vst [vmem:[#allocation38_spill] sm:$0xff] %v13620_v17  ;;  %v11228_v8 = vld [vmem:[#allocation2 + $0x338] ss:$24 sps:$4 sm:$0xff]   ;;  %v11802_v51 = vld [vmem:[#allocation10 + $0x64] ss:$8 sps:$4 sm:$0xff]  }
 0x7fe   : > { %15086 = vst [vmem:[#allocation36_spill] sm:$0xff] %v13614_v56  ;;  %v13617_v50 = vadd.f32 %v10569_v12, %v13582_v43  ;;  %v11231_v43 = vld [vmem:[#allocation2 + $0x368] ss:$24 sps:$4 sm:$0xff]   ;;  %v11806_v58 = vld [vmem:[#allocation10 + $0x84] ss:$8 sps:$4 sm:$0xff]  }
 0x7ff   : > { %15085 = vst [vmem:[#allocation35_spill] sm:$0xff] %v13611_v63  ;;  %v13626_v21 = vpack.c.bf16 %v13611_v63, %v13620_v17  ;;  %v11809_v27 = vld [vmem:[#allocation10 + $0x90] ss:$8 sps:$4 sm:$0xff]   ;;  %v11810_v0 = vld [vmem:[#allocation10 + $0xa4] ss:$8 sps:$4 sm:$0xff]  }
 0x800   : > { %15087 = vst [vmem:[#allocation37_spill] sm:$0xff] %v13617_v50  ;;  %v5171_v2 = vpack.c.bf16 %v13617_v50, %v13614_v56  ;;  %v11811_v12 = vld [vmem:[#allocation10 + $0xa0] ss:$8 sps:$4 sm:$0xff]  }
 0x802   : > { %5781 = vmatprep.mubr.bf16.mxu1 %v5171_v2  ;;  %5867 = vmatprep.mubr.bf16.mxu0 %v5171_v2 }
 0x803   : > { %5782 = vmatmul.mubr.bf16.vlgmr.msra.gmra.mrb[16].mxu1 %v13626_v21  ;;  %5868 = vmatmul.mubr.bf16.vlgmr.msra.gmra.mrb[48].mxu0 %v13626_v21 }
 0x804   : > { %5793 = vmatpush1.bf16.msra.mxu1 %v11225_v48  ;;  %5824 = vmatprep.mubr.bf16.mxu1 %v5171_v2  ;;  %v11812_v2 = vld [vmem:[#allocation10 + $0xb4] ss:$8 sps:$4 sm:$0xff]   ;;  %v11813_v48 = vld [vmem:[#allocation10 + $0xb0] ss:$8 sps:$4 sm:$0xff]  }
 0x805   : > { %5794 = vmatprep.subr.bf16.mxu1 %v11230_v62  ;;  %v11815_v62 = vld [vmem:[#allocation10 + $0xc0] ss:$8 sps:$4 sm:$0xff]  }
 0x808   : > { %5795 = vmatpush1.bf16.msra.mxu1 %v11228_v8  ;;  %v11816_v8 = vld [vmem:[#allocation10 + $0xd4] ss:$8 sps:$4 sm:$0xff]  }
 0x809   : > { %5796 = vmatprep.subr.bf16.mxu1 %v11233_v59  ;;  %v11817_v59 = vld [vmem:[#allocation10 + $0xd0] ss:$8 sps:$4 sm:$0xff]  }
 0x80c   : > { %5797 = vmatpush1.bf16.msra.mxu1 %v11231_v43  ;;  %v11818_v43 = vld [vmem:[#allocation10 + $0xe4] ss:$8 sps:$4 sm:$0xff]  }
 0x80d   : > { %5798 = vmatprep.subr.bf16.mxu1 %v11236_v29  ;;  %v11819_v29 = vld [vmem:[#allocation10 + $0xe0] ss:$8 sps:$4 sm:$0xff]  }
 0x810   : > { %5799 = vmatpush1.bf16.msra.mxu1 %v11234_v30  ;;  %v11820_v30 = vld [vmem:[#allocation10 + $0xf4] ss:$8 sps:$4 sm:$0xff]  }
 0x811   : > { %5800 = vmatprep.subr.bf16.mxu1 %v11239_v4  ;;  %v11821_v4 = vld [vmem:[#allocation10 + $0xf0] ss:$8 sps:$4 sm:$0xff]  }
 0x814   : > { %5801 = vmatpush1.bf16.msra.mxu1 %v11237_v6 }
 0x815   : > { %5802 = vmatprep.subr.bf16.mxu1 %v11242_v16 }
 0x818   : > { %5803 = vmatpush1.bf16.msra.mxu1 %v11240_v15 }
 0x819   : > { %5804 = vmatprep.subr.bf16.mxu1 %v11245_v52 }
 0x81c   : > { %5805 = vmatpush1.bf16.msra.mxu1 %v11243_v54 }
 0x81d   : > { %5806 = vmatprep.subr.bf16.mxu1 %v11248_v10 }
 0x820   : > { %5807 = vmatpush1.bf16.msra.mxu1 %v11246_v13 }
 0x821   : > { %5808 = vmatprep.subr.bf16.mxu1 %v11251_v26 }
 0x824   : > { %5809 = vmatpush1.bf16.msra.mxu1 %v11249_v45 }
 0x825   : > { %5810 = vmatprep.subr.bf16.mxu1 %v11254_v34 }
 0x828   : > { %5811 = vmatpush1.bf16.msra.mxu1 %v11252_v31 }
 0x829   : > { %5812 = vmatprep.subr.bf16.mxu1 %v11257_v9 }
 0x82c   : > { %5813 = vmatpush1.bf16.msra.mxu1 %v11255_v55 }
 0x82d   : > { %5814 = vmatprep.subr.bf16.mxu1 %v11260_v38 }
 0x830   : > { %5815 = vmatpush1.bf16.msra.mxu1 %v11258_v14 }
 0x831   : > { %5816 = vmatprep.subr.bf16.mxu1 %v11263_v19 }
 0x834   : > { %5817 = vmatpush1.bf16.msra.mxu1 %v11261_v49 }
 0x835   : > { %5818 = vmatprep.subr.bf16.mxu1 %v11266_v53 }
 0x838   : > { %5819 = vmatpush1.bf16.msra.mxu1 %v11264_v32 }
 0x839   : > { %5820 = vmatprep.subr.bf16.mxu1 %v11269_v18 }
 0x83c   : > { %5821 = vmatpush1.bf16.msra.mxu1 %v11267_v25 }
 0x83d   : > { %5822 = vmatprep.subr.bf16.mxu1 %v11272_v24 }
 0x840   : > { %5823 = vmatpush1.bf16.msra.mxu1 %v11270_v33 }
 0x841   : > { %7230 = vmatprep.subr.bf16.mxu1 %v11790_v57 }
 0x843   : > { %5825 = vmatmul.mubr.bf16.vlgmr.msra.gmra.mrb[20].mxu1 %v13626_v21  ;;  %v11814_v21 = vld [vmem:[#allocation10 + $0xc4] ss:$8 sps:$4 sm:$0xff]  }
 0x844   : > { %7231 = vmatpush1.bf16.msra.mxu1 %v11791_v42  ;;  %v15089_v42 = vld [vmem:[#allocation32_spill] sm:$0xff] }
 0x845   : > { %7232 = vmatprep.subr.bf16.mxu1 %v11792_v44 }
 0x848   : > { %7233 = vmatpush1.bf16.msra.mxu1 %v11793_v3 }
 0x849   : > { %7234 = vmatprep.subr.bf16.mxu1 %v11794_v37 }
 0x84c   : > { %7235 = vmatpush1.bf16.msra.mxu1 %v11795_v36 }
 0x84d   : > { %7236 = vmatprep.subr.bf16.mxu1 %v11796_v39 }
 0x850   : > { %7237 = vmatpush1.bf16.msra.mxu1 %v11797_v40 }
 0x851   : > { %7238 = vmatprep.subr.bf16.mxu1 %v11798_v5 }
 0x854   : > { %7239 = vmatpush1.bf16.msra.mxu1 %v11799_v60 }
 0x855   : > { %7240 = vmatprep.subr.bf16.mxu1 %v11800_v11 }
 0x858   : > { %7241 = vmatpush1.bf16.msra.mxu1 %v11801_v28 }
 0x859   : > { %7242 = vmatprep.subr.bf16.mxu1 %v11802_v51 }
 0x85c   : > { %7243 = vmatpush1.bf16.msra.mxu1 %v11803_v61 }
 0x85d   : > { %7244 = vmatprep.subr.bf16.mxu1 %v11804_v35 }
 0x860   : > { %7245 = vmatpush1.bf16.msra.mxu1 %v11805_v41 }
 0x861   : > { %7246 = vmatprep.subr.bf16.mxu1 %v11806_v58 }
 0x864   : > { %7247 = vmatpush1.bf16.msra.mxu1 %v11807_v23 }
 0x865   : > { %7248 = vmatprep.subr.bf16.mxu1 %v11808_v7 }
 0x868   : > { %7249 = vmatpush1.bf16.msra.mxu1 %v11809_v27 }
 0x869   : > { %7250 = vmatprep.subr.bf16.mxu1 %v11810_v0 }
 0x86c   : > { %7251 = vmatpush1.bf16.msra.mxu1 %v11811_v12 }
 0x86d   : > { %7252 = vmatprep.subr.bf16.mxu1 %v11812_v2 }
 0x870   : > { %7253 = vmatpush1.bf16.msra.mxu1 %v11813_v48 }
 0x871   : > { %7254 = vmatprep.subr.bf16.mxu1 %v11814_v21 }
 0x874   : > { %7255 = vmatpush1.bf16.msra.mxu1 %v11815_v62 }
 0x875   : > { %7256 = vmatprep.subr.bf16.mxu1 %v11816_v8  ;;  %v15090_v8 = vld [vmem:[#allocation33_spill] sm:$0xff] }
 0x878   : > { %7257 = vmatpush1.bf16.msra.mxu1 %v11817_v59 }
 0x879   : > { %7258 = vmatprep.subr.bf16.mxu1 %v11818_v43 }
 0x87c   : > { %7259 = vmatpush1.bf16.msra.mxu1 %v11819_v29 }
 0x87d   : > { %7260 = vmatprep.subr.bf16.mxu1 %v11820_v30 }
 0x880   : > { %7261 = vmatpush1.bf16.msra.mxu1 %v11821_v4 }
 0x8d6   : > { %v13631_v6 = vpop.f32.mrb[16].mxu1  ;;  %v13633_v16 = vpop.f32.mrb[48].mxu0 }
 0x8d7   : > { %v13635_v15 = vpop.f32.mrb[17].mxu1  ;;  %v13637_v52 = vpop.f32.mrb[49].mxu0 }
 0x8d8   : > { %v6922_v54 = vcombine.low %v13631_v6, %v13635_v15  ;;  %v6923_v10 = vcombine.high %v13631_v6, %v13635_v15  ;;  %v13643_v13 = vpop.f32.mrb[18].mxu1  ;;  %v13645_v26 = vpop.f32.mrb[50].mxu0 }
 0x8d9   : > { %v13647_v45 = vpop.f32.mrb[19].mxu1  ;;  %v13649_v34 = vpop.f32.mrb[51].mxu0 }
 0x8da   : > { %v6972_v31 = vcombine.low %v13643_v13, %v13647_v45  ;;  %v6973_v9 = vcombine.high %v13643_v13, %v13647_v45 }
 0x916   : > { %v5826_v55 = vpop.f32.mrb[20].mxu1 }
 0x917   : > { %5886 = vrot.lane.b32.xlu1 %v5826_v55, %s12052_s23  ;;  %5880 = vrot.lane.b32.xlu0 %v5826_v55, %s12051_s30  ;;  %v5828_v38 = vpop.f32.mrb[21].mxu1 }
 0x918   : > { %v13657_v14 = vpop.f32.mrb[22].mxu1 }
 0x919   : > { %v13659_v19 = vpop.f32.mrb[23].mxu1 }
 0x91b   : > { %5892 = vrot.lane.b32.xlu0 %v5826_v55, %s12050_s15  ;;  %5900 = vrot.lane.b32.xlu1 %v5828_v38, %s12051_s30 }
 0x91f   : > { %5906 = vrot.lane.b32.xlu0 %v5828_v38, %s12052_s23  ;;  %5912 = vrot.lane.b32.xlu1 %v5828_v38, %s12050_s15 }
 0x923   : > { %5888 = vrot.lane.b32.xlu1 %v13657_v14, %s12052_s23  ;;  %5882 = vrot.lane.b32.xlu0 %v13657_v14, %s12051_s30 }
 0x927   : > { %5894 = vrot.lane.b32.xlu0 %v13657_v14, %s12050_s15  ;;  %5902 = vrot.lane.b32.xlu1 %v13659_v19, %s12051_s30 }
 0x92b   : > { %5908 = vrot.lane.b32.xlu0 %v13659_v19, %s12052_s23  ;;  %5914 = vrot.lane.b32.xlu1 %v13659_v19, %s12050_s15 }
 0x989   : > { %v5887_v49 = vpop.permute.xlu1 %5886  ;;  %v5881_v53 = vpop.permute.xlu0 %5880 }
 0x98a   : > { %v5918_v25 = vcombine.low %v5826_v55, %v5887_v49  ;;  %v5919_v24 = vcombine.high %v5826_v55, %v5887_v49 }
 0x98c   : > { %v5926_v39 = vrot.slane %v5918_v25, %v15089_v42  ;;  %v5933_v40 = vrot.slane %v5919_v24, %v15089_v42 }
 0x98d   : > { %v5893_v32 = vpop.permute.xlu0 %5892  ;;  %v5901_v18 = vpop.permute.xlu1 %5900 }
 0x98e   : > { %v5934_v33 = vcombine.low %v5881_v53, %v5893_v32  ;;  %v5935_v57 = vcombine.high %v5881_v53, %v5893_v32 }
 0x990   : > { %v5942_v44 = vrot.slane %v5934_v33, %v15089_v42  ;;  %v5949_v3 = vrot.slane %v5935_v57, %v15089_v42 }
 0x991   : > { %v5907_v37 = vpop.permute.xlu0 %5906  ;;  %v5913_v36 = vpop.permute.xlu1 %5912 }
 0x992   : > { %v5950_v5 = vcombine.low %v5828_v38, %v5907_v37  ;;  %v5951_v60 = vcombine.high %v5828_v38, %v5907_v37  ;;  %v5966_v11 = vcombine.low %v5901_v18, %v5913_v36  ;;  %v5967_v28 = vcombine.high %v5901_v18, %v5913_v36 }
 0x993   : > { %v5982_v51 = vcombine.low %v5926_v39, %v5942_v44  ;;  %v5983_v61 = vcombine.high %v5926_v39, %v5942_v44  ;;  %v5998_v35 = vcombine.low %v5933_v40, %v5949_v3  ;;  %v5999_v12 = vcombine.high %v5933_v40, %v5949_v3 }
 0x994   : > { %v5958_v41 = vrot.slane %v5950_v5, %v15089_v42  ;;  %v5965_v58 = vrot.slane %v5951_v60, %v15089_v42  ;;  %v5974_v23 = vrot.slane %v5966_v11, %v15089_v42  ;;  %v5981_v7 = vrot.slane %v5967_v28, %v15089_v42 }
 0x995   : > { %v5889_v27 = vpop.permute.xlu1 %5888  ;;  %v5883_v0 = vpop.permute.xlu0 %5882  ;;  %v5990_v59 = vrot.slane %v5982_v51, %v15090_v8  ;;  %v5997_v43 = vrot.slane %v5983_v61, %v15090_v8  ;;  %v6006_v29 = vrot.slane %v5998_v35, %v15090_v8  ;;  %v6013_v24 = vrot.slane %v5999_v12, %v15090_v8 }
 0x996   : > { %v6014_v2 = vcombine.low %v5958_v41, %v5974_v23  ;;  %v6015_v48 = vcombine.high %v5958_v41, %v5974_v23  ;;  %v6030_v21 = vcombine.low %v5965_v58, %v5981_v7  ;;  %v6031_v62 = vcombine.high %v5965_v58, %v5981_v7 }
 0x997   : > { %v6054_v32 = vcombine.low %v13657_v14, %v5889_v27  ;;  %v6055_v37 = vcombine.high %v13657_v14, %v5889_v27 }
 0x998   : > { %v6022_v55 = vrot.slane %v6014_v2, %v15090_v8  ;;  %v6029_v38 = vrot.slane %v6015_v48, %v15090_v8  ;;  %v6038_v49 = vrot.slane %v6030_v21, %v15090_v8  ;;  %v6045_v53 = vrot.slane %v6031_v62, %v15090_v8 }
 0x999   : > { %v5895_v30 = vpop.permute.xlu0 %5894  ;;  %v5903_v4 = vpop.permute.xlu1 %5902  ;;  %v6062_v14 = vrot.slane %v6054_v32, %v15089_v42  ;;  %v6069_v23 = vrot.slane %v6055_v37, %v15089_v42 }
 0x99a   : > { %v6070_v18 = vcombine.low %v5883_v0, %v5895_v30  ;;  %v6071_v25 = vcombine.high %v5883_v0, %v5895_v30  ;;  %v13694_v33 = vcombine.low %v5990_v59, %v6022_v55  ;;  %v13696_v57 = vcombine.high %v5990_v59, %v6022_v55 }
 0x99b   : > { %v13698_v44 = vcombine.low %v5997_v43, %v6029_v38  ;;  %v13700_v3 = vcombine.high %v5997_v43, %v6029_v38  ;;  %v13704_v39 = vcombine.low %v6006_v29, %v6038_v49  ;;  %v13706_v40 = vcombine.high %v6006_v29, %v6038_v49 }
 0x99c   : > { %v6078_v36 = vrot.slane %v6070_v18, %v15089_v42  ;;  %6206 = vrot.lane.b32.xlu0 %v13694_v33, %s12050_s15  ;;  %6208 = vrot.lane.b32.xlu1 %v13696_v57, %s12050_s15  ;;  %v13712_v11 = vcombine.low %v6013_v24, %v6045_v53  ;;  %v13714_v28 = vcombine.high %v6013_v24, %v6045_v53 }
 0x99d   : > { %v5909_v5 = vpop.permute.xlu0 %5908  ;;  %v5915_v60 = vpop.permute.xlu1 %5914  ;;  %v6085_v51 = vrot.slane %v6071_v25, %v15089_v42 }
 0x99e   : > { %v6086_v61 = vcombine.low %v13659_v19, %v5909_v5  ;;  %v6087_v35 = vcombine.high %v13659_v19, %v5909_v5  ;;  %v6102_v41 = vcombine.low %v5903_v4, %v5915_v60  ;;  %v6103_v58 = vcombine.high %v5903_v4, %v5915_v60 }
 0x99f   : > { %v6118_v7 = vcombine.low %v6062_v14, %v6078_v36  ;;  %v6119_v27 = vcombine.high %v6062_v14, %v6078_v36  ;;  %v6134_v21 = vcombine.low %v6069_v23, %v6085_v51  ;;  %v6135_v62 = vcombine.high %v6069_v23, %v6085_v51 }
 0x9a0   : > { %v6094_v0 = vrot.slane %v6086_v61, %v15089_v42  ;;  %v6101_v12 = vrot.slane %v6087_v35, %v15089_v42  ;;  %v6110_v2 = vrot.slane %v6102_v41, %v15089_v42  ;;  %v6117_v48 = vrot.slane %v6103_v58, %v15089_v42  ;;  %6254 = vrot.lane.b32.xlu0 %v13694_v33, %s12052_s23  ;;  %v15091_v61 = vld [vmem:[#allocation34_spill] sm:$0xff] }
 0x9a1   : > { %6256 = vrot.lane.b32.xlu1 %v13696_v57, %s12052_s23  ;;  %v6126_v30 = vrot.slane %v6118_v7, %v15090_v8  ;;  %v6133_v4 = vrot.slane %v6119_v27, %v15090_v8  ;;  %v6142_v32 = vrot.slane %v6134_v21, %v15090_v8  ;;  %v6149_v18 = vrot.slane %v6135_v62, %v15090_v8 }
 0x9a2   : > { %v6150_v19 = vcombine.low %v6094_v0, %v6110_v2  ;;  %v6151_v59 = vcombine.high %v6094_v0, %v6110_v2  ;;  %v6166_v43 = vcombine.low %v6101_v12, %v6117_v48  ;;  %v6167_v29 = vcombine.high %v6101_v12, %v6117_v48 }
 0x9a3   : > { %v6930_v35 = vrot.slane %v6922_v54, %v15091_v61 }
 0x9a4   : > { %6302 = vrot.lane.b32.xlu0 %v13694_v33, %s12051_s30  ;;  %v6158_v55 = vrot.slane %v6150_v19, %v15090_v8  ;;  %v6165_v38 = vrot.slane %v6151_v59, %v15090_v8  ;;  %v6174_v49 = vrot.slane %v6166_v43, %v15090_v8  ;;  %v6181_v53 = vrot.slane %v6167_v29, %v15090_v8 }
 0x9a5   : > { %6304 = vrot.lane.b32.xlu1 %v13696_v57, %s12051_s30  ;;  %v6938_v23 = vcombine.high %v6930_v35, %v6930_v35  ;;  %v6946_v7 = vrot.slane %v6930_v35, %v15091_v61 }
 0x9a6   : > { %v13741_v25 = vcombine.high %v6126_v30, %v6158_v55  ;;  %v13743_v24 = vcombine.low %v6126_v30, %v6158_v55  ;;  %v13745_v37 = vcombine.high %v6133_v4, %v6165_v38  ;;  %v13747_v36 = vcombine.low %v6133_v4, %v6165_v38 }
 0x9a7   : > { %v13749_v5 = vcombine.high %v6142_v32, %v6174_v49  ;;  %v13751_v60 = vcombine.low %v6142_v32, %v6174_v49  ;;  %v13753_v14 = vcombine.high %v6149_v18, %v6181_v53  ;;  %v13755_v51 = vcombine.low %v6149_v18, %v6181_v53 }
 0x9a8   : > { %6210 = vrot.lane.b32.xlu0 %v13698_v44, %s12050_s15  ;;  %v6960_v54 = vrot.slane %v6938_v23, %v15091_v61  ;;  %v7025_v21 = vrot.slane %v6946_v7, %v15083_v1  ;;  %v7029_v62 = vrot.slane %v6946_v7, %v15084_v20 }
 0x9a9   : > { %6212 = vrot.lane.b32.xlu1 %v13700_v3, %s12050_s15 }
 0x9aa   : > { %v7033_v29 = vrot.slane %v6960_v54, %v15083_v1  ;;  %v7037_v30 = vrot.slane %v6960_v54, %v15084_v20 }
 0x9ac   : > { %6258 = vrot.lane.b32.xlu0 %v13698_v44, %s12052_s23 }
 0x9ad   : > { %6260 = vrot.lane.b32.xlu1 %v13700_v3, %s12052_s23 }
 0x9b0   : > { %6306 = vrot.lane.b32.xlu0 %v13698_v44, %s12051_s30 }
 0x9b1   : > { %6308 = vrot.lane.b32.xlu1 %v13700_v3, %s12051_s30 }
 0x9b4   : > { %6214 = vrot.lane.b32.xlu0 %v13704_v39, %s12050_s15 }
 0x9b5   : > { %6216 = vrot.lane.b32.xlu1 %v13706_v40, %s12050_s15 }
 0x9b8   : > { %6262 = vrot.lane.b32.xlu0 %v13704_v39, %s12052_s23 }
 0x9b9   : > { %6264 = vrot.lane.b32.xlu1 %v13706_v40, %s12052_s23 }
 0x9bc   : > { %6310 = vrot.lane.b32.xlu0 %v13704_v39, %s12051_s30 }
 0x9bd   : > { %6312 = vrot.lane.b32.xlu1 %v13706_v40, %s12051_s30 }
 0x9c0   : > { %6218 = vrot.lane.b32.xlu0 %v13712_v11, %s12050_s15 }
 0x9c1   : > { %6220 = vrot.lane.b32.xlu1 %v13714_v28, %s12050_s15 }
 0x9c4   : > { %6266 = vrot.lane.b32.xlu0 %v13712_v11, %s12052_s23 }
 0x9c5   : > { %6268 = vrot.lane.b32.xlu1 %v13714_v28, %s12052_s23 }
 0x9c8   : > { %6314 = vrot.lane.b32.xlu0 %v13712_v11, %s12051_s30 }
 0x9c9   : > { %6316 = vrot.lane.b32.xlu1 %v13714_v28, %s12051_s30 }
 0x9cc   : > { %6222 = vrot.lane.b32.xlu0 %v13743_v24, %s12050_s15 }
 0x9cd   : > { %6224 = vrot.lane.b32.xlu1 %v13741_v25, %s12050_s15 }
 0x9d0   : > { %6270 = vrot.lane.b32.xlu0 %v13743_v24, %s12052_s23 }
 0x9d1   : > { %6272 = vrot.lane.b32.xlu1 %v13741_v25, %s12052_s23 }
 0x9d4   : > { %6318 = vrot.lane.b32.xlu0 %v13743_v24, %s12051_s30 }
 0x9d5   : > { %6320 = vrot.lane.b32.xlu1 %v13741_v25, %s12051_s30 }
 0x9d8   : > { %6226 = vrot.lane.b32.xlu0 %v13747_v36, %s12050_s15 }
 0x9d9   : > { %6228 = vrot.lane.b32.xlu1 %v13745_v37, %s12050_s15 }
 0x9dc   : > { %6274 = vrot.lane.b32.xlu0 %v13747_v36, %s12052_s23 }
 0x9dd   : > { %6276 = vrot.lane.b32.xlu1 %v13745_v37, %s12052_s23 }
 0x9e0   : > { %6322 = vrot.lane.b32.xlu0 %v13747_v36, %s12051_s30 }
 0x9e1   : > { %6324 = vrot.lane.b32.xlu1 %v13745_v37, %s12051_s30 }
 0x9e4   : > { %6230 = vrot.lane.b32.xlu0 %v13751_v60, %s12050_s15 }
 0x9e5   : > { %6232 = vrot.lane.b32.xlu1 %v13749_v5, %s12050_s15 }
 0x9e8   : > { %6278 = vrot.lane.b32.xlu0 %v13751_v60, %s12052_s23 }
 0x9e9   : > { %6280 = vrot.lane.b32.xlu1 %v13749_v5, %s12052_s23 }
 0x9ec   : > { %6326 = vrot.lane.b32.xlu0 %v13751_v60, %s12051_s30 }
 0x9ed   : > { %6328 = vrot.lane.b32.xlu1 %v13749_v5, %s12051_s30 }
 0x9f0   : > { %6234 = vrot.lane.b32.xlu0 %v13755_v51, %s12050_s15 }
 0x9f1   : > { %6236 = vrot.lane.b32.xlu1 %v13753_v14, %s12050_s15 }
 0x9f4   : > { %6282 = vrot.lane.b32.xlu0 %v13755_v51, %s12052_s23 }
 0x9f5   : > { %6284 = vrot.lane.b32.xlu1 %v13753_v14, %s12052_s23 }
 0x9f8   : > { %6330 = vrot.lane.b32.xlu0 %v13755_v51, %s12051_s30 }
 0x9f9   : > { %6332 = vrot.lane.b32.xlu1 %v13753_v14, %s12051_s30 }
 0x9fc   : > { %6400 = vrot.lane.b32.xlu0 %v13633_v16, %s12051_s30 }
 0x9fd   : > { %6402 = vrot.lane.b32.xlu1 %v13645_v26, %s12051_s30 }
 0xa00   : > { %6406 = vrot.lane.b32.xlu0 %v13633_v16, %s12052_s23 }
 0xa01   : > { %6408 = vrot.lane.b32.xlu1 %v13645_v26, %s12052_s23 }
 0xa04   : > { %6412 = vrot.lane.b32.xlu0 %v13633_v16, %s12050_s15 }
 0xa05   : > { %6414 = vrot.lane.b32.xlu1 %v13645_v26, %s12050_s15 }
 0xa08   : > { %6420 = vrot.lane.b32.xlu0 %v13637_v52, %s12051_s30 }
 0xa09   : > { %6422 = vrot.lane.b32.xlu1 %v13649_v34, %s12051_s30 }
 0xa0c   : > { %6426 = vrot.lane.b32.xlu0 %v13637_v52, %s12052_s23 }
 0xa0d   : > { %6428 = vrot.lane.b32.xlu1 %v13649_v34, %s12052_s23 }
 0xa0e   : > { %v6207_v41 = vpop.permute.xlu0 %6206  ;;  %v6209_v58 = vpop.permute.xlu1 %6208 }
 0xa0f   : > { %v6350_v12 = vsel %vm1880_vm2, %v13694_v33, %v6207_v41  ;;  %v6351_v2 = vsel %vm1880_vm2, %v13696_v57, %v6209_v58  ;;  %v6968_v58 = vcombine.high %v6946_v7, %v6946_v7 }
 0xa10   : > { %6432 = vrot.lane.b32.xlu0 %v13637_v52, %s12050_s15 }
 0xa11   : > { %6434 = vrot.lane.b32.xlu1 %v13649_v34, %s12050_s15 }
 0xa12   : > { %v6255_v27 = vpop.permute.xlu0 %6254 }
 0xa13   : > { %v6257_v0 = vpop.permute.xlu1 %6256  ;;  %v6366_v48 = vsel %vm1897_vm3, %v6350_v12, %v6255_v27  ;;  %v6970_v27 = vcombine.high %v6960_v54, %v6960_v54 }
 0xa14   : > { %v6367_v59 = vsel %vm1897_vm3, %v6351_v2, %v6257_v0  ;;  %v6937_v0 = vrot.slane %v6923_v10, %v15091_v61 }
 0xa15   : > { %v7049_v6 = vrot.slane %v6970_v27, %v15083_v1  ;;  %v7053_v15 = vrot.slane %v6970_v27, %v15084_v20 }
 0xa16   : > { %v6303_v19 = vpop.permute.xlu0 %6302 }
 0xa17   : > { %v6382_v43 = vsel %vm1914_vm4, %v6366_v48, %v6303_v19  ;;  %v6305_v4 = vpop.permute.xlu1 %6304 }
 0xa18   : > { %v7182_v33 = vmul.f32 %v7025_v21, %v6382_v43  ;;  %v7183_v55 = vmul.f32 %v7029_v62, %v6382_v43  ;;  %v6383_v57 = vsel %vm1914_vm4, %v6367_v59, %v6305_v4  ;;  %v7041_v21 = vrot.slane %v6968_v58, %v15083_v1 }
 0xa19   : > { %v7184_v38 = vmul.f32 %v7033_v29, %v6383_v57  ;;  %v7185_v49 = vmul.f32 %v7037_v30, %v6383_v57  ;;  %v7045_v62 = vrot.slane %v6968_v58, %v15084_v20  ;;  %v6939_v4 = vcombine.high %v6937_v0, %v6937_v0 }
 0xa1a   : > { %v6211_v53 = vpop.permute.xlu0 %6210 }
 0xa1b   : > { %v7214_v32 = vpack.c.bf16 %v7184_v38, %v7182_v33  ;;  %v6213_v18 = vpop.permute.xlu1 %6212  ;;  %v7215_v35 = vpack.c.bf16 %v7185_v49, %v7183_v55  ;;  %v6352_v12 = vsel %vm1880_vm2, %v13698_v44, %v6211_v53  ;;  %v6953_v38 = vrot.slane %v6937_v0, %v15091_v61 }
 0xa1c   : > { %v6353_v2 = vsel %vm1880_vm2, %v13700_v3, %v6213_v18  ;;  %v6967_v53 = vrot.slane %v6939_v4, %v15091_v61 }
 0xa1d   : > { %7262 = vmatprep.mubr.bf16.mxu1 %v7215_v35  ;;  %v7057_v58 = vrot.slane %v6953_v38, %v15083_v1 }
 0xa1e   : > { %7263 = vmatmul.mubr.bf16.vlgmr.msra.gmra.mrb[24].mxu1 %v7214_v32  ;;  %v6259_v41 = vpop.permute.xlu0 %6258 }
 0xa1f   : > { %v6261_v23 = vpop.permute.xlu1 %6260  ;;  %v6368_v48 = vsel %vm1897_vm3, %v6352_v12, %v6259_v41 }
 0xa20   : > { %v6369_v54 = vsel %vm1897_vm3, %v6353_v2, %v6261_v23  ;;  %v7061_v23 = vrot.slane %v6953_v38, %v15084_v20  ;;  %v7065_v2 = vrot.slane %v6967_v53, %v15083_v1 }
 0xa22   : > { %v6307_v7 = vpop.permute.xlu0 %6306 }
 0xa23   : > { %v6384_v19 = vsel %vm1914_vm4, %v6368_v48, %v6307_v7  ;;  %v6309_v10 = vpop.permute.xlu1 %6308  ;;  %v7069_v48 = vrot.slane %v6967_v53, %v15084_v20 }
 0xa24   : > { %v7186_v44 = vmul.f32 %v7041_v21, %v6384_v19  ;;  %v7187_v59 = vmul.f32 %v7045_v62, %v6384_v19  ;;  %v6385_v3 = vsel %vm1914_vm4, %v6369_v54, %v6309_v10 }
 0xa25   : > { %v7188_v43 = vmul.f32 %v7049_v6, %v6385_v3  ;;  %v7189_v29 = vmul.f32 %v7053_v15, %v6385_v3 }
 0xa26   : > { %v6215_v30 = vpop.permute.xlu0 %6214 }
 0xa27   : > { %v6217_v33 = vpop.permute.xlu1 %6216  ;;  %v7217_v55 = vpack.c.bf16 %v7189_v29, %v7187_v59  ;;  %v7216_v57 = vpack.c.bf16 %v7188_v43, %v7186_v44  ;;  %v6354_v18 = vsel %vm1880_vm2, %v13704_v39, %v6215_v30  ;;  %v6969_v59 = vcombine.high %v6953_v38, %v6953_v38 }
 0xa28   : > { %v6355_v35 = vsel %vm1880_vm2, %v13706_v40, %v6217_v33  ;;  %v6971_v43 = vcombine.high %v6967_v53, %v6967_v53  ;;  %v6980_v29 = vrot.slane %v6972_v31, %v15091_v61 }
 0xa29   : > { %7272 = vmatprep.mubr.bf16.mxu1 %v7217_v55  ;;  %v7073_v55 = vrot.slane %v6969_v59, %v15083_v1 }
 0xa2a   : > { %7273 = vmatmul.mubr.bf16.gmra.mrb[28].mxu1 %v7216_v57  ;;  %v6263_v49 = vpop.permute.xlu0 %6262  ;;  %v7077_v57 = vrot.slane %v6969_v59, %v15084_v20  ;;  %v7085_v31 = vrot.slane %v6971_v43, %v15084_v20 }
 0xa2b   : > { %v6265_v32 = vpop.permute.xlu1 %6264  ;;  %v6370_v41 = vsel %vm1897_vm3, %v6354_v18, %v6263_v49 }
 0xa2c   : > { %v6371_v0 = vsel %vm1897_vm3, %v6355_v35, %v6265_v32  ;;  %v7081_v32 = vrot.slane %v6971_v43, %v15083_v1 }
 0xa2e   : > { %v6311_v27 = vpop.permute.xlu0 %6310 }
 0xa2f   : > { %v6386_v12 = vsel %vm1914_vm4, %v6370_v41, %v6311_v27  ;;  %v6313_v21 = vpop.permute.xlu1 %6312  ;;  %v6988_v27 = vcombine.high %v6980_v29, %v6980_v29 }
 0xa30   : > { %v7190_v39 = vmul.f32 %v7057_v58, %v6386_v12  ;;  %v7191_v62 = vmul.f32 %v7061_v23, %v6386_v12  ;;  %v6387_v40 = vsel %vm1914_vm4, %v6371_v0, %v6313_v21 }
 0xa31   : > { %v7192_v7 = vmul.f32 %v7065_v2, %v6387_v40  ;;  %v7193_v54 = vmul.f32 %v7069_v48, %v6387_v40  ;;  %v6996_v48 = vrot.slane %v6980_v29, %v15091_v61 }
 0xa32   : > { %v6219_v19 = vpop.permute.xlu0 %6218 }
 0xa33   : > { %v6221_v6 = vpop.permute.xlu1 %6220  ;;  %v7219_v15 = vpack.c.bf16 %v7193_v54, %v7191_v62  ;;  %v7218_v10 = vpack.c.bf16 %v7192_v7, %v7190_v39  ;;  %v6356_v30 = vsel %vm1880_vm2, %v13712_v11, %v6219_v19  ;;  %v7010_v39 = vrot.slane %v6988_v27, %v15091_v61 }
 0xa34   : > { %v6357_v4 = vsel %vm1880_vm2, %v13714_v28, %v6221_v6  ;;  %v7089_v19 = vrot.slane %v6996_v48, %v15083_v1  ;;  %v7093_v6 = vrot.slane %v6996_v48, %v15084_v20 }
 0xa35   : > { %7282 = vmatprep.mubr.bf16.mxu1 %v7219_v15  ;;  %v7097_v59 = vrot.slane %v7010_v39, %v15083_v1 }
 0xa36   : > { %7283 = vmatmul.mubr.bf16.gmra.mrb[32].mxu1 %v7218_v10  ;;  %v6267_v44 = vpop.permute.xlu0 %6266 }
 0xa37   : > { %v6269_v3 = vpop.permute.xlu1 %6268  ;;  %v6372_v33 = vsel %vm1897_vm3, %v6356_v30, %v6267_v44 }
 0xa38   : > { %v6373_v49 = vsel %vm1897_vm3, %v6357_v4, %v6269_v3  ;;  %v7101_v3 = vrot.slane %v7010_v39, %v15084_v20 }
 0xa3a   : > { %v6315_v38 = vpop.permute.xlu0 %6314 }
 0xa3b   : > { %v6388_v53 = vsel %vm1914_vm4, %v6372_v33, %v6315_v38  ;;  %v6317_v18 = vpop.permute.xlu1 %6316 }
 0xa3c   : > { %v7194_v11 = vmul.f32 %v7073_v55, %v6388_v53  ;;  %v7195_v35 = vmul.f32 %v7077_v57, %v6388_v53  ;;  %v6389_v28 = vsel %vm1914_vm4, %v6373_v49, %v6317_v18  ;;  %v7018_v53 = vcombine.high %v6996_v48, %v6996_v48 }
 0xa3d   : > { %v7196_v41 = vmul.f32 %v7081_v32, %v6389_v28  ;;  %v7197_v58 = vmul.f32 %v7085_v31, %v6389_v28  ;;  %v7020_v31 = vcombine.high %v7010_v39, %v7010_v39  ;;  %v6987_v18 = vrot.slane %v6973_v9, %v15091_v61 }
 0xa3e   : > { %v6223_v23 = vpop.permute.xlu0 %6222 }
 0xa3f   : > { %v6225_v0 = vpop.permute.xlu1 %6224  ;;  %v7221_v12 = vpack.c.bf16 %v7197_v58, %v7195_v35  ;;  %v7220_v2 = vpack.c.bf16 %v7196_v41, %v7194_v11  ;;  %v6358_v40 = vsel %vm1880_vm2, %v13743_v24, %v6223_v23  ;;  %v7105_v41 = vrot.slane %v7018_v53, %v15083_v1 }
 0xa40   : > { %v6359_v7 = vsel %vm1880_vm2, %v13741_v25, %v6225_v0  ;;  %v7109_v58 = vrot.slane %v7018_v53, %v15084_v20  ;;  %v7113_v13 = vrot.slane %v7020_v31, %v15083_v1  ;;  %v7117_v45 = vrot.slane %v7020_v31, %v15084_v20 }
 0xa41   : > { %7292 = vmatprep.mubr.bf16.mxu1 %v7221_v12  ;;  %v6989_v39 = vcombine.high %v6987_v18, %v6987_v18 }
 0xa42   : > { %7293 = vmatmul.mubr.bf16.gmra.mrb[36].mxu1 %v7220_v2  ;;  %v6271_v21 = vpop.permute.xlu0 %6270 }
 0xa43   : > { %v6273_v62 = vpop.permute.xlu1 %6272  ;;  %v6374_v54 = vsel %vm1897_vm3, %v6358_v40, %v6271_v21 }
 0xa44   : > { %v6375_v10 = vsel %vm1897_vm3, %v6359_v7, %v6273_v62 }
 0xa46   : > { %v6319_v15 = vpop.permute.xlu0 %6318 }
 0xa47   : > { %v6390_v44 = vsel %vm1914_vm4, %v6374_v54, %v6319_v15  ;;  %v6321_v43 = vpop.permute.xlu1 %6320  ;;  %v7003_v54 = vrot.slane %v6987_v18, %v15091_v61 }
 0xa48   : > { %v7198_v24 = vmul.f32 %v7089_v19, %v6390_v44  ;;  %v7199_v29 = vmul.f32 %v7093_v6, %v6390_v44  ;;  %v6391_v25 = vsel %vm1914_vm4, %v6375_v10, %v6321_v43  ;;  %v7017_v6 = vrot.slane %v6989_v39, %v15091_v61 }
 0xa49   : > { %v7200_v30 = vmul.f32 %v7097_v59, %v6391_v25  ;;  %v7201_v4 = vmul.f32 %v7101_v3, %v6391_v25  ;;  %v7121_v3 = vrot.slane %v7003_v54, %v15083_v1  ;;  %v7125_v43 = vrot.slane %v7003_v54, %v15084_v20 }
 0xa4a   : > { %v6227_v33 = vpop.permute.xlu0 %6226  ;;  %v7129_v61 = vrot.slane %v7017_v6, %v15083_v1  ;;  %v7019_v18 = vcombine.high %v7003_v54, %v7003_v54 }
 0xa4b   : > { %v6229_v55 = vpop.permute.xlu1 %6228  ;;  %v7223_v57 = vpack.c.bf16 %v7201_v4, %v7199_v29  ;;  %v7222_v38 = vpack.c.bf16 %v7200_v30, %v7198_v24  ;;  %v6360_v11 = vsel %vm1880_vm2, %v13747_v36, %v6227_v33  ;;  %v7133_v30 = vrot.slane %v7017_v6, %v15084_v20 }
 0xa4c   : > { %v6361_v35 = vsel %vm1880_vm2, %v13745_v37, %v6229_v55 }
 0xa4d   : > { %7302 = vmatprep.mubr.bf16.mxu1 %v7223_v57 }
 0xa4e   : > { %7303 = vmatmul.mubr.bf16.gmra.mrb[40].mxu1 %v7222_v38  ;;  %v6275_v49 = vpop.permute.xlu0 %6274 }
 0xa4f   : > { %v6277_v32 = vpop.permute.xlu1 %6276  ;;  %v6376_v28 = vsel %vm1897_vm3, %v6360_v11, %v6275_v49 }
 0xa50   : > { %v6377_v27 = vsel %vm1897_vm3, %v6361_v35, %v6277_v32  ;;  %v7021_v35 = vcombine.high %v7017_v6, %v7017_v6 }
 0xa52   : > { %v6323_v23 = vpop.permute.xlu0 %6322 }
 0xa53   : > { %v6392_v0 = vsel %vm1914_vm4, %v6376_v28, %v6323_v23  ;;  %v6325_v9 = vpop.permute.xlu1 %6324  ;;  %v7137_v23 = vrot.slane %v7019_v18, %v15083_v1 }
 0xa54   : > { %v7202_v36 = vmul.f32 %v7105_v41, %v6392_v0  ;;  %v7203_v12 = vmul.f32 %v7109_v58, %v6392_v0  ;;  %v6393_v37 = vsel %vm1914_vm4, %v6377_v27, %v6325_v9  ;;  %v7141_v27 = vrot.slane %v7019_v18, %v15084_v20 }
 0xa55   : > { %v7204_v2 = vmul.f32 %v7113_v13, %v6393_v37  ;;  %v7205_v48 = vmul.f32 %v7117_v45, %v6393_v37  ;;  %v7145_v9 = vrot.slane %v7021_v35, %v15083_v1 }
 0xa56   : > { %v6231_v21 = vpop.permute.xlu0 %6230 }
 0xa57   : > { %v6233_v62 = vpop.permute.xlu1 %6232  ;;  %v7225_v40 = vpack.c.bf16 %v7205_v48, %v7203_v12  ;;  %v7224_v7 = vpack.c.bf16 %v7204_v2, %v7202_v36  ;;  %v6362_v10 = vsel %vm1880_vm2, %v13751_v60, %v6231_v21  ;;  %v7149_v36 = vrot.slane %v7021_v35, %v15084_v20 }
 0xa58   : > { %v6363_v44 = vsel %vm1880_vm2, %v13749_v5, %v6233_v62 }
 0xa59   : > { %7312 = vmatprep.mubr.bf16.mxu1 %v7225_v40 }
 0xa5a   : > { %7313 = vmatmul.mubr.bf16.gmra.mrb[44].mxu1 %v7224_v7  ;;  %v6279_v19 = vpop.permute.xlu0 %6278 }
 0xa5b   : > { %v6281_v15 = vpop.permute.xlu1 %6280  ;;  %v6378_v59 = vsel %vm1897_vm3, %v6362_v10, %v6279_v19 }
 0xa5c   : > { %v6379_v29 = vsel %vm1897_vm3, %v6363_v44, %v6281_v15 }
 0xa5e   : > { %v6327_v24 = vpop.permute.xlu0 %6326 }
 0xa5f   : > { %v6394_v25 = vsel %vm1914_vm4, %v6378_v59, %v6327_v24  ;;  %v6329_v4 = vpop.permute.xlu1 %6328 }
 0xa60   : > { %v7206_v60 = vmul.f32 %v7121_v3, %v6394_v25  ;;  %v7207_v33 = vmul.f32 %v7125_v43, %v6394_v25  ;;  %v6395_v5 = vsel %vm1914_vm4, %v6379_v29, %v6329_v4 }
 0xa61   : > { %v7208_v55 = vmul.f32 %v7129_v61, %v6395_v5  ;;  %v7209_v57 = vmul.f32 %v7133_v30, %v6395_v5 }
 0xa62   : > { %v6235_v38 = vpop.permute.xlu0 %6234 }
 0xa63   : > { %v6237_v49 = vpop.permute.xlu1 %6236  ;;  %v7227_v53 = vpack.c.bf16 %v7209_v57, %v7207_v33  ;;  %v7226_v32 = vpack.c.bf16 %v7208_v55, %v7206_v60  ;;  %v6364_v28 = vsel %vm1880_vm2, %v13755_v51, %v6235_v38 }
 0xa64   : > { %v6365_v41 = vsel %vm1880_vm2, %v13753_v14, %v6237_v49 }
 0xa65   : > { %7322 = vmatprep.mubr.bf16.mxu1 %v7227_v53 }
 0xa66   : > { %7323 = vmatmul.mubr.bf16.gmra.mrb[48].mxu1 %v7226_v32  ;;  %v6283_v31 = vpop.permute.xlu0 %6282 }
 0xa67   : > { %v6285_v11 = vpop.permute.xlu1 %6284  ;;  %v6380_v58 = vsel %vm1897_vm3, %v6364_v28, %v6283_v31 }
 0xa68   : > { %v6381_v13 = vsel %vm1897_vm3, %v6365_v41, %v6285_v11 }
 0xa6a   : > { %v6331_v0 = vpop.permute.xlu0 %6330 }
 0xa6b   : > { %v6396_v45 = vsel %vm1914_vm4, %v6380_v58, %v6331_v0  ;;  %v6333_v12 = vpop.permute.xlu1 %6332 }
 0xa6c   : > { %v7210_v51 = vmul.f32 %v7137_v23, %v6396_v45  ;;  %v7211_v37 = vmul.f32 %v7141_v27, %v6396_v45  ;;  %v6397_v14 = vsel %vm1914_vm4, %v6381_v13, %v6333_v12 }
 0xa6d   : > { %v7212_v2 = vmul.f32 %v7145_v9, %v6397_v14  ;;  %v7213_v48 = vmul.f32 %v7149_v36, %v6397_v14 }
 0xa6e   : > { %v6401_v21 = vpop.permute.xlu0 %6400 }
 0xa6f   : > { %v6403_v39 = vpop.permute.xlu1 %6402  ;;  %v7229_v62 = vpack.c.bf16 %v7213_v48, %v7211_v37  ;;  %v7228_v40 = vpack.c.bf16 %v7212_v2, %v7210_v51 }
 0xa71   : > { %7332 = vmatprep.mubr.bf16.mxu1 %v7229_v62 }
 0xa72   : > { %7333 = vmatmul.mubr.bf16.gmra.mrb[52].mxu1 %v7228_v40  ;;  %v6407_v7 = vpop.permute.xlu0 %6406 }
 0xa73   : > { %v6409_v54 = vpop.permute.xlu1 %6408  ;;  %v6438_v6 = vcombine.low %v13633_v16, %v6407_v7  ;;  %v6439_v59 = vcombine.high %v13633_v16, %v6407_v7 }
 0xa74   : > { %v6574_v24 = vcombine.low %v13645_v26, %v6409_v54  ;;  %v6575_v25 = vcombine.high %v13645_v26, %v6409_v54 }
 0xa75   : > { %v6446_v4 = vrot.slane %v6438_v6, %v15089_v42  ;;  %v6453_v5 = vrot.slane %v6439_v59, %v15089_v42 }
 0xa76   : > { %v6413_v19 = vpop.permute.xlu0 %6412  ;;  %v6582_v55 = vrot.slane %v6574_v24, %v15089_v42  ;;  %v6589_v49 = vrot.slane %v6575_v25, %v15089_v42 }
 0xa77   : > { %v6454_v15 = vcombine.low %v6401_v21, %v6413_v19  ;;  %v6455_v10 = vcombine.high %v6401_v21, %v6413_v19  ;;  %v6415_v44 = vpop.permute.xlu1 %6414 }
 0xa78   : > { %v6590_v3 = vcombine.low %v6403_v39, %v6415_v44  ;;  %v6591_v43 = vcombine.high %v6403_v39, %v6415_v44 }
 0xa79   : > { %v6462_v29 = vrot.slane %v6454_v15, %v15089_v42  ;;  %v6469_v61 = vrot.slane %v6455_v10, %v15089_v42 }
 0xa7a   : > { %v6421_v30 = vpop.permute.xlu0 %6420  ;;  %v6598_v60 = vrot.slane %v6590_v3, %v15089_v42  ;;  %v6605_v16 = vrot.slane %v6591_v43, %v15089_v42 }
 0xa7b   : > { %v6423_v33 = vpop.permute.xlu1 %6422  ;;  %v6502_v57 = vcombine.low %v6446_v4, %v6462_v29  ;;  %v6503_v38 = vcombine.high %v6446_v4, %v6462_v29  ;;  %v6518_v53 = vcombine.low %v6453_v5, %v6469_v61  ;;  %v6519_v26 = vcombine.high %v6453_v5, %v6469_v61 }
 0xa7c   : > { %v6638_v31 = vcombine.low %v6582_v55, %v6598_v60  ;;  %v6639_v18 = vcombine.high %v6582_v55, %v6598_v60  ;;  %v6654_v35 = vcombine.low %v6589_v49, %v6605_v16  ;;  %v6655_v28 = vcombine.high %v6589_v49, %v6605_v16 }
 0xa7d   : > { %v6510_v41 = vrot.slane %v6502_v57, %v15090_v8  ;;  %v6517_v58 = vrot.slane %v6503_v38, %v15090_v8  ;;  %v6526_v0 = vrot.slane %v6518_v53, %v15090_v8  ;;  %v6533_v13 = vrot.slane %v6519_v26, %v15090_v8 }
 0xa7e   : > { %v6427_v32 = vpop.permute.xlu0 %6426  ;;  %v6646_v12 = vrot.slane %v6638_v31, %v15090_v8  ;;  %v6653_v51 = vrot.slane %v6639_v18, %v15090_v8  ;;  %v6662_v48 = vrot.slane %v6654_v35, %v15090_v8 }
 0xa7f   : > { %v6429_v11 = vpop.permute.xlu1 %6428  ;;  %v6470_v23 = vcombine.low %v13637_v52, %v6427_v32  ;;  %v6471_v27 = vcombine.high %v13637_v52, %v6427_v32  ;;  %v6669_v52 = vrot.slane %v6655_v28, %v15090_v8 }
 0xa80   : > { %v6606_v45 = vcombine.low %v13649_v34, %v6429_v11  ;;  %v6607_v9 = vcombine.high %v13649_v34, %v6429_v11 }
 0xa81   : > { %v6478_v62 = vrot.slane %v6470_v23, %v15089_v42  ;;  %v6485_v40 = vrot.slane %v6471_v27, %v15089_v42 }
 0xa82   : > { %v6433_v36 = vpop.permute.xlu0 %6432  ;;  %v6614_v54 = vrot.slane %v6606_v45, %v15089_v42  ;;  %v6621_v19 = vrot.slane %v6607_v9, %v15089_v42 }
 0xa83   : > { %v6486_v37 = vcombine.low %v6421_v30, %v6433_v36  ;;  %v6487_v14 = vcombine.high %v6421_v30, %v6433_v36  ;;  %v6435_v2 = vpop.permute.xlu1 %6434 }
 0xa84   : > { %v6622_v21 = vcombine.low %v6423_v33, %v6435_v2  ;;  %v6623_v39 = vcombine.high %v6423_v33, %v6435_v2 }
 0xa85   : > { %v6494_v34 = vrot.slane %v6486_v37, %v15089_v42  ;;  %v6501_v7 = vrot.slane %v6487_v14, %v15089_v42 }
 0xa86   : > { %v6630_v6 = vrot.slane %v6622_v21, %v15089_v42  ;;  %v6637_v15 = vrot.slane %v6623_v39, %v15089_v42 }
 0xa87   : > { %v6534_v10 = vcombine.low %v6478_v62, %v6494_v34  ;;  %v6535_v44 = vcombine.high %v6478_v62, %v6494_v34  ;;  %v6550_v59 = vcombine.low %v6485_v40, %v6501_v7  ;;  %v6551_v3 = vcombine.high %v6485_v40, %v6501_v7 }
 0xa88   : > { %v6670_v43 = vcombine.low %v6614_v54, %v6630_v6  ;;  %v6671_v24 = vcombine.high %v6614_v54, %v6630_v6  ;;  %v6686_v29 = vcombine.low %v6621_v19, %v6637_v15  ;;  %v6687_v25 = vcombine.high %v6621_v19, %v6637_v15 }
 0xa89   : > { %v6542_v61 = vrot.slane %v6534_v10, %v15090_v8  ;;  %v6549_v30 = vrot.slane %v6535_v44, %v15090_v8  ;;  %v6558_v4 = vrot.slane %v6550_v59, %v15090_v8  ;;  %v6565_v60 = vrot.slane %v6551_v3, %v15090_v8 }
 0xa8a   : > { %v6678_v33 = vrot.slane %v6670_v43, %v15090_v8  ;;  %v6685_v42 = vrot.slane %v6671_v24, %v15090_v8  ;;  %v6694_v5 = vrot.slane %v6686_v29, %v15090_v8  ;;  %v6701_v16 = vrot.slane %v6687_v25, %v15090_v8 }
 0xa8b   : > { %v14025_v55 = vcombine.high %v6510_v41, %v6542_v61  ;;  %v14027_v57 = vcombine.low %v6510_v41, %v6542_v61  ;;  %v14029_v38 = vcombine.low %v6517_v58, %v6549_v30  ;;  %v14031_v49 = vcombine.high %v6517_v58, %v6549_v30 }
 0xa8c   : > { %v14033_v53 = vcombine.high %v6646_v12, %v6678_v33  ;;  %v14035_v26 = vcombine.low %v6646_v12, %v6678_v33  ;;  %v14037_v32 = vcombine.low %v6653_v51, %v6685_v42  ;;  %v14039_v31 = vcombine.high %v6653_v51, %v6685_v42 }
 0xa8d   : > { %6728 = vrot.lane.b32.xlu1 %v14025_v55, %s12050_s15  ;;  %6726 = vrot.lane.b32.xlu0 %v14027_v57, %s12050_s15  ;;  %v14045_v8 = vcombine.low %v6662_v48, %v6694_v5  ;;  %v14047_v18 = vcombine.low %v6526_v0, %v6558_v4  ;;  %v14049_v11 = vcombine.high %v6662_v48, %v6694_v5 }
 0xa8e   : > { %v14051_v35 = vcombine.high %v6526_v0, %v6558_v4  ;;  %v14053_v28 = vcombine.low %v6669_v52, %v6701_v16  ;;  %v14055_v41 = vcombine.low %v6533_v13, %v6565_v60  ;;  %v14057_v58 = vcombine.high %v6669_v52, %v6701_v16 }
 0xa8f   : > { %v14059_v23 = vcombine.high %v6533_v13, %v6565_v60 }
 0xa90   : > { %15092 = vst [vmem:[#allocation40_spill] sm:$0xff] %v14057_v58 }
 0xa91   : > { %15093 = vst [vmem:[#allocation39_spill] sm:$0xff] %v14059_v23  ;;  %6744 = vrot.lane.b32.xlu1 %v14033_v53, %s12050_s15  ;;  %6742 = vrot.lane.b32.xlu0 %v14035_v26, %s12050_s15 }
 0xa95   : > { %6746 = vrot.lane.b32.xlu1 %v14037_v32, %s12050_s15  ;;  %6730 = vrot.lane.b32.xlu0 %v14029_v38, %s12050_s15 }
 0xa99   : > { %6776 = vrot.lane.b32.xlu1 %v14025_v55, %s12052_s23  ;;  %6774 = vrot.lane.b32.xlu0 %v14027_v57, %s12052_s23 }
 0xa9d   : > { %6792 = vrot.lane.b32.xlu1 %v14033_v53, %s12052_s23  ;;  %6790 = vrot.lane.b32.xlu0 %v14035_v26, %s12052_s23 }
 0xaa1   : > { %6748 = vrot.lane.b32.xlu1 %v14039_v31, %s12050_s15  ;;  %6732 = vrot.lane.b32.xlu0 %v14031_v49, %s12050_s15 }
 0xaa5   : > { %6794 = vrot.lane.b32.xlu1 %v14037_v32, %s12052_s23  ;;  %6778 = vrot.lane.b32.xlu0 %v14029_v38, %s12052_s23 }
 0xaa9   : > { %6824 = vrot.lane.b32.xlu1 %v14025_v55, %s12051_s30  ;;  %6822 = vrot.lane.b32.xlu0 %v14027_v57, %s12051_s30 }
 0xaad   : > { %6840 = vrot.lane.b32.xlu1 %v14033_v53, %s12051_s30  ;;  %6838 = vrot.lane.b32.xlu0 %v14035_v26, %s12051_s30 }
 0xab1   : > { %6750 = vrot.lane.b32.xlu1 %v14045_v8, %s12050_s15  ;;  %6734 = vrot.lane.b32.xlu0 %v14047_v18, %s12050_s15 }
 0xab5   : > { %6796 = vrot.lane.b32.xlu1 %v14039_v31, %s12052_s23  ;;  %6780 = vrot.lane.b32.xlu0 %v14031_v49, %s12052_s23 }
 0xab9   : > { %6842 = vrot.lane.b32.xlu1 %v14037_v32, %s12051_s30  ;;  %6826 = vrot.lane.b32.xlu0 %v14029_v38, %s12051_s30 }
 0xabd   : > { %6752 = vrot.lane.b32.xlu1 %v14049_v11, %s12050_s15  ;;  %6736 = vrot.lane.b32.xlu0 %v14051_v35, %s12050_s15 }
 0xac1   : > { %6798 = vrot.lane.b32.xlu1 %v14045_v8, %s12052_s23  ;;  %6782 = vrot.lane.b32.xlu0 %v14047_v18, %s12052_s23 }
 0xac5   : > { %6844 = vrot.lane.b32.xlu1 %v14039_v31, %s12051_s30  ;;  %6828 = vrot.lane.b32.xlu0 %v14031_v49, %s12051_s30 }
 0xac9   : > { %6754 = vrot.lane.b32.xlu1 %v14053_v28, %s12050_s15  ;;  %6738 = vrot.lane.b32.xlu0 %v14055_v41, %s12050_s15 }
 0xacd   : > { %6800 = vrot.lane.b32.xlu1 %v14049_v11, %s12052_s23  ;;  %6784 = vrot.lane.b32.xlu0 %v14051_v35, %s12052_s23 }
 0xad1   : > { %6846 = vrot.lane.b32.xlu1 %v14045_v8, %s12051_s30  ;;  %6830 = vrot.lane.b32.xlu0 %v14047_v18, %s12051_s30 }
 0xad5   : > { %6756 = vrot.lane.b32.xlu1 %v14057_v58, %s12050_s15  ;;  %6740 = vrot.lane.b32.xlu0 %v14059_v23, %s12050_s15  ;;  %s15128_s15 = sld [smem:[#allocation46_spill]] }
 0xad9   : > { %6802 = vrot.lane.b32.xlu1 %v14053_v28, %s12052_s23  ;;  %6786 = vrot.lane.b32.xlu0 %v14055_v41, %s12052_s23 }
 0xadd   : > { %6848 = vrot.lane.b32.xlu1 %v14049_v11, %s12051_s30  ;;  %6832 = vrot.lane.b32.xlu0 %v14051_v35, %s12051_s30 }
 0xae1   : > { %6804 = vrot.lane.b32.xlu1 %v14057_v58, %s12052_s23  ;;  %6788 = vrot.lane.b32.xlu0 %v14059_v23, %s12052_s23  ;;  %s15124_s23 = sld [smem:[#allocation17_spill]] }
 0xae5   : > { %6850 = vrot.lane.b32.xlu1 %v14053_v28, %s12051_s30  ;;  %6834 = vrot.lane.b32.xlu0 %v14055_v41, %s12051_s30 }
 0xae7   : > { %s559_s16 = sand.u32 1, %s15124_s23  }
 0xae8   : > { %s9931_s25 = sshll.u32 %s559_s16, 4  ;;  %s14909_s23 = scalar_lea.sflag [#allocation4], %s559_s16 }
 0xae9   : > { %6852 = vrot.lane.b32.xlu1 %v14057_v58, %s12051_s30  ;;  %6836 = vrot.lane.b32.xlu0 %v14059_v23, %s12051_s30  ;;  %s561_s20 = scalar_lea.vmem [#allocation11], %s9931_s25  ;;  %s14907_s30 = scalar_lea.hbm %s15128_s15, %s10518_s12 }
 0xaea   : > { %s9805_s26 = sshll.u32 %s561_s20, 4  ;;  %s14902_s26 = int_to_ptr.vmem [resolvable:$true] %s9805_s26 }
 0xaeb   : > { %s11962_s22 = scalar_lea.vmem %s14902_s26, 256  ;;  %p11969_p6 = scmp.lt.s32.totalorder %s14902_s26, %s11967_s19 }
 0xaec   : > { %p11963_p8 = scmp.ne.s32.totalorder %s14902_s26, %s11962_s22 }
 0xaee   : > { %p11964_p13 = pnand %p11963_p8, %p15129_p11 }
 0xaf0   : > { %p11965_p1 = pneg %p11964_p13 }
 0xaf1   : > { %v7264_v27 = vpop.f32.mrb[24].mxu1 }
 0xaf2   : > { %v7343_v0 = vrot.slane %v7264_v27, 4  ;;  %v7266_v13 = vpop.f32.mrb[25].mxu1 }
 0xaf3   : > { %v7349_v45 = vrot.slane %v7266_v13, 4  ;;  %v7268_v9 = vpop.f32.mrb[26].mxu1 }
 0xaf4   : > { %v7344_v36 = vmax.f32 %v7264_v27, %v7343_v0  ;;  %v7355_v12 = vrot.slane %v7268_v9, 4  ;;  %v7270_v51 = vpop.f32.mrb[27].mxu1 }
 0xaf5   : > { %v7350_v37 = vmax.f32 %v7266_v13, %v7349_v45  ;;  %v7361_v14 = vrot.slane %v7270_v51, 4 }
 0xaf6   : > { %v7345_v2 = vrot.slane %v7344_v36, 2  ;;  %v7356_v48 = vmax.f32 %v7268_v9, %v7355_v12 }
 0xaf7   : > { %v7351_v52 = vrot.slane %v7350_v37, 2  ;;  %v7362_v21 = vmax.f32 %v7270_v51, %v7361_v14 }
 0xaf8   : > { %v7346_v39 = vmax.f32 %v7344_v36, %v7345_v2  ;;  %v7357_v62 = vrot.slane %v7356_v48, 2 }
 0xaf9   : > { %v7352_v40 = vmax.f32 %v7350_v37, %v7351_v52  ;;  %v7363_v34 = vrot.slane %v7362_v21, 2 }
 0xafa   : > { %v7347_v7 = vrot.slane %v7346_v39, 1  ;;  %v7358_v54 = vmax.f32 %v7356_v48, %v7357_v62 }
 0xafb   : > { %v7353_v19 = vrot.slane %v7352_v40, 1  ;;  %v7364_v6 = vmax.f32 %v7362_v21, %v7363_v34 }
 0xafc   : > { %v7348_v15 = vmax.f32 %v7346_v39, %v7347_v7  ;;  %v7359_v10 = vrot.slane %v7358_v54, 1 }
 0xafd   : > { %v7354_v44 = vmax.f32 %v7352_v40, %v7353_v19  ;;  %v7365_v59 = vrot.slane %v7364_v6, 1  ;;  %v14153_v3 = vpop.f32.mrb[28].mxu1 }
 0xafe   : > { %v7535_v43 = vsub.f32 %v7264_v27, %v7348_v15  ;;  %v7367_v24 = vrot.slane %v14153_v3, 4  ;;  %v14156_v29 = vpop.f32.mrb[29].mxu1  ;;  %v7360_v25 = vmax.f32 %v7358_v54, %v7359_v10 }
 0xaff   : > { %v7373_v61 = vrot.slane %v14156_v29, 4  ;;  %v14159_v30 = vpop.f32.mrb[30].mxu1  ;;  %v6727_v4 = vpop.permute.xlu0 %6726  ;;  %v7536_v16 = vsub.f32 %v7266_v13, %v7354_v44  ;;  %v7366_v0 = vmax.f32 %v7364_v6, %v7365_v59 }
 0xb00   : > { %v7368_v60 = vmax.f32 %v14153_v3, %v7367_v24  ;;  %v7379_v33 = vrot.slane %v14159_v30, 4  ;;  %v14163_v42 = vpop.f32.mrb[31].mxu1  ;;  %v6729_v5 = vpop.permute.xlu1 %6728  ;;  %v7567_v45 = vmul.f32 1.442695, %v7535_v43  ;;  %v7537_v37 = vsub.f32 %v7268_v9, %v7360_v25 }
 0xb01   : > { %v7374_v27 = vmax.f32 %v14156_v29, %v7373_v61  ;;  %v7385_v2 = vrot.slane %v14163_v42, 4  ;;  %v7569_v62 = vmul.f32 1.442695, %v7536_v16  ;;  %v7538_v40 = vsub.f32 %v7270_v51, %v7366_v0 }
 0xb02   : > { %v7369_v36 = vrot.slane %v7368_v60, 2  ;;  %v7380_v12 = vmax.f32 %v14159_v30, %v7379_v33  ;;  %11662 = vpow2.f32 %v7567_v45  ;;  %v7571_v19 = vmul.f32 1.442695, %v7537_v37 }
 0xb03   : > { %v7375_v14 = vrot.slane %v7374_v27, 2  ;;  %v6743_v48 = vpop.permute.xlu0 %6742  ;;  %v7386_v13 = vmax.f32 %v14163_v42, %v7385_v2  ;;  %11664 = vpow2.f32 %v7569_v62  ;;  %v7573_v59 = vmul.f32 1.442695, %v7538_v40 }
 0xb04   : > { %v7370_v52 = vmax.f32 %v7368_v60, %v7369_v36  ;;  %v7381_v21 = vrot.slane %v7380_v12, 2  ;;  %v6745_v39 = vpop.permute.xlu1 %6744  ;;  %v6870_v51 = vsel %vm1880_vm2, %v14027_v57, %v6727_v4  ;;  %11666 = vpow2.f32 %v7571_v19 }
 0xb05   : > { %v7376_v34 = vmax.f32 %v7374_v27, %v7375_v14  ;;  %v7387_v15 = vrot.slane %v7386_v13, 2  ;;  %11668 = vpow2.f32 %v7573_v59  ;;  %v6879_v62 = vsel %vm1880_vm2, %v14033_v53, %v6745_v39 }
 0xb06   : > { %v7371_v7 = vrot.slane %v7370_v52, 1  ;;  %v7382_v54 = vmax.f32 %v7380_v12, %v7381_v21  ;;  %v6871_v12 = vsel %vm1880_vm2, %v14025_v55, %v6729_v5  ;;  %v6878_v21 = vsel %vm1880_vm2, %v14035_v26, %v6743_v48 }
 0xb07   : > { %v7377_v6 = vrot.slane %v7376_v34, 1  ;;  %v6731_v10 = vpop.permute.xlu0 %6730  ;;  %v7388_v24 = vmax.f32 %v7386_v13, %v7387_v15 }
 0xb08   : > { %v7372_v9 = vmax.f32 %v7370_v52, %v7371_v7  ;;  %v6747_v44 = vpop.permute.xlu1 %6746  ;;  %v7383_v43 = vrot.slane %v7382_v54, 1 }
 0xb09   : > { %v14169_v25 = vpop.f32.mrb[32].mxu1  ;;  %v7378_v16 = vmax.f32 %v7376_v34, %v7377_v6  ;;  %v7389_v36 = vrot.slane %v7388_v24, 1 }
 0xb0a   : > { %v7391_v61 = vrot.slane %v14169_v25, 4  ;;  %v14174_v60 = vpop.f32.mrb[33].mxu1  ;;  %v7539_v33 = vsub.f32 %v14153_v3, %v7372_v9  ;;  %v7384_v2 = vmax.f32 %v7382_v54, %v7383_v43 }
 0xb0b   : > { %v7397_v0 = vrot.slane %v14174_v60, 4  ;;  %v14178_v27 = vpop.f32.mrb[34].mxu1  ;;  %v6775_v45 = vpop.permute.xlu0 %6774  ;;  %v7540_v34 = vsub.f32 %v14156_v29, %v7378_v16  ;;  %v7390_v6 = vmax.f32 %v7388_v24, %v7389_v36 }
 0xb0c   : > { %v7392_v37 = vmax.f32 %v14169_v25, %v7391_v61  ;;  %v7403_v57 = vrot.slane %v14178_v27, 4  ;;  %v14184_v4 = vpop.f32.mrb[35].mxu1  ;;  %v6777_v14 = vpop.permute.xlu1 %6776  ;;  %v7575_v40 = vmul.f32 1.442695, %v7539_v33  ;;  %v14198_v26 = vsel %vm1897_vm3, %v6870_v51, %v6775_v45 }
 0xb0d   : > { %v7398_v3 = vmax.f32 %v14174_v60, %v7397_v0  ;;  %v7409_v52 = vrot.slane %v14184_v4, 4  ;;  %v14195_v19 = vpop.eup %11662  ;;  %v7541_v53 = vsub.f32 %v14159_v30, %v7384_v2  ;;  %v14202_v43 = vsel %vm1897_vm3, %v6871_v12, %v6777_v14 }
 0xb0e   : > { %v7393_v55 = vrot.slane %v7392_v37, 2  ;;  %v7404_v5 = vmax.f32 %v14178_v27, %v7403_v57  ;;  %v14210_v16 = vpop.eup %11664  ;;  %v7577_v51 = vmul.f32 1.442695, %v7540_v34  ;;  %v7631_v30 = vrot.slane %v14195_v19, 4 }
 0xb0f   : > { %v7399_v13 = vrot.slane %v7398_v3, 2  ;;  %v7410_v7 = vmax.f32 %v14184_v4, %v7409_v52  ;;  %v6791_v54 = vpop.permute.xlu0 %6790  ;;  %v7542_v12 = vsub.f32 %v14163_v42, %v7390_v6  ;;  %v14220_v2 = vpop.eup %11666  ;;  %11670 = vpow2.f32 %v7575_v40 }
 0xb10   : > { %v7394_v15 = vmax.f32 %v7392_v37, %v7393_v55  ;;  %v7405_v9 = vrot.slane %v7404_v5, 2  ;;  %v6793_v48 = vpop.permute.xlu1 %6792  ;;  %v14205_v33 = vsel %vm1897_vm3, %v6878_v21, %v6791_v54  ;;  %v14218_v37 = vsel %vm1880_vm2, %v14029_v38, %v6731_v10  ;;  %v14233_v34 = vpop.eup %11668 }
 0xb11   : > { %v7400_v39 = vmax.f32 %v7398_v3, %v7399_v13  ;;  %v7411_v59 = vrot.slane %v7410_v7, 2  ;;  %v14208_v24 = vsel %vm1897_vm3, %v6879_v62, %v6793_v48  ;;  %v14224_v3 = vsel %vm1880_vm2, %v14037_v32, %v6747_v44 }
 0xb12   : > { %v7395_v29 = vrot.slane %v7394_v15, 1  ;;  %v7406_v61 = vmax.f32 %v7404_v5, %v7405_v9  ;;  %v7632_v38 = vadd.f32 %v14195_v19, %v7631_v30  ;;  %v7637_v10 = vrot.slane %v14210_v16, 4 }
 0xb13   : > { %v7401_v0 = vrot.slane %v7400_v39, 1  ;;  %v7412_v45 = vmax.f32 %v7410_v7, %v7411_v59  ;;  %v14212_v36 = vpop.permute.xlu0 %6732  ;;  %11672 = vpow2.f32 %v7577_v51  ;;  %v7579_v40 = vmul.f32 1.442695, %v7541_v53 }
 0xb14   : > { %v7396_v57 = vmax.f32 %v7394_v15, %v7395_v29  ;;  %v7407_v14 = vrot.slane %v7406_v61, 1  ;;  %v7581_v54 = vmul.f32 1.442695, %v7542_v12  ;;  %v6749_v59 = vpop.permute.xlu1 %6748 }
 0xb15   : > { %v7402_v52 = vmax.f32 %v7400_v39, %v7401_v0  ;;  %v7413_v21 = vrot.slane %v7412_v45, 1  ;;  %v14226_v62 = vpop.f32.mrb[36].mxu1  ;;  %v7633_v0 = vrot.slane %v7632_v38, 2  ;;  %11674 = vpow2.f32 %v7579_v40 }
 0xb16   : > { %v7408_v55 = vmax.f32 %v7406_v61, %v7407_v14  ;;  %v7415_v42 = vrot.slane %v14226_v62, 4  ;;  %v14229_v5 = vpop.f32.mrb[37].mxu1  ;;  %v7543_v32 = vsub.f32 %v14169_v25, %v7396_v57  ;;  %v11275_v14 = vld [vmem:[#allocation5 + $0x104] ss:$8 sps:$4 sm:$0xff]   ;;  %11676 = vpow2.f32 %v7581_v54 }
 0xb17   : > { %v7421_v44 = vrot.slane %v14229_v5, 4  ;;  %v14237_v13 = vpop.f32.mrb[38].mxu1  ;;  %v14239_v7 = vpop.permute.xlu0 %6778  ;;  %v7544_v6 = vsub.f32 %v14174_v60, %v7402_v52  ;;  %v7414_v53 = vmax.f32 %v7412_v45, %v7413_v21  ;;  %v7638_v60 = vadd.f32 %v14210_v16, %v7637_v10  ;;  %8432 = vmatprep.subr.bf16.mxu0 %v11275_v14 }
 0xb18   : > { %v7416_v15 = vmax.f32 %v14226_v62, %v7415_v42  ;;  %v7427_v9 = vrot.slane %v14237_v13, 4  ;;  %v14244_v48 = vpop.f32.mrb[39].mxu1  ;;  %v7545_v39 = vsub.f32 %v14178_v27, %v7408_v55  ;;  %v7583_v30 = vmul.f32 1.442695, %v7543_v32  ;;  %v11273_v55 = vld [vmem:[#allocation5 + $0x100] ss:$8 sps:$4 sm:$0xff]  }
 0xb19   : > { %v7422_v25 = vmax.f32 %v14229_v5, %v7421_v44  ;;  %v7433_v29 = vrot.slane %v14244_v48, 4  ;;  %v7585_v27 = vmul.f32 1.442695, %v7544_v6  ;;  %v7546_v44 = vsub.f32 %v14184_v4, %v7414_v53  ;;  %8433 = vmatpush1.bf16.msra.mxu0 %v11273_v55  ;;  %v14253_v20 = vpop.eup %11670 }
 0xb1a   : > { %v7417_v61 = vrot.slane %v7416_v15, 2  ;;  %v7428_v51 = vmax.f32 %v14237_v13, %v7427_v9  ;;  %v7587_v42 = vmul.f32 1.442695, %v7545_v39  ;;  %v7634_v40 = vadd.f32 %v7633_v0, %v7632_v38 }
 0xb1b   : > { %v7423_v12 = vrot.slane %v7422_v25, 2  ;;  %v7434_v57 = vmax.f32 %v14244_v48, %v7433_v29  ;;  %v6823_v21 = vpop.permute.xlu0 %6822  ;;  %v7639_v32 = vrot.slane %v7638_v60, 2  ;;  %11678 = vpow2.f32 %v7583_v30  ;;  %v11278_v29 = vld [vmem:[#allocation5 + $0x114] ss:$8 sps:$4 sm:$0xff]  }
 0xb1c   : > { %v7418_v45 = vmax.f32 %v7416_v15, %v7417_v61  ;;  %v7429_v52 = vrot.slane %v7428_v51, 2  ;;  %v14255_v15 = vpop.permute.xlu1 %6794  ;;  %v6902_v39 = vsel %vm1914_vm4, %v14198_v26, %v6823_v21  ;;  %11680 = vpow2.f32 %v7585_v27  ;;  %v11276_v61 = vld [vmem:[#allocation5 + $0x110] ss:$8 sps:$4 sm:$0xff]   ;;  %8434 = vmatprep.subr.bf16.mxu0 %v11278_v29 }
 0xb1d   : > { %v7424_v22 = vmax.f32 %v7422_v25, %v7423_v12  ;;  %v7435_v9 = vrot.slane %v7434_v57, 2  ;;  %v7635_v53 = vrot.slane %v7634_v40, 1  ;;  %v7640_v25 = vadd.f32 %v7639_v32, %v7638_v60  ;;  %8435 = vmatpush1.bf16.msra.mxu0 %v11276_v61 }
 0xb1e   : > { %v7419_v46 = vrot.slane %v7418_v45, 1  ;;  %v7430_v10 = vmax.f32 %v7428_v51, %v7429_v52  ;;  %v14259_v51 = vpop.eup %11672  ;;  %v7589_v38 = vmul.f32 1.442695, %v7546_v44  ;;  %v7823_v12 = vmul.f32 %v14195_v19, %v6902_v39  ;;  %v11279_v19 = vld [vmem:[#allocation5 + $0x120] ss:$8 sps:$4 sm:$0xff]  }
 0xb1f   : > { %v7425_v54 = vrot.slane %v7424_v22, 1  ;;  %v7436_v6 = vmax.f32 %v7434_v57, %v7435_v9  ;;  %v7824_v30 = vmul.f32 %v14210_v16, %v6902_v39  ;;  %11682 = vpow2.f32 %v7587_v42 }
 0xb20   : > { %v7420_v4 = vmax.f32 %v7418_v45, %v7419_v46  ;;  %v7431_v0 = vrot.slane %v7430_v10, 1  ;;  %v7636_v14 = vadd.f32 %v7635_v53, %v7634_v40  ;;  %v7641_v26 = vrot.slane %v7640_v25, 1  ;;  %v14282_v40 = vpop.eup %11674  ;;  %v6825_v39 = vpop.permute.xlu1 %6824 }
 0xb21   : > { %v14263_v57 = vpop.f32.mrb[40].mxu1  ;;  %v7643_v27 = vrot.slane %v14220_v2, 4  ;;  %v7426_v60 = vmax.f32 %v7424_v22, %v7425_v54  ;;  %v7437_v45 = vrot.slane %v7436_v6, 1  ;;  %v7855_v52 = vrot.slane %v7823_v12, 4  ;;  %v11281_v22 = vld [vmem:[#allocation5 + $0x124] ss:$8 sps:$4 sm:$0xff]  }
 0xb22   : > { %v14266_v46 = vpop.f32.mrb[41].mxu1  ;;  %v7861_v21 = vrot.slane %v7824_v30, 4  ;;  %v14273_v16 = vsel %vm1880_vm2, %v14031_v49, %v14212_v36  ;;  %v14277_v42 = vsel %vm1880_vm2, %v14039_v31, %v6749_v59  ;;  %v7547_v44 = vsub.f32 %v14226_v62, %v7420_v4  ;;  %v14291_v31 = vpop.permute.xlu0 %6838  ;;  %8436 = vmatprep.subr.bf16.mxu0 %v11281_v22 }
 0xb23   : > { %v14268_v55 = vpop.f32.mrb[42].mxu1  ;;  %11684 = vrcp.f32 %v7636_v14  ;;  %v14284_v32 = vmax.f32 %v7430_v10, %v7431_v0  ;;  %v14289_v54 = vsel %vm1897_vm3, %v14218_v37, %v14239_v7  ;;  %v7856_v49 = vadd.f32 %v7855_v52, %v7823_v12  ;;  %v14293_v59 = vpop.eup %11676  ;;  %8437 = vmatpush1.bf16.msra.mxu0 %v11279_v19 }
 0xb24   : > { %v14280_v9 = vpop.f32.mrb[43].mxu1  ;;  %v7862_v36 = vadd.f32 %v7861_v21, %v7824_v30  ;;  %11686 = vpow2.f32 %v7589_v38  ;;  %v7642_v62 = vadd.f32 %v7641_v26, %v7640_v25  ;;  %v7644_v29 = vadd.f32 %v14220_v2, %v7643_v27 }
 0xb25   : > { %v7649_v4 = vrot.slane %v14233_v34, 4  ;;  %v7548_v10 = vsub.f32 %v14229_v5, %v7426_v60  ;;  %v14298_v53 = vmax.f32 %v7436_v6, %v7437_v45  ;;  %v7857_v37 = vrot.slane %v7856_v49, 2  ;;  %v14303_v25 = vpop.eup %11678 }
 0xb26   : > { %v7863_v7 = vrot.slane %v7862_v36, 2  ;;  %v7591_v61 = vmul.f32 1.442695, %v7547_v44  ;;  %v7645_v0 = vrot.slane %v7644_v29, 2  ;;  %v6903_v38 = vsel %vm1914_vm4, %v14202_v43, %v6825_v39  ;;  %v14308_v6 = vpop.eup %11680  ;;  %v14311_v44 = vpop.permute.xlu0 %6734 }
 0xb27   : > { %v7650_v12 = vadd.f32 %v14233_v34, %v7649_v4  ;;  %v7549_v30 = vsub.f32 %v14237_v13, %v14284_v32  ;;  %v7858_v14 = vadd.f32 %v7857_v37, %v7856_v49  ;;  %v7825_v5 = vmul.f32 %v14220_v2, %v6903_v38 }
 0xb28   : > { %v7864_v26 = vadd.f32 %v7863_v7, %v7862_v36  ;;  %11688 = vrcp.f32 %v7642_v62  ;;  %v7646_v27 = vadd.f32 %v7645_v0, %v7644_v29  ;;  %v7826_v45 = vmul.f32 %v14233_v34, %v6903_v38 }
 0xb29   : > { %v7651_v60 = vrot.slane %v7650_v12, 2  ;;  %v7593_v52 = vmul.f32 1.442695, %v7548_v10  ;;  %v7859_v21 = vrot.slane %v7858_v14, 1  ;;  %v7867_v43 = vrot.slane %v7825_v5, 4  ;;  %v14313_v22 = vpop.eup %11682 }
 0xb2a   : > { %v7865_v19 = vrot.slane %v7864_v26, 1  ;;  %15094 = vst [vmem:[#allocation41_spill] sm:$0xff] %v14313_v22  ;;  %v7550_v13 = vsub.f32 %v14244_v48, %v14298_v53  ;;  %v7647_v32 = vrot.slane %v7646_v27, 1  ;;  %v7873_v49 = vrot.slane %v7826_v45, 4 }
 0xb2b   : > { %v7652_v2 = vadd.f32 %v7651_v60, %v7650_v12  ;;  %v7860_v36 = vadd.f32 %v7859_v21, %v7858_v14  ;;  %v7868_v62 = vadd.f32 %v7867_v43, %v7825_v5  ;;  %v7439_v29 = vrot.slane %v14263_v57, 4 }
 0xb2c   : > { %v7866_v39 = vadd.f32 %v7865_v19, %v7864_v26  ;;  %v7648_v10 = vadd.f32 %v7647_v32, %v7646_v27  ;;  %v7874_v7 = vadd.f32 %v7873_v49, %v7826_v45  ;;  %v7445_v0 = vrot.slane %v14266_v46, 4  ;;  %v14333_v49 = vpop.permute.xlu0 %6780 }
 0xb2d   : > { %v14318_v34 = vpop.f32.mrb[44].mxu1  ;;  %v11685_v4 = vpop.eup %11684  ;;  %v7653_v37 = vrot.slane %v7652_v2, 1  ;;  %v7869_v48 = vrot.slane %v7868_v62, 2  ;;  %v7440_v53 = vmax.f32 %v14263_v57, %v7439_v29  ;;  %v7451_v12 = vrot.slane %v14268_v55, 4 }
 0xb2e   : > { %v14321_v38 = vpop.f32.mrb[45].mxu1  ;;  %v8079_v47 = vmul.f32 %v11685_v4, %v7860_v36  ;;  %v14327_v26 = vpop.eup %11686  ;;  %11690 = vrcp.f32 %v7648_v10  ;;  %v7875_v60 = vrot.slane %v7874_v7, 2  ;;  %v7446_v27 = vmax.f32 %v14266_v46, %v7445_v0 }
 0xb2f   : > { %v14325_v14 = vpop.f32.mrb[46].mxu1  ;;  %15095 = vst [vmem:[#allocation42_spill] sm:$0xff] %v14327_v26  ;;  %v7654_v5 = vadd.f32 %v7653_v37, %v7652_v2  ;;  %v7870_v19 = vadd.f32 %v7869_v48, %v7868_v62  ;;  %v7441_v43 = vrot.slane %v7440_v53, 2  ;;  %v7452_v32 = vmax.f32 %v14268_v55, %v7451_v12 }
 0xb30   : > { %v14330_v45 = vpop.f32.mrb[47].mxu1  ;;  %v8111_v21 = vpack.c.bf16 %v8079_v47, %v8079_v47  ;;  %v7876_v36 = vadd.f32 %v7875_v60, %v7874_v7  ;;  %v7447_v29 = vrot.slane %v7446_v27, 2  ;;  %v7457_v4 = vrot.slane %v14280_v9, 4 }
 0xb31   : > { %11692 = vrcp.f32 %v7654_v5  ;;  %v7871_v2 = vrot.slane %v7870_v19, 1  ;;  %v7442_v10 = vmax.f32 %v7440_v53, %v7441_v43  ;;  %v7453_v37 = vrot.slane %v7452_v32, 2 }
 0xb32   : > { %11694 = vpow2.f32 %v7591_v61  ;;  %v11689_v1 = vpop.eup %11688  ;;  %v14336_v0 = vmul.f32 1.442695, %v7549_v30  ;;  %v7877_v17 = vrot.slane %v7876_v36, 1  ;;  %v7448_v47 = vmax.f32 %v7446_v27, %v7447_v29  ;;  %v6827_v30 = vpop.permute.xlu0 %6826 }
 0xb33   : > { %v7458_v62 = vmax.f32 %v14280_v9, %v7457_v4  ;;  %11696 = vpow2.f32 %v7593_v52  ;;  %v8080_v48 = vmul.f32 %v11689_v1, %v7866_v39  ;;  %v7443_v12 = vrot.slane %v7442_v10, 1  ;;  %v11282_v52 = vld [vmem:[#allocation5 + $0x130] ss:$8 sps:$4 sm:$0xff]   ;;  %v11284_v1 = vld [vmem:[#allocation5 + $0x134] ss:$8 sps:$4 sm:$0xff]  }
 0xb34   : > { %v7454_v50 = vmax.f32 %v7452_v32, %v7453_v37  ;;  %v14339_v5 = vmul.f32 1.442695, %v7550_v13  ;;  %v14341_v7 = vunpack.c.l.b16 %v8111_v21  ;;  %v7449_v60 = vrot.slane %v7448_v47, 1  ;;  %v11287_v37 = vld [vmem:[#allocation5 + $0x144] ss:$8 sps:$4 sm:$0xff]   ;;  %8438 = vmatprep.subr.bf16.mxu0 %v11284_v1 }
 0xb35   : > { %v7459_v61 = vrot.slane %v7458_v62, 2  ;;  %v8112_v56 = vpack.c.bf16 %v8080_v48, %v8080_v48  ;;  %v7872_v53 = vadd.f32 %v7871_v2, %v7870_v19  ;;  %v7444_v43 = vmax.f32 %v7442_v10, %v7443_v12  ;;  %8439 = vmatpush1.bf16.msra.mxu0 %v11282_v52  ;;  %v11285_v48 = vld [vmem:[#allocation5 + $0x140] ss:$8 sps:$4 sm:$0xff]  }
 0xb36   : > { %v7455_v63 = vrot.slane %v7454_v50, 1  ;;  %v7878_v58 = vadd.f32 %v7877_v17, %v7876_v36  ;;  %v7450_v26 = vmax.f32 %v7448_v47, %v7449_v60  ;;  %v7655_v29 = vrot.slane %v14253_v20, 4  ;;  %8440 = vmatprep.subr.bf16.mxu0 %v11287_v37 }
 0xb37   : > { %v7460_v27 = vmax.f32 %v7458_v62, %v7459_v61  ;;  %v8209_v39 = vunpack.c.l.b16 %v8112_v56  ;;  %v7551_v13 = vsub.f32 %v14263_v57, %v7444_v43  ;;  %v7661_v21 = vrot.slane %v14259_v51, 4 }
 0xb38   : > { %v7456_v32 = vmax.f32 %v7454_v50, %v7455_v63  ;;  %v11691_v19 = vpop.eup %11690  ;;  %v7552_v2 = vsub.f32 %v14266_v46, %v7450_v26  ;;  %v7656_v17 = vadd.f32 %v14253_v20, %v7655_v29  ;;  %v6904_v36 = vsel %vm1914_vm4, %v14289_v54, %v6827_v30  ;;  %v6841_v29 = vpop.permute.xlu1 %6840 }
 0xb39   : > { %v14346_v4 = vpop.f32.mrb[48].mxu1  ;;  %v7461_v10 = vrot.slane %v7460_v27, 1  ;;  %v8081_v56 = vmul.f32 %v11691_v19, %v7872_v53  ;;  %v7599_v57 = vmul.f32 1.442695, %v7551_v13  ;;  %v7662_v50 = vadd.f32 %v14259_v51, %v7661_v21  ;;  %8441 = vmatpush1.bf16.msra.mxu0 %v11285_v48 }
 0xb3a   : > { %v14352_v47 = vpop.f32.mrb[49].mxu1  ;;  %v7553_v63 = vsub.f32 %v14268_v55, %v7456_v32  ;;  %v7601_v26 = vmul.f32 1.442695, %v7552_v2  ;;  %v7657_v60 = vrot.slane %v7656_v17, 2  ;;  %v7827_v61 = vmul.f32 %v14253_v20, %v6904_v36 }
 0xb3b   : > { %v14356_v62 = vpop.f32.mrb[50].mxu1  ;;  %v11693_v46 = vpop.eup %11692  ;;  %v7462_v12 = vmax.f32 %v7460_v27, %v7461_v10  ;;  %v8113_v30 = vpack.c.bf16 %v8081_v56, %v8081_v56  ;;  %11698 = vpow2.f32 %v7599_v57  ;;  %v7663_v13 = vrot.slane %v7662_v50, 2 }
 0xb3c   : > { %v14359_v54 = vpop.f32.mrb[51].mxu1  ;;  %v14361_v43 = vpop.eup %11694  ;;  %v8082_v53 = vmul.f32 %v11693_v46, %v7878_v58  ;;  %v7603_v55 = vmul.f32 1.442695, %v7553_v63  ;;  %11700 = vpow2.f32 %v7601_v26  ;;  %v7658_v1 = vadd.f32 %v7657_v60, %v7656_v17 }
 0xb3d   : > { %15096 = vst [vmem:[#allocation43_spill] sm:$0xff] %v14361_v43  ;;  %v7554_v52 = vsub.f32 %v14280_v9, %v7462_v12  ;;  %v14364_v32 = vpop.eup %11696  ;;  %v8210_v21 = vunpack.c.l.b16 %v8113_v30  ;;  %v7828_v20 = vmul.f32 %v14259_v51, %v6904_v36  ;;  %v7664_v58 = vadd.f32 %v7663_v13, %v7662_v50 }
 0xb3e   : > { %15097 = vst [vmem:[#allocation28_spill] sm:$0xff] %v14364_v32  ;;  %v8114_v27 = vpack.c.bf16 %v8082_v53, %v8082_v53  ;;  %11702 = vpow2.f32 %v7603_v55  ;;  %v7659_v19 = vrot.slane %v7658_v1, 1  ;;  %v7879_v2 = vrot.slane %v7827_v61, 4 }
 0xb3f   : > { %v7605_v37 = vmul.f32 1.442695, %v7554_v52  ;;  %11704 = vpow2.f32 %v14336_v0  ;;  %v14370_v9 = vsel %vm3932_vm5, %v8210_v21, %v14341_v7  ;;  %v7885_v17 = vrot.slane %v7828_v20, 4  ;;  %v6751_v7 = vpop.permute.xlu1 %6750 }
 0xb40   : > { %v8211_v10 = vunpack.c.l.b16 %v8114_v27  ;;  %v7660_v56 = vadd.f32 %v7659_v19, %v7658_v1  ;;  %v7665_v57 = vrot.slane %v7664_v58, 1  ;;  %v7880_v63 = vadd.f32 %v7879_v2, %v7827_v61 }
 0xb41   : > { %11706 = vpow2.f32 %v7605_v37  ;;  %v7886_v51 = vadd.f32 %v7885_v17, %v7828_v20  ;;  %v7463_v36 = vrot.slane %v14318_v34, 4  ;;  %v7469_v50 = vrot.slane %v14321_v38, 4 }
 0xb42   : > { %v14373_v46 = vsel %vm3932_vm5, %v8211_v10, %v8209_v39  ;;  %v14380_v0 = vsel %vm1897_vm3, %v14224_v3, %v14255_v15  ;;  %v7666_v48 = vadd.f32 %v7665_v57, %v7664_v58  ;;  %11708 = vrcp.f32 %v7660_v56  ;;  %v6737_v57 = vpop.permute.xlu0 %6736 }
 0xb43   : > { %15098 = vst [vmem:[#allocation29_spill] sm:$0xff] %v14373_v46  ;;  %v7881_v26 = vrot.slane %v7880_v63, 2  ;;  %11710 = vpow2.f32 %v14339_v5  ;;  %v6910_v39 = vsel %vm1914_vm4, %v14205_v33, %v14291_v31  ;;  %v7887_v12 = vrot.slane %v7886_v51, 2  ;;  %v6797_v17 = vpop.permute.xlu1 %6796 }
 0xb44   : > { %v7464_v60 = vmax.f32 %v14318_v34, %v7463_v36  ;;  %v6911_v53 = vsel %vm1914_vm4, %v14208_v24, %v6841_v29  ;;  %11712 = vrcp.f32 %v7666_v48  ;;  %v7470_v15 = vmax.f32 %v14321_v38, %v7469_v50  ;;  %v11288_v48 = vld [vmem:[#allocation5 + $0x150] ss:$8 sps:$4 sm:$0xff]  }
 0xb45   : > { %v14387_v61 = vpop.f32.mrb[52].mxu1  ;;  %v7882_v3 = vadd.f32 %v7881_v26, %v7880_v63  ;;  %v11699_v55 = vpop.eup %11698  ;;  %v14397_v5 = vsel %vm1880_vm2, %v14047_v18, %v14311_v44  ;;  %v14401_v33 = vsel %vm1880_vm2, %v14045_v8, %v6751_v7  ;;  %v7888_v31 = vadd.f32 %v7887_v12, %v7886_v51  ;;  %v11290_v26 = vld [vmem:[#allocation5 + $0x154] ss:$8 sps:$4 sm:$0xff]  }
 0xb46   : > { %v14392_v30 = vpop.f32.mrb[53].mxu1  ;;  %v7465_v52 = vrot.slane %v7464_v60, 2  ;;  %v11701_v24 = vpop.eup %11700  ;;  %v7727_v29 = vrot.slane %v11699_v55, 4  ;;  %v14405_v13 = vmul.f32 %v11699_v55, %v6910_v39  ;;  %v7475_v21 = vrot.slane %v14325_v14, 4  ;;  %8442 = vmatprep.subr.bf16.mxu0 %v11290_v26 }
 0xb47   : > { %v14403_v1 = vpop.f32.mrb[54].mxu1  ;;  %v7883_v27 = vrot.slane %v7882_v3, 1  ;;  %v7733_v18 = vrot.slane %v11701_v24, 4  ;;  %v14410_v44 = vmul.f32 %v11701_v24, %v6910_v39  ;;  %v7889_v19 = vrot.slane %v7888_v31, 1  ;;  %8443 = vmatpush1.bf16.msra.mxu0 %v11288_v48  ;;  %v6843_v26 = vpop.permute.xlu1 %6842 }
 0xb48   : > { %v14408_v20 = vpop.f32.mrb[55].mxu1  ;;  %v11703_v37 = vpop.eup %11702  ;;  %v7466_v8 = vmax.f32 %v7464_v60, %v7465_v52  ;;  %v7728_v58 = vadd.f32 %v11699_v55, %v7727_v29  ;;  %v7471_v56 = vrot.slane %v7470_v15, 2  ;;  %v14419_v36 = vsel %vm1897_vm3, %v14273_v16, %v14333_v49 }
 0xb49   : > { %v7739_v2 = vrot.slane %v11703_v37, 4  ;;  %v14412_v10 = vmul.f32 %v11703_v37, %v6911_v53  ;;  %v14414_v63 = vpop.eup %11704  ;;  %v7734_v51 = vadd.f32 %v11701_v24, %v7733_v18  ;;  %v7884_v50 = vadd.f32 %v7883_v27, %v7882_v3 }
 0xb4a   : > { %15099 = vst [vmem:[#allocation30_spill] sm:$0xff] %v14414_v63  ;;  %v7481_v7 = vrot.slane %v14330_v45, 4  ;;  %v7729_v12 = vrot.slane %v7728_v58, 2  ;;  %v7890_v55 = vadd.f32 %v7889_v19, %v7888_v31  ;;  %v7476_v52 = vmax.f32 %v14325_v14, %v7475_v21 }
 0xb4b   : > { %v11707_v39 = vpop.eup %11706  ;;  %v7740_v60 = vadd.f32 %v11703_v37, %v7739_v2  ;;  %v7735_v29 = vrot.slane %v7734_v51, 2  ;;  %v7467_v24 = vrot.slane %v7466_v8, 1  ;;  %v14427_v3 = vsel %vm1897_vm3, %v14277_v42, %v6797_v17 }
 0xb4c   : > { %v7745_v46 = vrot.slane %v11707_v39, 4  ;;  %v14423_v63 = vmul.f32 %v11707_v39, %v6911_v53  ;;  %v11709_v18 = vpop.eup %11708  ;;  %v7730_v16 = vadd.f32 %v7729_v12, %v7728_v58  ;;  %v7472_v27 = vmax.f32 %v7470_v15, %v7471_v56  ;;  %v14432_v12 = vpop.permute.xlu0 %6782 }
 0xb4d   : > { %v7741_v49 = vrot.slane %v7740_v60, 2  ;;  %v14429_v32 = vpop.eup %11710  ;;  %v7736_v31 = vadd.f32 %v7735_v29, %v7734_v51  ;;  %v8083_v21 = vmul.f32 %v11709_v18, %v7884_v50  ;;  %v7482_v19 = vmax.f32 %v14330_v45, %v7481_v7 }
 0xb4e   : > { %v7746_v37 = vadd.f32 %v11707_v39, %v7745_v46  ;;  %v11713_v53 = vpop.eup %11712  ;;  %v7731_v2 = vrot.slane %v7730_v16, 1  ;;  %v7468_v22 = vmax.f32 %v7466_v8, %v7467_v24  ;;  %v7473_v58 = vrot.slane %v7472_v27, 1 }
 0xb4f   : > { %v7742_v43 = vadd.f32 %v7741_v49, %v7740_v60  ;;  %v7737_v23 = vrot.slane %v7736_v31, 1  ;;  %v14434_v42 = vmul.f32 %v11713_v53, %v7890_v55  ;;  %v8115_v15 = vpack.c.bf16 %v8083_v21, %v8083_v21 }
 0xb50   : > { %v7477_v17 = vrot.slane %v7476_v52, 2  ;;  %v7732_v56 = vadd.f32 %v7731_v2, %v7730_v16  ;;  %v7555_v46 = vsub.f32 %v14318_v34, %v7468_v22  ;;  %v7474_v51 = vmax.f32 %v7472_v27, %v7473_v58  ;;  %v6829_v27 = vpop.permute.xlu0 %6828 }
 0xb51   : > { %v7743_v48 = vrot.slane %v7742_v43, 1  ;;  %v7951_v50 = vrot.slane %v14405_v13, 4  ;;  %v7963_v7 = vrot.slane %v14412_v10, 4  ;;  %v8212_v39 = vunpack.c.l.b16 %v8115_v15  ;;  %v11294_v15 = vld [vmem:[#allocation5 + $0x170] ss:$8 sps:$4 sm:$0xff]  }
 0xb52   : > { %v14441_v8 = vsel %vm1914_vm4, %v14380_v0, %v6843_v26  ;;  %v7747_v29 = vrot.slane %v7746_v37, 2  ;;  %v7607_v55 = vmul.f32 1.442695, %v7555_v46  ;;  %v7556_v24 = vsub.f32 %v14321_v38, %v7474_v51  ;;  %v11299_v46 = vld [vmem:[#allocation5 + $0x184] ss:$8 sps:$4 sm:$0xff]  }
 0xb53   : > { %v7744_v60 = vadd.f32 %v7743_v48, %v7742_v43  ;;  %11714 = vrcp.f32 %v7732_v56  ;;  %v7738_v18 = vadd.f32 %v7737_v23, %v7736_v31  ;;  %v14446_v22 = vsel %vm3934_vm6, %v8212_v39, %v14370_v9  ;;  %v11291_v23 = vld [vmem:[#allocation5 + $0x160] ss:$8 sps:$4 sm:$0xff]   ;;  %v11293_v31 = vld [vmem:[#allocation5 + $0x164] ss:$8 sps:$4 sm:$0xff]  }
 0xb54   : > { %v14450_v34 = vsel %vm1880_vm2, %v14051_v35, %v6737_v57  ;;  %v7609_v16 = vmul.f32 1.442695, %v7556_v24  ;;  %v7478_v49 = vmax.f32 %v7476_v52, %v7477_v17  ;;  %v7483_v0 = vrot.slane %v7482_v19, 2  ;;  %v11296_v57 = vld [vmem:[#allocation5 + $0x174] ss:$8 sps:$4 sm:$0xff]   ;;  %8444 = vmatprep.subr.bf16.mxu0 %v11293_v31 }
 0xb55   : > { %11716 = vrcp.f32 %v7744_v60  ;;  %v7952_v43 = vadd.f32 %v7951_v50, %v14405_v13  ;;  %v7964_v38 = vadd.f32 %v7963_v7, %v14412_v10  ;;  %v14455_v9 = vadd.f32 %v7747_v29, %v7746_v37  ;;  %8445 = vmatpush1.bf16.msra.mxu0 %v11291_v23  ;;  %v14466_v50 = vpop.permute.xlu1 %6752 }
 0xb56   : > { %11718 = vpow2.f32 %v7607_v55  ;;  %v7479_v53 = vrot.slane %v7478_v49, 1  ;;  %v7484_v35 = vmax.f32 %v7482_v19, %v7483_v0  ;;  %v7667_v52 = vrot.slane %v14282_v40, 4  ;;  %8446 = vmatprep.subr.bf16.mxu0 %v11296_v57 }
 0xb57   : > { %11720 = vpow2.f32 %v7609_v16  ;;  %v7673_v2 = vrot.slane %v14293_v59, 4  ;;  %v6905_v13 = vsel %vm1914_vm4, %v14419_v36, %v6829_v27  ;;  %v7953_v56 = vrot.slane %v7952_v43, 2 }
 0xb58   : > { %11722 = vrcp.f32 %v7738_v18  ;;  %v7480_v26 = vmax.f32 %v7478_v49, %v7479_v53  ;;  %v7485_v10 = vrot.slane %v7484_v35, 1  ;;  %v7829_v58 = vmul.f32 %v14282_v40, %v6905_v13  ;;  %v11297_v49 = vld [vmem:[#allocation5 + $0x180] ss:$8 sps:$4 sm:$0xff]   ;;  %v11302_v53 = vld [vmem:[#allocation5 + $0x194] ss:$8 sps:$4 sm:$0xff]  }
 0xb59   : > { %v7830_v37 = vmul.f32 %v14293_v59, %v6905_v13  ;;  %v7668_v19 = vadd.f32 %v14282_v40, %v7667_v52  ;;  %v7674_v17 = vadd.f32 %v14293_v59, %v7673_v2  ;;  %v7965_v48 = vrot.slane %v7964_v38, 2  ;;  %8447 = vmatpush1.bf16.msra.mxu0 %v11294_v15  ;;  %v14472_v15 = vpop.permute.xlu1 %6798 }
 0xb5a   : > { %v7557_v51 = vsub.f32 %v14325_v14, %v7480_v26  ;;  %v7486_v36 = vmax.f32 %v7484_v35, %v7485_v10  ;;  %v7891_v7 = vrot.slane %v7829_v58, 4  ;;  %v7954_v55 = vadd.f32 %v7953_v56, %v7952_v43  ;;  %8448 = vmatprep.subr.bf16.mxu0 %v11299_v46 }
 0xb5b   : > { %v7897_v39 = vrot.slane %v7830_v37, 4  ;;  %v7669_v60 = vrot.slane %v7668_v19, 2  ;;  %v7675_v29 = vrot.slane %v7674_v17, 2  ;;  %v7966_v24 = vadd.f32 %v7965_v48, %v7964_v38 }
 0xb5c   : > { %v7611_v18 = vmul.f32 1.442695, %v7557_v51  ;;  %v7558_v40 = vsub.f32 %v14330_v45, %v7486_v36  ;;  %v7892_v16 = vadd.f32 %v7891_v7, %v7829_v58  ;;  %v7955_v14 = vrot.slane %v7954_v55, 1  ;;  %v11305_v36 = vld [vmem:[#allocation5 + $0x1a4] ss:$8 sps:$4 sm:$0xff]  }
 0xb5d   : > { %v7898_v59 = vadd.f32 %v7897_v39, %v7830_v37  ;;  %v11715_v0 = vpop.eup %11714  ;;  %v7670_v27 = vadd.f32 %v7669_v60, %v7668_v19  ;;  %v7676_v23 = vadd.f32 %v7675_v29, %v7674_v17  ;;  %v7967_v31 = vrot.slane %v7966_v24, 1  ;;  %8449 = vmatpush1.bf16.msra.mxu0 %v11297_v49  ;;  %v11300_v17 = vld [vmem:[#allocation5 + $0x190] ss:$8 sps:$4 sm:$0xff]  }
 0xb5e   : > { %v8116_v57 = vpack.c.bf16 %v14434_v42, %v14434_v42  ;;  %11724 = vpow2.f32 %v7611_v18  ;;  %v7613_v43 = vmul.f32 1.442695, %v7558_v40  ;;  %v7893_v38 = vrot.slane %v7892_v16, 2  ;;  %8450 = vmatprep.subr.bf16.mxu0 %v11302_v53  ;;  %v11308_v53 = vld [vmem:[#allocation5 + $0x1b4] ss:$8 sps:$4 sm:$0xff]  }
 0xb5f   : > { %v11717_v35 = vpop.eup %11716  ;;  %v7671_v45 = vrot.slane %v7670_v27, 1  ;;  %v7677_v2 = vrot.slane %v7676_v23, 1  ;;  %v7899_v13 = vrot.slane %v7898_v59, 2  ;;  %v7956_v26 = vadd.f32 %v7955_v14, %v7954_v55 }
 0xb60   : > { %v11719_v52 = vpop.eup %11718  ;;  %11726 = vpow2.f32 %v7613_v43  ;;  %v7894_v19 = vadd.f32 %v7893_v38, %v7892_v16  ;;  %v7968_v51 = vadd.f32 %v7967_v31, %v7966_v24  ;;  %v7749_v7 = vrot.slane %v14455_v9, 1 }
 0xb61   : > { %v11721_v10 = vpop.eup %11720  ;;  %v7751_v58 = vrot.slane %v11719_v52, 4  ;;  %v7843_v37 = vmul.f32 %v11719_v52, %v14441_v8  ;;  %v7672_v48 = vadd.f32 %v7671_v45, %v7670_v27  ;;  %v7678_v46 = vadd.f32 %v7677_v2, %v7676_v23  ;;  %8451 = vmatpush1.bf16.msra.mxu0 %v11300_v17  ;;  %v11303_v27 = vld [vmem:[#allocation5 + $0x1a0] ss:$8 sps:$4 sm:$0xff]  }
 0xb62   : > { %v14474_v56 = vpop.eup %11722  ;;  %v14477_v42 = vmul.f32 %v11721_v10, %v14441_v8  ;;  %v7757_v29 = vrot.slane %v11721_v10, 4  ;;  %v7900_v55 = vadd.f32 %v7899_v13, %v7898_v59  ;;  %v8095_v18 = vmul.f32 %v11715_v0, %v7956_v26  ;;  %8452 = vmatprep.subr.bf16.mxu0 %v11305_v36  ;;  %v11323_v26 = vld [vmem:[#allocation7 + $0x204] ss:$16 sps:$4 sm:$0xff]  }
 0xb63   : > { %15100 = vst [vmem:[#allocation31_spill] sm:$0xff] %v14474_v56  ;;  %v7752_v39 = vadd.f32 %v11719_v52, %v7751_v58  ;;  %v7975_v60 = vrot.slane %v7843_v37, 4  ;;  %11728 = vrcp.f32 %v7672_v48  ;;  %v8097_v40 = vmul.f32 %v11717_v35, %v7968_v51  ;;  %v6845_v35 = vpop.permute.xlu1 %6844  ;;  %8889 = vmatprep.subr.bf16.mxu1 %v11323_v26 }
 0xb64   : > { %11730 = vrcp.f32 %v7678_v46  ;;  %v7895_v8 = vrot.slane %v7894_v19, 1  ;;  %v14481_v23 = vunpack.c.l.b16 %v8116_v57  ;;  %v8127_v14 = vpack.c.bf16 %v8095_v18, %v8095_v18  ;;  %v11321_v57 = vld [vmem:[#allocation7 + $0x200] ss:$16 sps:$4 sm:$0xff]  }
 0xb65   : > { %v7753_v49 = vrot.slane %v7752_v39, 2  ;;  %v7976_v24 = vadd.f32 %v7975_v60, %v7843_v37  ;;  %v8129_v31 = vpack.c.bf16 %v8097_v40, %v8097_v40  ;;  %v14484_v43 = vadd.f32 %v7749_v7, %v14455_v9  ;;  %8453 = vmatpush1.bf16.msra.mxu0 %v11303_v27  ;;  %v11306_v46 = vld [vmem:[#allocation5 + $0x1b0] ss:$8 sps:$4 sm:$0xff]   ;;  %8890 = vmatpush1.bf16.msra.mxu1 %v11321_v57 }
 0xb66   : > { %15101 = vst [vmem:[#allocation32_spill] sm:$0xff] %v14481_v23  ;;  %v14486_v0 = vadd.f32 %v11721_v10, %v7757_v29  ;;  %v7487_v38 = vrot.slane %v14346_v4, 4  ;;  %v7901_v52 = vrot.slane %v7900_v55, 1  ;;  %v8224_v2 = vunpack.c.l.b16 %v8127_v14  ;;  %8454 = vmatprep.subr.bf16.mxu0 %v11308_v53  ;;  %v11341_v23 = vld [vmem:[#allocation7 + $0x264] ss:$16 sps:$4 sm:$0xff]  }
 0xb67   : > { %v7754_v59 = vadd.f32 %v7753_v49, %v7752_v39  ;;  %v7977_v45 = vrot.slane %v7976_v24, 2  ;;  %v8226_v13 = vunpack.c.l.b16 %v8129_v31  ;;  %v7896_v17 = vadd.f32 %v7895_v8, %v7894_v19  ;;  %v11311_v39 = vld [vmem:[#allocation5 + $0x1c4] ss:$8 sps:$4 sm:$0xff]   ;;  %v11327_v49 = vld [vmem:[#allocation7 + $0x220] ss:$16 sps:$4 sm:$0xff]  }
 0xb68   : > { %v11725_v58 = vpop.eup %11724  ;;  %v7488_v48 = vmax.f32 %v14346_v4, %v7487_v38  ;;  %v7493_v9 = vrot.slane %v14352_v47, 4  ;;  %v6913_v7 = vsel %vm1914_vm4, %v14427_v3, %v6845_v35  ;;  %v11329_v8 = vld [vmem:[#allocation7 + $0x224] ss:$16 sps:$4 sm:$0xff]   ;;  %v7902_v27 = vadd.f32 %v7901_v52, %v7900_v55  ;;  %v14499_v38 = vpop.permute.xlu0 %6738 }
 0xb69   : > { %v7755_v37 = vrot.slane %v7754_v59, 1  ;;  %v7763_v10 = vrot.slane %v11725_v58, 4  ;;  %v14491_v51 = vadd.f32 %v7977_v45, %v7976_v24  ;;  %v14494_v36 = vsel %vm3932_vm5, %v8226_v13, %v8224_v2  ;;  %8455 = vmatpush1.bf16.msra.mxu0 %v11306_v46  ;;  %v11309_v45 = vld [vmem:[#allocation5 + $0x1c0] ss:$8 sps:$4 sm:$0xff]   ;;  %8891 = vmatprep.subr.bf16.mxu1 %v11329_v8  ;;  %v11314_v55 = vld [vmem:[#allocation5 + $0x1d4] ss:$8 sps:$4 sm:$0xff]  }
 0xb6a   : > { %v11727_v60 = vpop.eup %11726  ;;  %v7845_v29 = vmul.f32 %v11725_v58, %v6913_v7  ;;  %v7489_v18 = vrot.slane %v7488_v48, 2  ;;  %v7494_v40 = vmax.f32 %v14352_v47, %v7493_v9  ;;  %8456 = vmatprep.subr.bf16.mxu0 %v11311_v39  ;;  %8892 = vmatpush1.bf16.msra.mxu1 %v11327_v49  ;;  %v11312_v39 = vld [vmem:[#allocation5 + $0x1d0] ss:$8 sps:$4 sm:$0xff]  }
 0xb6b   : > { %v7756_v19 = vadd.f32 %v7755_v37, %v7754_v59  ;;  %v7764_v24 = vadd.f32 %v11725_v58, %v7763_v10  ;;  %v7769_v14 = vrot.slane %v11727_v60, 4  ;;  %v7846_v31 = vmul.f32 %v11727_v60, %v6913_v7  ;;  %v11335_v59 = vld [vmem:[#allocation7 + $0x244] ss:$16 sps:$4 sm:$0xff]  }
 0xb6c   : > { %v7987_v3 = vrot.slane %v7845_v29, 4  ;;  %v7490_v53 = vmax.f32 %v7488_v48, %v7489_v18  ;;  %v7495_v35 = vrot.slane %v7494_v40, 2  ;;  %v7979_v57 = vrot.slane %v14491_v51, 1  ;;  %v11333_v48 = vld [vmem:[#allocation7 + $0x240] ss:$16 sps:$4 sm:$0xff]   ;;  %8893 = vmatprep.subr.bf16.mxu1 %v11335_v59  ;;  %v14505_v49 = vpop.permute.xlu0 %6784 }
 0xb6d   : > { %11732 = vrcp.f32 %v7756_v19  ;;  %v11729_v2 = vpop.eup %11728  ;;  %v7765_v13 = vrot.slane %v7764_v24, 2  ;;  %v7770_v26 = vadd.f32 %v11727_v60, %v7769_v14  ;;  %v7993_v37 = vrot.slane %v7846_v31, 4  ;;  %8457 = vmatpush1.bf16.msra.mxu0 %v11309_v45 }
 0xb6e   : > { %v11731_v52 = vpop.eup %11730  ;;  %v8085_v58 = vmul.f32 %v11729_v2, %v7896_v17  ;;  %v7988_v9 = vadd.f32 %v7987_v3, %v7845_v29  ;;  %v7491_v10 = vrot.slane %v7490_v53, 1  ;;  %v7496_v7 = vmax.f32 %v7494_v40, %v7495_v35  ;;  %8458 = vmatprep.subr.bf16.mxu0 %v11314_v55  ;;  %8894 = vmatpush1.bf16.msra.mxu1 %v11333_v48  ;;  %v11339_v35 = vld [vmem:[#allocation7 + $0x260] ss:$16 sps:$4 sm:$0xff]  }
 0xb6f   : > { %v14502_v19 = vmul.f32 %v11731_v52, %v7902_v27  ;;  %v7766_v46 = vadd.f32 %v7765_v13, %v7764_v24  ;;  %v7771_v18 = vrot.slane %v7770_v26, 2  ;;  %v7994_v8 = vadd.f32 %v7993_v37, %v7846_v31  ;;  %v11317_v27 = vld [vmem:[#allocation5 + $0x1e4] ss:$8 sps:$4 sm:$0xff]   ;;  %8895 = vmatprep.subr.bf16.mxu1 %v11341_v23 }
 0xb70   : > { %v8117_v16 = vpack.c.bf16 %v8085_v58, %v8085_v58  ;;  %v7989_v60 = vrot.slane %v7988_v9, 2  ;;  %v7492_v14 = vmax.f32 %v7490_v53, %v7491_v10  ;;  %v7497_v21 = vrot.slane %v7496_v7, 1  ;;  %v11347_v52 = vld [vmem:[#allocation7 + $0x284] ss:$16 sps:$4 sm:$0xff]   ;;  %v6831_v48 = vpop.permute.xlu0 %6830 }
 0xb71   : > { %v7767_v56 = vrot.slane %v7766_v46, 1  ;;  %v7772_v17 = vadd.f32 %v7771_v18, %v7770_v26  ;;  %v7995_v29 = vrot.slane %v7994_v8, 2  ;;  %v7499_v40 = vrot.slane %v14356_v62, 4  ;;  %8459 = vmatpush1.bf16.msra.mxu0 %v11312_v39  ;;  %v11318_v18 = vld [vmem:[#allocation5 + $0x1f0] ss:$8 sps:$4 sm:$0xff]  }
 0xb72   : > { %v14510_v24 = vsel %vm1880_vm2, %v14049_v11, %v14466_v50  ;;  %v8214_v31 = vunpack.c.l.b16 %v8117_v16  ;;  %v7559_v3 = vsub.f32 %v14346_v4, %v7492_v14  ;;  %v7498_v53 = vmax.f32 %v7496_v7, %v7497_v21  ;;  %v11315_v4 = vld [vmem:[#allocation5 + $0x1e0] ss:$8 sps:$4 sm:$0xff]   ;;  %8460 = vmatprep.subr.bf16.mxu0 %v11317_v27  ;;  %8896 = vmatpush1.bf16.msra.mxu1 %v11339_v35  ;;  %v14530_v7 = vpop.permute.xlu1 %6754  ;;  %v11326_v14 = vld [vmem:[#allocation7 + $0x20c] ss:$16 sps:$4 sm:$0xff]  }
 0xb73   : > { %v7759_v45 = vrot.slane %v14486_v0, 2  ;;  %v7768_v59 = vadd.f32 %v7767_v56, %v7766_v46  ;;  %v7773_v2 = vrot.slane %v7772_v17, 1  ;;  %v7980_v13 = vadd.f32 %v7979_v57, %v14491_v51  ;;  %v11320_v56 = vld [vmem:[#allocation5 + $0x1f4] ss:$8 sps:$4 sm:$0xff]   ;;  %8897 = vmatprep.subr.bf16.mxu1 %v11347_v52 }
 0xb74   : > { %v14517_v26 = vsel %vm3936_vm7, %v8214_v31, %v14446_v22  ;;  %v7990_v37 = vadd.f32 %v7989_v60, %v7988_v9  ;;  %v7615_v11 = vmul.f32 1.442695, %v7559_v3  ;;  %v7560_v50 = vsub.f32 %v14352_v47, %v7498_v53  ;;  %v11345_v47 = vld [vmem:[#allocation7 + $0x280] ss:$16 sps:$4 sm:$0xff]  }
 0xb75   : > { %v7774_v21 = vadd.f32 %v7773_v2, %v7772_v17  ;;  %11734 = vrcp.f32 %v7768_v59  ;;  %v7996_v16 = vadd.f32 %v7995_v29, %v7994_v8  ;;  %v7500_v55 = vmax.f32 %v14356_v62, %v7499_v40  ;;  %8461 = vmatpush1.bf16.msra.mxu0 %v11315_v4  ;;  %v11353_v8 = vld [vmem:[#allocation7 + $0x2a4] ss:$16 sps:$4 sm:$0xff]   ;;  %v11351_v29 = vld [vmem:[#allocation7 + $0x2a0] ss:$16 sps:$4 sm:$0xff]  }
 0xb76   : > { %v6890_v22 = vsel %vm1897_vm3, %v14397_v5, %v14432_v12  ;;  %11736 = vpow2.f32 %v7615_v11  ;;  %v7617_v23 = vmul.f32 1.442695, %v7560_v50  ;;  %v7505_v57 = vrot.slane %v14359_v54, 4  ;;  %8462 = vmatprep.subr.bf16.mxu0 %v11320_v56  ;;  %8898 = vmatpush1.bf16.msra.mxu1 %v11345_v47  ;;  %v11359_v2 = vld [vmem:[#allocation7 + $0x2c4] ss:$16 sps:$4 sm:$0xff]   ;;  %v14547_v50 = vpop.permute.xlu1 %6800 }
 0xb77   : > { %v11733_v51 = vpop.eup %11732  ;;  %v14528_v58 = vsel %vm1897_vm3, %v14401_v33, %v14472_v15  ;;  %11738 = vrcp.f32 %v7774_v21  ;;  %v7501_v10 = vrot.slane %v7500_v55, 2  ;;  %v14534_v5 = vadd.f32 %v7759_v45, %v14486_v0  ;;  %8899 = vmatprep.subr.bf16.mxu1 %v11353_v8 }
 0xb78   : > { %v8099_v9 = vmul.f32 %v11733_v51, %v7980_v13  ;;  %11740 = vrcp.f32 %v14484_v43  ;;  %v7991_v12 = vrot.slane %v7990_v37, 1  ;;  %v7506_v46 = vmax.f32 %v14359_v54, %v7505_v57 }
 0xb79   : > { %v7997_v15 = vrot.slane %v7996_v16, 1  ;;  %11742 = vpow2.f32 %v7617_v23  ;;  %v7502_v60 = vmax.f32 %v7500_v55, %v7501_v10  ;;  %v7679_v17 = vrot.slane %v14303_v25, 4  ;;  %8463 = vmatpush1.bf16.msra.mxu0 %v11318_v18  ;;  %v11365_v18 = vld [vmem:[#allocation7 + $0x2e4] ss:$16 sps:$4 sm:$0xff]  }
 0xb7a   : > { %v8131_v33 = vpack.c.bf16 %v8099_v9, %v8099_v9  ;;  %v7507_v39 = vrot.slane %v7506_v46, 2  ;;  %v7685_v43 = vrot.slane %v14308_v6, 4  ;;  %v6906_v0 = vsel %vm1914_vm4, %v6890_v22, %v6831_v48  ;;  %8932 = vmatprep.subr.bf16.mxu0 %v11326_v14  ;;  %8900 = vmatpush1.bf16.msra.mxu1 %v11351_v29  ;;  %v11357_v22 = vld [vmem:[#allocation7 + $0x2c0] ss:$16 sps:$4 sm:$0xff]  }
 0xb7b   : > { %v7503_v27 = vrot.slane %v7502_v60, 1  ;;  %v7831_v31 = vmul.f32 %v14303_v25, %v6906_v0  ;;  %v7832_v3 = vmul.f32 %v14308_v6, %v6906_v0  ;;  %v7761_v53 = vrot.slane %v14534_v5, 1  ;;  %8901 = vmatprep.subr.bf16.mxu1 %v11359_v2  ;;  %v11371_v2 = vld [vmem:[#allocation7 + $0x304] ss:$16 sps:$4 sm:$0xff]  }
 0xb7c   : > { %v8228_v40 = vunpack.c.l.b16 %v8131_v33  ;;  %v7508_v35 = vmax.f32 %v7506_v46, %v7507_v39  ;;  %v7680_v45 = vadd.f32 %v14303_v25, %v7679_v17  ;;  %v7686_v59 = vadd.f32 %v14308_v6, %v7685_v43  ;;  %v11363_v17 = vld [vmem:[#allocation7 + $0x2e0] ss:$16 sps:$4 sm:$0xff]  }
 0xb7d   : > { %v7504_v11 = vmax.f32 %v7502_v60, %v7503_v27  ;;  %v7903_v4 = vrot.slane %v7831_v31, 4  ;;  %v7909_v21 = vrot.slane %v7832_v3, 4  ;;  %v7992_v55 = vadd.f32 %v7991_v12, %v7990_v37  ;;  %v6847_v27 = vpop.permute.xlu1 %6846 }
 0xb7e   : > { %v8255_v13 = vsel %vm3934_vm6, %v8228_v40, %v14494_v36  ;;  %v7509_v56 = vrot.slane %v7508_v35, 1  ;;  %v7681_v52 = vrot.slane %v7680_v45, 2  ;;  %v7687_v51 = vrot.slane %v7686_v59, 2  ;;  %8902 = vmatpush1.bf16.msra.mxu1 %v11357_v22 }
 0xb7f   : > { %v11735_v25 = vpop.eup %11734  ;;  %v7998_v23 = vadd.f32 %v7997_v15, %v7996_v16  ;;  %v7561_v6 = vsub.f32 %v14356_v62, %v7504_v11  ;;  %v7904_v57 = vadd.f32 %v7903_v4, %v7831_v31  ;;  %v7910_v47 = vadd.f32 %v7909_v21, %v7832_v3  ;;  %8903 = vmatprep.subr.bf16.mxu1 %v11365_v18 }
 0xb80   : > { %v11737_v36 = vpop.eup %11736  ;;  %v8101_v9 = vmul.f32 %v11735_v25, %v7992_v55  ;;  %v7510_v10 = vmax.f32 %v7508_v35, %v7509_v56  ;;  %v7682_v48 = vadd.f32 %v7681_v52, %v7680_v45  ;;  %v7688_v46 = vadd.f32 %v7687_v51, %v7686_v59  ;;  %v11369_v52 = vld [vmem:[#allocation7 + $0x300] ss:$16 sps:$4 sm:$0xff]  }
 0xb81   : > { %v11739_v8 = vpop.eup %11738  ;;  %v7619_v37 = vmul.f32 1.442695, %v7561_v6  ;;  %v7905_v12 = vrot.slane %v7904_v57, 2  ;;  %v7911_v33 = vrot.slane %v7910_v47, 2  ;;  %v7775_v60 = vrot.slane %v11737_v36, 4 }
 0xb82   : > { %v14550_v14 = vpop.eup %11740  ;;  %v14552_v39 = vmul.f32 %v11739_v8, %v7998_v23  ;;  %v8133_v16 = vpack.c.bf16 %v8101_v9, %v8101_v9  ;;  %v7562_v62 = vsub.f32 %v14359_v54, %v7510_v10  ;;  %v7683_v15 = vrot.slane %v7682_v48, 1  ;;  %8904 = vmatpush1.bf16.msra.mxu1 %v11363_v17 }
 0xb83   : > { %v11743_v43 = vpop.eup %11742  ;;  %v7689_v0 = vrot.slane %v7688_v46, 1  ;;  %v7906_v29 = vadd.f32 %v7905_v12, %v7904_v57  ;;  %v7912_v40 = vadd.f32 %v7911_v33, %v7910_v47  ;;  %v7511_v31 = vrot.slane %v14387_v61, 4  ;;  %8905 = vmatprep.subr.bf16.mxu1 %v11371_v2  ;;  %v11377_v47 = vld [vmem:[#allocation7 + $0x324] ss:$16 sps:$4 sm:$0xff]   ;;  %v11375_v12 = vld [vmem:[#allocation7 + $0x320] ss:$16 sps:$4 sm:$0xff]  }
 0xb84   : > { %v8230_v3 = vunpack.c.l.b16 %v8133_v16  ;;  %v7621_v35 = vmul.f32 1.442695, %v7562_v62  ;;  %v7684_v45 = vadd.f32 %v7683_v15, %v7682_v48  ;;  %v7517_v59 = vrot.slane %v14392_v30, 4 }
 0xb85   : > { %11744 = vpow2.f32 %v7619_v37  ;;  %v7690_v11 = vadd.f32 %v7689_v0, %v7688_v46  ;;  %v7907_v54 = vrot.slane %v7906_v29, 1  ;;  %v7776_v4 = vadd.f32 %v11737_v36, %v7775_v60  ;;  %v14566_v37 = vpop.permute.xlu0 %6740  ;;  %v11383_v0 = vld [vmem:[#allocation7 + $0x344] ss:$16 sps:$4 sm:$0xff]  }
 0xb86   : > { %v14558_v21 = vsel %vm3936_vm7, %v8230_v3, %v8255_v13  ;;  %11746 = vpow2.f32 %v7621_v35  ;;  %v7781_v55 = vrot.slane %v11743_v43, 4  ;;  %v6914_v56 = vsel %vm1914_vm4, %v14528_v58, %v6847_v27  ;;  %8906 = vmatpush1.bf16.msra.mxu1 %v11369_v52 }
 0xb87   : > { %11748 = vrcp.f32 %v7684_v45  ;;  %v7908_v51 = vadd.f32 %v7907_v54, %v7906_v29  ;;  %v7913_v22 = vrot.slane %v7912_v40, 1  ;;  %v7777_v25 = vrot.slane %v7776_v4, 2  ;;  %8907 = vmatprep.subr.bf16.mxu1 %v11377_v47 }
 0xb88   : > { %11750 = vrcp.f32 %v7690_v11  ;;  %v7782_v23 = vadd.f32 %v11743_v43, %v7781_v55  ;;  %v7847_v6 = vmul.f32 %v11737_v36, %v6914_v56  ;;  %v7848_v57 = vmul.f32 %v11743_v43, %v6914_v56  ;;  %v11381_v11 = vld [vmem:[#allocation7 + $0x340] ss:$16 sps:$4 sm:$0xff]  }
 0xb89   : > { %v7778_v9 = vadd.f32 %v7777_v25, %v7776_v4  ;;  %v7512_v13 = vmax.f32 %v14387_v61, %v7511_v31  ;;  %v7518_v10 = vmax.f32 %v14392_v30, %v7517_v59  ;;  %v7523_v48 = vrot.slane %v14403_v1, 4 }
 0xb8a   : > { %v7783_v58 = vrot.slane %v7782_v23, 2  ;;  %v7999_v46 = vrot.slane %v7847_v6, 4  ;;  %v8005_v18 = vrot.slane %v7848_v57, 4  ;;  %v7529_v8 = vrot.slane %v14408_v20, 4  ;;  %8908 = vmatpush1.bf16.msra.mxu1 %v11375_v12 }
 0xb8b   : > { %v7779_v33 = vrot.slane %v7778_v9, 1  ;;  %v7513_v36 = vrot.slane %v7512_v13, 2  ;;  %v7519_v60 = vrot.slane %v7518_v10, 2  ;;  %v7524_v16 = vmax.f32 %v14403_v1, %v7523_v48  ;;  %8909 = vmatprep.subr.bf16.mxu1 %v11383_v0  ;;  %v11395_v0 = vld [vmem:[#allocation7 + $0x384] ss:$16 sps:$4 sm:$0xff]  }
 0xb8c   : > { %v7784_v62 = vadd.f32 %v7783_v58, %v7782_v23  ;;  %v8000_v15 = vadd.f32 %v7999_v46, %v7847_v6  ;;  %v8006_v17 = vadd.f32 %v8005_v18, %v7848_v57  ;;  %v7530_v43 = vmax.f32 %v14408_v20, %v7529_v8 }
 0xb8d   : > { %v7780_v29 = vadd.f32 %v7779_v33, %v7778_v9  ;;  %v7514_v27 = vmax.f32 %v7512_v13, %v7513_v36  ;;  %v7520_v31 = vmax.f32 %v7518_v10, %v7519_v60  ;;  %v7525_v3 = vrot.slane %v7524_v16, 2  ;;  %v6787_v9 = vpop.permute.xlu0 %6786  ;;  %v11389_v13 = vld [vmem:[#allocation7 + $0x364] ss:$16 sps:$4 sm:$0xff]   ;;  %v6757_v33 = vpop.permute.xlu1 %6756  ;;  %v11387_v36 = vld [vmem:[#allocation7 + $0x360] ss:$16 sps:$4 sm:$0xff]  }
 0xb8e   : > { %v7785_v35 = vrot.slane %v7784_v62, 1  ;;  %v8001_v45 = vrot.slane %v8000_v15, 2  ;;  %v8007_v59 = vrot.slane %v8006_v17, 2  ;;  %v7531_v2 = vrot.slane %v7530_v43, 2  ;;  %8910 = vmatpush1.bf16.msra.mxu1 %v11381_v11  ;;  %v15104_v11 = vld [vmem:[#allocation42_spill] sm:$0xff] }
 0xb8f   : > { %v14570_v54 = vpop.eup %11744  ;;  %v7914_v4 = vadd.f32 %v7913_v22, %v7912_v40  ;;  %v7515_v55 = vrot.slane %v7514_v27, 1  ;;  %v7521_v56 = vrot.slane %v7520_v31, 1  ;;  %v7526_v52 = vmax.f32 %v7524_v16, %v7525_v3  ;;  %8911 = vmatprep.subr.bf16.mxu1 %v11389_v13 }
 0xb90   : > { %v14572_v25 = vpop.eup %11746  ;;  %v8118_v23 = vpack.c.bf16 %v14502_v19, %v14502_v19  ;;  %v8002_v6 = vadd.f32 %v8001_v45, %v8000_v15  ;;  %v8008_v57 = vadd.f32 %v8007_v59, %v8006_v17  ;;  %v7532_v47 = vmax.f32 %v7530_v43, %v7531_v2  ;;  %v15103_v2 = vld [vmem:[#allocation41_spill] sm:$0xff] }
 0xb91   : > { %v11749_v10 = vpop.eup %11748  ;;  %11752 = vrcp.f32 %v7780_v29  ;;  %v7516_v48 = vmax.f32 %v7514_v27, %v7515_v55  ;;  %v7522_v58 = vmax.f32 %v7520_v31, %v7521_v56  ;;  %v7527_v46 = vrot.slane %v7526_v52, 1  ;;  %v15102_v31 = vld [vmem:[#allocation39_spill] sm:$0xff]  ;;  %v6803_v59 = vpop.permute.xlu1 %6802  ;;  %v11401_v55 = vld [vmem:[#allocation7 + $0x3a4] ss:$16 sps:$4 sm:$0xff]  }
 0xb92   : > { %v11751_v40 = vpop.eup %11750  ;;  %v8087_v22 = vmul.f32 %v11749_v10, %v7908_v51  ;;  %v7786_v18 = vadd.f32 %v7785_v35, %v7784_v62  ;;  %v8003_v8 = vrot.slane %v8002_v6, 1  ;;  %v8009_v12 = vrot.slane %v8008_v57, 1  ;;  %8912 = vmatpush1.bf16.msra.mxu1 %v11387_v36 }
 0xb93   : > { %v8088_v60 = vmul.f32 %v11751_v40, %v7914_v4  ;;  %v7563_v19 = vsub.f32 %v14387_v61, %v7516_v48  ;;  %v7564_v16 = vsub.f32 %v14392_v30, %v7522_v58  ;;  %v7528_v15 = vmax.f32 %v7526_v52, %v7527_v46  ;;  %8913 = vmatprep.subr.bf16.mxu1 %v11395_v0  ;;  %v11399_v48 = vld [vmem:[#allocation7 + $0x3a0] ss:$16 sps:$4 sm:$0xff]  }
 0xb94   : > { %v14578_v17 = vunpack.c.l.b16 %v8118_v23  ;;  %v6876_v43 = vsel %vm1880_vm2, %v14055_v41, %v14499_v38  ;;  %v8119_v51 = vpack.c.bf16 %v8087_v22, %v8087_v22  ;;  %v7533_v62 = vrot.slane %v7532_v47, 1 }
 0xb95   : > { %v8134_v29 = vpack.c.bf16 %v14552_v39, %v14552_v39  ;;  %v14588_v61 = vsel %vm1880_vm2, %v14053_v28, %v14530_v7  ;;  %v6891_v30 = vsel %vm1897_vm3, %v14450_v34, %v14505_v49  ;;  %v14596_v27 = vsel %vm1897_vm3, %v14510_v24, %v14547_v50  ;;  %v6833_v28 = vpop.permute.xlu0 %6832  ;;  %v11393_v7 = vld [vmem:[#allocation7 + $0x380] ss:$16 sps:$4 sm:$0xff]  }
 0xb96   : > { %11754 = vrcp.f32 %v7786_v18  ;;  %v8004_v41 = vadd.f32 %v8003_v8, %v8002_v6  ;;  %v7565_v38 = vsub.f32 %v14403_v1, %v7528_v15  ;;  %v14602_v3 = vsel %vm1880_vm2, %v15102_v31, %v14566_v37  ;;  %v15105_v37 = vld [vmem:[#allocation40_spill] sm:$0xff]  ;;  %8914 = vmatpush1.bf16.msra.mxu1 %v11393_v7 }
 0xb97   : > { %v8120_v35 = vpack.c.bf16 %v8088_v60, %v8088_v60  ;;  %v14604_v45 = vadd.f32 %v8009_v12, %v8008_v57  ;;  %v7623_v34 = vmul.f32 1.442695, %v7563_v19  ;;  %v7625_v49 = vmul.f32 1.442695, %v7564_v16  ;;  %8915 = vmatprep.subr.bf16.mxu1 %v11401_v55 }
 0xb98   : > { %v14606_v24 = vunpack.c.l.b16 %v8119_v51  ;;  %v7534_v50 = vmax.f32 %v7532_v47, %v7533_v62  ;;  %v7691_v1 = vrot.slane %v15103_v2, 4  ;;  %v7697_v4 = vrot.slane %v15104_v11, 4  ;;  %v6849_v51 = vpop.permute.xlu1 %6848 }
 0xb99   : > { %v14612_v56 = vsel %vm1880_vm2, %v15105_v37, %v6757_v33  ;;  %v6907_v52 = vsel %vm1914_vm4, %v6891_v30, %v6833_v28  ;;  %v7787_v23 = vrot.slane %v14570_v54, 4  ;;  %v7793_v6 = vrot.slane %v14572_v25, 4 }
 0xb9a   : > { %v7627_v57 = vmul.f32 1.442695, %v7565_v38  ;;  %v14618_v13 = vsel %vm1897_vm3, %v6876_v43, %v6787_v9  ;;  %v7692_v47 = vadd.f32 %v15103_v2, %v7691_v1  ;;  %v7698_v10 = vadd.f32 %v15104_v11, %v7697_v4  ;;  %8916 = vmatpush1.bf16.msra.mxu1 %v11399_v48  ;;  %v14629_v38 = vpop.permute.xlu0 %6788 }
 0xb9b   : > { %v11753_v58 = vpop.eup %11752  ;;  %v7833_v46 = vmul.f32 %v15103_v2, %v6907_v52  ;;  %v7834_v40 = vmul.f32 %v15104_v11, %v6907_v52  ;;  %v7788_v22 = vadd.f32 %v14570_v54, %v7787_v23  ;;  %v7794_v18 = vadd.f32 %v14572_v25, %v7793_v6 }
 0xb9c   : > { %v14626_v8 = vunpack.c.l.b16 %v8120_v35  ;;  %11756 = vpow2.f32 %v7623_v34  ;;  %v7693_v9 = vrot.slane %v7692_v47, 2  ;;  %v7699_v12 = vrot.slane %v7698_v10, 2 }
 0xb9d   : > { %11758 = vpow2.f32 %v7625_v49  ;;  %v7915_v33 = vrot.slane %v7833_v46, 4  ;;  %v7921_v36 = vrot.slane %v7834_v40, 4  ;;  %v7789_v60 = vrot.slane %v7788_v22, 2 }
 0xb9e   : > { %v7566_v19 = vsub.f32 %v14408_v20, %v7534_v50  ;;  %v7694_v16 = vadd.f32 %v7693_v9, %v7692_v47  ;;  %v7700_v15 = vadd.f32 %v7699_v12, %v7698_v10  ;;  %v7795_v43 = vrot.slane %v7794_v18, 2 }
 0xb9f   : > { %11760 = vpow2.f32 %v7627_v57  ;;  %v7916_v62 = vadd.f32 %v7915_v33, %v7833_v46  ;;  %v7922_v0 = vadd.f32 %v7921_v36, %v7834_v40  ;;  %v7790_v30 = vadd.f32 %v7789_v60, %v7788_v22  ;;  %v15107_v36 = vld [vmem:[#allocation28_spill] sm:$0xff] }
 0xba0   : > { %v14631_v31 = vpop.eup %11754  ;;  %v14633_v28 = vmul.f32 %v11753_v58, %v8004_v41  ;;  %v7695_v7 = vrot.slane %v7694_v16, 1  ;;  %v7701_v35 = vrot.slane %v7700_v15, 1  ;;  %v7796_v34 = vadd.f32 %v7795_v43, %v7794_v18  ;;  %v6835_v58 = vpop.permute.xlu0 %6834 }
 0xba1   : > { %v7917_v49 = vrot.slane %v7916_v62, 2  ;;  %v7923_v20 = vrot.slane %v7922_v0, 2  ;;  %v7791_v50 = vrot.slane %v7790_v30, 1  ;;  %v6915_v2 = vsel %vm1914_vm4, %v14596_v27, %v6849_v51 }
 0xba2   : > { %v7696_v1 = vadd.f32 %v7695_v7, %v7694_v16  ;;  %v7702_v11 = vadd.f32 %v7701_v35, %v7700_v15  ;;  %v7797_v4 = vrot.slane %v7796_v34, 1  ;;  %v7849_v55 = vmul.f32 %v14570_v54, %v6915_v2 }
 0xba3   : > { %v7918_v37 = vadd.f32 %v7917_v49, %v7916_v62  ;;  %v7924_v52 = vadd.f32 %v7923_v20, %v7922_v0  ;;  %v7792_v23 = vadd.f32 %v7791_v50, %v7790_v30  ;;  %v7850_v41 = vmul.f32 %v14572_v25, %v6915_v2  ;;  %v15106_v25 = vld [vmem:[#allocation43_spill] sm:$0xff] }
 0xba4   : > { %v14641_v6 = vsel %vm1897_vm3, %v14588_v61, %v6803_v59  ;;  %11762 = vrcp.f32 %v7696_v1  ;;  %v7798_v57 = vadd.f32 %v7797_v4, %v7796_v34  ;;  %v8011_v47 = vrot.slane %v7849_v55, 4 }
 0xba5   : > { %v7629_v10 = vmul.f32 1.442695, %v7566_v19  ;;  %11764 = vrcp.f32 %v7702_v11  ;;  %v7919_v27 = vrot.slane %v7918_v37, 1  ;;  %v8017_v48 = vrot.slane %v7850_v41, 4  ;;  %v6805_v11 = vpop.permute.xlu1 %6804 }
 0xba6   : > { %v14643_v46 = vpop.eup %11756  ;;  %v8135_v54 = vpack.c.bf16 %v14633_v28, %v14633_v28  ;;  %11766 = vrcp.f32 %v7792_v23  ;;  %v8012_v40 = vadd.f32 %v8011_v47, %v7849_v55  ;;  %v7703_v22 = vrot.slane %v15106_v25, 4 }
 0xba7   : > { %v14648_v18 = vpop.eup %11758  ;;  %v7920_v61 = vadd.f32 %v7919_v27, %v7918_v37  ;;  %v7925_v59 = vrot.slane %v7924_v52, 1  ;;  %11768 = vrcp.f32 %v7798_v57  ;;  %v8018_v9 = vadd.f32 %v8017_v48, %v7850_v41 }
 0xba8   : > { %v8013_v12 = vrot.slane %v8012_v40, 2  ;;  %v7704_v33 = vadd.f32 %v15106_v25, %v7703_v22  ;;  %v7709_v60 = vrot.slane %v15107_v36, 4  ;;  %v6908_v19 = vsel %vm1914_vm4, %v14618_v13, %v6835_v58 }
 0xba9   : > { %v14654_v16 = vpop.eup %11760  ;;  %v8019_v15 = vrot.slane %v8018_v9, 2  ;;  %v7835_v43 = vmul.f32 %v15106_v25, %v6908_v19  ;;  %v7836_v51 = vmul.f32 %v15107_v36, %v6908_v19  ;;  %v7799_v62 = vrot.slane %v14643_v46, 4 }
 0xbaa   : > { %v8014_v0 = vadd.f32 %v8013_v12, %v8012_v40  ;;  %v7705_v30 = vrot.slane %v7704_v33, 2  ;;  %v7710_v28 = vadd.f32 %v15107_v36, %v7709_v60  ;;  %v7805_v7 = vrot.slane %v14648_v18, 4 }
 0xbab   : > { %v8020_v35 = vadd.f32 %v8019_v15, %v8018_v9  ;;  %v7927_v34 = vrot.slane %v7835_v43, 4  ;;  %v7933_v49 = vrot.slane %v7836_v51, 4  ;;  %v7800_v13 = vadd.f32 %v14643_v46, %v7799_v62 }
 0xbac   : > { %v7926_v20 = vadd.f32 %v7925_v59, %v7924_v52  ;;  %v8015_v50 = vrot.slane %v8014_v0, 1  ;;  %v7706_v2 = vadd.f32 %v7705_v30, %v7704_v33  ;;  %v7711_v1 = vrot.slane %v7710_v28, 2  ;;  %v6851_v30 = vpop.permute.xlu1 %6850 }
 0xbad   : > { %v7928_v4 = vadd.f32 %v7927_v34, %v7835_v43  ;;  %v7934_v55 = vadd.f32 %v7933_v49, %v7836_v51  ;;  %v7801_v37 = vrot.slane %v7800_v13, 2  ;;  %v7806_v23 = vadd.f32 %v14648_v18, %v7805_v7  ;;  %v6837_v49 = vpop.permute.xlu0 %6836 }
 0xbae   : > { %v11763_v41 = vpop.eup %11762  ;;  %v14665_v57 = vmul.f32 %v14631_v31, %v14604_v45  ;;  %v8021_v47 = vrot.slane %v8020_v35, 1  ;;  %v7707_v27 = vrot.slane %v7706_v2, 1  ;;  %v7712_v48 = vadd.f32 %v7711_v1, %v7710_v28 }
 0xbaf   : > { %v11765_v58 = vpop.eup %11764  ;;  %v14667_v40 = vmul.f32 %v11763_v41, %v7920_v61  ;;  %v8016_v52 = vadd.f32 %v8015_v50, %v8014_v0  ;;  %v7929_v25 = vrot.slane %v7928_v4, 2  ;;  %v7935_v22 = vrot.slane %v7934_v55, 2  ;;  %v15108_v50 = vld [vmem:[#allocation30_spill] sm:$0xff] }
 0xbb0   : > { %v11767_v59 = vpop.eup %11766  ;;  %v14669_v9 = vmul.f32 %v11765_v58, %v7926_v20  ;;  %v7708_v12 = vadd.f32 %v7707_v27, %v7706_v2  ;;  %v7713_v33 = vrot.slane %v7712_v48, 1  ;;  %v7802_v36 = vadd.f32 %v7801_v37, %v7800_v13  ;;  %v6853_v58 = vpop.permute.xlu1 %6852 }
 0xbb1   : > { %v11769_v60 = vpop.eup %11768  ;;  %11770 = vpow2.f32 %v7629_v10  ;;  %v14671_v19 = vmul.f32 %v11767_v59, %v8016_v52  ;;  %v7930_v45 = vadd.f32 %v7929_v25, %v7928_v4  ;;  %v7807_v31 = vrot.slane %v7806_v23, 2 }
 0xbb2   : > { %v8022_v15 = vadd.f32 %v8021_v47, %v8020_v35  ;;  %v7714_v43 = vadd.f32 %v7713_v33, %v7712_v48  ;;  %11772 = vrcp.f32 %v7708_v12  ;;  %v7936_v61 = vadd.f32 %v7935_v22, %v7934_v55 }
 0xbb3   : > { %v8136_v51 = vpack.c.bf16 %v14665_v57, %v14665_v57  ;;  %v14675_v62 = vunpack.c.l.b16 %v8135_v54  ;;  %v6893_v0 = vsel %vm1897_vm3, %v14602_v3, %v14629_v38  ;;  %v6901_v10 = vsel %vm1897_vm3, %v14612_v56, %v6805_v11 }
 0xbb4   : > { %v8121_v28 = vpack.c.bf16 %v14667_v40, %v14667_v40  ;;  %v8122_v7 = vpack.c.bf16 %v14669_v9, %v14669_v9  ;;  %v14686_v35 = vmul.f32 %v11769_v60, %v8022_v15  ;;  %v7803_v34 = vrot.slane %v7802_v36, 1 }
 0xbb5   : > { %v8137_v54 = vpack.c.bf16 %v14671_v19, %v14671_v19  ;;  %11774 = vrcp.f32 %v7714_v43  ;;  %v7931_v13 = vrot.slane %v7930_v45, 1  ;;  %v7808_v3 = vadd.f32 %v7807_v31, %v7806_v23 }
 0xbb6   : > { %v7937_v38 = vrot.slane %v7936_v61, 1  ;;  %v7804_v20 = vadd.f32 %v7803_v34, %v7802_v36  ;;  %v6916_v56 = vsel %vm1914_vm4, %v14641_v6, %v6851_v30  ;;  %v7715_v2 = vrot.slane %v15108_v50, 4 }
 0xbb7   : > { %v7809_v1 = vrot.slane %v7808_v3, 1  ;;  %v7851_v11 = vmul.f32 %v14643_v46, %v6916_v56  ;;  %v7852_v4 = vmul.f32 %v14648_v18, %v6916_v56  ;;  %v6909_v55 = vsel %vm1914_vm4, %v6893_v0, %v6837_v49 }
 0xbb8   : > { %11776 = vrcp.f32 %v7804_v20  ;;  %v7716_v37 = vadd.f32 %v15108_v50, %v7715_v2  ;;  %v7837_v41 = vmul.f32 %v15108_v50, %v6909_v55  ;;  %v7838_v23 = vmul.f32 %v14429_v32, %v6909_v55 }
 0xbb9   : > { %v7932_v47 = vadd.f32 %v7931_v13, %v7930_v45  ;;  %v8023_v27 = vrot.slane %v7851_v11, 4  ;;  %v8029_v48 = vrot.slane %v7852_v4, 4  ;;  %v7811_v6 = vrot.slane %v14654_v16, 4 }
 0xbba   : > { %v7810_v40 = vadd.f32 %v7809_v1, %v7808_v3  ;;  %v7717_v52 = vrot.slane %v7716_v37, 2  ;;  %v7939_v46 = vrot.slane %v7837_v41, 4  ;;  %v7945_v25 = vrot.slane %v7838_v23, 4 }
 0xbbb   : > { %v11771_v18 = vpop.eup %11770  ;;  %v7938_v22 = vadd.f32 %v7937_v38, %v7936_v61  ;;  %v8024_v59 = vadd.f32 %v8023_v27, %v7851_v11  ;;  %v8030_v9 = vadd.f32 %v8029_v48, %v7852_v4  ;;  %v7812_v12 = vadd.f32 %v14654_v16, %v7811_v6 }
 0xbbc   : > { %v11773_v33 = vpop.eup %11772  ;;  %v7718_v36 = vadd.f32 %v7717_v52, %v7716_v37  ;;  %v7940_v60 = vadd.f32 %v7939_v46, %v7837_v41  ;;  %v7946_v19 = vadd.f32 %v7945_v25, %v7838_v23  ;;  %v6917_v45 = vsel %vm1914_vm4, %v6901_v10, %v6853_v58 }
 0xbbd   : > { %v8091_v31 = vmul.f32 %v11773_v33, %v7932_v47  ;;  %v8025_v15 = vrot.slane %v8024_v59, 2  ;;  %v8031_v43 = vrot.slane %v8030_v9, 2  ;;  %v7813_v0 = vrot.slane %v7812_v12, 2 }
 0xbbe   : > { %11778 = vrcp.f32 %v7810_v40  ;;  %v7719_v30 = vrot.slane %v7718_v36, 1  ;;  %v7941_v34 = vrot.slane %v7940_v60, 2  ;;  %v7947_v49 = vrot.slane %v7946_v19, 2 }
 0xbbf   : > { %v11775_v13 = vpop.eup %11774  ;;  %v8026_v61 = vadd.f32 %v8025_v15, %v8024_v59  ;;  %v8032_v3 = vadd.f32 %v8031_v43, %v8030_v9  ;;  %v7853_v38 = vmul.f32 %v14654_v16, %v6917_v45  ;;  %v7854_v20 = vmul.f32 %v11771_v18, %v6917_v45 }
 0xbc0   : > { %v14703_v56 = vmul.f32 %v11775_v13, %v7938_v22  ;;  %v7720_v50 = vadd.f32 %v7719_v30, %v7718_v36  ;;  %v7942_v2 = vadd.f32 %v7941_v34, %v7940_v60  ;;  %v7814_v1 = vadd.f32 %v7813_v0, %v7812_v12 }
 0xbc1   : > { %v14705_v10 = vunpack.c.l.b16 %v8121_v28  ;;  %v14707_v11 = vunpack.c.l.b16 %v8122_v7  ;;  %v8123_v4 = vpack.c.bf16 %v8091_v31, %v8091_v31  ;;  %v8027_v55 = vrot.slane %v8026_v61, 1 }
 0xbc2   : > { %v11777_v37 = vpop.eup %11776  ;;  %v14709_v41 = vunpack.c.l.b16 %v8137_v54  ;;  %11780 = vrcp.f32 %v7720_v50  ;;  %v14711_v23 = vadd.f32 %v7947_v49, %v7946_v19  ;;  %v7815_v47 = vrot.slane %v7814_v1, 1 }
 0xbc3   : > { %v8028_v16 = vadd.f32 %v8027_v55, %v8026_v61  ;;  %v8033_v27 = vrot.slane %v8032_v3, 1  ;;  %v8035_v48 = vrot.slane %v7853_v38, 4  ;;  %v8041_v6 = vrot.slane %v7854_v20, 4 }
 0xbc4   : > { %v8124_v58 = vpack.c.bf16 %v14703_v56, %v14703_v56  ;;  %v7943_v28 = vrot.slane %v7942_v2, 1  ;;  %v7816_v40 = vadd.f32 %v7815_v47, %v7814_v1  ;;  %v7721_v7 = vrot.slane %v14429_v32, 4 }
 0xbc5   : > { %v14716_v52 = vunpack.c.l.b16 %v8123_v4  ;;  %v8107_v46 = vmul.f32 %v11777_v37, %v8028_v16  ;;  %v8036_v54 = vadd.f32 %v8035_v48, %v7853_v38  ;;  %v8042_v25 = vadd.f32 %v8041_v6, %v7854_v20 }
 0xbc6   : > { %v7949_v22 = vrot.slane %v14711_v23, 1  ;;  %11782 = vrcp.f32 %v7816_v40  ;;  %v7722_v59 = vadd.f32 %v14429_v32, %v7721_v7  ;;  %v7817_v9 = vrot.slane %v11771_v18, 4 }
 0xbc7   : > { %v8034_v12 = vadd.f32 %v8033_v27, %v8032_v3  ;;  %v8037_v33 = vrot.slane %v8036_v54, 2  ;;  %v7762_v36 = vadd.f32 %v7761_v53, %v14534_v5  ;;  %v15109_v60 = vrot.slane %v14410_v44, 4 }
 0xbc8   : > { %v11779_v45 = vpop.eup %11778  ;;  %v7944_v31 = vadd.f32 %v7943_v28, %v7942_v2  ;;  %v7723_v15 = vrot.slane %v7722_v59, 2  ;;  %v7818_v43 = vadd.f32 %v11771_v18, %v7817_v9  ;;  %v15110_v0 = vrot.slane %v14423_v63, 4 }
 0xbc9   : > { %v7958_v19 = vadd.f32 %v15109_v60, %v14410_v44  ;;  %v8139_v32 = vpack.c.bf16 %v8107_v46, %v8107_v46  ;;  %v8038_v34 = vadd.f32 %v8037_v33, %v8036_v54  ;;  %v8043_v49 = vrot.slane %v8042_v25, 2  ;;  %v15112_v60 = vld [vmem:[#allocation29_spill] sm:$0xff] }
 0xbca   : > { %v7970_v30 = vadd.f32 %v15110_v0, %v14423_v63  ;;  %v7724_v61 = vadd.f32 %v7723_v15, %v7722_v59  ;;  %v7819_v3 = vrot.slane %v7818_v43, 2  ;;  %v7981_v5 = vrot.slane %v14477_v42, 4 }
 0xbcb   : > { %v7959_v13 = vrot.slane %v7958_v19, 2  ;;  %v14730_v53 = vmul.f32 %v11779_v45, %v8034_v12  ;;  %v8039_v44 = vrot.slane %v8038_v34, 1  ;;  %11784 = vrcp.f32 %v7762_v36 }
 0xbcc   : > { %v7971_v38 = vrot.slane %v7970_v30, 2  ;;  %v11781_v56 = vpop.eup %11780  ;;  %v7725_v18 = vrot.slane %v7724_v61, 1  ;;  %v7820_v50 = vadd.f32 %v7819_v3, %v7818_v43  ;;  %v7982_v63 = vadd.f32 %v7981_v5, %v14477_v42  ;;  %v15111_v42 = vld [vmem:[#allocation31_spill] sm:$0xff] }
 0xbcd   : > { %v7960_v20 = vadd.f32 %v7959_v13, %v7958_v19  ;;  %v8236_v1 = vunpack.c.l.b16 %v8139_v32  ;;  %v8093_v4 = vmul.f32 %v11781_v56, %v7944_v31  ;;  %v8044_v55 = vadd.f32 %v8043_v49, %v8042_v25  ;;  %v15113_v25 = vld [vmem:[#allocation32_spill] sm:$0xff] }
 0xbce   : > { %v7972_v2 = vadd.f32 %v7971_v38, %v7970_v30  ;;  %v7726_v47 = vadd.f32 %v7725_v18, %v7724_v61  ;;  %v7821_v16 = vrot.slane %v7820_v50, 1  ;;  %v7983_v48 = vrot.slane %v7982_v63, 2 }
 0xbcf   : > { %v7961_v37 = vrot.slane %v7960_v20, 1  ;;  %v8125_v6 = vpack.c.bf16 %v8093_v4, %v8093_v4  ;;  %v8040_v28 = vadd.f32 %v8039_v44, %v8038_v34  ;;  %v8221_v7 = vunpack.c.l.b16 %v8124_v58 }
 0xbd0   : > { %v7973_v27 = vrot.slane %v7972_v2, 1  ;;  %v11783_v46 = vpop.eup %11782  ;;  %v7822_v54 = vadd.f32 %v7821_v16, %v7820_v50  ;;  %v7984_v9 = vadd.f32 %v7983_v48, %v7982_v63  ;;  %11786 = vrcp.f32 %v7726_v47 }
 0xbd1   : > { %v7962_v40 = vadd.f32 %v7961_v37, %v7960_v20  ;;  %v8222_v12 = vunpack.c.l.b16 %v8125_v6  ;;  %v8109_v33 = vmul.f32 %v11783_v46, %v8040_v28  ;;  %v8248_v19 = vsel %vm3934_vm6, %v15113_v25, %v15112_v60  ;;  %v11332_v46 = vld [vmem:[#allocation7 + $0x22c] ss:$16 sps:$4 sm:$0xff]   ;;  %v11354_v25 = vld [vmem:[#allocation7 + $0x2a8] ss:$16 sps:$4 sm:$0xff]  }
 0xbd2   : > { %v7974_v59 = vadd.f32 %v7973_v27, %v7972_v2  ;;  %v7985_v45 = vrot.slane %v7984_v9, 1  ;;  %11788 = vrcp.f32 %v7822_v54  ;;  %v8249_v58 = vsel %vm3936_vm7, %v14578_v17, %v8248_v19  ;;  %v11330_v54 = vld [vmem:[#allocation7 + $0x228] ss:$16 sps:$4 sm:$0xff]   ;;  %v11356_v60 = vld [vmem:[#allocation7 + $0x2ac] ss:$16 sps:$4 sm:$0xff]  }
 0xbd3   : > { %v8096_v36 = vmul.f32 %v15111_v42, %v7962_v40  ;;  %v8141_v15 = vpack.c.bf16 %v8109_v33, %v8109_v33  ;;  %v8250_v0 = vsel %vm3938_vm8, %v14626_v8, %v8249_v58  ;;  %v8243_v30 = vsel %vm3938_vm8, %v14606_v24, %v14517_v26  ;;  %v11342_v33 = vld [vmem:[#allocation7 + $0x268] ss:$16 sps:$4 sm:$0xff]   ;;  %v11350_v42 = vld [vmem:[#allocation7 + $0x28c] ss:$16 sps:$4 sm:$0xff]  }
 0xbd4   : > { %v8098_v31 = vmul.f32 %v14550_v14, %v7974_v59  ;;  %v7986_v32 = vadd.f32 %v7985_v45, %v7984_v9  ;;  %v8251_v49 = vsel %vm3940_vm9, %v14707_v11, %v8250_v0  ;;  %v8244_v14 = vsel %vm3940_vm9, %v14705_v10, %v8243_v30  ;;  %v11338_v59 = vld [vmem:[#allocation7 + $0x24c] ss:$16 sps:$4 sm:$0xff]   ;;  %v11336_v9 = vld [vmem:[#allocation7 + $0x248] ss:$16 sps:$4 sm:$0xff]  }
 0xbd5   : > { %v8128_v43 = vpack.c.bf16 %v8096_v36, %v8096_v36  ;;  %v11785_v13 = vpop.eup %11784  ;;  %v8238_v61 = vunpack.c.l.b16 %v8141_v15  ;;  %v8252_v3 = vsel %vm3942_vm10, %v8221_v7, %v8251_v49  ;;  %v8245_v8 = vsel %vm3942_vm10, %v14716_v52, %v8244_v14  ;;  %v11324_v7 = vld [vmem:[#allocation7 + $0x208] ss:$16 sps:$4 sm:$0xff]   ;;  %v11362_v19 = vld [vmem:[#allocation7 + $0x2cc] ss:$16 sps:$4 sm:$0xff]  }
 0xbd6   : > { %v8130_v34 = vpack.c.bf16 %v8098_v31, %v8098_v31  ;;  %v8100_v38 = vmul.f32 %v11785_v13, %v7986_v32  ;;  %v8246_v26 = vsel %vm3944_vm11, %v8222_v12, %v8245_v8  ;;  %v8257_v24 = vsel %vm3938_vm8, %v14675_v62, %v14558_v21  ;;  %v11344_v12 = vld [vmem:[#allocation7 + $0x26c] ss:$16 sps:$4 sm:$0xff]   ;;  %v11348_v36 = vld [vmem:[#allocation7 + $0x288] ss:$16 sps:$4 sm:$0xff]   ;;  %v11405_v8 = vld [vmem:[#allocation7 + $0x3c0] ss:$16 sps:$4 sm:$0xff]  }
 0xbd7   : > { %v8225_v17 = vunpack.c.l.b16 %v8128_v43  ;;  %v8138_v11 = vpack.c.bf16 %v14686_v35, %v14686_v35  ;;  %v7950_v10 = vadd.f32 %v7949_v22, %v14711_v23  ;;  %v8045_v44 = vrot.slane %v8044_v55, 1  ;;  %v11360_v45 = vld [vmem:[#allocation7 + $0x2c8] ss:$16 sps:$4 sm:$0xff]   ;;  %v11368_v31 = vld [vmem:[#allocation7 + $0x2ec] ss:$16 sps:$4 sm:$0xff]  }
 0xbd8   : > { %v8227_v5 = vunpack.c.l.b16 %v8130_v34  ;;  %v8258_v20 = vsel %vm3940_vm9, %v14709_v41, %v8257_v24  ;;  %v8140_v52 = vpack.c.bf16 %v14730_v53, %v14730_v53  ;;  %v8132_v56 = vpack.c.bf16 %v8100_v38, %v8100_v38  ;;  %v11366_v58 = vld [vmem:[#allocation7 + $0x2e8] ss:$16 sps:$4 sm:$0xff]   ;;  %v11374_v15 = vld [vmem:[#allocation7 + $0x30c] ss:$16 sps:$4 sm:$0xff]   ;;  %v11407_v38 = vld [vmem:[#allocation7 + $0x3c4] ss:$16 sps:$4 sm:$0xff]  }
 0xbd9   : > { %v8259_v50 = vsel %vm3942_vm10, %v8236_v1, %v8258_v20  ;;  %v8231_v21 = vunpack.c.l.b16 %v8134_v29  ;;  %v8233_v23 = vunpack.c.l.b16 %v8136_v51  ;;  %v8235_v2 = vunpack.c.l.b16 %v8138_v11  ;;  %v11372_v43 = vld [vmem:[#allocation7 + $0x308] ss:$16 sps:$4 sm:$0xff]   ;;  %v11380_v0 = vld [vmem:[#allocation7 + $0x32c] ss:$16 sps:$4 sm:$0xff]   ;;  %8917 = vmatprep.subr.bf16.mxu1 %v11407_v38  ;;  %v11411_v24 = vld [vmem:[#allocation7 + $0x3e0] ss:$16 sps:$4 sm:$0xff]  }
 0xbda   : > { %v8261_v18 = vsel %vm3932_vm5, %v8227_v5, %v8225_v17  ;;  %v8260_v62 = vsel %vm3944_vm11, %v8238_v61, %v8259_v50  ;;  %v11787_v35 = vpop.eup %11786  ;;  %v8229_v41 = vunpack.c.l.b16 %v8132_v56  ;;  %v8046_v53 = vadd.f32 %v8045_v44, %v8044_v55  ;;  %v11378_v30 = vld [vmem:[#allocation7 + $0x328] ss:$16 sps:$4 sm:$0xff]   ;;  %v11386_v32 = vld [vmem:[#allocation7 + $0x34c] ss:$16 sps:$4 sm:$0xff]   ;;  %8918 = vmatpush1.bf16.msra.mxu1 %v11405_v8  ;;  %v11413_v11 = vld [vmem:[#allocation7 + $0x3e4] ss:$16 sps:$4 sm:$0xff]  }
 0xbdb   : > { %v8268_v22 = vpack.c.b16 %v8260_v62, %v8246_v26  ;;  %v8094_v63 = vmul.f32 %v11787_v35, %v7950_v10  ;;  %v8237_v37 = vunpack.c.l.b16 %v8140_v52  ;;  %v11384_v34 = vld [vmem:[#allocation7 + $0x348] ss:$16 sps:$4 sm:$0xff]   ;;  %v11392_v49 = vld [vmem:[#allocation7 + $0x36c] ss:$16 sps:$4 sm:$0xff]   ;;  %8919 = vmatprep.subr.bf16.mxu1 %v11413_v11  ;;  %v15115_v35 = vld [vmem:[#allocation36_spill] sm:$0xff] }
 0xbdc   : > { %v11789_v4 = vpop.eup %11788  ;;  %v8262_v1 = vsel %vm3934_vm6, %v8229_v41, %v8261_v18  ;;  %v11390_v14 = vld [vmem:[#allocation7 + $0x368] ss:$16 sps:$4 sm:$0xff]   ;;  %v11398_v13 = vld [vmem:[#allocation7 + $0x38c] ss:$16 sps:$4 sm:$0xff]   ;;  %v11520_v38 = vld [vmem:[%s14960_s10 + $0x50] sm:$0xff]  }
 0xbdd   : > { %v8110_v47 = vmul.f32 %v11789_v4, %v8046_v53  ;;  %v8126_v16 = vpack.c.bf16 %v8094_v63, %v8094_v63  ;;  %v8263_v39 = vsel %vm3936_vm7, %v8231_v21, %v8262_v1  ;;  %v11396_v61 = vld [vmem:[#allocation7 + $0x388] ss:$16 sps:$4 sm:$0xff]   ;;  %v11404_v17 = vld [vmem:[#allocation7 + $0x3ac] ss:$16 sps:$4 sm:$0xff]   ;;  %v11524_v11 = vld [vmem:[%s14960_s10 + $0x60] sm:$0xff]  }
 0xbde   : > { %v8264_v29 = vsel %vm3938_vm8, %v8233_v23, %v8263_v39  ;;  %v11408_v5 = vld [vmem:[#allocation7 + $0x3c8] ss:$16 sps:$4 sm:$0xff]   ;;  %v11410_v26 = vld [vmem:[#allocation7 + $0x3cc] ss:$16 sps:$4 sm:$0xff]   ;;  %8920 = vmatpush1.bf16.msra.mxu1 %v11411_v24 }
 0xbdf   : > { %v8142_v27 = vpack.c.bf16 %v8110_v47, %v8110_v47  ;;  %v8223_v48 = vunpack.c.l.b16 %v8126_v16  ;;  %v8265_v57 = vsel %vm3940_vm9, %v8235_v2, %v8264_v29  ;;  %v11414_v10 = vld [vmem:[#allocation7 + $0x3e8] ss:$16 sps:$4 sm:$0xff]   ;;  %v11416_v44 = vld [vmem:[#allocation7 + $0x3ec] ss:$16 sps:$4 sm:$0xff]   ;;  %v15117_v2 = vld [vmem:[#allocation38_spill] sm:$0xff] }
 0xbe0   : > { %v8266_v51 = vsel %vm3942_vm10, %v8237_v37, %v8265_v57  ;;  %v11419_v20 = vld [vmem:[#allocation8 + $0x204] ss:$8 sps:$4 sm:$0xff]   ;;  %v15114_v50 = vld [vmem:[#allocation35_spill] sm:$0xff]  ;;  %v11417_v4 = vld [vmem:[#allocation8 + $0x200] ss:$8 sps:$4 sm:$0xff]  }
 0xbe1   : > { %v8239_v6 = vunpack.c.l.b16 %v8142_v27  ;;  %v8253_v55 = vsel %vm3944_vm11, %v8223_v48, %v8252_v3  ;;  %v11402_v3 = vld [vmem:[#allocation7 + $0x3a8] ss:$16 sps:$4 sm:$0xff]   ;;  %9385 = vmatprep.subr.bf16.mxu1 %v11419_v20  ;;  %v11422_v1 = vld [vmem:[#allocation8 + $0x214] ss:$8 sps:$4 sm:$0xff]   ;;  %v11425_v16 = vld [vmem:[#allocation8 + $0x224] ss:$8 sps:$4 sm:$0xff]  }
 0xbe2   : > { %v15116_v41 = vld [vmem:[#allocation37_spill] sm:$0xff]  ;;  %v11420_v47 = vld [vmem:[#allocation8 + $0x210] ss:$8 sps:$4 sm:$0xff]   ;;  %v11428_v29 = vld [vmem:[#allocation8 + $0x234] ss:$8 sps:$4 sm:$0xff]  }
 0xbe3   : > { %v8267_v28 = vsel %vm3944_vm11, %v8239_v6, %v8266_v51  ;;  %v11423_v39 = vld [vmem:[#allocation8 + $0x220] ss:$8 sps:$4 sm:$0xff]   ;;  %v11426_v27 = vld [vmem:[#allocation8 + $0x230] ss:$8 sps:$4 sm:$0xff]   ;;  %v11431_v48 = vld [vmem:[#allocation8 + $0x244] ss:$8 sps:$4 sm:$0xff]  }
 0xbe4   : > { %v8269_v40 = vpack.c.b16 %v8267_v28, %v8253_v55  ;;  %v11429_v57 = vld [vmem:[#allocation8 + $0x240] ss:$8 sps:$4 sm:$0xff]   ;;  %v11434_v51 = vld [vmem:[#allocation8 + $0x254] ss:$8 sps:$4 sm:$0xff]   ;;  %v11432_v6 = vld [vmem:[#allocation8 + $0x250] ss:$8 sps:$4 sm:$0xff]  }
 0xbe5   : > { %v11437_v55 = vld [vmem:[#allocation8 + $0x264] ss:$8 sps:$4 sm:$0xff]   ;;  %v11435_v28 = vld [vmem:[#allocation8 + $0x260] ss:$8 sps:$4 sm:$0xff]   ;;  %v11523_v24 = vld [vmem:[%s14960_s10 + $0x18] sm:$0xff]  }
 0xbe6   : > { %8464 = vmatprep.mubr.bf16.mxu0 %v8269_v40  ;;  %v11440_v40 = vld [vmem:[#allocation8 + $0x274] ss:$8 sps:$4 sm:$0xff]   ;;  %v11519_v8 = vld [vmem:[%s14960_s10 + $0x8] sm:$0xff]   ;;  %v10358_v20 = vld [vmem:[%s14956_s6 + $0x4] sm:$0xf] }
 0xbe7   : > { %8465 = vmatmul.mubr.bf16.vlgmr.msra.gmra.mrb[52].mxu0 %v8268_v22 }
 0xbe8   : > { %8933 = vmatpush1.bf16.msra.mxu0 %v11324_v7  ;;  %v11438_v7 = vld [vmem:[#allocation8 + $0x270] ss:$8 sps:$4 sm:$0xff]  }
 0xbe9   : > { %8934 = vmatprep.subr.bf16.mxu0 %v11332_v46  ;;  %v11443_v46 = vld [vmem:[#allocation8 + $0x284] ss:$8 sps:$4 sm:$0xff]  }
 0xbec   : > { %8935 = vmatpush1.bf16.msra.mxu0 %v11330_v54  ;;  %v11441_v54 = vld [vmem:[#allocation8 + $0x280] ss:$8 sps:$4 sm:$0xff]  }
 0xbed   : > { %8936 = vmatprep.subr.bf16.mxu0 %v11338_v59  ;;  %v11446_v59 = vld [vmem:[#allocation8 + $0x294] ss:$8 sps:$4 sm:$0xff]  }
 0xbf0   : > { %8937 = vmatpush1.bf16.msra.mxu0 %v11336_v9  ;;  %v11444_v9 = vld [vmem:[#allocation8 + $0x290] ss:$8 sps:$4 sm:$0xff]  }
 0xbf1   : > { %8938 = vmatprep.subr.bf16.mxu0 %v11344_v12  ;;  %v11449_v12 = vld [vmem:[#allocation8 + $0x2a4] ss:$8 sps:$4 sm:$0xff]  }
 0xbf4   : > { %8939 = vmatpush1.bf16.msra.mxu0 %v11342_v33  ;;  %v11447_v33 = vld [vmem:[#allocation8 + $0x2a0] ss:$8 sps:$4 sm:$0xff]  }
 0xbf5   : > { %8940 = vmatprep.subr.bf16.mxu0 %v11350_v42  ;;  %v11452_v42 = vld [vmem:[#allocation8 + $0x2b4] ss:$8 sps:$4 sm:$0xff]  }
 0xbf8   : > { %8941 = vmatpush1.bf16.msra.mxu0 %v11348_v36  ;;  %v11450_v36 = vld [vmem:[#allocation8 + $0x2b0] ss:$8 sps:$4 sm:$0xff]  }
 0xbf9   : > { %8942 = vmatprep.subr.bf16.mxu0 %v11356_v60  ;;  %v11455_v60 = vld [vmem:[#allocation8 + $0x2c4] ss:$8 sps:$4 sm:$0xff]  }
 0xbfc   : > { %8943 = vmatpush1.bf16.msra.mxu0 %v11354_v25  ;;  %v11453_v25 = vld [vmem:[#allocation8 + $0x2c0] ss:$8 sps:$4 sm:$0xff]  }
 0xbfd   : > { %8944 = vmatprep.subr.bf16.mxu0 %v11362_v19  ;;  %v11458_v19 = vld [vmem:[#allocation8 + $0x2d4] ss:$8 sps:$4 sm:$0xff]  }
 0xc00   : > { %8945 = vmatpush1.bf16.msra.mxu0 %v11360_v45  ;;  %v11456_v45 = vld [vmem:[#allocation8 + $0x2d0] ss:$8 sps:$4 sm:$0xff]  }
 0xc01   : > { %8946 = vmatprep.subr.bf16.mxu0 %v11368_v31  ;;  %v11459_v31 = vld [vmem:[#allocation8 + $0x2e0] ss:$8 sps:$4 sm:$0xff]  }
 0xc04   : > { %8947 = vmatpush1.bf16.msra.mxu0 %v11366_v58  ;;  %v11461_v58 = vld [vmem:[#allocation8 + $0x2e4] ss:$8 sps:$4 sm:$0xff]  }
 0xc05   : > { %8948 = vmatprep.subr.bf16.mxu0 %v11374_v15  ;;  %v11464_v15 = vld [vmem:[#allocation8 + $0x2f4] ss:$8 sps:$4 sm:$0xff]  }
 0xc08   : > { %8949 = vmatpush1.bf16.msra.mxu0 %v11372_v43  ;;  %v11462_v43 = vld [vmem:[#allocation8 + $0x2f0] ss:$8 sps:$4 sm:$0xff]  }
 0xc09   : > { %8950 = vmatprep.subr.bf16.mxu0 %v11380_v0  ;;  %v11467_v0 = vld [vmem:[#allocation8 + $0x304] ss:$8 sps:$4 sm:$0xff]  }
 0xc0c   : > { %8951 = vmatpush1.bf16.msra.mxu0 %v11378_v30  ;;  %v11513_v30 = vld [vmem:[%s14961_s11] sm:$0xff]  }
 0xc0d   : > { %8952 = vmatprep.subr.bf16.mxu0 %v11386_v32  ;;  %v12056_v32 = vmov 0.0  }
 0xc10   : > { %8953 = vmatpush1.bf16.msra.mxu0 %v11384_v34  ;;  %v11514_v34 = vld [vmem:[%s14961_s11 + $0x8] sm:$0xff]  }
 0xc11   : > { %8954 = vmatprep.subr.bf16.mxu0 %v11392_v49  ;;  %v11515_v49 = vld [vmem:[%s14961_s11 + $0x10] ss:$0 sps:$4 sm:$0xff]  }
 0xc14   : > { %8955 = vmatpush1.bf16.msra.mxu0 %v11390_v14  ;;  %v9530_v14 = vsel %vm619_vm0, %v11515_v49, 0  ;;  %v11479_v49 = vld [vmem:[#allocation8 + $0x344] ss:$8 sps:$4 sm:$0xff]  }
 0xc15   : > { %8956 = vmatprep.subr.bf16.mxu0 %v11398_v13  ;;  %v11516_v13 = vld [vmem:[%s14960_s10 + $0x40] sm:$0xff]  }
 0xc18   : > { %8957 = vmatpush1.bf16.msra.mxu0 %v11396_v61  ;;  %v11517_v61 = vld [vmem:[%s14960_s10] sm:$0xff]  }
 0xc19   : > { %8958 = vmatprep.subr.bf16.mxu0 %v11404_v17  ;;  %v11518_v17 = vld [vmem:[%s14960_s10 + $0x48] sm:$0xff]  }
 0xc1c   : > { %8959 = vmatpush1.bf16.msra.mxu0 %v11402_v3  ;;  %v15118_v3 = vld [vmem:[#allocation24_spill] sm:$0xff] }
 0xc1d   : > { %8960 = vmatprep.subr.bf16.mxu0 %v11410_v26  ;;  %v11522_v26 = vld [vmem:[%s14960_s10 + $0x58] sm:$0xff]  }
 0xc20   : > { %8961 = vmatpush1.bf16.msra.mxu0 %v11408_v5  ;;  %v11521_v5 = vld [vmem:[%s14960_s10 + $0x10] sm:$0xff]  }
 0xc21   : > { %8962 = vmatprep.subr.bf16.mxu0 %v11416_v44  ;;  %v11526_v44 = vld [vmem:[%s14960_s10 + $0x68] sm:$0xff]  }
 0xc24   : > { %8963 = vmatpush1.bf16.msra.mxu0 %v11414_v10  ;;  %v11525_v10 = vld [vmem:[%s14960_s10 + $0x20] sm:$0xff]  }
 0xc25   : > { %10548 = vmatprep.subr.bf16.mxu0 %v12056_v32 }
 0xcba   : > { %v8466_v52 = vpop.f32.mrb[52].mxu0 }
 0xcbb   : > { %v8468_v56 = vpop.f32.mrb[53].mxu0  ;;  %v14791_v53 = vadd.f32 %v8466_v52, %v15117_v2  ;;  %v15119_v52 = vld [vmem:[#allocation26_spill] sm:$0xff] }
 0xcbc   : > { %v8470_v18 = vpop.f32.mrb[54].mxu0  ;;  %v14785_v23 = vadd.f32 %v8468_v56, %v15115_v35  ;;  %v8552_v56 = vrot.slane %v10358_v20, %v15119_v52  ;;  %v15122_v35 = vld [vmem:[#allocation27_spill] sm:$0xff] }
 0xcbd   : > { %v14782_v21 = vadd.f32 %v8470_v18, %v15114_v50  ;;  %v8472_v62 = vpop.f32.mrb[55].mxu0  ;;  %v15120_v18 = vld [vmem:[#allocation25_spill] sm:$0xff] }
 0xcbe   : > { %v14788_v22 = vadd.f32 %v8472_v62, %v15116_v41  ;;  %v15121_v50 = vsub.s32 2, %v15120_v18  ;;  %v8556_v41 = vrot.slane %v10358_v20, %v15122_v35  ;;  %v15123_v2 = vsub.s32 3, %v15120_v18  ;;  %v11503_v18 = vld [vmem:[#allocation8 + $0x3c4] ss:$8 sps:$4 sm:$0xff]  }
 0xcbf   : > { %v8479_v37 = vpack.c.bf16 %v14782_v21, %v14791_v53 }
 0xcc0   : > { %v8480_v63 = vpack.c.bf16 %v14788_v22, %v14785_v23  ;;  %v8560_v62 = vrot.slane %v10358_v20, %v15121_v50  ;;  %v11501_v50 = vld [vmem:[#allocation8 + $0x3c0] ss:$8 sps:$4 sm:$0xff]  }
 0xcc2   : > { %8921 = vmatprep.mubr.bf16.mxu1 %v8480_v63  ;;  %8964 = vmatprep.mubr.bf16.mxu0 %v8480_v63  ;;  %v8564_v63 = vrot.slane %v10358_v20, %v15123_v2  ;;  %v11500_v20 = vld [vmem:[#allocation8 + $0x3b4] ss:$8 sps:$4 sm:$0xff]   ;;  %v11509_v2 = vld [vmem:[#allocation8 + $0x3e4] ss:$8 sps:$4 sm:$0xff]  }
 0xcc3   : > { %8922 = vmatmul.mubr.bf16.vlgmr.msra.gmra.mrb[56].mxu1 %v8479_v37  ;;  %8965 = vmatmul.mubr.bf16.vlgmr.msra.gmra.mrb[56].mxu0 %v8479_v37 }
 0xcc4   : > { %9386 = vmatpush1.bf16.msra.mxu1 %v11417_v4  ;;  %10554 = vmatprep.mubr.msk.bf16.mxu0 %vm12057_vm12, %v12056_v32 }
 0xcc5   : > { %9387 = vmatprep.subr.bf16.mxu1 %v11422_v1  ;;  %10549 = vmatpush3.bf16.msra.mxu0 %v11513_v30  ;;  %v11476_v30 = vld [vmem:[#allocation8 + $0x334] ss:$8 sps:$4 sm:$0xff]  }
 0xcc6   : > { %10550 = vmatprep.subr.bf16.mxu0 %v12056_v32 }
 0xcc8   : > { %9388 = vmatpush1.bf16.msra.mxu1 %v11420_v47 }
 0xcc9   : > { %9389 = vmatprep.subr.bf16.mxu1 %v11425_v16  ;;  %10551 = vmatpush3.bf16.msra.mxu0 %v11514_v34  ;;  %v11474_v34 = vld [vmem:[#allocation8 + $0x330] ss:$8 sps:$4 sm:$0xff]  }
 0xcca   : > { %10552 = vmatprep.subr.bf16.mxu0 %v12056_v32 }
 0xccc   : > { %9390 = vmatpush1.bf16.msra.mxu1 %v11423_v39 }
 0xccd   : > { %9391 = vmatprep.subr.bf16.mxu1 %v11428_v29  ;;  %10553 = vmatpush3.bf16.msra.mxu0 %v9530_v14  ;;  %v11477_v14 = vld [vmem:[#allocation8 + $0x340] ss:$8 sps:$4 sm:$0xff]  }
 0xcce   : > { %10523 = vmatprep.subr.bf16.mxu0 %v11516_v13  ;;  %v11482_v13 = vld [vmem:[#allocation8 + $0x354] ss:$8 sps:$4 sm:$0xff]  }
 0xcd0   : > { %9392 = vmatpush1.bf16.msra.mxu1 %v11426_v27  ;;  %10555 = vmatmul.mubr.msk.bf16.vlgmr.msra.gmra.mrb[60].mxu0 %vm615_vm1, %v15118_v3  ;;  %v11483_v3 = vld [vmem:[#allocation8 + $0x360] ss:$8 sps:$4 sm:$0xff]  }
 0xcd1   : > { %9393 = vmatprep.subr.bf16.mxu1 %v11431_v48  ;;  %10524 = vmatpush3.bf16.msra.mxu0 %v11517_v61  ;;  %v11480_v61 = vld [vmem:[#allocation8 + $0x350] ss:$8 sps:$4 sm:$0xff]  }
 0xcd2   : > { %10525 = vmatprep.subr.bf16.mxu0 %v11518_v17  ;;  %v11485_v17 = vld [vmem:[#allocation8 + $0x364] ss:$8 sps:$4 sm:$0xff]  }
 0xcd4   : > { %9394 = vmatpush1.bf16.msra.mxu1 %v11429_v57 }
 0xcd5   : > { %9395 = vmatprep.subr.bf16.mxu1 %v11434_v51  ;;  %10526 = vmatpush3.bf16.msra.mxu0 %v11519_v8  ;;  %v11488_v8 = vld [vmem:[#allocation8 + $0x374] ss:$8 sps:$4 sm:$0xff]  }
 0xcd6   : > { %10527 = vmatprep.subr.bf16.mxu0 %v11520_v38  ;;  %v11486_v38 = vld [vmem:[#allocation8 + $0x370] ss:$8 sps:$4 sm:$0xff]  }
 0xcd8   : > { %9396 = vmatpush1.bf16.msra.mxu1 %v11432_v6 }
 0xcd9   : > { %9397 = vmatprep.subr.bf16.mxu1 %v11437_v55  ;;  %10528 = vmatpush3.bf16.msra.mxu0 %v11521_v5  ;;  %v11491_v5 = vld [vmem:[#allocation8 + $0x384] ss:$8 sps:$4 sm:$0xff]  }
 0xcda   : > { %10529 = vmatprep.subr.bf16.mxu0 %v11522_v26  ;;  %v11489_v26 = vld [vmem:[#allocation8 + $0x380] ss:$8 sps:$4 sm:$0xff]  }
 0xcdc   : > { %9398 = vmatpush1.bf16.msra.mxu1 %v11435_v28 }
 0xcdd   : > { %9399 = vmatprep.subr.bf16.mxu1 %v11440_v40  ;;  %10530 = vmatpush3.bf16.msra.mxu0 %v11523_v24  ;;  %v11494_v24 = vld [vmem:[#allocation8 + $0x394] ss:$8 sps:$4 sm:$0xff]  }
 0xcde   : > { %10531 = vmatprep.subr.bf16.mxu0 %v11524_v11  ;;  %v11492_v11 = vld [vmem:[#allocation8 + $0x390] ss:$8 sps:$4 sm:$0xff]  }
 0xce0   : > { %9400 = vmatpush1.bf16.msra.mxu1 %v11438_v7 }
 0xce1   : > { %9401 = vmatprep.subr.bf16.mxu1 %v11443_v46  ;;  %10532 = vmatpush3.bf16.msra.mxu0 %v11525_v10  ;;  %v11497_v10 = vld [vmem:[#allocation8 + $0x3a4] ss:$8 sps:$4 sm:$0xff]  }
 0xce2   : > { %10533 = vmatprep.subr.bf16.mxu0 %v11526_v44  ;;  %v11495_v44 = vld [vmem:[#allocation8 + $0x3a0] ss:$8 sps:$4 sm:$0xff]  }
 0xce4   : > { %9402 = vmatpush1.bf16.msra.mxu1 %v11441_v54 }
 0xce5   : > { %9403 = vmatprep.subr.bf16.mxu1 %v11446_v59 }
 0xce8   : > { %9404 = vmatpush1.bf16.msra.mxu1 %v11444_v9 }
 0xce9   : > { %9405 = vmatprep.subr.bf16.mxu1 %v11449_v12 }
 0xcec   : > { %9406 = vmatpush1.bf16.msra.mxu1 %v11447_v33 }
 0xced   : > { %9407 = vmatprep.subr.bf16.mxu1 %v11452_v42 }
 0xcf0   : > { %9408 = vmatpush1.bf16.msra.mxu1 %v11450_v36 }
 0xcf1   : > { %9409 = vmatprep.subr.bf16.mxu1 %v11455_v60 }
 0xcf4   : > { %9410 = vmatpush1.bf16.msra.mxu1 %v11453_v25 }
 0xcf5   : > { %9411 = vmatprep.subr.bf16.mxu1 %v11458_v19 }
 0xcf8   : > { %9412 = vmatpush1.bf16.msra.mxu1 %v11456_v45 }
 0xcf9   : > { %9413 = vmatprep.subr.bf16.mxu1 %v11461_v58  ;;  %v11470_v58 = vld [vmem:[#allocation8 + $0x314] ss:$8 sps:$4 sm:$0xff]  }
 0xcfc   : > { %9414 = vmatpush1.bf16.msra.mxu1 %v11459_v31  ;;  %v11465_v31 = vld [vmem:[#allocation8 + $0x300] ss:$8 sps:$4 sm:$0xff]  }
 0xcfd   : > { %9415 = vmatprep.subr.bf16.mxu1 %v11464_v15  ;;  %v11468_v15 = vld [vmem:[#allocation8 + $0x310] ss:$8 sps:$4 sm:$0xff]  }
 0xd00   : > { %9416 = vmatpush1.bf16.msra.mxu1 %v11462_v43  ;;  %v11473_v43 = vld [vmem:[#allocation8 + $0x324] ss:$8 sps:$4 sm:$0xff]  }
 0xd01   : > { %9428 = vmatprep.subr.bf16.mxu1 %v11467_v0  ;;  %v11471_v0 = vld [vmem:[#allocation8 + $0x320] ss:$8 sps:$4 sm:$0xff]  }
 0xd96   : > { %v8923_v4 = vpop.f32.mrb[56].mxu1  ;;  %v8966_v37 = vpop.f32.mrb[56].mxu0 }
 0xd97   : > { %v8924_v1 = vadd.f32 %v8923_v4, %v8552_v56  ;;  %v8967_v47 = vadd.f32 %v8966_v37, %v8560_v62  ;;  %v8925_v16 = vpop.f32.mrb[57].mxu1  ;;  %v8968_v39 = vpop.f32.mrb[57].mxu0  ;;  %v11512_v4 = vld [vmem:[#allocation8 + $0x3f4] ss:$8 sps:$4 sm:$0xff]   ;;  %v11510_v37 = vld [vmem:[#allocation8 + $0x3f0] ss:$8 sps:$4 sm:$0xff]  }
 0xd98   : > { %v8926_v29 = vadd.f32 %v8925_v16, %v8556_v41  ;;  %v8969_v27 = vadd.f32 %v8968_v39, %v8564_v63  ;;  %v8927_v48 = vpop.f32.mrb[58].mxu1  ;;  %v8970_v57 = vpop.f32.mrb[58].mxu0  ;;  %v11529_v16 = vld [vmem:[%s14960_s10 + $0x30] sm:$0xff]   ;;  %v11530_v39 = vld [vmem:[%s14960_s10 + $0x78] sm:$0xff]  }
 0xd99   : > { %v8928_v51 = vadd.f32 %v8927_v48, %v8552_v56  ;;  %v8971_v6 = vadd.f32 %v8970_v57, %v8560_v62  ;;  %v8929_v55 = vpop.f32.mrb[59].mxu1  ;;  %v8972_v28 = vpop.f32.mrb[59].mxu0  ;;  %v8975_v46 = vmax.f32 %v8924_v1, 0.0  ;;  %v8977_v54 = vmax.f32 %v8967_v47, 0.0  ;;  %v11498_v56 = vld [vmem:[#allocation8 + $0x3b0] ss:$8 sps:$4 sm:$0xff]  }
 0xd9a   : > { %v8930_v40 = vadd.f32 %v8929_v55, %v8556_v41  ;;  %v8973_v7 = vadd.f32 %v8972_v28, %v8564_v63  ;;  %v8976_v12 = vmax.f32 %v8926_v29, 0.0  ;;  %v8978_v33 = vmax.f32 %v8969_v27, 0.0  ;;  %v11506_v62 = vld [vmem:[#allocation8 + $0x3d4] ss:$8 sps:$4 sm:$0xff]   ;;  %v11504_v41 = vld [vmem:[#allocation8 + $0x3d0] ss:$8 sps:$4 sm:$0xff]  }
 0xd9b   : > { %v8979_v59 = vmax.f32 %v8928_v51, 0.0  ;;  %v8981_v9 = vmax.f32 %v8971_v6, 0.0  ;;  %v11507_v63 = vld [vmem:[#allocation8 + $0x3e0] ss:$8 sps:$4 sm:$0xff]   ;;  %v11528_v47 = vld [vmem:[%s14960_s10 + $0x70] sm:$0xff]   ;;  %v11531_v29 = vld [vmem:[%s14960_s10 + $0x38] sm:$0xff]  }
 0xd9c   : > { %v8980_v42 = vmax.f32 %v8930_v40, 0.0  ;;  %v8982_v36 = vmax.f32 %v8973_v7, 0.0  ;;  %v11527_v1 = vld [vmem:[%s14960_s10 + $0x28] sm:$0xff]   ;;  %v10423_v6 = vld [vmem:[%s14958_s8 + $0x2] sm:$0x3] }
 0xd9d   : > { %v8983_v60 = vpack.c.bf16 %v8979_v59, %v8975_v46  ;;  %v14856_v25 = vpack.c.bf16 %v8981_v9, %v8977_v54  ;;  %10534 = vmatpush3.bf16.msra.mxu0 %v11527_v1  ;;  %v9058_v55 = vrot.slane %v10423_v6, %v15119_v52  ;;  %v9062_v28 = vrot.slane %v10423_v6, %v15122_v35  ;;  %v11532_v35 = vld [vmem:[%s14963_s13] sm:$0xff]  }
 0xd9e   : > { %v8984_v19 = vpack.c.bf16 %v8980_v42, %v8976_v12  ;;  %v8986_v45 = vpack.c.bf16 %v8982_v36, %v8978_v33  ;;  %10535 = vmatprep.subr.bf16.mxu0 %v11528_v47 }
 0xda0   : > { %9417 = vmatprep.mubr.bf16.mxu1 %v8984_v19 }
 0xda1   : > { %9418 = vmatmul.mubr.bf16.vlgmr.msra.gmra.mrb[60].mxu1 %v8983_v60  ;;  %10536 = vmatpush3.bf16.msra.mxu0 %v11529_v16 }
 0xda2   : > { %9429 = vmatpush1.bf16.msra.mxu1 %v11465_v31  ;;  %9460 = vmatprep.mubr.bf16.mxu1 %v8986_v45  ;;  %v10508_v31 = vld [vmem:[%s15125_s28] ss:$0 sm:$0xff]  ;;  %s11968_s28 = scalar_lea.vmem %s11967_s19, 512 }
 0xda3   : > { %9430 = vmatprep.subr.bf16.mxu1 %v11470_v58  ;;  %10537 = vmatprep.subr.bf16.mxu0 %v11530_v39  ;;  %v9566_v27 = vpop.f32.mrb[60].mxu0  ;;  %p11970_p9 = scmp.lt.s32.totalorder %s11968_s28, %s11962_s22 }
 0xda4   : > { %v10556_v48 = vpop.f32.mrb[61].mxu0 }
 0xda5   : > { %10538 = vmatpush3.bf16.msra.mxu0 %v11531_v29  ;;  %v9569_v57 = vpop.f32.mrb[62].mxu0  ;;  %p11971_p5 = por %p11970_p9, %p11969_p6 }
 0xda6   : > { %9431 = vmatpush1.bf16.msra.mxu1 %v11468_v15  ;;  %10558 = vmatprep.subr.bf16.mxu0 %v12056_v32  ;;  %v10557_v51 = vpop.f32.mrb[63].mxu0 }
 0xda7   : > { %9432 = vmatprep.subr.bf16.mxu1 %v11473_v43  ;;  %p11972_p0 = pnand %p11971_p5, %p11965_p1 }
 0xdaa   : > { %9433 = vmatpush1.bf16.msra.mxu1 %v11471_v0 }
 0xdab   : > { %9434 = vmatprep.subr.bf16.mxu1 %v11476_v30 }
 0xdae   : > { %9435 = vmatpush1.bf16.msra.mxu1 %v11474_v34 }
 0xdaf   : > { %9436 = vmatprep.subr.bf16.mxu1 %v11479_v49 }
 0xdb2   : > { %9437 = vmatpush1.bf16.msra.mxu1 %v11477_v14 }
 0xdb3   : > { %9438 = vmatprep.subr.bf16.mxu1 %v11482_v13  ;;  %v10509_v13 = vld [vmem:[%s15126_s17] ss:$0 sm:$0xff] }
 0xdb6   : > { %9439 = vmatpush1.bf16.msra.mxu1 %v11480_v61 }
 0xdb7   : > { %9440 = vmatprep.subr.bf16.mxu1 %v11485_v17 }
 0xdba   : > { %9441 = vmatpush1.bf16.msra.mxu1 %v11483_v3 }
 0xdbb   : > { %9442 = vmatprep.subr.bf16.mxu1 %v11488_v8 }
 0xdbe   : > { %9443 = vmatpush1.bf16.msra.mxu1 %v11486_v38 }
 0xdbf   : > { %9444 = vmatprep.subr.bf16.mxu1 %v11491_v5 }
 0xdc2   : > { %9445 = vmatpush1.bf16.msra.mxu1 %v11489_v26 }
 0xdc3   : > { %9446 = vmatprep.subr.bf16.mxu1 %v11494_v24 }
 0xdc6   : > { %9447 = vmatpush1.bf16.msra.mxu1 %v11492_v11 }
 0xdc7   : > { %9448 = vmatprep.subr.bf16.mxu1 %v11497_v10 }
 0xdca   : > { %9449 = vmatpush1.bf16.msra.mxu1 %v11495_v44 }
 0xdcb   : > { %9450 = vmatprep.subr.bf16.mxu1 %v11500_v20 }
 0xdce   : > { %9451 = vmatpush1.bf16.msra.mxu1 %v11498_v56 }
 0xdcf   : > { %9452 = vmatprep.subr.bf16.mxu1 %v11503_v18 }
 0xdd2   : > { %9453 = vmatpush1.bf16.msra.mxu1 %v11501_v50 }
 0xdd3   : > { %9454 = vmatprep.subr.bf16.mxu1 %v11506_v62 }
 0xdd6   : > { %9455 = vmatpush1.bf16.msra.mxu1 %v11504_v41 }
 0xdd7   : > { %9456 = vmatprep.subr.bf16.mxu1 %v11509_v2 }
 0xdda   : > { %9457 = vmatpush1.bf16.msra.mxu1 %v11507_v63 }
 0xddb   : > { %9458 = vmatprep.subr.bf16.mxu1 %v11512_v4 }
 0xdde   : > { %9459 = vmatpush1.bf16.msra.mxu1 %v11510_v37 }
 0xde1   : > { %9461 = vmatmul.mubr.bf16.vlgmr.msra.gmra.mrb[60].mxu1 %v14856_v25 }
 0xeb4   : > { %v9462_v40 = vpop.f32.mrb[60].mxu1 }
 0xeb5   : > { %v10570_v7 = vadd.f32 %v9462_v40, %v9058_v55  ;;  %v9464_v46 = vpop.f32.mrb[61].mxu1 }
 0xeb6   : > { %v10571_v54 = vadd.f32 %v9464_v46, %v9062_v28  ;;  %v9466_v59 = vpop.f32.mrb[62].mxu1 }
 0xeb7   : > { %v10572_v9 = vadd.f32 %v9466_v59, %v9058_v55  ;;  %v9468_v12 = vpop.f32.mrb[63].mxu1  ;;  %v9471_v42 = vadd.f32 %v10570_v7, %v14791_v53 }
 0xeb8   : > { %v10573_v33 = vadd.f32 %v9468_v12, %v9062_v28  ;;  %v9472_v60 = vadd.f32 %v10571_v54, %v14785_v23 }
 0xeb9   : > { %v9473_v36 = vadd.f32 %v10572_v9, %v14782_v21  ;;  %v11533_v21 = vld [vmem:[%s14963_s13 + $0x8] sm:$0xff]  }
 0xeba   : > { %v9474_v25 = vadd.f32 %v10573_v33, %v14788_v22 }
 0xebb   : > { %v9475_v19 = vpack.c.bf16 %v9473_v36, %v9471_v42 }
 0xebc   : > { %v9476_v52 = vpack.c.bf16 %v9474_v25, %v9472_v60 }
 0xebe   : > { %9701 = vmatprep.mubr.bf16.mxu0 %v9476_v52 }
 0xebf   : > { %9702 = vmatmul.mubr.bf16.vlgmr.msra.gmra.mrb[64].mxu0 %v9475_v19 }
 0xec0   : > { %10562 = vmatprep.mubr.msk.bf16.mxu0 %vm12057_vm12, %v12056_v32  ;;  %10559 = vmatpush3.bf16.msra.mxu0 %v11532_v35 }
 0xec1   : > { %10560 = vmatprep.subr.bf16.mxu0 %v12056_v32 }
 0xec4   : > { %10561 = vmatpush3.bf16.msra.mxu0 %v11533_v21 }
 0xf92   : > { %v10539_v23 = vpop.f32.mrb[64].mxu0 }
 0xf93   : > { %v10540_v22 = vpop.f32.mrb[65].mxu0 }
 0xf94   : > { %v10541_v53 = vadd.f32 %v10540_v22, %v10539_v23  ;;  %v10542_v45 = vpop.f32.mrb[66].mxu0 }
 0xf95   : > { %v10543_v58 = vpop.f32.mrb[67].mxu0 }
 0xf96   : > { %v9704_v15 = vadd.f32 %v10541_v53, %v9566_v27  ;;  %v10544_v43 = vadd.f32 %v10543_v58, %v10542_v45 }
 0xf98   : > { %v9717_v0 = vadd.f32 %v10508_v31, %v9704_v15  ;;  %v9707_v30 = vadd.f32 %v10544_v43, %v9569_v57 }
 0xf9a   : > { %v9718_v34 = vadd.f32 %v10508_v31, %v9707_v30  ;;  %v9719_v49 = vmax.f32 %v9717_v0, 0.0 }
 0xf9c   : > { %v9720_v14 = vmax.f32 %v9718_v34, 0.0 }
 0xf9e   : > { %v9721_v32 = vpack.c.bf16 %v9720_v14, %v9719_v49 }
 0xfa0   : > { %10563 = vmatmul.mubr.msk.bf16.vlgmr.msra.gmra.mrb[68].mxu0 %vm1880_vm2, %v9721_v32 }
0x1073   : > { %v9782_v61 = vpop.f32.mrb[68].mxu0 }
0x1074   : > { %v9783_v17 = vadd.f32 %v10509_v13, %v9782_v61  ;;  %v10564_v3 = vpop.f32.mrb[69].mxu0 }
0x1075   : > { %v9785_v8 = vpop.f32.mrb[70].mxu0 }
0x1076   : > { %9789 = vst [vmem:[%s561_s20] sm:$0xff] %v9783_v17  ;;  %v9786_v38 = vadd.f32 %v10509_v13, %v9785_v8  ;;  %v10565_v5 = vpop.f32.mrb[71].mxu0 }
0x1078   : > { %9790 = vst [vmem:[%s561_s20 + $0x8] sm:$0xff] %v9786_v38 }
0x1079   : > { %11975 = shalt.err (!%p11972_p0)
}
0x107a   : > { %s11976_s16 = scalar_lea.hbm %s14907_s30, 256  ;;  %s11980_s18 = scalar_lea.hbm %s15128_s15, 512 }
0x107b   : > { %p11977_p10 = scmp.ne.s32.totalorder %s14907_s30, %s11976_s16  ;;  %p11981_p4 = scmp.lt.u32.totalorder %s14907_s30, %s15128_s15 }
0x107c   : > { %p11982_p12 = scmp.lt.u32.totalorder %s11980_s18, %s11976_s16  ;;  %p11984_p8 = scmp.lt.u32.totalorder %s11976_s16, %s14907_s30 }
0x107d   : > { %p11978_p2 = pnand %p11977_p10, %p15129_p11 }
0x107e   : > { %p11983_p7 = por %p11982_p12, %p11981_p4 }
0x107f   : > { %p11979_p3 = pneg %p11978_p2 }
0x1080   : > { %p11985_p13 = por %p11984_p8, %p11983_p7 }
0x1082   : > { %p11986_p1 = pnand %p11985_p13, %p11979_p3 }
0x1084   : > { %11989 = shalt.err (!%p11986_p1)
}
0x1085   : > { %s12059_s12 = smov 128   ;;  %s12060_s21 = smov 8  }
0x1086   : > { %10602 = dma.vmem_to_hbm [thread:$0]  (%p15129_p11), %s14902_s26, 256, %s14907_s30, %s14909_s23, %s12059_s12, %s12059_s12, %s12060_s21  }
0x1087 PF: > { %s15130_s24 = sld [smem:[#allocation19_spill]]  ;;  %s15131_s22 = sld [smem:[#allocation16_spill]] }
0x1088   : > { %s15132_s14 = sld [smem:[#allocation23_spill]] }
0x108d   : > { %p10634_p6 = scmp.ge.s32.totalorder %s15130_s24, 2  ;;  %s9820_s19 = sand.u32 1, %s15131_s22  }
0x108e   : > { %p15133_p9 = scmp.ne.s32.totalorder %s15132_s14, 0  ;;  %s9821_s28 = scalar_lea.sflag [#allocation4], %s9820_s19 }
0x1090   : > { %p10621_p5 = pnand %p10634_p6, %p15133_p9 }
0x1092   : > { %12019 = dma.done.wait (!%p10621_p5), %s9821_s28, 256  }
0x1093   : > { %12021 = vsyncadd (!%p10621_p5), %s9821_s28, 4294967040  ;;  %s15134_s21 = sld [smem:[#allocation20_spill]]  ;;  %s15135_s18 = sld [smem:[#allocation17_spill]] }
0x1094   : > { %s15136_s19 = sld [smem:[#allocation18_spill]]  ;;  %s15137_s20 = sld [smem:[#allocation21_spill]] }
0x1099   : > { %p28_p0 = scmp.ge.s32.totalorder %s15134_s21, 4  }
0x109b   :  { %30 = sbr.rel (!%p28_p0) target bundleno = 10 (0xa), region = 142 }
0x10a2   :  { %9826 = vsyncpa [#allocation3], 1 }
0x10a3   :  { %9828 = vsyncpa [#allocation3 + $0x1], 1 }
0x10a4   :  { %9829 = vsyncpa [#allocation6], 1 }
0x10a5   :  { %9830 = vsyncpa [#allocation9], 1 }
0x10a6   :  { %9831 = vsyncpa [#allocation4], 1 }
0x10a7   :  { %9833 = vsyncpa [#allocation4 + $0x1], 1 }

</bundles_post_ra>
